<compile_context>
chip_gen: v6e
topology: v6e:2x2x1
jax: 0.10.0
libtpu: 0.0.40
codegen_flags: <defaults>
</compile_context>

<pallas_src>
import math
import functools

import jax
import jax.numpy as jnp
from jax.experimental import pallas as pl
from jax.experimental.pallas import tpu as pltpu

NEG_SLOPE = 0.01  # F.leaky_relu default


def _round_up(x, m):
    return ((x + m - 1) // m) * m


# ---------------------------------------------------------------------------
# Pallas kernels
# ---------------------------------------------------------------------------
def _conv_pool_lrelu_kernel(a_ref, w_ref, b_ref, o_ref):
    """Fused conv (as matmul) + bias + leaky_relu + 2x2 max-pool.

    a_ref: (4, tm, K) bf16 -- im2col rows for the 4 pool quadrants
    w_ref: (K, N)     bf16
    b_ref: (1, N)     f32
    o_ref: (tm, N)    f32  -- pooled conv output, rows in (n, h/2, w/2) order
    """
    w = w_ref[...]
    b = b_ref[...]

    def quad(q):
        acc = jnp.dot(a_ref[q], w, preferred_element_type=jnp.float32) + b
        return jnp.where(acc >= 0, acc, NEG_SLOPE * acc)

    o_ref[...] = jnp.maximum(jnp.maximum(quad(0), quad(1)),
                             jnp.maximum(quad(2), quad(3)))


def _conv_lrelu_kernel(a_ref, w_ref, b_ref, o_ref):
    """Fused conv (as matmul) + bias + leaky_relu (no pool)."""
    acc = jnp.dot(a_ref[...], w_ref[...],
                  preferred_element_type=jnp.float32) + b_ref[...]
    o_ref[...] = jnp.where(acc >= 0, acc, NEG_SLOPE * acc)


# ---------------------------------------------------------------------------
# Pallas wrappers (im2col glue in plain JAX, hot path in the kernels above)
# ---------------------------------------------------------------------------
def conv_pool_lrelu(x_nhwc, w_mat, b_row, *, stride, pad, ksize, n_tiles=1):
    """conv2d + bias + leaky_relu + 2x2 max-pool (floor mode). NHWC in/out."""
    N, H, W, Cin = x_nhwc.shape
    K, Cout = w_mat.shape
    Ho = (H + 2 * pad - ksize) // stride + 1
    Wo = (W + 2 * pad - ksize) // stride + 1
    Hh, Wh = Ho // 2, Wo // 2          # pooled spatial size (floor mode)
    s2 = 2 * stride

    xp = jnp.pad(x_nhwc, ((0, 0), (pad, pad), (pad, pad), (0, 0)))
    quads = []
    for ph in range(2):                # pool-window row offset
        for pw in range(2):            # pool-window col offset
            patches = []
            for kh in range(ksize):
                for kw in range(ksize):
                    r0 = stride * ph + kh
                    c0 = stride * pw + kw
                    patches.append(xp[:, r0:r0 + s2 * Hh:s2,
                                       c0:c0 + s2 * Wh:s2, :])
            # patch feature order (kh, kw, cin) matches the weight layout
            quads.append(jnp.concatenate(patches, axis=-1)
                         .reshape(N * Hh * Wh, K))
    a = jnp.stack(quads, axis=0).astype(jnp.bfloat16)        # (4, Mq, K)

    Mq = N * Hh * Wh
    tm = _round_up(pl.cdiv(Mq, n_tiles), 8)
    Mqp = tm * n_tiles
    if Mqp != Mq:
        a = jnp.pad(a, ((0, 0), (0, Mqp - Mq), (0, 0)))

    out = pl.pallas_call(
        _conv_pool_lrelu_kernel,
        out_shape=jax.ShapeDtypeStruct((Mqp, Cout), jnp.float32),
        grid=(n_tiles,),
        in_specs=[
            pl.BlockSpec((4, tm, K), lambda i: (0, i, 0)),
            pl.BlockSpec((K, Cout), lambda i: (0, 0)),
            pl.BlockSpec((1, Cout), lambda i: (0, 0)),
        ],
        out_specs=pl.BlockSpec((tm, Cout), lambda i: (i, 0)),
        compiler_params=pltpu.CompilerParams(
            dimension_semantics=("parallel",)),
    )(a, w_mat, b_row)
    return out[:Mq].reshape(N, Hh, Wh, Cout)


def conv_lrelu(x_nhwc, w_mat, b_row, *, stride, pad, ksize):
    """conv2d + bias + leaky_relu (no pool). NHWC in/out."""
    N, H, W, Cin = x_nhwc.shape
    K, Cout = w_mat.shape
    Ho = (H + 2 * pad - ksize) // stride + 1
    Wo = (W + 2 * pad - ksize) // stride + 1

    xp = jnp.pad(x_nhwc, ((0, 0), (pad, pad), (pad, pad), (0, 0)))
    patches = []
    for kh in range(ksize):
        for kw in range(ksize):
            patches.append(xp[:, kh:kh + stride * Ho:stride,
                               kw:kw + stride * Wo:stride, :])
    a = (jnp.concatenate(patches, axis=-1)
         .reshape(N * Ho * Wo, K).astype(jnp.bfloat16))

    M = N * Ho * Wo
    Mp = _round_up(M, 8)
    if Mp != M:
        a = jnp.pad(a, ((0, Mp - M), (0, 0)))

    out = pl.pallas_call(
        _conv_lrelu_kernel,
        out_shape=jax.ShapeDtypeStruct((Mp, Cout), jnp.float32),
        grid=(1,),
        in_specs=[
            pl.BlockSpec((Mp, K), lambda i: (0, 0)),
            pl.BlockSpec((K, Cout), lambda i: (0, 0)),
            pl.BlockSpec((1, Cout), lambda i: (0, 0)),
        ],
        out_specs=pl.BlockSpec((Mp, Cout), lambda i: (0, 0)),
        compiler_params=pltpu.CompilerParams(
            dimension_semantics=("arbitrary",)),
    )(a, w_mat, b_row)
    return out[:M].reshape(N, Ho, Wo, Cout)


# ---------------------------------------------------------------------------
# Parameter init (mirrors weights_init: kaiming_uniform fan_in, leaky_relu gain,
# bias = 0.01) and one-time conversion to the kernel layout.
# ---------------------------------------------------------------------------
def _kaiming_uniform_conv(key, cout, cin, ksize):
    fan_in = cin * ksize * ksize
    bound = math.sqrt(6.0 / fan_in)    # gain sqrt(2) * sqrt(3 / fan_in)
    return jax.random.uniform(key, (cout, cin, ksize, ksize), jnp.float32,
                              minval=-bound, maxval=bound)


def init_raw_params(key, input_dim=3, out_dim=256):
    k1, k2, k3, k4 = jax.random.split(key, 4)
    return {
        "w1": _kaiming_uniform_conv(k1, 64, input_dim, 5),
        "b1": jnp.full((64,), 0.01, jnp.float32),
        "w2": _kaiming_uniform_conv(k2, 128, 64, 5),
        "b2": jnp.full((128,), 0.01, jnp.float32),
        "w3": _kaiming_uniform_conv(k3, 256, 128, 3),
        "b3": jnp.full((256,), 0.01, jnp.float32),
        "w4": _kaiming_uniform_conv(k4, out_dim, 256, 3),
        "b4": jnp.full((out_dim,), 0.01, jnp.float32),
    }


def prepare_params(raw):
    """One-time: (Cout,Cin,KH,KW) f32 -> (KH*KW*Cin, Cout) bf16, bias -> (1,Cout) f32."""
    out = {}
    for idx in (1, 2, 3, 4):
        w = raw[f"w{idx}"]
        cout, cin, kh, kw = w.shape
        out[f"w{idx}"] = (jnp.transpose(w, (2, 3, 1, 0))
                          .reshape(kh * kw * cin, cout).astype(jnp.bfloat16))
        out[f"b{idx}"] = raw[f"b{idx}"].reshape(1, cout).astype(jnp.float32)
    return out


# ---------------------------------------------------------------------------
# Full forward pass (eval mode: MixStyle == identity)
# ---------------------------------------------------------------------------
@functools.partial(jax.jit, static_argnames=("out_dim",))
def mixstyle_encoder_forward(x_nchw, params, out_dim=256):
    x = jnp.transpose(x_nchw, (0, 2, 3, 1))                  # NCHW -> NHWC
    # conv + leaky_relu + mixstyle(identity in eval) + 2x2 max-pool, fused.
    x = conv_pool_lrelu(x, params["w1"], params["b1"],
                        stride=3, pad=2, ksize=5, n_tiles=2)
    x = conv_pool_lrelu(x, params["w2"], params["b2"],
                        stride=4, pad=2, ksize=5, n_tiles=1)
    x = conv_pool_lrelu(x, params["w3"], params["b3"],
                        stride=2, pad=1, ksize=3, n_tiles=1)
    x = conv_lrelu(x, params["w4"], params["b4"], stride=2, pad=1, ksize=3)
    # match PyTorch x.view(-1, out_dim) on the NCHW tensor (spatial is 1x1 here)
    x_nchw_out = jnp.transpose(x, (0, 3, 1, 2))
    return x_nchw_out.reshape(-1, out_dim)


# ---------------------------------------------------------------------------
# Pure-JAX f32 reference (for a loose numerical sanity check vs bf16 kernels)
# ---------------------------------------------------------------------------
def reference_forward(x_nchw, raw, out_dim=256):
    lrelu = lambda v: jnp.where(v >= 0, v, NEG_SLOPE * v)

    def conv(x, w, b, stride, pad):
        y = jax.lax.conv_general_dilated(
            x, w, window_strides=(stride, stride),
            padding=((pad, pad), (pad, pad)),
            dimension_numbers=("NCHW", "OIHW", "NCHW"))
        return y + b[None, :, None, None]

    def pool(x):
        return jax.lax.reduce_window(x, -jnp.inf, jax.lax.max,
                                     (1, 1, 2, 2), (1, 1, 2, 2), "VALID")

    x = pool(lrelu(conv(x_nchw, raw["w1"], raw["b1"], 3, 2)))
    x = pool(lrelu(conv(x, raw["w2"], raw["b2"], 4, 2)))
    x = pool(lrelu(conv(x, raw["w3"], raw["b3"], 2, 1)))
    x = lrelu(conv(x, raw["w4"], raw["b4"], 2, 1))
    return x.reshape(-1, out_dim)


if __name__ == "__main__":
    key = jax.random.PRNGKey(0)
    kx, kp = jax.random.split(key)
    # 128x128 input -> conv/pool chain ends at 1x1 spatial -> (B, 256)
    x = jax.random.normal(kx, (2, 3, 128, 128), jnp.float32)
    raw = init_raw_params(kp)
    params = prepare_params(raw)

    out = mixstyle_encoder_forward(x, params)
    out = jax.block_until_ready(out)
    assert out.shape == (2, 256), out.shape
    assert bool(jnp.all(jnp.isfinite(out)))

    # loose check against a pure-JAX f32 reference (kernel uses bf16 MXU operands)
    ref = jax.block_until_ready(reference_forward(x, raw))
    max_err = float(jnp.max(jnp.abs(out - ref)))
    assert bool(jnp.allclose(out, ref, rtol=0.1, atol=0.1)), max_err

    print("KERNEL_OK")
</pallas_src>

<mosaic_0001>
module attributes {stable_mosaic.version = 11 : i64} {
  func.func @_conv_pool_lrelu_kernel(%arg0: i32, %arg1: memref<4x448x75xbf16, #tpu.memory_space<vmem>>, %arg2: memref<75x64xbf16, #tpu.memory_space<vmem>>, %arg3: memref<1x64xf32, #tpu.memory_space<vmem>>, %arg4: memref<448x64xf32, #tpu.memory_space<vmem>>) attributes {dimension_semantics = [#tpu.dimension_semantics<parallel>], iteration_bounds = array<i64: 2>, scalar_prefetch = 0 : i64, scratch_operands = 0 : i64, tpu.core_type = #tpu.core_type<tc>, window_params = [{transform_indices = @transform_0, window_bounds = array<i64: 4, 448, 75>}, {pipeline_mode = #tpu.pipeline_mode<synchronous>, transform_indices = @transform_1, window_bounds = array<i64: 75, 64>}, {pipeline_mode = #tpu.pipeline_mode<synchronous>, transform_indices = @transform_2, window_bounds = array<i64: 1, 64>}, {transform_indices = @transform_3, window_bounds = array<i64: 448, 64>}]} {
    %c0 = arith.constant 0 : index
    %c0_0 = arith.constant 0 : index
    %0 = vector.load %arg2[%c0, %c0_0] : memref<75x64xbf16, #tpu.memory_space<vmem>>, vector<75x64xbf16>
    %c0_1 = arith.constant 0 : index
    %c0_2 = arith.constant 0 : index
    %1 = vector.load %arg3[%c0_1, %c0_2] : memref<1x64xf32, #tpu.memory_space<vmem>>, vector<1x64xf32>
    %c0_3 = arith.constant 0 : index
    %c0_4 = arith.constant 0 : index
    %c0_5 = arith.constant 0 : index
    %2 = vector.load %arg1[%c0_3, %c0_4, %c0_5] : memref<4x448x75xbf16, #tpu.memory_space<vmem>>, vector<1x448x75xbf16>
    %3 = vector.shape_cast %2 : vector<1x448x75xbf16> to vector<448x75xbf16>
    %cst = arith.constant dense<0.000000e+00> : vector<448x64xf32>
    %4 = tpu.matmul %3, %0, %cst {dimension_numbers = #tpu.dot_dimension_numbers<[1], [0], [0], [1], [0, 0, 1, 1], [], []>} : vector<448x75xbf16>, vector<75x64xbf16>, vector<448x64xf32> -> vector<448x64xf32>
    %5 = vector.broadcast %1 : vector<1x64xf32> to vector<448x64xf32>
    %6 = arith.addf %4, %5 : vector<448x64xf32>
    %cst_6 = arith.constant 0.000000e+00 : f32
    %7 = vector.broadcast %cst_6 : f32 to vector<448x64xf32>
    %8 = arith.cmpf oge, %6, %7 : vector<448x64xf32>
    %cst_7 = arith.constant 0.00999999977 : f32
    %9 = vector.broadcast %cst_7 : f32 to vector<448x64xf32>
    %10 = arith.mulf %9, %6 : vector<448x64xf32>
    %11 = arith.select %8, %6, %10 : vector<448x64xi1>, vector<448x64xf32>
    %c1 = arith.constant 1 : index
    %c0_8 = arith.constant 0 : index
    %c0_9 = arith.constant 0 : index
    %12 = vector.load %arg1[%c1, %c0_8, %c0_9] : memref<4x448x75xbf16, #tpu.memory_space<vmem>>, vector<1x448x75xbf16>
    %13 = vector.shape_cast %12 : vector<1x448x75xbf16> to vector<448x75xbf16>
    %cst_10 = arith.constant dense<0.000000e+00> : vector<448x64xf32>
    %14 = tpu.matmul %13, %0, %cst_10 {dimension_numbers = #tpu.dot_dimension_numbers<[1], [0], [0], [1], [0, 0, 1, 1], [], []>} : vector<448x75xbf16>, vector<75x64xbf16>, vector<448x64xf32> -> vector<448x64xf32>
    %15 = vector.broadcast %1 : vector<1x64xf32> to vector<448x64xf32>
    %16 = arith.addf %14, %15 : vector<448x64xf32>
    %cst_11 = arith.constant 0.000000e+00 : f32
    %17 = vector.broadcast %cst_11 : f32 to vector<448x64xf32>
    %18 = arith.cmpf oge, %16, %17 : vector<448x64xf32>
    %cst_12 = arith.constant 0.00999999977 : f32
    %19 = vector.broadcast %cst_12 : f32 to vector<448x64xf32>
    %20 = arith.mulf %19, %16 : vector<448x64xf32>
    %21 = arith.select %18, %16, %20 : vector<448x64xi1>, vector<448x64xf32>
    %22 = arith.maximumf %11, %21 : vector<448x64xf32>
    %c2 = arith.constant 2 : index
    %c0_13 = arith.constant 0 : index
    %c0_14 = arith.constant 0 : index
    %23 = vector.load %arg1[%c2, %c0_13, %c0_14] : memref<4x448x75xbf16, #tpu.memory_space<vmem>>, vector<1x448x75xbf16>
    %24 = vector.shape_cast %23 : vector<1x448x75xbf16> to vector<448x75xbf16>
    %cst_15 = arith.constant dense<0.000000e+00> : vector<448x64xf32>
    %25 = tpu.matmul %24, %0, %cst_15 {dimension_numbers = #tpu.dot_dimension_numbers<[1], [0], [0], [1], [0, 0, 1, 1], [], []>} : vector<448x75xbf16>, vector<75x64xbf16>, vector<448x64xf32> -> vector<448x64xf32>
    %26 = vector.broadcast %1 : vector<1x64xf32> to vector<448x64xf32>
    %27 = arith.addf %25, %26 : vector<448x64xf32>
    %cst_16 = arith.constant 0.000000e+00 : f32
    %28 = vector.broadcast %cst_16 : f32 to vector<448x64xf32>
    %29 = arith.cmpf oge, %27, %28 : vector<448x64xf32>
    %cst_17 = arith.constant 0.00999999977 : f32
    %30 = vector.broadcast %cst_17 : f32 to vector<448x64xf32>
    %31 = arith.mulf %30, %27 : vector<448x64xf32>
    %32 = arith.select %29, %27, %31 : vector<448x64xi1>, vector<448x64xf32>
    %c3 = arith.constant 3 : index
    %c0_18 = arith.constant 0 : index
    %c0_19 = arith.constant 0 : index
    %33 = vector.load %arg1[%c3, %c0_18, %c0_19] : memref<4x448x75xbf16, #tpu.memory_space<vmem>>, vector<1x448x75xbf16>
    %34 = vector.shape_cast %33 : vector<1x448x75xbf16> to vector<448x75xbf16>
    %cst_20 = arith.constant dense<0.000000e+00> : vector<448x64xf32>
    %35 = tpu.matmul %34, %0, %cst_20 {dimension_numbers = #tpu.dot_dimension_numbers<[1], [0], [0], [1], [0, 0, 1, 1], [], []>} : vector<448x75xbf16>, vector<75x64xbf16>, vector<448x64xf32> -> vector<448x64xf32>
    %36 = vector.broadcast %1 : vector<1x64xf32> to vector<448x64xf32>
    %37 = arith.addf %35, %36 : vector<448x64xf32>
    %cst_21 = arith.constant 0.000000e+00 : f32
    %38 = vector.broadcast %cst_21 : f32 to vector<448x64xf32>
    %39 = arith.cmpf oge, %37, %38 : vector<448x64xf32>
    %cst_22 = arith.constant 0.00999999977 : f32
    %40 = vector.broadcast %cst_22 : f32 to vector<448x64xf32>
    %41 = arith.mulf %40, %37 : vector<448x64xf32>
    %42 = arith.select %39, %37, %41 : vector<448x64xi1>, vector<448x64xf32>
    %43 = arith.maximumf %32, %42 : vector<448x64xf32>
    %44 = arith.maximumf %22, %43 : vector<448x64xf32>
    %c0_23 = arith.constant 0 : index
    %c0_24 = arith.constant 0 : index
    %45 = vector.load %arg4[%c0_23, %c0_24] : memref<448x64xf32, #tpu.memory_space<vmem>>, vector<448x64xf32>
    tpu.vector_store %arg4[%c0_23, %c0_24], %44 {strides = array<i32>} : memref<448x64xf32, #tpu.memory_space<vmem>>, vector<448x64xf32>,
    return
  }
  func.func @transform_0(%arg0: i32) -> (i32, i32, i32) {
    %c0_i32 = arith.constant 0 : i32
    %c0_i32_0 = arith.constant 0 : i32
    %c0_i32_1 = arith.constant 0 : i32
    return %c0_i32, %arg0, %c0_i32_0 : i32, i32, i32
  }
  func.func @transform_1(%arg0: i32) -> (i32, i32) {
    %c0_i32 = arith.constant 0 : i32
    %c0_i32_0 = arith.constant 0 : i32
    %c0_i32_1 = arith.constant 0 : i32
    return %c0_i32, %c0_i32_0 : i32, i32
  }
  func.func @transform_2(%arg0: i32) -> (i32, i32) {
    %c0_i32 = arith.constant 0 : i32
    %c0_i32_0 = arith.constant 0 : i32
    %c0_i32_1 = arith.constant 0 : i32
    return %c0_i32, %c0_i32_0 : i32, i32
  }
  func.func @transform_3(%arg0: i32) -> (i32, i32) {
    %c0_i32 = arith.constant 0 : i32
    %c0_i32_0 = arith.constant 0 : i32
    return %arg0, %c0_i32 : i32, i32
  }
}

module attributes {stable_mosaic.version = 11 : i64} {
  func.func @_conv_pool_lrelu_kernel(%arg0: i32, %arg1: memref<4x24x1600xbf16, #tpu.memory_space<vmem>>, %arg2: memref<1600x128xbf16, #tpu.memory_space<vmem>>, %arg3: memref<1x128xf32, #tpu.memory_space<vmem>>, %arg4: memref<24x128xf32, #tpu.memory_space<vmem>>) attributes {dimension_semantics = [#tpu.dimension_semantics<parallel>], iteration_bounds = array<i64: 1>, scalar_prefetch = 0 : i64, scratch_operands = 0 : i64, tpu.core_type = #tpu.core_type<tc>, window_params = [{transform_indices = @transform_0, window_bounds = array<i64: 4, 24, 1600>}, {pipeline_mode = #tpu.pipeline_mode<synchronous>, transform_indices = @transform_1, window_bounds = array<i64: 1600, 128>}, {pipeline_mode = #tpu.pipeline_mode<synchronous>, transform_indices = @transform_2, window_bounds = array<i64: 1, 128>}, {transform_indices = @transform_3, window_bounds = array<i64: 24, 128>}]} {
    %c0 = arith.constant 0 : index
    %c0_0 = arith.constant 0 : index
    %0 = vector.load %arg2[%c0, %c0_0] : memref<1600x128xbf16, #tpu.memory_space<vmem>>, vector<1600x128xbf16>
    %c0_1 = arith.constant 0 : index
    %c0_2 = arith.constant 0 : index
    %1 = vector.load %arg3[%c0_1, %c0_2] : memref<1x128xf32, #tpu.memory_space<vmem>>, vector<1x128xf32>
    %c0_3 = arith.constant 0 : index
    %c0_4 = arith.constant 0 : index
    %c0_5 = arith.constant 0 : index
    %2 = vector.load %arg1[%c0_3, %c0_4, %c0_5] : memref<4x24x1600xbf16, #tpu.memory_space<vmem>>, vector<1x24x1600xbf16>
    %3 = vector.shape_cast %2 : vector<1x24x1600xbf16> to vector<24x1600xbf16>
    %cst = arith.constant dense<0.000000e+00> : vector<24x128xf32>
    %4 = tpu.matmul %3, %0, %cst {dimension_numbers = #tpu.dot_dimension_numbers<[1], [0], [0], [1], [0, 0, 1, 1], [], []>} : vector<24x1600xbf16>, vector<1600x128xbf16>, vector<24x128xf32> -> vector<24x128xf32>
    %5 = vector.broadcast %1 : vector<1x128xf32> to vector<24x128xf32>
    %6 = arith.addf %4, %5 : vector<24x128xf32>
    %cst_6 = arith.constant 0.000000e+00 : f32
    %7 = vector.broadcast %cst_6 : f32 to vector<24x128xf32>
    %8 = arith.cmpf oge, %6, %7 : vector<24x128xf32>
    %cst_7 = arith.constant 0.00999999977 : f32
    %9 = vector.broadcast %cst_7 : f32 to vector<24x128xf32>
    %10 = arith.mulf %9, %6 : vector<24x128xf32>
    %11 = arith.select %8, %6, %10 : vector<24x128xi1>, vector<24x128xf32>
    %c1 = arith.constant 1 : index
    %c0_8 = arith.constant 0 : index
    %c0_9 = arith.constant 0 : index
    %12 = vector.load %arg1[%c1, %c0_8, %c0_9] : memref<4x24x1600xbf16, #tpu.memory_space<vmem>>, vector<1x24x1600xbf16>
    %13 = vector.shape_cast %12 : vector<1x24x1600xbf16> to vector<24x1600xbf16>
    %cst_10 = arith.constant dense<0.000000e+00> : vector<24x128xf32>
    %14 = tpu.matmul %13, %0, %cst_10 {dimension_numbers = #tpu.dot_dimension_numbers<[1], [0], [0], [1], [0, 0, 1, 1], [], []>} : vector<24x1600xbf16>, vector<1600x128xbf16>, vector<24x128xf32> -> vector<24x128xf32>
    %15 = vector.broadcast %1 : vector<1x128xf32> to vector<24x128xf32>
    %16 = arith.addf %14, %15 : vector<24x128xf32>
    %cst_11 = arith.constant 0.000000e+00 : f32
    %17 = vector.broadcast %cst_11 : f32 to vector<24x128xf32>
    %18 = arith.cmpf oge, %16, %17 : vector<24x128xf32>
    %cst_12 = arith.constant 0.00999999977 : f32
    %19 = vector.broadcast %cst_12 : f32 to vector<24x128xf32>
    %20 = arith.mulf %19, %16 : vector<24x128xf32>
    %21 = arith.select %18, %16, %20 : vector<24x128xi1>, vector<24x128xf32>
    %22 = arith.maximumf %11, %21 : vector<24x128xf32>
    %c2 = arith.constant 2 : index
    %c0_13 = arith.constant 0 : index
    %c0_14 = arith.constant 0 : index
    %23 = vector.load %arg1[%c2, %c0_13, %c0_14] : memref<4x24x1600xbf16, #tpu.memory_space<vmem>>, vector<1x24x1600xbf16>
    %24 = vector.shape_cast %23 : vector<1x24x1600xbf16> to vector<24x1600xbf16>
    %cst_15 = arith.constant dense<0.000000e+00> : vector<24x128xf32>
    %25 = tpu.matmul %24, %0, %cst_15 {dimension_numbers = #tpu.dot_dimension_numbers<[1], [0], [0], [1], [0, 0, 1, 1], [], []>} : vector<24x1600xbf16>, vector<1600x128xbf16>, vector<24x128xf32> -> vector<24x128xf32>
    %26 = vector.broadcast %1 : vector<1x128xf32> to vector<24x128xf32>
    %27 = arith.addf %25, %26 : vector<24x128xf32>
    %cst_16 = arith.constant 0.000000e+00 : f32
    %28 = vector.broadcast %cst_16 : f32 to vector<24x128xf32>
    %29 = arith.cmpf oge, %27, %28 : vector<24x128xf32>
    %cst_17 = arith.constant 0.00999999977 : f32
    %30 = vector.broadcast %cst_17 : f32 to vector<24x128xf32>
    %31 = arith.mulf %30, %27 : vector<24x128xf32>
    %32 = arith.select %29, %27, %31 : vector<24x128xi1>, vector<24x128xf32>
    %c3 = arith.constant 3 : index
    %c0_18 = arith.constant 0 : index
    %c0_19 = arith.constant 0 : index
    %33 = vector.load %arg1[%c3, %c0_18, %c0_19] : memref<4x24x1600xbf16, #tpu.memory_space<vmem>>, vector<1x24x1600xbf16>
    %34 = vector.shape_cast %33 : vector<1x24x1600xbf16> to vector<24x1600xbf16>
    %cst_20 = arith.constant dense<0.000000e+00> : vector<24x128xf32>
    %35 = tpu.matmul %34, %0, %cst_20 {dimension_numbers = #tpu.dot_dimension_numbers<[1], [0], [0], [1], [0, 0, 1, 1], [], []>} : vector<24x1600xbf16>, vector<1600x128xbf16>, vector<24x128xf32> -> vector<24x128xf32>
    %36 = vector.broadcast %1 : vector<1x128xf32> to vector<24x128xf32>
    %37 = arith.addf %35, %36 : vector<24x128xf32>
    %cst_21 = arith.constant 0.000000e+00 : f32
    %38 = vector.broadcast %cst_21 : f32 to vector<24x128xf32>
    %39 = arith.cmpf oge, %37, %38 : vector<24x128xf32>
    %cst_22 = arith.constant 0.00999999977 : f32
    %40 = vector.broadcast %cst_22 : f32 to vector<24x128xf32>
    %41 = arith.mulf %40, %37 : vector<24x128xf32>
    %42 = arith.select %39, %37, %41 : vector<24x128xi1>, vector<24x128xf32>
    %43 = arith.maximumf %32, %42 : vector<24x128xf32>
    %44 = arith.maximumf %22, %43 : vector<24x128xf32>
    %c0_23 = arith.constant 0 : index
    %c0_24 = arith.constant 0 : index
    %45 = vector.load %arg4[%c0_23, %c0_24] : memref<24x128xf32, #tpu.memory_space<vmem>>, vector<24x128xf32>
    tpu.vector_store %arg4[%c0_23, %c0_24], %44 {strides = array<i32>} : memref<24x128xf32, #tpu.memory_space<vmem>>, vector<24x128xf32>,
    return
  }
  func.func @transform_0(%arg0: i32) -> (i32, i32, i32) {
    %c0_i32 = arith.constant 0 : i32
    %c0_i32_0 = arith.constant 0 : i32
    %c0_i32_1 = arith.constant 0 : i32
    return %c0_i32, %arg0, %c0_i32_0 : i32, i32, i32
  }
  func.func @transform_1(%arg0: i32) -> (i32, i32) {
    %c0_i32 = arith.constant 0 : i32
    %c0_i32_0 = arith.constant 0 : i32
    %c0_i32_1 = arith.constant 0 : i32
    return %c0_i32, %c0_i32_0 : i32, i32
  }
  func.func @transform_2(%arg0: i32) -> (i32, i32) {
    %c0_i32 = arith.constant 0 : i32
    %c0_i32_0 = arith.constant 0 : i32
    %c0_i32_1 = arith.constant 0 : i32
    return %c0_i32, %c0_i32_0 : i32, i32
  }
  func.func @transform_3(%arg0: i32) -> (i32, i32) {
    %c0_i32 = arith.constant 0 : i32
    %c0_i32_0 = arith.constant 0 : i32
    return %arg0, %c0_i32 : i32, i32
  }
}

module attributes {stable_mosaic.version = 11 : i64} {
  func.func @_conv_pool_lrelu_kernel(%arg0: i32, %arg1: memref<4x8x1152xbf16, #tpu.memory_space<vmem>>, %arg2: memref<1152x256xbf16, #tpu.memory_space<vmem>>, %arg3: memref<1x256xf32, #tpu.memory_space<vmem>>, %arg4: memref<8x256xf32, #tpu.memory_space<vmem>>) attributes {dimension_semantics = [#tpu.dimension_semantics<parallel>], iteration_bounds = array<i64: 1>, scalar_prefetch = 0 : i64, scratch_operands = 0 : i64, tpu.core_type = #tpu.core_type<tc>, window_params = [{transform_indices = @transform_0, window_bounds = array<i64: 4, 8, 1152>}, {pipeline_mode = #tpu.pipeline_mode<synchronous>, transform_indices = @transform_1, window_bounds = array<i64: 1152, 256>}, {pipeline_mode = #tpu.pipeline_mode<synchronous>, transform_indices = @transform_2, window_bounds = array<i64: 1, 256>}, {transform_indices = @transform_3, window_bounds = array<i64: 8, 256>}]} {
    %c0 = arith.constant 0 : index
    %c0_0 = arith.constant 0 : index
    %0 = vector.load %arg2[%c0, %c0_0] : memref<1152x256xbf16, #tpu.memory_space<vmem>>, vector<1152x256xbf16>
    %c0_1 = arith.constant 0 : index
    %c0_2 = arith.constant 0 : index
    %1 = vector.load %arg3[%c0_1, %c0_2] : memref<1x256xf32, #tpu.memory_space<vmem>>, vector<1x256xf32>
    %c0_3 = arith.constant 0 : index
    %c0_4 = arith.constant 0 : index
    %c0_5 = arith.constant 0 : index
    %2 = vector.load %arg1[%c0_3, %c0_4, %c0_5] : memref<4x8x1152xbf16, #tpu.memory_space<vmem>>, vector<1x8x1152xbf16>
    %3 = vector.shape_cast %2 : vector<1x8x1152xbf16> to vector<8x1152xbf16>
    %cst = arith.constant dense<0.000000e+00> : vector<8x256xf32>
    %4 = tpu.matmul %3, %0, %cst {dimension_numbers = #tpu.dot_dimension_numbers<[1], [0], [0], [1], [0, 0, 1, 1], [], []>} : vector<8x1152xbf16>, vector<1152x256xbf16>, vector<8x256xf32> -> vector<8x256xf32>
    %5 = vector.broadcast %1 : vector<1x256xf32> to vector<8x256xf32>
    %6 = arith.addf %4, %5 : vector<8x256xf32>
    %cst_6 = arith.constant 0.000000e+00 : f32
    %7 = vector.broadcast %cst_6 : f32 to vector<8x256xf32>
    %8 = arith.cmpf oge, %6, %7 : vector<8x256xf32>
    %cst_7 = arith.constant 0.00999999977 : f32
    %9 = vector.broadcast %cst_7 : f32 to vector<8x256xf32>
    %10 = arith.mulf %9, %6 : vector<8x256xf32>
    %11 = arith.select %8, %6, %10 : vector<8x256xi1>, vector<8x256xf32>
    %c1 = arith.constant 1 : index
    %c0_8 = arith.constant 0 : index
    %c0_9 = arith.constant 0 : index
    %12 = vector.load %arg1[%c1, %c0_8, %c0_9] : memref<4x8x1152xbf16, #tpu.memory_space<vmem>>, vector<1x8x1152xbf16>
    %13 = vector.shape_cast %12 : vector<1x8x1152xbf16> to vector<8x1152xbf16>
    %cst_10 = arith.constant dense<0.000000e+00> : vector<8x256xf32>
    %14 = tpu.matmul %13, %0, %cst_10 {dimension_numbers = #tpu.dot_dimension_numbers<[1], [0], [0], [1], [0, 0, 1, 1], [], []>} : vector<8x1152xbf16>, vector<1152x256xbf16>, vector<8x256xf32> -> vector<8x256xf32>
    %15 = vector.broadcast %1 : vector<1x256xf32> to vector<8x256xf32>
    %16 = arith.addf %14, %15 : vector<8x256xf32>
    %cst_11 = arith.constant 0.000000e+00 : f32
    %17 = vector.broadcast %cst_11 : f32 to vector<8x256xf32>
    %18 = arith.cmpf oge, %16, %17 : vector<8x256xf32>
    %cst_12 = arith.constant 0.00999999977 : f32
    %19 = vector.broadcast %cst_12 : f32 to vector<8x256xf32>
    %20 = arith.mulf %19, %16 : vector<8x256xf32>
    %21 = arith.select %18, %16, %20 : vector<8x256xi1>, vector<8x256xf32>
    %22 = arith.maximumf %11, %21 : vector<8x256xf32>
    %c2 = arith.constant 2 : index
    %c0_13 = arith.constant 0 : index
    %c0_14 = arith.constant 0 : index
    %23 = vector.load %arg1[%c2, %c0_13, %c0_14] : memref<4x8x1152xbf16, #tpu.memory_space<vmem>>, vector<1x8x1152xbf16>
    %24 = vector.shape_cast %23 : vector<1x8x1152xbf16> to vector<8x1152xbf16>
    %cst_15 = arith.constant dense<0.000000e+00> : vector<8x256xf32>
    %25 = tpu.matmul %24, %0, %cst_15 {dimension_numbers = #tpu.dot_dimension_numbers<[1], [0], [0], [1], [0, 0, 1, 1], [], []>} : vector<8x1152xbf16>, vector<1152x256xbf16>, vector<8x256xf32> -> vector<8x256xf32>
    %26 = vector.broadcast %1 : vector<1x256xf32> to vector<8x256xf32>
    %27 = arith.addf %25, %26 : vector<8x256xf32>
    %cst_16 = arith.constant 0.000000e+00 : f32
    %28 = vector.broadcast %cst_16 : f32 to vector<8x256xf32>
    %29 = arith.cmpf oge, %27, %28 : vector<8x256xf32>
    %cst_17 = arith.constant 0.00999999977 : f32
    %30 = vector.broadcast %cst_17 : f32 to vector<8x256xf32>
    %31 = arith.mulf %30, %27 : vector<8x256xf32>
    %32 = arith.select %29, %27, %31 : vector<8x256xi1>, vector<8x256xf32>
    %c3 = arith.constant 3 : index
    %c0_18 = arith.constant 0 : index
    %c0_19 = arith.constant 0 : index
    %33 = vector.load %arg1[%c3, %c0_18, %c0_19] : memref<4x8x1152xbf16, #tpu.memory_space<vmem>>, vector<1x8x1152xbf16>
    %34 = vector.shape_cast %33 : vector<1x8x1152xbf16> to vector<8x1152xbf16>
    %cst_20 = arith.constant dense<0.000000e+00> : vector<8x256xf32>
    %35 = tpu.matmul %34, %0, %cst_20 {dimension_numbers = #tpu.dot_dimension_numbers<[1], [0], [0], [1], [0, 0, 1, 1], [], []>} : vector<8x1152xbf16>, vector<1152x256xbf16>, vector<8x256xf32> -> vector<8x256xf32>
    %36 = vector.broadcast %1 : vector<1x256xf32> to vector<8x256xf32>
    %37 = arith.addf %35, %36 : vector<8x256xf32>
    %cst_21 = arith.constant 0.000000e+00 : f32
    %38 = vector.broadcast %cst_21 : f32 to vector<8x256xf32>
    %39 = arith.cmpf oge, %37, %38 : vector<8x256xf32>
    %cst_22 = arith.constant 0.00999999977 : f32
    %40 = vector.broadcast %cst_22 : f32 to vector<8x256xf32>
    %41 = arith.mulf %40, %37 : vector<8x256xf32>
    %42 = arith.select %39, %37, %41 : vector<8x256xi1>, vector<8x256xf32>
    %43 = arith.maximumf %32, %42 : vector<8x256xf32>
    %44 = arith.maximumf %22, %43 : vector<8x256xf32>
    %c0_23 = arith.constant 0 : index
    %c0_24 = arith.constant 0 : index
    %45 = vector.load %arg4[%c0_23, %c0_24] : memref<8x256xf32, #tpu.memory_space<vmem>>, vector<8x256xf32>
    tpu.vector_store %arg4[%c0_23, %c0_24], %44 {strides = array<i32>} : memref<8x256xf32, #tpu.memory_space<vmem>>, vector<8x256xf32>,
    return
  }
  func.func @transform_0(%arg0: i32) -> (i32, i32, i32) {
    %c0_i32 = arith.constant 0 : i32
    %c0_i32_0 = arith.constant 0 : i32
    %c0_i32_1 = arith.constant 0 : i32
    return %c0_i32, %arg0, %c0_i32_0 : i32, i32, i32
  }
  func.func @transform_1(%arg0: i32) -> (i32, i32) {
    %c0_i32 = arith.constant 0 : i32
    %c0_i32_0 = arith.constant 0 : i32
    %c0_i32_1 = arith.constant 0 : i32
    return %c0_i32, %c0_i32_0 : i32, i32
  }
  func.func @transform_2(%arg0: i32) -> (i32, i32) {
    %c0_i32 = arith.constant 0 : i32
    %c0_i32_0 = arith.constant 0 : i32
    %c0_i32_1 = arith.constant 0 : i32
    return %c0_i32, %c0_i32_0 : i32, i32
  }
  func.func @transform_3(%arg0: i32) -> (i32, i32) {
    %c0_i32 = arith.constant 0 : i32
    %c0_i32_0 = arith.constant 0 : i32
    return %arg0, %c0_i32 : i32, i32
  }
}

module attributes {stable_mosaic.version = 11 : i64} {
  func.func @_conv_lrelu_kernel(%arg0: i32, %arg1: memref<8x2304xbf16, #tpu.memory_space<vmem>>, %arg2: memref<2304x256xbf16, #tpu.memory_space<vmem>>, %arg3: memref<1x256xf32, #tpu.memory_space<vmem>>, %arg4: memref<8x256xf32, #tpu.memory_space<vmem>>) attributes {dimension_semantics = [#tpu.dimension_semantics<arbitrary>], iteration_bounds = array<i64: 1>, scalar_prefetch = 0 : i64, scratch_operands = 0 : i64, tpu.core_type = #tpu.core_type<tc>, window_params = [{pipeline_mode = #tpu.pipeline_mode<synchronous>, transform_indices = @transform_0, window_bounds = array<i64: 8, 2304>}, {pipeline_mode = #tpu.pipeline_mode<synchronous>, transform_indices = @transform_1, window_bounds = array<i64: 2304, 256>}, {pipeline_mode = #tpu.pipeline_mode<synchronous>, transform_indices = @transform_2, window_bounds = array<i64: 1, 256>}, {pipeline_mode = #tpu.pipeline_mode<synchronous>, transform_indices = @transform_3, window_bounds = array<i64: 8, 256>}]} {
    %c0 = arith.constant 0 : index
    %c0_0 = arith.constant 0 : index
    %0 = vector.load %arg1[%c0, %c0_0] : memref<8x2304xbf16, #tpu.memory_space<vmem>>, vector<8x2304xbf16>
    %c0_1 = arith.constant 0 : index
    %c0_2 = arith.constant 0 : index
    %1 = vector.load %arg2[%c0_1, %c0_2] : memref<2304x256xbf16, #tpu.memory_space<vmem>>, vector<2304x256xbf16>
    %cst = arith.constant dense<0.000000e+00> : vector<8x256xf32>
    %2 = tpu.matmul %0, %1, %cst {dimension_numbers = #tpu.dot_dimension_numbers<[1], [0], [0], [1], [0, 0, 1, 1], [], []>} : vector<8x2304xbf16>, vector<2304x256xbf16>, vector<8x256xf32> -> vector<8x256xf32>
    %c0_3 = arith.constant 0 : index
    %c0_4 = arith.constant 0 : index
    %3 = vector.load %arg3[%c0_3, %c0_4] : memref<1x256xf32, #tpu.memory_space<vmem>>, vector<1x256xf32>
    %4 = vector.broadcast %3 : vector<1x256xf32> to vector<8x256xf32>
    %5 = arith.addf %2, %4 : vector<8x256xf32>
    %cst_5 = arith.constant 0.000000e+00 : f32
    %6 = vector.broadcast %cst_5 : f32 to vector<8x256xf32>
    %7 = arith.cmpf oge, %5, %6 : vector<8x256xf32>
    %cst_6 = arith.constant 0.00999999977 : f32
    %8 = vector.broadcast %cst_6 : f32 to vector<8x256xf32>
    %9 = arith.mulf %8, %5 : vector<8x256xf32>
    %10 = arith.select %7, %5, %9 : vector<8x256xi1>, vector<8x256xf32>
    %c0_7 = arith.constant 0 : index
    %c0_8 = arith.constant 0 : index
    %11 = vector.load %arg4[%c0_7, %c0_8] : memref<8x256xf32, #tpu.memory_space<vmem>>, vector<8x256xf32>
    tpu.vector_store %arg4[%c0_7, %c0_8], %10 {strides = array<i32>} : memref<8x256xf32, #tpu.memory_space<vmem>>, vector<8x256xf32>,
    return
  }
  func.func @transform_0(%arg0: i32) -> (i32, i32) {
    %c0_i32 = arith.constant 0 : i32
    %c0_i32_0 = arith.constant 0 : i32
    %c0_i32_1 = arith.constant 0 : i32
    return %c0_i32, %c0_i32_0 : i32, i32
  }
  func.func @transform_1(%arg0: i32) -> (i32, i32) {
    %c0_i32 = arith.constant 0 : i32
    %c0_i32_0 = arith.constant 0 : i32
    %c0_i32_1 = arith.constant 0 : i32
    return %c0_i32, %c0_i32_0 : i32, i32
  }
  func.func @transform_2(%arg0: i32) -> (i32, i32) {
    %c0_i32 = arith.constant 0 : i32
    %c0_i32_0 = arith.constant 0 : i32
    %c0_i32_1 = arith.constant 0 : i32
    return %c0_i32, %c0_i32_0 : i32, i32
  }
  func.func @transform_3(%arg0: i32) -> (i32, i32) {
    %c0_i32 = arith.constant 0 : i32
    %c0_i32_0 = arith.constant 0 : i32
    %c0_i32_1 = arith.constant 0 : i32
    return %c0_i32, %c0_i32_0 : i32, i32
  }
}

</mosaic_0001>

<bundles_post_ra>
// kernel: mixstyle_encoder_forward.4
= control target key start
LH: loop header
LB: loop body
LE: loop exit
PB: predicated region body
PF: predicated region fallthrough
CT: control target
= control target key end

     0   :  { %s5269_s12 = smov 0   ;;  %s5271_s13 = smov 0   ;;  %s7005_s0 = inlined_call_operand.vmem [shape: bf16[4,896,75], index: 0, kind: input, shape index: {}]   ;;  %s7006_s1 = inlined_call_operand.vmem [shape: bf16[75,64], index: 1, kind: input, shape index: {}]   ;;  %s7007_s2 = inlined_call_operand.vmem [shape: f32[1,64], index: 2, kind: input, shape index: {}]   ;;  %s7008_s3 = inlined_call_operand.vmem [shape: f32[896,64], index: 3, kind: output, shape index: {}]  }
   0x1   :  { %s5273_s14 = smov 0  }
   0x2 LB: > { %s4274_s15 = sadd.s32 4294967295, %s5246_s14   ;;  %s5286_s16 = sadd.s32 1, %s5246_s14   ;;  %s5246_s14 = sphi %s5273_s14, %s7319_s14   ;;  %s5242_s13 = sphi %s5271_s13, %s7318_s13   ;;  %s5238_s12 = sphi %s5269_s12, %s7317_s12  }
   0x3   : > { %s17_s17 = ssub.s32 %s5246_s14, %s5286_s16  ;;  %s20_s18 = sadd.s32 1, %s5242_s13 }
   0x4   : > { %p18_p0 = scmp.eq.s32.totalorder %s17_s17, 0  ;;  %p27_p1 = scmp.ne.s32.totalorder %s5242_s13, %s5238_s12 }
   0x5   : > { %p28_p2 = scmp.eq.s32.totalorder %s5246_s14, 0  ;;  %p4277_p4 = scmp.ge.s32.totalorder %s5246_s14, 2 }
   0x6   : > { %s5295_s19 = scalar_select %p18_p0, %s5242_s13, %s20_s18  }
   0x7   : > { %p29_p3 = por %p28_p2, %p27_p1  ;;  %127 = sbr.rel (%p4277_p4) target bundleno = 73 (0x49), region = 24 }
   0xc   : > { %130 = sbr.rel (!%p29_p3) target bundleno = 73 (0x49), region = 28  ;;  %s132_s20 = sand.u32 (%p29_p3), 1, %s5242_s13  }
   0xd   : > { %s4681_s21 = smul.u32 (%p29_p3), 224, %s5246_s14 }
   0xe   : > { %s5078_s22 = smul.u32 (%p29_p3), 896, %s132_s20 }
   0xf   : > { %s5303_s25 = scalar_lea.vmem (%p29_p3), %s7005_s0, %s4681_s21 }
  0x10   : > { %v154_v0 = vld [vmem:[%s5303_s25] sm:$0xff] (%p29_p3)   ;;  %v158_v1 = vld [vmem:[%s5303_s25 + $0x8] sm:$0xff] (%p29_p3)   ;;  %v162_v2 = vld [vmem:[%s5303_s25 + $0x10] sm:$0xff] (%p29_p3)   ;;  %s5308_s26 = scalar_lea.vmem (%p29_p3), [#allocation2], %s5078_s22 }
  0x11   : > { %155 = vst [vmem:[%s5308_s26] sm:$0xff] %v154_v0   ;;  %159 = vst [vmem:[%s5308_s26 + $0x8] sm:$0xff] %v158_v1   ;;  %v166_v3 = vld [vmem:[%s5303_s25 + $0x18] sm:$0xff]   ;;  %v170_v4 = vld [vmem:[%s5303_s25 + $0x20] sm:$0xff]  }
  0x12   : > { %163 = vst [vmem:[%s5308_s26 + $0x10] sm:$0xff] %v162_v2   ;;  %v174_v5 = vld [vmem:[%s5303_s25 + $0x28] sm:$0xff]   ;;  %167 = vst [vmem:[%s5308_s26 + $0x18] sm:$0xff] %v166_v3   ;;  %v178_v6 = vld [vmem:[%s5303_s25 + $0x30] sm:$0xff]  }
  0x13   : > { %171 = vst [vmem:[%s5308_s26 + $0x20] sm:$0xff] %v170_v4   ;;  %175 = vst [vmem:[%s5308_s26 + $0x28] sm:$0xff] %v174_v5   ;;  %v182_v7 = vld [vmem:[%s5303_s25 + $0x38] sm:$0xff]   ;;  %v186_v8 = vld [vmem:[%s5303_s25 + $0x40] sm:$0xff]  }
  0x14   : > { %179 = vst [vmem:[%s5308_s26 + $0x30] sm:$0xff] %v178_v6   ;;  %183 = vst [vmem:[%s5308_s26 + $0x38] sm:$0xff] %v182_v7   ;;  %v190_v9 = vld [vmem:[%s5303_s25 + $0x48] sm:$0xff]   ;;  %v194_v10 = vld [vmem:[%s5303_s25 + $0x50] sm:$0xff]  }
  0x15   : > { %187 = vst [vmem:[%s5308_s26 + $0x40] sm:$0xff] %v186_v8   ;;  %v198_v11 = vld [vmem:[%s5303_s25 + $0x58] sm:$0xff]   ;;  %191 = vst [vmem:[%s5308_s26 + $0x48] sm:$0xff] %v190_v9   ;;  %v202_v12 = vld [vmem:[%s5303_s25 + $0x60] sm:$0xff]  }
  0x16   : > { %195 = vst [vmem:[%s5308_s26 + $0x50] sm:$0xff] %v194_v10   ;;  %199 = vst [vmem:[%s5308_s26 + $0x58] sm:$0xff] %v198_v11   ;;  %v206_v13 = vld [vmem:[%s5303_s25 + $0x68] sm:$0xff]   ;;  %v210_v14 = vld [vmem:[%s5303_s25 + $0x70] sm:$0xff]  }
  0x17   : > { %203 = vst [vmem:[%s5308_s26 + $0x60] sm:$0xff] %v202_v12   ;;  %207 = vst [vmem:[%s5308_s26 + $0x68] sm:$0xff] %v206_v13   ;;  %v214_v15 = vld [vmem:[%s5303_s25 + $0x78] sm:$0xff]   ;;  %v218_v16 = vld [vmem:[%s5303_s25 + $0x80] sm:$0xff]  }
  0x18   : > { %211 = vst [vmem:[%s5308_s26 + $0x70] sm:$0xff] %v210_v14   ;;  %v222_v17 = vld [vmem:[%s5303_s25 + $0x88] sm:$0xff]   ;;  %215 = vst [vmem:[%s5308_s26 + $0x78] sm:$0xff] %v214_v15   ;;  %v226_v18 = vld [vmem:[%s5303_s25 + $0x90] sm:$0xff]  }
  0x19   : > { %219 = vst [vmem:[%s5308_s26 + $0x80] sm:$0xff] %v218_v16   ;;  %223 = vst [vmem:[%s5308_s26 + $0x88] sm:$0xff] %v222_v17   ;;  %v230_v19 = vld [vmem:[%s5303_s25 + $0x98] sm:$0xff]   ;;  %v234_v20 = vld [vmem:[%s5303_s25 + $0xa0] sm:$0xff]  }
  0x1a   : > { %227 = vst [vmem:[%s5308_s26 + $0x90] sm:$0xff] %v226_v18   ;;  %231 = vst [vmem:[%s5308_s26 + $0x98] sm:$0xff] %v230_v19   ;;  %v238_v21 = vld [vmem:[%s5303_s25 + $0xa8] sm:$0xff]   ;;  %v242_v22 = vld [vmem:[%s5303_s25 + $0xb0] sm:$0xff]  }
  0x1b   : > { %235 = vst [vmem:[%s5308_s26 + $0xa0] sm:$0xff] %v234_v20   ;;  %v246_v23 = vld [vmem:[%s5303_s25 + $0xb8] sm:$0xff]   ;;  %239 = vst [vmem:[%s5308_s26 + $0xa8] sm:$0xff] %v238_v21   ;;  %v250_v24 = vld [vmem:[%s5303_s25 + $0xc0] sm:$0xff]  }
  0x1c   : > { %243 = vst [vmem:[%s5308_s26 + $0xb0] sm:$0xff] %v242_v22   ;;  %247 = vst [vmem:[%s5308_s26 + $0xb8] sm:$0xff] %v246_v23   ;;  %v254_v25 = vld [vmem:[%s5303_s25 + $0xc8] sm:$0xff]   ;;  %v258_v26 = vld [vmem:[%s5303_s25 + $0xd0] sm:$0xff]  }
  0x1d   : > { %251 = vst [vmem:[%s5308_s26 + $0xc0] sm:$0xff] %v250_v24   ;;  %255 = vst [vmem:[%s5308_s26 + $0xc8] sm:$0xff] %v254_v25   ;;  %v262_v27 = vld [vmem:[%s5303_s25 + $0xd8] sm:$0xff]   ;;  %v266_v28 = vld [vmem:[%s5303_s25 + $0x1c0] sm:$0xff]  }
  0x1e   : > { %259 = vst [vmem:[%s5308_s26 + $0xd0] sm:$0xff] %v258_v26   ;;  %v270_v29 = vld [vmem:[%s5303_s25 + $0x1c8] sm:$0xff]   ;;  %263 = vst [vmem:[%s5308_s26 + $0xd8] sm:$0xff] %v262_v27   ;;  %v274_v30 = vld [vmem:[%s5303_s25 + $0x1d0] sm:$0xff]  }
  0x1f   : > { %267 = vst [vmem:[%s5308_s26 + $0xe0] sm:$0xff] %v266_v28   ;;  %271 = vst [vmem:[%s5308_s26 + $0xe8] sm:$0xff] %v270_v29   ;;  %v278_v31 = vld [vmem:[%s5303_s25 + $0x1d8] sm:$0xff]   ;;  %v282_v32 = vld [vmem:[%s5303_s25 + $0x1e0] sm:$0xff]  }
  0x20   : > { %275 = vst [vmem:[%s5308_s26 + $0xf0] sm:$0xff] %v274_v30   ;;  %279 = vst [vmem:[%s5308_s26 + $0xf8] sm:$0xff] %v278_v31   ;;  %v286_v33 = vld [vmem:[%s5303_s25 + $0x1e8] sm:$0xff]   ;;  %v290_v34 = vld [vmem:[%s5303_s25 + $0x1f0] sm:$0xff]  }
  0x21   : > { %283 = vst [vmem:[%s5308_s26 + $0x100] sm:$0xff] %v282_v32   ;;  %v294_v35 = vld [vmem:[%s5303_s25 + $0x1f8] sm:$0xff]   ;;  %287 = vst [vmem:[%s5308_s26 + $0x108] sm:$0xff] %v286_v33   ;;  %v298_v36 = vld [vmem:[%s5303_s25 + $0x200] sm:$0xff]  }
  0x22   : > { %291 = vst [vmem:[%s5308_s26 + $0x110] sm:$0xff] %v290_v34   ;;  %295 = vst [vmem:[%s5308_s26 + $0x118] sm:$0xff] %v294_v35   ;;  %v302_v37 = vld [vmem:[%s5303_s25 + $0x208] sm:$0xff]   ;;  %v306_v38 = vld [vmem:[%s5303_s25 + $0x210] sm:$0xff]  }
  0x23   : > { %299 = vst [vmem:[%s5308_s26 + $0x120] sm:$0xff] %v298_v36   ;;  %303 = vst [vmem:[%s5308_s26 + $0x128] sm:$0xff] %v302_v37   ;;  %v310_v39 = vld [vmem:[%s5303_s25 + $0x218] sm:$0xff]   ;;  %v314_v40 = vld [vmem:[%s5303_s25 + $0x220] sm:$0xff]  }
  0x24   : > { %307 = vst [vmem:[%s5308_s26 + $0x130] sm:$0xff] %v306_v38   ;;  %v318_v41 = vld [vmem:[%s5303_s25 + $0x228] sm:$0xff]   ;;  %311 = vst [vmem:[%s5308_s26 + $0x138] sm:$0xff] %v310_v39   ;;  %v322_v42 = vld [vmem:[%s5303_s25 + $0x230] sm:$0xff]  }
  0x25   : > { %315 = vst [vmem:[%s5308_s26 + $0x140] sm:$0xff] %v314_v40   ;;  %319 = vst [vmem:[%s5308_s26 + $0x148] sm:$0xff] %v318_v41   ;;  %v326_v43 = vld [vmem:[%s5303_s25 + $0x238] sm:$0xff]   ;;  %v330_v44 = vld [vmem:[%s5303_s25 + $0x240] sm:$0xff]  }
  0x26   : > { %323 = vst [vmem:[%s5308_s26 + $0x150] sm:$0xff] %v322_v42   ;;  %327 = vst [vmem:[%s5308_s26 + $0x158] sm:$0xff] %v326_v43   ;;  %v334_v45 = vld [vmem:[%s5303_s25 + $0x248] sm:$0xff]   ;;  %v338_v46 = vld [vmem:[%s5303_s25 + $0x250] sm:$0xff]  }
  0x27   : > { %331 = vst [vmem:[%s5308_s26 + $0x160] sm:$0xff] %v330_v44   ;;  %v342_v47 = vld [vmem:[%s5303_s25 + $0x258] sm:$0xff]   ;;  %335 = vst [vmem:[%s5308_s26 + $0x168] sm:$0xff] %v334_v45   ;;  %v346_v48 = vld [vmem:[%s5303_s25 + $0x260] sm:$0xff]  }
  0x28   : > { %339 = vst [vmem:[%s5308_s26 + $0x170] sm:$0xff] %v338_v46   ;;  %343 = vst [vmem:[%s5308_s26 + $0x178] sm:$0xff] %v342_v47   ;;  %v350_v49 = vld [vmem:[%s5303_s25 + $0x268] sm:$0xff]   ;;  %v354_v50 = vld [vmem:[%s5303_s25 + $0x270] sm:$0xff]  }
  0x29   : > { %347 = vst [vmem:[%s5308_s26 + $0x180] sm:$0xff] %v346_v48   ;;  %351 = vst [vmem:[%s5308_s26 + $0x188] sm:$0xff] %v350_v49   ;;  %v358_v51 = vld [vmem:[%s5303_s25 + $0x278] sm:$0xff]   ;;  %v362_v52 = vld [vmem:[%s5303_s25 + $0x280] sm:$0xff]  }
  0x2a   : > { %355 = vst [vmem:[%s5308_s26 + $0x190] sm:$0xff] %v354_v50   ;;  %v366_v53 = vld [vmem:[%s5303_s25 + $0x288] sm:$0xff]   ;;  %359 = vst [vmem:[%s5308_s26 + $0x198] sm:$0xff] %v358_v51   ;;  %v370_v54 = vld [vmem:[%s5303_s25 + $0x290] sm:$0xff]  }
  0x2b   : > { %363 = vst [vmem:[%s5308_s26 + $0x1a0] sm:$0xff] %v362_v52   ;;  %367 = vst [vmem:[%s5308_s26 + $0x1a8] sm:$0xff] %v366_v53   ;;  %v374_v55 = vld [vmem:[%s5303_s25 + $0x298] sm:$0xff]   ;;  %v378_v56 = vld [vmem:[%s5303_s25 + $0x380] sm:$0xff]  }
  0x2c   : > { %371 = vst [vmem:[%s5308_s26 + $0x1b0] sm:$0xff] %v370_v54   ;;  %375 = vst [vmem:[%s5308_s26 + $0x1b8] sm:$0xff] %v374_v55   ;;  %v382_v57 = vld [vmem:[%s5303_s25 + $0x388] sm:$0xff]   ;;  %v386_v58 = vld [vmem:[%s5303_s25 + $0x390] sm:$0xff]  }
  0x2d   : > { %379 = vst [vmem:[%s5308_s26 + $0x1c0] sm:$0xff] %v378_v56   ;;  %v390_v59 = vld [vmem:[%s5303_s25 + $0x398] sm:$0xff]   ;;  %383 = vst [vmem:[%s5308_s26 + $0x1c8] sm:$0xff] %v382_v57   ;;  %v394_v60 = vld [vmem:[%s5303_s25 + $0x3a0] sm:$0xff]  }
  0x2e   : > { %387 = vst [vmem:[%s5308_s26 + $0x1d0] sm:$0xff] %v386_v58   ;;  %391 = vst [vmem:[%s5308_s26 + $0x1d8] sm:$0xff] %v390_v59   ;;  %v398_v61 = vld [vmem:[%s5303_s25 + $0x3a8] sm:$0xff]   ;;  %v402_v62 = vld [vmem:[%s5303_s25 + $0x3b0] sm:$0xff]  }
  0x2f   : > { %395 = vst [vmem:[%s5308_s26 + $0x1e0] sm:$0xff] %v394_v60   ;;  %399 = vst [vmem:[%s5308_s26 + $0x1e8] sm:$0xff] %v398_v61   ;;  %v406_v63 = vld [vmem:[%s5303_s25 + $0x3b8] sm:$0xff]   ;;  %v410_v0 = vld [vmem:[%s5303_s25 + $0x3c0] sm:$0xff]  }
  0x30   : > { %403 = vst [vmem:[%s5308_s26 + $0x1f0] sm:$0xff] %v402_v62   ;;  %v414_v1 = vld [vmem:[%s5303_s25 + $0x3c8] sm:$0xff]   ;;  %407 = vst [vmem:[%s5308_s26 + $0x1f8] sm:$0xff] %v406_v63   ;;  %v418_v2 = vld [vmem:[%s5303_s25 + $0x3d0] sm:$0xff]  }
  0x31   : > { %411 = vst [vmem:[%s5308_s26 + $0x200] sm:$0xff] %v410_v0   ;;  %415 = vst [vmem:[%s5308_s26 + $0x208] sm:$0xff] %v414_v1   ;;  %v422_v3 = vld [vmem:[%s5303_s25 + $0x3d8] sm:$0xff]   ;;  %v426_v4 = vld [vmem:[%s5303_s25 + $0x3e0] sm:$0xff]  }
  0x32   : > { %419 = vst [vmem:[%s5308_s26 + $0x210] sm:$0xff] %v418_v2   ;;  %423 = vst [vmem:[%s5308_s26 + $0x218] sm:$0xff] %v422_v3   ;;  %v430_v5 = vld [vmem:[%s5303_s25 + $0x3e8] sm:$0xff]   ;;  %v434_v6 = vld [vmem:[%s5303_s25 + $0x3f0] sm:$0xff]  }
  0x33   : > { %427 = vst [vmem:[%s5308_s26 + $0x220] sm:$0xff] %v426_v4   ;;  %v438_v7 = vld [vmem:[%s5303_s25 + $0x3f8] sm:$0xff]   ;;  %431 = vst [vmem:[%s5308_s26 + $0x228] sm:$0xff] %v430_v5   ;;  %v442_v8 = vld [vmem:[%s5303_s25 + $0x400] sm:$0xff]  }
  0x34   : > { %435 = vst [vmem:[%s5308_s26 + $0x230] sm:$0xff] %v434_v6   ;;  %439 = vst [vmem:[%s5308_s26 + $0x238] sm:$0xff] %v438_v7   ;;  %v446_v9 = vld [vmem:[%s5303_s25 + $0x408] sm:$0xff]   ;;  %v450_v10 = vld [vmem:[%s5303_s25 + $0x410] sm:$0xff]  }
  0x35   : > { %443 = vst [vmem:[%s5308_s26 + $0x240] sm:$0xff] %v442_v8   ;;  %447 = vst [vmem:[%s5308_s26 + $0x248] sm:$0xff] %v446_v9   ;;  %v454_v11 = vld [vmem:[%s5303_s25 + $0x418] sm:$0xff]   ;;  %v458_v12 = vld [vmem:[%s5303_s25 + $0x420] sm:$0xff]  }
  0x36   : > { %451 = vst [vmem:[%s5308_s26 + $0x250] sm:$0xff] %v450_v10   ;;  %v462_v13 = vld [vmem:[%s5303_s25 + $0x428] sm:$0xff]   ;;  %455 = vst [vmem:[%s5308_s26 + $0x258] sm:$0xff] %v454_v11   ;;  %v466_v14 = vld [vmem:[%s5303_s25 + $0x430] sm:$0xff]  }
  0x37   : > { %459 = vst [vmem:[%s5308_s26 + $0x260] sm:$0xff] %v458_v12   ;;  %463 = vst [vmem:[%s5308_s26 + $0x268] sm:$0xff] %v462_v13   ;;  %v470_v15 = vld [vmem:[%s5303_s25 + $0x438] sm:$0xff]   ;;  %v474_v16 = vld [vmem:[%s5303_s25 + $0x440] sm:$0xff]  }
  0x38   : > { %467 = vst [vmem:[%s5308_s26 + $0x270] sm:$0xff] %v466_v14   ;;  %471 = vst [vmem:[%s5308_s26 + $0x278] sm:$0xff] %v470_v15   ;;  %v478_v17 = vld [vmem:[%s5303_s25 + $0x448] sm:$0xff]   ;;  %v482_v18 = vld [vmem:[%s5303_s25 + $0x450] sm:$0xff]  }
  0x39   : > { %475 = vst [vmem:[%s5308_s26 + $0x280] sm:$0xff] %v474_v16   ;;  %v486_v19 = vld [vmem:[%s5303_s25 + $0x458] sm:$0xff]   ;;  %479 = vst [vmem:[%s5308_s26 + $0x288] sm:$0xff] %v478_v17   ;;  %v490_v20 = vld [vmem:[%s5303_s25 + $0x540] sm:$0xff]  }
  0x3a   : > { %483 = vst [vmem:[%s5308_s26 + $0x290] sm:$0xff] %v482_v18   ;;  %487 = vst [vmem:[%s5308_s26 + $0x298] sm:$0xff] %v486_v19   ;;  %v494_v21 = vld [vmem:[%s5303_s25 + $0x548] sm:$0xff]   ;;  %v498_v22 = vld [vmem:[%s5303_s25 + $0x550] sm:$0xff]  }
  0x3b   : > { %491 = vst [vmem:[%s5308_s26 + $0x2a0] sm:$0xff] %v490_v20   ;;  %495 = vst [vmem:[%s5308_s26 + $0x2a8] sm:$0xff] %v494_v21   ;;  %v502_v23 = vld [vmem:[%s5303_s25 + $0x558] sm:$0xff]   ;;  %v506_v24 = vld [vmem:[%s5303_s25 + $0x560] sm:$0xff]  }
  0x3c   : > { %499 = vst [vmem:[%s5308_s26 + $0x2b0] sm:$0xff] %v498_v22   ;;  %v510_v25 = vld [vmem:[%s5303_s25 + $0x568] sm:$0xff]   ;;  %503 = vst [vmem:[%s5308_s26 + $0x2b8] sm:$0xff] %v502_v23   ;;  %v514_v26 = vld [vmem:[%s5303_s25 + $0x570] sm:$0xff]  }
  0x3d   : > { %507 = vst [vmem:[%s5308_s26 + $0x2c0] sm:$0xff] %v506_v24   ;;  %511 = vst [vmem:[%s5308_s26 + $0x2c8] sm:$0xff] %v510_v25   ;;  %v518_v27 = vld [vmem:[%s5303_s25 + $0x578] sm:$0xff]   ;;  %v522_v28 = vld [vmem:[%s5303_s25 + $0x580] sm:$0xff]  }
  0x3e   : > { %515 = vst [vmem:[%s5308_s26 + $0x2d0] sm:$0xff] %v514_v26   ;;  %519 = vst [vmem:[%s5308_s26 + $0x2d8] sm:$0xff] %v518_v27   ;;  %v526_v29 = vld [vmem:[%s5303_s25 + $0x588] sm:$0xff]   ;;  %v530_v30 = vld [vmem:[%s5303_s25 + $0x590] sm:$0xff]  }
  0x3f   : > { %523 = vst [vmem:[%s5308_s26 + $0x2e0] sm:$0xff] %v522_v28   ;;  %v534_v31 = vld [vmem:[%s5303_s25 + $0x598] sm:$0xff]   ;;  %527 = vst [vmem:[%s5308_s26 + $0x2e8] sm:$0xff] %v526_v29   ;;  %v538_v32 = vld [vmem:[%s5303_s25 + $0x5a0] sm:$0xff]  }
  0x40   : > { %531 = vst [vmem:[%s5308_s26 + $0x2f0] sm:$0xff] %v530_v30   ;;  %535 = vst [vmem:[%s5308_s26 + $0x2f8] sm:$0xff] %v534_v31   ;;  %v542_v33 = vld [vmem:[%s5303_s25 + $0x5a8] sm:$0xff]   ;;  %v546_v34 = vld [vmem:[%s5303_s25 + $0x5b0] sm:$0xff]  }
  0x41   : > { %539 = vst [vmem:[%s5308_s26 + $0x300] sm:$0xff] %v538_v32   ;;  %543 = vst [vmem:[%s5308_s26 + $0x308] sm:$0xff] %v542_v33   ;;  %v550_v35 = vld [vmem:[%s5303_s25 + $0x5b8] sm:$0xff]   ;;  %v554_v36 = vld [vmem:[%s5303_s25 + $0x5c0] sm:$0xff]  }
  0x42   : > { %547 = vst [vmem:[%s5308_s26 + $0x310] sm:$0xff] %v546_v34   ;;  %v558_v37 = vld [vmem:[%s5303_s25 + $0x5c8] sm:$0xff]   ;;  %551 = vst [vmem:[%s5308_s26 + $0x318] sm:$0xff] %v550_v35   ;;  %v562_v38 = vld [vmem:[%s5303_s25 + $0x5d0] sm:$0xff]  }
  0x43   : > { %555 = vst [vmem:[%s5308_s26 + $0x320] sm:$0xff] %v554_v36   ;;  %559 = vst [vmem:[%s5308_s26 + $0x328] sm:$0xff] %v558_v37   ;;  %v566_v39 = vld [vmem:[%s5303_s25 + $0x5d8] sm:$0xff]   ;;  %v570_v40 = vld [vmem:[%s5303_s25 + $0x5e0] sm:$0xff]  }
  0x44   : > { %563 = vst [vmem:[%s5308_s26 + $0x330] sm:$0xff] %v562_v38   ;;  %567 = vst [vmem:[%s5308_s26 + $0x338] sm:$0xff] %v566_v39   ;;  %v574_v41 = vld [vmem:[%s5303_s25 + $0x5e8] sm:$0xff]   ;;  %v578_v42 = vld [vmem:[%s5303_s25 + $0x5f0] sm:$0xff]  }
  0x45   : > { %571 = vst [vmem:[%s5308_s26 + $0x340] sm:$0xff] %v570_v40   ;;  %v582_v43 = vld [vmem:[%s5303_s25 + $0x5f8] sm:$0xff]   ;;  %575 = vst [vmem:[%s5308_s26 + $0x348] sm:$0xff] %v574_v41   ;;  %v586_v44 = vld [vmem:[%s5303_s25 + $0x600] sm:$0xff]  }
  0x46   : > { %579 = vst [vmem:[%s5308_s26 + $0x350] sm:$0xff] %v578_v42   ;;  %583 = vst [vmem:[%s5308_s26 + $0x358] sm:$0xff] %v582_v43   ;;  %v590_v45 = vld [vmem:[%s5303_s25 + $0x608] sm:$0xff]   ;;  %v594_v46 = vld [vmem:[%s5303_s25 + $0x610] sm:$0xff]  }
  0x47   : > { %587 = vst [vmem:[%s5308_s26 + $0x360] sm:$0xff] %v586_v44   ;;  %591 = vst [vmem:[%s5308_s26 + $0x368] sm:$0xff] %v590_v45   ;;  %v598_v47 = vld [vmem:[%s5303_s25 + $0x618] sm:$0xff]  }
  0x48   : > { %595 = vst [vmem:[%s5308_s26 + $0x370] sm:$0xff] %v594_v46   ;;  %599 = vst [vmem:[%s5308_s26 + $0x378] sm:$0xff] %v598_v47  }
  0x49 PF: > { %p4279_p5 = scmp.ge.s32.totalorder %s5246_s14, 1  ;;  %p1072_p6 = scmp.lt.s32.totalorder %s5246_s14, 3 }
  0x4b   : > { %p1073_p7 = pnand %p4279_p5, %p1072_p6 }
  0x4d   : > { %1076 = sbr.rel (%p1073_p7) target bundleno = 574 (0x23e), region = 69 }
  0x52   : > { %v5105_v48 = vld [vmem:[%s7006_s1 + $0x20] sm:$0x3f]   ;;  %vm1437_vm0 = vcmask 1044480   ;;  %vm1438_vm1 = vcmask 1045504   ;;  %v5248_v49 = vmov 65535   ;;  %v5106_v52 = vld [vmem:[%s7006_s1 + $0x18] sm:$0xff]  }
  0x53   : > { %v1439_v50 = vsel %vm1437_vm0, 4294967295, %v5248_v49  ;;  %s1079_s4 = sand.u32 1, %s5238_s12   ;;  %v5107_v54 = vld [vmem:[%s7006_s1 + $0x10] sm:$0xff]   ;;  %vm1352_vm2 = vcmask 613376   ;;  %v5108_v57 = vld [vmem:[%s7006_s1 + $0x8] sm:$0xff]   ;;  %v5109_v58 = vld [vmem:[%s7006_s1] sm:$0xff]  }
  0x54   : > { %v1440_v51 = vsel %vm1438_vm1, %v1439_v50, 0  ;;  %s5079_s5 = smul.u32 896, %s1079_s4 }
  0x55   : > { %v1442_v53 = vand.u32 %v5105_v48, %v1440_v51  ;;  %s6258_s22 = smul.u32 56, %s4274_s15 }
  0x56   : > { %s5543_s8 = scalar_lea.vmem [#allocation2], %s5079_s5 }
  0x57   : > { %4814 = vmatprep.subr.bf16.mxu0 %v1442_v53  ;;  %4880 = vmatprep.subr.bf16.mxu1 %v1442_v53  ;;  %v5110_v55 = vld [vmem:[%s5543_s8] sm:$0xff]   ;;  %v5112_v59 = vld [vmem:[%s5543_s8 + $0x8] sm:$0xff]   ;;  %v5114_v61 = vld [vmem:[%s5543_s8 + $0x10] sm:$0xff]   ;;  %p1104_p8 = scmp.lt.s32.totalorder %s6258_s22, 111 }
  0x58   : > { %4815 = vmatpush3.bf16.msra.mxu0 %v1442_v53  ;;  %4881 = vmatpush3.bf16.msra.mxu1 %v1442_v53  ;;  %v5111_v56 = vld [vmem:[%s5543_s8 + $0xe0] sm:$0xff]   ;;  %v5113_v60 = vld [vmem:[%s5543_s8 + $0xe8] sm:$0xff]   ;;  %v5115_v62 = vld [vmem:[%s5543_s8 + $0xf0] sm:$0xff]  }
  0x59   : > { %4816 = vmatprep.subr.bf16.mxu0 %v5106_v52  ;;  %4882 = vmatprep.subr.bf16.mxu1 %v5106_v52  ;;  %v5116_v63 = vld [vmem:[%s5543_s8 + $0x18] sm:$0xff]   ;;  %v5118_v1 = vld [vmem:[%s5543_s8 + $0x20] sm:$0xff]   ;;  %v5120_v3 = vld [vmem:[%s5543_s8 + $0x28] sm:$0xff]   ;;  %s7321_s22 = smov (!%p1104_p8, %s6258_s22), 111 }
  0x5a   : > { %4824 = vmatprep.mubr.msk.bf16.mxu0 %vm1352_vm2, %v5110_v55  ;;  %4890 = vmatprep.mubr.msk.bf16.mxu1 %vm1352_vm2, %v5111_v56  ;;  %v5117_v0 = vld [vmem:[%s5543_s8 + $0xf8] sm:$0xff]   ;;  %v5119_v2 = vld [vmem:[%s5543_s8 + $0x100] sm:$0xff]   ;;  %v5121_v4 = vld [vmem:[%s5543_s8 + $0x108] sm:$0xff]   ;;  %s4280_s14 = sshll.u32 %s7321_s22, 3 }
  0x5b   : > { %v5122_v5 = vld [vmem:[%s5543_s8 + $0x30] sm:$0xff]   ;;  %v5124_v7 = vld [vmem:[%s5543_s8 + $0x38] sm:$0xff]   ;;  %v5126_v9 = vld [vmem:[%s5543_s8 + $0x40] sm:$0xff]   ;;  %s6356_s24 = scalar_lea.vmem %s7008_s3, %s4280_s14 }
  0x5c   : > { %4817 = vmatpush3.bf16.msra.mxu0 %v5106_v52  ;;  %4883 = vmatpush3.bf16.msra.mxu1 %v5106_v52  ;;  %v5123_v6 = vld [vmem:[%s5543_s8 + $0x110] sm:$0xff]   ;;  %v5125_v8 = vld [vmem:[%s5543_s8 + $0x118] sm:$0xff]   ;;  %v5127_v10 = vld [vmem:[%s5543_s8 + $0x120] sm:$0xff]  }
  0x5d   : > { %4818 = vmatprep.subr.bf16.mxu0 %v5107_v54  ;;  %4884 = vmatprep.subr.bf16.mxu1 %v5107_v54  ;;  %v5128_v11 = vld [vmem:[%s5543_s8 + $0x48] sm:$0xff]   ;;  %v5130_v13 = vld [vmem:[%s5543_s8 + $0x50] sm:$0xff]   ;;  %v5132_v15 = vld [vmem:[%s5543_s8 + $0x58] sm:$0xff]  }
  0x5e   : > { %v5129_v12 = vld [vmem:[%s5543_s8 + $0x128] sm:$0xff]   ;;  %v5131_v14 = vld [vmem:[%s5543_s8 + $0x130] sm:$0xff]   ;;  %v5133_v16 = vld [vmem:[%s5543_s8 + $0x138] sm:$0xff]  }
  0x5f   : > { %v5134_v17 = vld [vmem:[%s5543_s8 + $0x60] sm:$0xff]   ;;  %v5136_v19 = vld [vmem:[%s5543_s8 + $0x68] sm:$0xff]   ;;  %v5138_v21 = vld [vmem:[%s5543_s8 + $0x70] sm:$0xff]  }
  0x60   : > { %4819 = vmatpush3.bf16.msra.mxu0 %v5107_v54  ;;  %4885 = vmatpush3.bf16.msra.mxu1 %v5107_v54  ;;  %v5135_v18 = vld [vmem:[%s5543_s8 + $0x140] sm:$0xff]   ;;  %v5137_v20 = vld [vmem:[%s5543_s8 + $0x148] sm:$0xff]   ;;  %v5139_v22 = vld [vmem:[%s5543_s8 + $0x150] sm:$0xff]  }
  0x61   : > { %4820 = vmatprep.subr.bf16.mxu0 %v5108_v57  ;;  %4886 = vmatprep.subr.bf16.mxu1 %v5108_v57  ;;  %v5140_v23 = vld [vmem:[%s5543_s8 + $0x78] sm:$0xff]   ;;  %v5142_v25 = vld [vmem:[%s5543_s8 + $0x80] sm:$0xff]   ;;  %v5144_v27 = vld [vmem:[%s5543_s8 + $0x88] sm:$0xff]  }
  0x62   : > { %v5141_v24 = vld [vmem:[%s5543_s8 + $0x158] sm:$0xff]   ;;  %v5143_v26 = vld [vmem:[%s5543_s8 + $0x160] sm:$0xff]   ;;  %v5145_v28 = vld [vmem:[%s5543_s8 + $0x168] sm:$0xff]  }
  0x63   : > { %v5146_v29 = vld [vmem:[%s5543_s8 + $0x90] sm:$0xff]   ;;  %v5148_v31 = vld [vmem:[%s5543_s8 + $0x98] sm:$0xff]   ;;  %v5150_v33 = vld [vmem:[%s5543_s8 + $0xa0] sm:$0xff]  }
  0x64   : > { %4821 = vmatpush3.bf16.msra.mxu0 %v5108_v57  ;;  %4887 = vmatpush3.bf16.msra.mxu1 %v5108_v57  ;;  %v5147_v30 = vld [vmem:[%s5543_s8 + $0x170] sm:$0xff]   ;;  %v5149_v32 = vld [vmem:[%s5543_s8 + $0x178] sm:$0xff]   ;;  %v5151_v34 = vld [vmem:[%s5543_s8 + $0x180] sm:$0xff]  }
  0x65   : > { %4822 = vmatprep.subr.bf16.mxu0 %v5109_v58  ;;  %4888 = vmatprep.subr.bf16.mxu1 %v5109_v58  ;;  %v5152_v35 = vld [vmem:[%s5543_s8 + $0xa8] sm:$0xff]   ;;  %v5154_v37 = vld [vmem:[%s5543_s8 + $0xb0] sm:$0xff]   ;;  %v5156_v39 = vld [vmem:[%s5543_s8 + $0xb8] sm:$0xff]  }
  0x66   : > { %v5153_v36 = vld [vmem:[%s5543_s8 + $0x188] sm:$0xff]   ;;  %v5155_v38 = vld [vmem:[%s5543_s8 + $0x190] sm:$0xff]   ;;  %v5157_v40 = vld [vmem:[%s5543_s8 + $0x198] sm:$0xff]  }
  0x67   : > { %v5158_v41 = vld [vmem:[%s5543_s8 + $0xc0] sm:$0xff]   ;;  %v5160_v43 = vld [vmem:[%s5543_s8 + $0xc8] sm:$0xff]   ;;  %v5162_v45 = vld [vmem:[%s5543_s8 + $0xd0] sm:$0xff]  }
  0x68   : > { %4823 = vmatpush3.bf16.msra.mxu0 %v5109_v58  ;;  %4889 = vmatpush3.bf16.msra.mxu1 %v5109_v58  ;;  %v5159_v42 = vld [vmem:[%s5543_s8 + $0x1a0] sm:$0xff]   ;;  %v5161_v44 = vld [vmem:[%s5543_s8 + $0x1a8] sm:$0xff]   ;;  %v5163_v46 = vld [vmem:[%s5543_s8 + $0x1b0] sm:$0xff]  }
  0x69   : > { %4946 = vmatprep.subr.bf16.mxu0 %v1442_v53  ;;  %5012 = vmatprep.subr.bf16.mxu1 %v1442_v53  ;;  %v5164_v47 = vld [vmem:[%s5543_s8 + $0xd8] sm:$0xff]   ;;  %v5166_v49 = vld [vmem:[%s5543_s8 + $0x1c0] sm:$0xff]   ;;  %v5168_v51 = vld [vmem:[%s5543_s8 + $0x1c8] sm:$0xff]  }
  0x6a   : > { %v5165_v48 = vld [vmem:[%s5543_s8 + $0x1b8] sm:$0xff]   ;;  %v5167_v50 = vld [vmem:[%s5543_s8 + $0x2a0] sm:$0xff]  }
  0x6b   : > { %4825 = vmatmul.mubr.msk.bf16.vlgmr.msra.gmra.mxu0 %vm1352_vm2, %v5112_v59  ;;  %4891 = vmatmul.mubr.msk.bf16.vlgmr.msra.gmra.mxu1 %vm1352_vm2, %v5113_v60  ;;  %v5172_v55 = vld [vmem:[%s5543_s8 + $0x1d8] sm:$0xff]   ;;  %v5176_v59 = vld [vmem:[%s5543_s8 + $0x1e8] sm:$0xff]  }
  0x6c   : > { %4947 = vmatpush3.bf16.msra.mxu0 %v1442_v53  ;;  %5013 = vmatpush3.bf16.msra.mxu1 %v1442_v53  ;;  %v5170_v53 = vld [vmem:[%s5543_s8 + $0x1d0] sm:$0xff]   ;;  %v5173_v56 = vld [vmem:[%s5543_s8 + $0x2b8] sm:$0xff]   ;;  %v5177_v60 = vld [vmem:[%s5543_s8 + $0x2c8] sm:$0xff]  }
  0x6d   : > { %4828 = vmatprep.mubr.msk.bf16.mxu0 %vm1352_vm2, %v5114_v61  ;;  %4894 = vmatprep.mubr.msk.bf16.mxu1 %vm1352_vm2, %v5115_v62  ;;  %v5178_v61 = vld [vmem:[%s5543_s8 + $0x1f0] sm:$0xff]  }
  0x6e   : > { %4948 = vmatprep.subr.bf16.mxu0 %v5106_v52  ;;  %5014 = vmatprep.subr.bf16.mxu1 %v5106_v52  ;;  %v5179_v62 = vld [vmem:[%s5543_s8 + $0x2d0] sm:$0xff]  }
  0x70   : > { %4949 = vmatpush3.bf16.msra.mxu0 %v5106_v52  ;;  %5015 = vmatpush3.bf16.msra.mxu1 %v5106_v52  ;;  %v5169_v52 = vld [vmem:[%s5543_s8 + $0x2a8] sm:$0xff]  }
  0x71   : > { %4950 = vmatprep.subr.bf16.mxu0 %v5107_v54  ;;  %5016 = vmatprep.subr.bf16.mxu1 %v5107_v54 }
  0x73   : > { %4829 = vmatmul.mubr.msk.bf16.gmra.mxu0 %vm1352_vm2, %v5116_v63  ;;  %4895 = vmatmul.mubr.msk.bf16.gmra.mxu1 %vm1352_vm2, %v5117_v0  ;;  %v5180_v63 = vld [vmem:[%s5543_s8 + $0x1f8] sm:$0xff]  }
  0x74   : > { %4832 = vmatprep.mubr.msk.bf16.mxu0 %vm1352_vm2, %v5118_v1  ;;  %4898 = vmatprep.mubr.msk.bf16.mxu1 %vm1352_vm2, %v5119_v2  ;;  %v5181_v0 = vld [vmem:[%s5543_s8 + $0x2d8] sm:$0xff]   ;;  %v5182_v1 = vld [vmem:[%s5543_s8 + $0x200] sm:$0xff]  }
  0x75   : > { %4951 = vmatpush3.bf16.msra.mxu0 %v5107_v54  ;;  %5017 = vmatpush3.bf16.msra.mxu1 %v5107_v54  ;;  %v5171_v54 = vld [vmem:[%s5543_s8 + $0x2b0] sm:$0xff]   ;;  %v5183_v2 = vld [vmem:[%s5543_s8 + $0x2e0] sm:$0xff]  }
  0x76   : > { %4952 = vmatprep.subr.bf16.mxu0 %v5108_v57  ;;  %5018 = vmatprep.subr.bf16.mxu1 %v5108_v57 }
  0x79   : > { %4953 = vmatpush3.bf16.msra.mxu0 %v5108_v57  ;;  %5019 = vmatpush3.bf16.msra.mxu1 %v5108_v57  ;;  %v5174_v57 = vld [vmem:[%s5543_s8 + $0x1e0] sm:$0xff]  }
  0x7a   : > { %4954 = vmatprep.subr.bf16.mxu0 %v5109_v58  ;;  %5020 = vmatprep.subr.bf16.mxu1 %v5109_v58 }
  0x7b   : > { %4833 = vmatmul.mubr.msk.bf16.gmra.mxu0 %vm1352_vm2, %v5120_v3  ;;  %4899 = vmatmul.mubr.msk.bf16.gmra.mxu1 %vm1352_vm2, %v5121_v4  ;;  %v5184_v3 = vld [vmem:[%s5543_s8 + $0x208] sm:$0xff]  }
  0x7c   : > { %4836 = vmatprep.mubr.msk.bf16.mxu0 %vm1352_vm2, %v5122_v5  ;;  %4902 = vmatprep.mubr.msk.bf16.mxu1 %vm1352_vm2, %v5123_v6  ;;  %v5185_v4 = vld [vmem:[%s5543_s8 + $0x2e8] sm:$0xff]   ;;  %v5186_v5 = vld [vmem:[%s5543_s8 + $0x210] sm:$0xff]  }
  0x7d   : > { %4955 = vmatpush3.bf16.msra.mxu0 %v5109_v58  ;;  %5021 = vmatpush3.bf16.msra.mxu1 %v5109_v58  ;;  %v5175_v58 = vld [vmem:[%s5543_s8 + $0x2c0] sm:$0xff]   ;;  %v5187_v6 = vld [vmem:[%s5543_s8 + $0x2f0] sm:$0xff]  }
  0x83   : > { %4837 = vmatmul.mubr.msk.bf16.gmra.mxu0 %vm1352_vm2, %v5124_v7  ;;  %4903 = vmatmul.mubr.msk.bf16.gmra.mxu1 %vm1352_vm2, %v5125_v8  ;;  %v5188_v7 = vld [vmem:[%s5543_s8 + $0x218] sm:$0xff]  }
  0x84   : > { %4840 = vmatprep.mubr.msk.bf16.mxu0 %vm1352_vm2, %v5126_v9  ;;  %4906 = vmatprep.mubr.msk.bf16.mxu1 %vm1352_vm2, %v5127_v10  ;;  %v5189_v8 = vld [vmem:[%s5543_s8 + $0x2f8] sm:$0xff]   ;;  %v5190_v9 = vld [vmem:[%s5543_s8 + $0x220] sm:$0xff]  }
  0x85   : > { %v5191_v10 = vld [vmem:[%s5543_s8 + $0x300] sm:$0xff]  }
  0x8b   : > { %4841 = vmatmul.mubr.msk.bf16.gmra.mxu0 %vm1352_vm2, %v5128_v11  ;;  %4907 = vmatmul.mubr.msk.bf16.gmra.mxu1 %vm1352_vm2, %v5129_v12  ;;  %v5192_v11 = vld [vmem:[%s5543_s8 + $0x228] sm:$0xff]  }
  0x8c   : > { %4844 = vmatprep.mubr.msk.bf16.mxu0 %vm1352_vm2, %v5130_v13  ;;  %4910 = vmatprep.mubr.msk.bf16.mxu1 %vm1352_vm2, %v5131_v14  ;;  %v5193_v12 = vld [vmem:[%s5543_s8 + $0x308] sm:$0xff]   ;;  %v5194_v13 = vld [vmem:[%s5543_s8 + $0x230] sm:$0xff]  }
  0x8d   : > { %v5195_v14 = vld [vmem:[%s5543_s8 + $0x310] sm:$0xff]  }
  0x93   : > { %4845 = vmatmul.mubr.msk.bf16.gmra.mxu0 %vm1352_vm2, %v5132_v15  ;;  %4911 = vmatmul.mubr.msk.bf16.gmra.mxu1 %vm1352_vm2, %v5133_v16  ;;  %v5196_v15 = vld [vmem:[%s5543_s8 + $0x238] sm:$0xff]  }
  0x94   : > { %4848 = vmatprep.mubr.msk.bf16.mxu0 %vm1352_vm2, %v5134_v17  ;;  %4914 = vmatprep.mubr.msk.bf16.mxu1 %vm1352_vm2, %v5135_v18  ;;  %v5197_v16 = vld [vmem:[%s5543_s8 + $0x318] sm:$0xff]   ;;  %v5198_v17 = vld [vmem:[%s5543_s8 + $0x240] sm:$0xff]  }
  0x95   : > { %v5199_v18 = vld [vmem:[%s5543_s8 + $0x320] sm:$0xff]  }
  0x9b   : > { %4849 = vmatmul.mubr.msk.bf16.gmra.mxu0 %vm1352_vm2, %v5136_v19  ;;  %4915 = vmatmul.mubr.msk.bf16.gmra.mxu1 %vm1352_vm2, %v5137_v20  ;;  %v5200_v19 = vld [vmem:[%s5543_s8 + $0x248] sm:$0xff]  }
  0x9c   : > { %4852 = vmatprep.mubr.msk.bf16.mxu0 %vm1352_vm2, %v5138_v21  ;;  %4918 = vmatprep.mubr.msk.bf16.mxu1 %vm1352_vm2, %v5139_v22  ;;  %v5201_v20 = vld [vmem:[%s5543_s8 + $0x328] sm:$0xff]   ;;  %v5202_v21 = vld [vmem:[%s5543_s8 + $0x250] sm:$0xff]  }
  0x9d   : > { %v5203_v22 = vld [vmem:[%s5543_s8 + $0x330] sm:$0xff]  }
  0xa3   : > { %4853 = vmatmul.mubr.msk.bf16.gmra.mxu0 %vm1352_vm2, %v5140_v23  ;;  %4919 = vmatmul.mubr.msk.bf16.gmra.mxu1 %vm1352_vm2, %v5141_v24  ;;  %v5204_v23 = vld [vmem:[%s5543_s8 + $0x258] sm:$0xff]  }
  0xa4   : > { %4856 = vmatprep.mubr.msk.bf16.mxu0 %vm1352_vm2, %v5142_v25  ;;  %4922 = vmatprep.mubr.msk.bf16.mxu1 %vm1352_vm2, %v5143_v26  ;;  %v5205_v24 = vld [vmem:[%s5543_s8 + $0x338] sm:$0xff]   ;;  %v5206_v25 = vld [vmem:[%s5543_s8 + $0x260] sm:$0xff]  }
  0xa5   : > { %v5207_v26 = vld [vmem:[%s5543_s8 + $0x340] sm:$0xff]  }
  0xab   : > { %4857 = vmatmul.mubr.msk.bf16.gmra.mxu0 %vm1352_vm2, %v5144_v27  ;;  %4923 = vmatmul.mubr.msk.bf16.gmra.mxu1 %vm1352_vm2, %v5145_v28  ;;  %v5208_v27 = vld [vmem:[%s5543_s8 + $0x268] sm:$0xff]  }
  0xac   : > { %4860 = vmatprep.mubr.msk.bf16.mxu0 %vm1352_vm2, %v5146_v29  ;;  %4926 = vmatprep.mubr.msk.bf16.mxu1 %vm1352_vm2, %v5147_v30  ;;  %v5209_v28 = vld [vmem:[%s5543_s8 + $0x348] sm:$0xff]   ;;  %v5210_v29 = vld [vmem:[%s5543_s8 + $0x270] sm:$0xff]  }
  0xad   : > { %v5211_v30 = vld [vmem:[%s5543_s8 + $0x350] sm:$0xff]  }
  0xb3   : > { %4861 = vmatmul.mubr.msk.bf16.gmra.mxu0 %vm1352_vm2, %v5148_v31  ;;  %4927 = vmatmul.mubr.msk.bf16.gmra.mxu1 %vm1352_vm2, %v5149_v32  ;;  %v5754_v31 = vld [vmem:[%s7007_s2] ss:$0 sm:$0xff] }
  0xb4   : > { %4864 = vmatprep.mubr.msk.bf16.mxu0 %vm1352_vm2, %v5150_v33  ;;  %4930 = vmatprep.mubr.msk.bf16.mxu1 %vm1352_vm2, %v5151_v34 }
  0xbb   : > { %4865 = vmatmul.mubr.msk.bf16.gmra.mxu0 %vm1352_vm2, %v5152_v35  ;;  %4931 = vmatmul.mubr.msk.bf16.gmra.mxu1 %vm1352_vm2, %v5153_v36 }
  0xbc   : > { %4868 = vmatprep.mubr.msk.bf16.mxu0 %vm1352_vm2, %v5154_v37  ;;  %4934 = vmatprep.mubr.msk.bf16.mxu1 %vm1352_vm2, %v5155_v38 }
  0xc3   : > { %4869 = vmatmul.mubr.msk.bf16.gmra.mxu0 %vm1352_vm2, %v5156_v39  ;;  %4935 = vmatmul.mubr.msk.bf16.gmra.mxu1 %vm1352_vm2, %v5157_v40 }
  0xc4   : > { %4872 = vmatprep.mubr.msk.bf16.mxu0 %vm1352_vm2, %v5158_v41  ;;  %4938 = vmatprep.mubr.msk.bf16.mxu1 %vm1352_vm2, %v5159_v42 }
  0xcb   : > { %4873 = vmatmul.mubr.msk.bf16.gmra.mxu0 %vm1352_vm2, %v5160_v43  ;;  %4939 = vmatmul.mubr.msk.bf16.gmra.mxu1 %vm1352_vm2, %v5161_v44  ;;  %v5212_v44 = vld [vmem:[%s5543_s8 + $0x278] sm:$0xff]  }
  0xcc   : > { %4876 = vmatprep.mubr.msk.bf16.mxu0 %vm1352_vm2, %v5162_v45  ;;  %4942 = vmatprep.mubr.msk.bf16.mxu1 %vm1352_vm2, %v5163_v46  ;;  %v5213_v45 = vld [vmem:[%s5543_s8 + $0x358] sm:$0xff]  }
  0xd3   : > { %4877 = vmatmul.mubr.msk.bf16.gmra.mxu0 %vm1352_vm2, %v5164_v47  ;;  %4943 = vmatmul.mubr.msk.bf16.gmra.mxu1 %vm1352_vm2, %v5165_v48 }
  0xd4   : > { %4956 = vmatprep.mubr.msk.bf16.mxu0 %vm1352_vm2, %v5166_v49  ;;  %5022 = vmatprep.mubr.msk.bf16.mxu1 %vm1352_vm2, %v5167_v50  ;;  %v5214_v50 = vld [vmem:[%s5543_s8 + $0x280] sm:$0xff]  }
  0xdb   : > { %4957 = vmatmul.mubr.msk.bf16.vlgmr.msra.gmra.mxu0 %vm1352_vm2, %v5168_v51  ;;  %5023 = vmatmul.mubr.msk.bf16.vlgmr.msra.gmra.mxu1 %vm1352_vm2, %v5169_v52 }
  0xdc   : > { %4960 = vmatprep.mubr.msk.bf16.mxu0 %vm1352_vm2, %v5170_v53  ;;  %5026 = vmatprep.mubr.msk.bf16.mxu1 %vm1352_vm2, %v5171_v54 }
  0xe3   : > { %4961 = vmatmul.mubr.msk.bf16.gmra.mxu0 %vm1352_vm2, %v5172_v55  ;;  %5027 = vmatmul.mubr.msk.bf16.gmra.mxu1 %vm1352_vm2, %v5173_v56  ;;  %v5215_v55 = vld [vmem:[%s5543_s8 + $0x360] sm:$0xff]  }
  0xe4   : > { %4964 = vmatprep.mubr.msk.bf16.mxu0 %vm1352_vm2, %v5174_v57  ;;  %5030 = vmatprep.mubr.msk.bf16.mxu1 %vm1352_vm2, %v5175_v58 }
  0xeb   : > { %4965 = vmatmul.mubr.msk.bf16.gmra.mxu0 %vm1352_vm2, %v5176_v59  ;;  %5031 = vmatmul.mubr.msk.bf16.gmra.mxu1 %vm1352_vm2, %v5177_v60 }
  0xec   : > { %4968 = vmatprep.mubr.msk.bf16.mxu0 %vm1352_vm2, %v5178_v61  ;;  %5034 = vmatprep.mubr.msk.bf16.mxu1 %vm1352_vm2, %v5179_v62 }
  0xf3   : > { %4969 = vmatmul.mubr.msk.bf16.gmra.mxu0 %vm1352_vm2, %v5180_v63  ;;  %5035 = vmatmul.mubr.msk.bf16.gmra.mxu1 %vm1352_vm2, %v5181_v0 }
  0xf4   : > { %4972 = vmatprep.mubr.msk.bf16.mxu0 %vm1352_vm2, %v5182_v1  ;;  %5038 = vmatprep.mubr.msk.bf16.mxu1 %vm1352_vm2, %v5183_v2 }
  0xfb   : > { %4973 = vmatmul.mubr.msk.bf16.gmra.mxu0 %vm1352_vm2, %v5184_v3  ;;  %5039 = vmatmul.mubr.msk.bf16.gmra.mxu1 %vm1352_vm2, %v5185_v4 }
  0xfc   : > { %4976 = vmatprep.mubr.msk.bf16.mxu0 %vm1352_vm2, %v5186_v5  ;;  %5042 = vmatprep.mubr.msk.bf16.mxu1 %vm1352_vm2, %v5187_v6 }
 0x103   : > { %4977 = vmatmul.mubr.msk.bf16.gmra.mxu0 %vm1352_vm2, %v5188_v7  ;;  %5043 = vmatmul.mubr.msk.bf16.gmra.mxu1 %vm1352_vm2, %v5189_v8 }
 0x104   : > { %4980 = vmatprep.mubr.msk.bf16.mxu0 %vm1352_vm2, %v5190_v9  ;;  %5046 = vmatprep.mubr.msk.bf16.mxu1 %vm1352_vm2, %v5191_v10 }
 0x10b   : > { %4981 = vmatmul.mubr.msk.bf16.gmra.mxu0 %vm1352_vm2, %v5192_v11  ;;  %5047 = vmatmul.mubr.msk.bf16.gmra.mxu1 %vm1352_vm2, %v5193_v12  ;;  %v5216_v11 = vld [vmem:[%s5543_s8 + $0x288] sm:$0xff]  }
 0x10c   : > { %4984 = vmatprep.mubr.msk.bf16.mxu0 %vm1352_vm2, %v5194_v13  ;;  %5050 = vmatprep.mubr.msk.bf16.mxu1 %vm1352_vm2, %v5195_v14 }
 0x113   : > { %4985 = vmatmul.mubr.msk.bf16.gmra.mxu0 %vm1352_vm2, %v5196_v15  ;;  %5051 = vmatmul.mubr.msk.bf16.gmra.mxu1 %vm1352_vm2, %v5197_v16 }
 0x114   : > { %4988 = vmatprep.mubr.msk.bf16.mxu0 %vm1352_vm2, %v5198_v17  ;;  %5054 = vmatprep.mubr.msk.bf16.mxu1 %vm1352_vm2, %v5199_v18  ;;  %v5217_v17 = vld [vmem:[%s5543_s8 + $0x368] sm:$0xff]  }
 0x11b   : > { %4989 = vmatmul.mubr.msk.bf16.gmra.mxu0 %vm1352_vm2, %v5200_v19  ;;  %5055 = vmatmul.mubr.msk.bf16.gmra.mxu1 %vm1352_vm2, %v5201_v20 }
 0x11c   : > { %4992 = vmatprep.mubr.msk.bf16.mxu0 %vm1352_vm2, %v5202_v21  ;;  %5058 = vmatprep.mubr.msk.bf16.mxu1 %vm1352_vm2, %v5203_v22  ;;  %v5218_v22 = vld [vmem:[%s5543_s8 + $0x290] sm:$0xff]  }
 0x123   : > { %4993 = vmatmul.mubr.msk.bf16.gmra.mxu0 %vm1352_vm2, %v5204_v23  ;;  %5059 = vmatmul.mubr.msk.bf16.gmra.mxu1 %vm1352_vm2, %v5205_v24  ;;  %v5219_v23 = vld [vmem:[%s5543_s8 + $0x370] sm:$0xff]  }
 0x124   : > { %4996 = vmatprep.mubr.msk.bf16.mxu0 %vm1352_vm2, %v5206_v25  ;;  %5062 = vmatprep.mubr.msk.bf16.mxu1 %vm1352_vm2, %v5207_v26 }
 0x12b   : > { %v4826_v32 = vpop.f32.mrf.mxu0  ;;  %v4892_v33 = vpop.f32.mrf.mxu1  ;;  %4997 = vmatmul.mubr.msk.bf16.gmra.mxu0 %vm1352_vm2, %v5208_v27  ;;  %5063 = vmatmul.mubr.msk.bf16.gmra.mxu1 %vm1352_vm2, %v5209_v28 }
 0x12c   : > { %v1487_v34 = vadd.f32 %v4826_v32, %v5754_v31  ;;  %v2193_v35 = vadd.f32 %v4892_v33, %v5754_v31  ;;  %5000 = vmatprep.mubr.msk.bf16.mxu0 %vm1352_vm2, %v5210_v29  ;;  %5066 = vmatprep.mubr.msk.bf16.mxu1 %vm1352_vm2, %v5211_v30 }
 0x12d   : > { %v1478_v36 = vpop.f32.mrf.mxu0  ;;  %v2184_v37 = vpop.f32.mrf.mxu1 }
 0x12e   : > { %vm1703_vm3 = vcmp.ge.f32.partialorder %v1487_v34, 0.0  ;;  %v1759_v38 = vmul.f32 0.01, %v1487_v34  ;;  %vm2409_vm4 = vcmp.ge.f32.partialorder %v2193_v35, 0.0  ;;  %v2465_v39 = vmul.f32 0.01, %v2193_v35 }
 0x12f   : > { %v1479_v40 = vadd.f32 %v5754_v31, %v1478_v36  ;;  %v2185_v41 = vadd.f32 %v5754_v31, %v2184_v37  ;;  %v4827_v42 = vpop.f32.mrf.mxu0  ;;  %v4893_v43 = vpop.f32.mrf.mxu1 }
 0x130   : > { %v5766_v46 = vsel %vm1703_vm3, %v1487_v34, %v1759_v38  ;;  %v5768_v47 = vsel %vm2409_vm4, %v2193_v35, %v2465_v39  ;;  %v1490_v48 = vadd.f32 %v4827_v42, %v5754_v31  ;;  %v2196_v49 = vadd.f32 %v4893_v43, %v5754_v31 }
 0x131   : > { %vm1701_vm5 = vcmp.ge.f32.partialorder %v1479_v40, 0.0  ;;  %v1757_v52 = vmul.f32 0.01, %v1479_v40  ;;  %vm2407_vm6 = vcmp.ge.f32.partialorder %v2185_v41, 0.0  ;;  %v1481_v53 = vpop.f32.mrf.mxu0  ;;  %v2187_v54 = vpop.f32.mrf.mxu1  ;;  %v2463_v56 = vmul.f32 0.01, %v2185_v41 }
 0x132   : > { %vm1704_vm7 = vcmp.ge.f32.partialorder %v1490_v48, 0.0  ;;  %v1760_v57 = vmul.f32 0.01, %v1490_v48  ;;  %vm2410_vm8 = vcmp.ge.f32.partialorder %v2196_v49, 0.0  ;;  %v2466_v59 = vmul.f32 0.01, %v2196_v49 }
 0x133   : > { %v5776_v58 = vsel %vm1701_vm5, %v1479_v40, %v1757_v52  ;;  %v1482_v60 = vadd.f32 %v5754_v31, %v1481_v53  ;;  %v2188_v61 = vadd.f32 %v5754_v31, %v2187_v54  ;;  %v4830_v62 = vpop.f32.mrf.mxu0  ;;  %v4896_v63 = vpop.f32.mrf.mxu1  ;;  %5001 = vmatmul.mubr.msk.bf16.gmra.mxu0 %vm1352_vm2, %v5212_v44  ;;  %5067 = vmatmul.mubr.msk.bf16.gmra.mxu1 %vm1352_vm2, %v5213_v45 }
 0x134   : > { %v5783_v0 = vsel %vm2407_vm6, %v2185_v41, %v2463_v56  ;;  %v5785_v1 = vsel %vm1704_vm7, %v1490_v48, %v1760_v57  ;;  %v1503_v2 = vadd.f32 %v4830_v62, %v5754_v31  ;;  %v2209_v3 = vadd.f32 %v4896_v63, %v5754_v31  ;;  %5004 = vmatprep.mubr.msk.bf16.mxu0 %vm1352_vm2, %v5214_v50  ;;  %v5220_v57 = vld [vmem:[%s5543_s8 + $0x298] sm:$0xff]  }
 0x135   : > { %v5792_v5 = vsel %vm2410_vm8, %v2196_v49, %v2466_v59  ;;  %vm1702_vm9 = vcmp.ge.f32.partialorder %v1482_v60, 0.0  ;;  %v1758_v6 = vmul.f32 0.01, %v1482_v60  ;;  %v1494_v7 = vpop.f32.mrf.mxu0  ;;  %v2200_v8 = vpop.f32.mrf.mxu1  ;;  %5070 = vmatprep.mubr.msk.bf16.mxu1 %vm1352_vm2, %v5215_v55  ;;  %vm2408_vm10 = vcmp.ge.f32.partialorder %v2188_v61, 0.0  ;;  %v5221_v59 = vld [vmem:[%s5543_s8 + $0x378] sm:$0xff]  }
 0x136   : > { %v2464_v10 = vmul.f32 0.01, %v2188_v61  ;;  %vm1707_vm11 = vcmp.ge.f32.partialorder %v1503_v2, 0.0  ;;  %v1763_v13 = vmul.f32 0.01, %v1503_v2  ;;  %vm2413_vm12 = vcmp.ge.f32.partialorder %v2209_v3, 0.0 }
 0x137   : > { %v5798_v12 = vsel %vm1702_vm9, %v1482_v60, %v1758_v6  ;;  %v2469_v14 = vmul.f32 0.01, %v2209_v3  ;;  %v4831_v15 = vpop.f32.mrf.mxu0  ;;  %v4897_v16 = vpop.f32.mrf.mxu1  ;;  %v1495_v19 = vadd.f32 %v5754_v31, %v1494_v7  ;;  %v2201_v20 = vadd.f32 %v5754_v31, %v2200_v8 }
 0x138   : > { %v5801_v18 = vsel %vm2408_vm10, %v2188_v61, %v2464_v10  ;;  %v1506_v21 = vadd.f32 %v4831_v15, %v5754_v31  ;;  %v5811_v25 = vsel %vm1707_vm11, %v1503_v2, %v1763_v13  ;;  %v2212_v27 = vadd.f32 %v4897_v16, %v5754_v31 }
 0x139   : > { %v5813_v26 = vsel %vm2413_vm12, %v2209_v3, %v2469_v14  ;;  %v1497_v28 = vpop.f32.mrf.mxu0  ;;  %v2203_v29 = vpop.f32.mrf.mxu1  ;;  %vm1705_vm13 = vcmp.ge.f32.partialorder %v1495_v19, 0.0  ;;  %v1761_v32 = vmul.f32 0.01, %v1495_v19  ;;  %vm2411_vm14 = vcmp.ge.f32.partialorder %v2201_v20, 0.0 }
 0x13a   : > { %v2467_v33 = vmul.f32 0.01, %v2201_v20  ;;  %vm1708_vm15 = vcmp.ge.f32.partialorder %v1506_v21, 0.0  ;;  %v1764_v34 = vmul.f32 0.01, %v1506_v21  ;;  %vm2414_vm0 = vcmp.ge.f32.partialorder %v2212_v27, 0.0 }
 0x13b   : > { %v4834_v35 = vpop.f32.mrf.mxu0  ;;  %v4900_v36 = vpop.f32.mrf.mxu1  ;;  %5005 = vmatmul.mubr.msk.bf16.gmra.mxu0 %vm1352_vm2, %v5216_v11  ;;  %5071 = vmatmul.mubr.msk.bf16.gmra.mxu1 %vm1352_vm2, %v5217_v17  ;;  %v5820_v37 = vsel %vm1705_vm13, %v1495_v19, %v1761_v32  ;;  %v2470_v38 = vmul.f32 0.01, %v2212_v27  ;;  %v1498_v39 = vadd.f32 %v5754_v31, %v1497_v28  ;;  %v2204_v40 = vadd.f32 %v5754_v31, %v2203_v29 }
 0x13c   : > { %5008 = vmatprep.mubr.msk.bf16.mxu0 %vm1352_vm2, %v5218_v22  ;;  %5074 = vmatprep.mubr.msk.bf16.mxu1 %vm1352_vm2, %v5219_v23  ;;  %v5826_v41 = vsel %vm2411_vm14, %v2201_v20, %v2467_v33  ;;  %v5828_v42 = vsel %vm1708_vm15, %v1506_v21, %v1764_v34  ;;  %v1519_v43 = vadd.f32 %v4834_v35, %v5754_v31 }
 0x13d   : > { %v2225_v44 = vadd.f32 %v4900_v36, %v5754_v31  ;;  %v1510_v45 = vpop.f32.mrf.mxu0  ;;  %v2216_v48 = vpop.f32.mrf.mxu1  ;;  %v5835_v50 = vsel %vm2414_vm0, %v2212_v27, %v2470_v38  ;;  %vm1706_vm1 = vcmp.ge.f32.partialorder %v1498_v39, 0.0  ;;  %v1762_v52 = vmul.f32 0.01, %v1498_v39 }
 0x13e   : > { %vm2412_vm3 = vcmp.ge.f32.partialorder %v2204_v40, 0.0  ;;  %v2468_v54 = vmul.f32 0.01, %v2204_v40  ;;  %vm1711_vm4 = vcmp.ge.f32.partialorder %v1519_v43, 0.0  ;;  %v1767_v61 = vmul.f32 0.01, %v1519_v43 }
 0x13f   : > { %v4835_v55 = vpop.f32.mrf.mxu0  ;;  %v4901_v56 = vpop.f32.mrf.mxu1  ;;  %v5841_v60 = vsel %vm1706_vm1, %v1498_v39, %v1762_v52  ;;  %vm2417_vm5 = vcmp.ge.f32.partialorder %v2225_v44, 0.0  ;;  %v2473_v62 = vmul.f32 0.01, %v2225_v44  ;;  %v1511_v2 = vadd.f32 %v5754_v31, %v1510_v45 }
 0x140   : > { %v5843_v63 = vsel %vm2412_vm3, %v2204_v40, %v2468_v54  ;;  %v2217_v3 = vadd.f32 %v5754_v31, %v2216_v48  ;;  %v1522_v6 = vadd.f32 %v4835_v55, %v5754_v31  ;;  %v5851_v11 = vsel %vm1711_vm4, %v1519_v43, %v1767_v61 }
 0x141   : > { %v1513_v7 = vpop.f32.mrf.mxu0  ;;  %v2219_v8 = vpop.f32.mrf.mxu1  ;;  %v5853_v13 = vsel %vm2417_vm5, %v2225_v44, %v2473_v62  ;;  %v2228_v14 = vadd.f32 %v4901_v56, %v5754_v31  ;;  %vm1709_vm6 = vcmp.ge.f32.partialorder %v1511_v2, 0.0  ;;  %v1765_v16 = vmul.f32 0.01, %v1511_v2 }
 0x142   : > { %vm2415_vm7 = vcmp.ge.f32.partialorder %v2217_v3, 0.0  ;;  %v2471_v20 = vmul.f32 0.01, %v2217_v3  ;;  %vm1712_vm8 = vcmp.ge.f32.partialorder %v1522_v6, 0.0  ;;  %v1768_v21 = vmul.f32 0.01, %v1522_v6 }
 0x143   : > { %v4838_v17 = vpop.f32.mrf.mxu0  ;;  %v4904_v19 = vpop.f32.mrf.mxu1  ;;  %5009 = vmatmul.mubr.msk.bf16.gmra.mxu0 %vm1352_vm2, %v5220_v57  ;;  %5075 = vmatmul.mubr.msk.bf16.gmra.mxu1 %vm1352_vm2, %v5221_v59  ;;  %vm2418_vm9 = vcmp.ge.f32.partialorder %v2228_v14, 0.0  ;;  %v5860_v22 = vsel %vm1709_vm6, %v1511_v2, %v1765_v16  ;;  %v2474_v23 = vmul.f32 0.01, %v2228_v14  ;;  %v1514_v27 = vadd.f32 %v5754_v31, %v1513_v7 }
 0x144   : > { %v2220_v28 = vadd.f32 %v5754_v31, %v2219_v8  ;;  %v5864_v33 = vsel %vm2415_vm7, %v2217_v3, %v2471_v20  ;;  %v5866_v34 = vsel %vm1712_vm8, %v1522_v6, %v1768_v21  ;;  %v1535_v35 = vadd.f32 %v4838_v17, %v5754_v31 }
 0x145   : > { %v1526_v29 = vpop.f32.mrf.mxu0  ;;  %v2232_v32 = vpop.f32.mrf.mxu1  ;;  %v2241_v36 = vadd.f32 %v4904_v19, %v5754_v31  ;;  %v5872_v39 = vsel %vm2418_vm9, %v2228_v14, %v2474_v23  ;;  %vm1710_vm2 = vcmp.ge.f32.partialorder %v1514_v27, 0.0  ;;  %v1766_v40 = vmul.f32 0.01, %v1514_v27 }
 0x146   : > { %vm2416_vm10 = vcmp.ge.f32.partialorder %v2220_v28, 0.0  ;;  %v2472_v48 = vmul.f32 0.01, %v2220_v28  ;;  %vm1715_vm11 = vcmp.ge.f32.partialorder %v1535_v35, 0.0  ;;  %v1771_v54 = vmul.f32 0.01, %v1535_v35 }
 0x147   : > { %v4839_v43 = vpop.f32.mrf.mxu0  ;;  %v4905_v44 = vpop.f32.mrf.mxu1  ;;  %v5876_v52 = vsel %vm1710_vm2, %v1514_v27, %v1766_v40  ;;  %vm2421_vm12 = vcmp.ge.f32.partialorder %v2241_v36, 0.0  ;;  %v2477_v55 = vmul.f32 0.01, %v2241_v36  ;;  %v1527_v61 = vadd.f32 %v5754_v31, %v1526_v29 }
 0x148   : > { %v5878_v59 = vsel %vm2416_vm10, %v2220_v28, %v2472_v48  ;;  %v2233_v62 = vadd.f32 %v5754_v31, %v2232_v32  ;;  %v1538_v2 = vadd.f32 %v4839_v43, %v5754_v31  ;;  %v5885_v6 = vsel %vm1715_vm11, %v1535_v35, %v1771_v54 }
 0x149   : > { %v1529_v56 = vpop.f32.mrf.mxu0  ;;  %v2235_v57 = vpop.f32.mrf.mxu1  ;;  %v5887_v7 = vsel %vm2421_vm12, %v2241_v36, %v2477_v55  ;;  %v2244_v8 = vadd.f32 %v4905_v44, %v5754_v31  ;;  %vm1713_vm13 = vcmp.ge.f32.partialorder %v1527_v61, 0.0  ;;  %v1769_v19 = vmul.f32 0.01, %v1527_v61 }
 0x14a   : > { %vm2419_vm14 = vcmp.ge.f32.partialorder %v2233_v62, 0.0  ;;  %v2475_v20 = vmul.f32 0.01, %v2233_v62  ;;  %vm1716_vm15 = vcmp.ge.f32.partialorder %v1538_v2, 0.0  ;;  %v1772_v21 = vmul.f32 0.01, %v1538_v2 }
 0x14b   : > { %v4842_v14 = vpop.f32.mrf.mxu0  ;;  %v4908_v16 = vpop.f32.mrf.mxu1  ;;  %vm2422_vm0 = vcmp.ge.f32.partialorder %v2244_v8, 0.0  ;;  %v5892_v28 = vsel %vm1713_vm13, %v1527_v61, %v1769_v19  ;;  %v2478_v29 = vmul.f32 0.01, %v2244_v8  ;;  %v1530_v32 = vadd.f32 %v5754_v31, %v1529_v56 }
 0x14c   : > { %v2236_v35 = vadd.f32 %v5754_v31, %v2235_v57  ;;  %v5896_v36 = vsel %vm2419_vm14, %v2233_v62, %v2475_v20  ;;  %v5898_v40 = vsel %vm1716_vm15, %v1538_v2, %v1772_v21  ;;  %v1551_v43 = vadd.f32 %v4842_v14, %v5754_v31 }
 0x14d   : > { %v1542_v23 = vpop.f32.mrf.mxu0  ;;  %v2248_v27 = vpop.f32.mrf.mxu1  ;;  %7093 = vst [vmem:[#allocation3_spill] sm:$0xff] %v5898_v40  ;;  %v2257_v44 = vadd.f32 %v4908_v16, %v5754_v31  ;;  %v5904_v61 = vsel %vm2422_vm0, %v2244_v8, %v2478_v29  ;;  %vm1714_vm1 = vcmp.ge.f32.partialorder %v1530_v32, 0.0  ;;  %v1770_v19 = vmul.f32 0.01, %v1530_v32 }
 0x14e   : > { %7094 = vst [vmem:[#allocation4_spill] sm:$0xff] %v5904_v61  ;;  %vm2420_vm3 = vcmp.ge.f32.partialorder %v2236_v35, 0.0  ;;  %v2476_v57 = vmul.f32 0.01, %v2236_v35  ;;  %vm1719_vm4 = vcmp.ge.f32.partialorder %v1551_v43, 0.0  ;;  %v1543_v8 = vadd.f32 %v5754_v31, %v1542_v23 }
 0x14f   : > { %v4843_v48 = vpop.f32.mrf.mxu0  ;;  %v4909_v54 = vpop.f32.mrf.mxu1  ;;  %v5908_v14 = vsel %vm1714_vm1, %v1530_v32, %v1770_v19  ;;  %v1775_v16 = vmul.f32 0.01, %v1551_v43  ;;  %vm2425_vm5 = vcmp.ge.f32.partialorder %v2257_v44, 0.0  ;;  %v2481_v20 = vmul.f32 0.01, %v2257_v44 }
 0x150   : > { %7095 = vst [vmem:[#allocation5_spill] sm:$0xff] %v5908_v14  ;;  %v5910_v21 = vsel %vm2420_vm3, %v2236_v35, %v2476_v57  ;;  %v2249_v29 = vadd.f32 %v5754_v31, %v2248_v27  ;;  %v1554_v55 = vadd.f32 %v4843_v48, %v5754_v31  ;;  %v2260_v19 = vadd.f32 %v4909_v54, %v5754_v31 }
 0x151   : > { %v1545_v62 = vpop.f32.mrf.mxu0  ;;  %v2251_v2 = vpop.f32.mrf.mxu1  ;;  %7096 = vst [vmem:[#allocation6_spill] sm:$0xff] %v5910_v21  ;;  %v5917_v45 = vsel %vm1719_vm4, %v1551_v43, %v1775_v16  ;;  %v5919_v32 = vsel %vm2425_vm5, %v2257_v44, %v2481_v20  ;;  %vm1717_vm6 = vcmp.ge.f32.partialorder %v1543_v8, 0.0  ;;  %v1773_v23 = vmul.f32 0.01, %v1543_v8 }
 0x152   : > { %7097 = vst [vmem:[#allocation7_spill] sm:$0xff] %v5917_v45  ;;  %7098 = vst [vmem:[#allocation8_spill] sm:$0xff] %v5919_v32  ;;  %vm2423_vm7 = vcmp.ge.f32.partialorder %v2249_v29, 0.0  ;;  %v2479_v48 = vmul.f32 0.01, %v2249_v29  ;;  %vm1720_vm8 = vcmp.ge.f32.partialorder %v1554_v55, 0.0  ;;  %v1546_v44 = vadd.f32 %v5754_v31, %v1545_v62 }
 0x153   : > { %v4846_v17 = vpop.f32.mrf.mxu0  ;;  %v4912_v56 = vpop.f32.mrf.mxu1  ;;  %v1776_v38 = vmul.f32 0.01, %v1554_v55  ;;  %vm2426_vm9 = vcmp.ge.f32.partialorder %v2260_v19, 0.0  ;;  %v5924_v15 = vsel %vm1717_vm6, %v1543_v8, %v1773_v23  ;;  %v2482_v43 = vmul.f32 0.01, %v2260_v19 }
 0x154   : > { %7099 = vst [vmem:[#allocation9_spill] sm:$0xff] %v5924_v15  ;;  %v2252_v16 = vadd.f32 %v5754_v31, %v2251_v2  ;;  %v5928_v3 = vsel %vm2423_vm7, %v2249_v29, %v2479_v48  ;;  %v1567_v10 = vadd.f32 %v4846_v17, %v5754_v31  ;;  %v2273_v53 = vadd.f32 %v4912_v56, %v5754_v31 }
 0x155   : > { %v1558_v27 = vpop.f32.mrf.mxu0  ;;  %v2264_v57 = vpop.f32.mrf.mxu1  ;;  %7100 = vst [vmem:[#allocation10_spill] sm:$0xff] %v5928_v3  ;;  %v5930_v35 = vsel %vm1720_vm8, %v1554_v55, %v1776_v38  ;;  %v5936_v8 = vsel %vm2426_vm9, %v2260_v19, %v2482_v43  ;;  %vm1718_vm2 = vcmp.ge.f32.partialorder %v1546_v44, 0.0  ;;  %v1774_v23 = vmul.f32 0.01, %v1546_v44 }
 0x156   : > { %7101 = vst [vmem:[#allocation11_spill] sm:$0xff] %v5930_v35  ;;  %7102 = vst [vmem:[#allocation12_spill] sm:$0xff] %v5936_v8  ;;  %vm2424_vm10 = vcmp.ge.f32.partialorder %v2252_v16, 0.0  ;;  %v2480_v29 = vmul.f32 0.01, %v2252_v16  ;;  %vm1723_vm11 = vcmp.ge.f32.partialorder %v1567_v10, 0.0  ;;  %v1559_v19 = vadd.f32 %v5754_v31, %v1558_v27 }
 0x157   : > { %v4847_v54 = vpop.f32.mrf.mxu0  ;;  %v4913_v20 = vpop.f32.mrf.mxu1  ;;  %v5940_v38 = vsel %vm1718_vm2, %v1546_v44, %v1774_v23  ;;  %v1779_v17 = vmul.f32 0.01, %v1567_v10  ;;  %vm2429_vm12 = vcmp.ge.f32.partialorder %v2273_v53, 0.0  ;;  %v2485_v55 = vmul.f32 0.01, %v2273_v53 }
 0x158   : > { %7103 = vst [vmem:[#allocation13_spill] sm:$0xff] %v5940_v38  ;;  %v5942_v49 = vsel %vm2424_vm10, %v2252_v16, %v2480_v29  ;;  %v2265_v43 = vadd.f32 %v5754_v31, %v2264_v57  ;;  %v1570_v24 = vadd.f32 %v4847_v54, %v5754_v31  ;;  %v2276_v23 = vadd.f32 %v4913_v20, %v5754_v31 }
 0x159   : > { %v1561_v62 = vpop.f32.mrf.mxu0  ;;  %v2267_v30 = vpop.f32.mrf.mxu1  ;;  %7104 = vst [vmem:[#allocation14_spill] sm:$0xff] %v5942_v49  ;;  %v5949_v9 = vsel %vm1723_vm11, %v1567_v10, %v1779_v17  ;;  %v5951_v44 = vsel %vm2429_vm12, %v2273_v53, %v2485_v55  ;;  %vm1721_vm13 = vcmp.ge.f32.partialorder %v1559_v19, 0.0  ;;  %v1777_v27 = vmul.f32 0.01, %v1559_v19 }
 0x15a   : > { %7105 = vst [vmem:[#allocation15_spill] sm:$0xff] %v5949_v9  ;;  %7106 = vst [vmem:[#allocation16_spill] sm:$0xff] %v5951_v44  ;;  %vm2427_vm14 = vcmp.ge.f32.partialorder %v2265_v43, 0.0  ;;  %v2483_v57 = vmul.f32 0.01, %v2265_v43  ;;  %vm1724_vm15 = vcmp.ge.f32.partialorder %v1570_v24, 0.0  ;;  %v1562_v17 = vadd.f32 %v5754_v31, %v1561_v62 }
 0x15b   : > { %v4850_v56 = vpop.f32.mrf.mxu0  ;;  %v4916_v48 = vpop.f32.mrf.mxu1  ;;  %v1780_v54 = vmul.f32 0.01, %v1570_v24  ;;  %vm2430_vm0 = vcmp.ge.f32.partialorder %v2276_v23, 0.0  ;;  %v5956_v10 = vsel %vm1721_vm13, %v1559_v19, %v1777_v27  ;;  %v2486_v53 = vmul.f32 0.01, %v2276_v23 }
 0x15c   : > { %7107 = vst [vmem:[#allocation17_spill] sm:$0xff] %v5956_v10  ;;  %v2268_v20 = vadd.f32 %v5754_v31, %v2267_v30  ;;  %v5960_v55 = vsel %vm2427_vm14, %v2265_v43, %v2483_v57  ;;  %v1583_v16 = vadd.f32 %v4850_v56, %v5754_v31  ;;  %v2289_v44 = vadd.f32 %v4916_v48, %v5754_v31 }
 0x15d   : > { %v1574_v4 = vpop.f32.mrf.mxu0  ;;  %v2280_v51 = vpop.f32.mrf.mxu1  ;;  %7108 = vst [vmem:[#allocation18_spill] sm:$0xff] %v5960_v55  ;;  %v5962_v49 = vsel %vm1724_vm15, %v1570_v24, %v1780_v54  ;;  %v5968_v19 = vsel %vm2430_vm0, %v2276_v23, %v2486_v53  ;;  %vm1722_vm1 = vcmp.ge.f32.partialorder %v1562_v17, 0.0  ;;  %v1778_v27 = vmul.f32 0.01, %v1562_v17 }
 0x15e   : > { %7109 = vst [vmem:[#allocation19_spill] sm:$0xff] %v5962_v49  ;;  %7110 = vst [vmem:[#allocation20_spill] sm:$0xff] %v5968_v19  ;;  %vm2428_vm3 = vcmp.ge.f32.partialorder %v2268_v20, 0.0  ;;  %v2484_v62 = vmul.f32 0.01, %v2268_v20  ;;  %vm1727_vm4 = vcmp.ge.f32.partialorder %v1583_v16, 0.0  ;;  %v1575_v23 = vadd.f32 %v5754_v31, %v1574_v4 }
 0x15f   : > { %v4851_v29 = vpop.f32.mrf.mxu0  ;;  %v4917_v2 = vpop.f32.mrf.mxu1  ;;  %v5972_v56 = vsel %vm1722_vm1, %v1562_v17, %v1778_v27  ;;  %v1783_v48 = vmul.f32 0.01, %v1583_v16  ;;  %vm2433_vm5 = vcmp.ge.f32.partialorder %v2289_v44, 0.0  ;;  %v2489_v57 = vmul.f32 0.01, %v2289_v44 }
 0x160   : > { %7111 = vst [vmem:[#allocation21_spill] sm:$0xff] %v5972_v56  ;;  %v5974_v54 = vsel %vm2428_vm3, %v2268_v20, %v2484_v62  ;;  %v2281_v53 = vadd.f32 %v5754_v31, %v2280_v51  ;;  %v1586_v8 = vadd.f32 %v4851_v29, %v5754_v31  ;;  %v2292_v27 = vadd.f32 %v4917_v2, %v5754_v31 }
 0x161   : > { %v1577_v9 = vpop.f32.mrf.mxu0  ;;  %v2283_v38 = vpop.f32.mrf.mxu1  ;;  %7112 = vst [vmem:[#allocation22_spill] sm:$0xff] %v5974_v54  ;;  %v5981_v49 = vsel %vm1727_vm4, %v1583_v16, %v1783_v48  ;;  %v5983_v17 = vsel %vm2433_vm5, %v2289_v44, %v2489_v57  ;;  %vm1725_vm6 = vcmp.ge.f32.partialorder %v1575_v23, 0.0  ;;  %v1781_v4 = vmul.f32 0.01, %v1575_v23 }
 0x162   : > { %7113 = vst [vmem:[#allocation23_spill] sm:$0xff] %v5981_v49  ;;  %7114 = vst [vmem:[#allocation24_spill] sm:$0xff] %v5983_v17  ;;  %vm2431_vm7 = vcmp.ge.f32.partialorder %v2281_v53, 0.0  ;;  %v2487_v29 = vmul.f32 0.01, %v2281_v53  ;;  %vm1728_vm8 = vcmp.ge.f32.partialorder %v1586_v8, 0.0  ;;  %v1578_v44 = vadd.f32 %v5754_v31, %v1577_v9 }
 0x163   : > { %v4854_v24 = vpop.f32.mrf.mxu0  ;;  %v4920_v43 = vpop.f32.mrf.mxu1  ;;  %v1784_v10 = vmul.f32 0.01, %v1586_v8  ;;  %vm2434_vm9 = vcmp.ge.f32.partialorder %v2292_v27, 0.0  ;;  %v5988_v35 = vsel %vm1725_vm6, %v1575_v23, %v1781_v4  ;;  %v2490_v16 = vmul.f32 0.01, %v2292_v27 }
 0x164   : > { %7115 = vst [vmem:[#allocation25_spill] sm:$0xff] %v5988_v35  ;;  %v2284_v48 = vadd.f32 %v5754_v31, %v2283_v38  ;;  %v5992_v19 = vsel %vm2431_vm7, %v2281_v53, %v2487_v29  ;;  %v1599_v17 = vadd.f32 %v4854_v24, %v5754_v31  ;;  %v2305_v49 = vadd.f32 %v4920_v43, %v5754_v31 }
 0x165   : > { %v1590_v55 = vpop.f32.mrf.mxu0  ;;  %v2296_v30 = vpop.f32.mrf.mxu1  ;;  %7116 = vst [vmem:[#allocation26_spill] sm:$0xff] %v5992_v19  ;;  %v5994_v20 = vsel %vm1728_vm8, %v1586_v8, %v1784_v10  ;;  %v6000_v23 = vsel %vm2434_vm9, %v2292_v27, %v2490_v16  ;;  %vm1726_vm2 = vcmp.ge.f32.partialorder %v1578_v44, 0.0  ;;  %v1782_v4 = vmul.f32 0.01, %v1578_v44 }
 0x166   : > { %7117 = vst [vmem:[#allocation27_spill] sm:$0xff] %v5994_v20  ;;  %7118 = vst [vmem:[#allocation28_spill] sm:$0xff] %v6000_v23  ;;  %vm2432_vm10 = vcmp.ge.f32.partialorder %v2284_v48, 0.0  ;;  %v2488_v53 = vmul.f32 0.01, %v2284_v48  ;;  %vm1731_vm11 = vcmp.ge.f32.partialorder %v1599_v17, 0.0  ;;  %v1591_v27 = vadd.f32 %v5754_v31, %v1590_v55 }
 0x167   : > { %v4855_v51 = vpop.f32.mrf.mxu0  ;;  %v4921_v62 = vpop.f32.mrf.mxu1  ;;  %v6004_v8 = vsel %vm1726_vm2, %v1578_v44, %v1782_v4  ;;  %v1787_v10 = vmul.f32 0.01, %v1599_v17  ;;  %vm2437_vm12 = vcmp.ge.f32.partialorder %v2305_v49, 0.0  ;;  %v2493_v24 = vmul.f32 0.01, %v2305_v49 }
 0x168   : > { %7119 = vst [vmem:[#allocation29_spill] sm:$0xff] %v6004_v8  ;;  %v6006_v54 = vsel %vm2432_vm10, %v2284_v48, %v2488_v53  ;;  %v2297_v16 = vadd.f32 %v5754_v31, %v2296_v30  ;;  %v1602_v19 = vadd.f32 %v4855_v51, %v5754_v31  ;;  %v2308_v4 = vadd.f32 %v4921_v62, %v5754_v31 }
 0x169   : > { %v1593_v2 = vpop.f32.mrf.mxu0  ;;  %v2299_v57 = vpop.f32.mrf.mxu1  ;;  %7120 = vst [vmem:[#allocation30_spill] sm:$0xff] %v6006_v54  ;;  %v6013_v23 = vsel %vm1731_vm11, %v1599_v17, %v1787_v10  ;;  %v6015_v44 = vsel %vm2437_vm12, %v2305_v49, %v2493_v24  ;;  %vm1729_vm13 = vcmp.ge.f32.partialorder %v1591_v27, 0.0  ;;  %v1785_v55 = vmul.f32 0.01, %v1591_v27 }
 0x16a   : > { %7121 = vst [vmem:[#allocation31_spill] sm:$0xff] %v6013_v23  ;;  %7122 = vst [vmem:[#allocation32_spill] sm:$0xff] %v6015_v44  ;;  %vm2435_vm14 = vcmp.ge.f32.partialorder %v2297_v16, 0.0  ;;  %v2491_v30 = vmul.f32 0.01, %v2297_v16  ;;  %vm1732_vm15 = vcmp.ge.f32.partialorder %v1602_v19, 0.0  ;;  %v1594_v10 = vadd.f32 %v5754_v31, %v1593_v2 }
 0x16b   : > { %v4858_v9 = vpop.f32.mrf.mxu0  ;;  %v4924_v56 = vpop.f32.mrf.mxu1  ;;  %v1788_v51 = vmul.f32 0.01, %v1602_v19  ;;  %vm2438_vm0 = vcmp.ge.f32.partialorder %v2308_v4, 0.0  ;;  %v6020_v17 = vsel %vm1729_vm13, %v1591_v27, %v1785_v55  ;;  %v2494_v49 = vmul.f32 0.01, %v2308_v4 }
 0x16c   : > { %7123 = vst [vmem:[#allocation33_spill] sm:$0xff] %v6020_v17  ;;  %v2300_v62 = vadd.f32 %v5754_v31, %v2299_v57  ;;  %v6024_v24 = vsel %vm2435_vm14, %v2297_v16, %v2491_v30  ;;  %v1615_v48 = vadd.f32 %v4858_v9, %v5754_v31  ;;  %v2321_v44 = vadd.f32 %v4924_v56, %v5754_v31 }
 0x16d   : > { %v1606_v43 = vpop.f32.mrf.mxu0  ;;  %v2312_v29 = vpop.f32.mrf.mxu1  ;;  %7124 = vst [vmem:[#allocation34_spill] sm:$0xff] %v6024_v24  ;;  %v6026_v54 = vsel %vm1732_vm15, %v1602_v19, %v1788_v51  ;;  %v6032_v27 = vsel %vm2438_vm0, %v2308_v4, %v2494_v49  ;;  %vm1730_vm1 = vcmp.ge.f32.partialorder %v1594_v10, 0.0  ;;  %v1786_v55 = vmul.f32 0.01, %v1594_v10 }
 0x16e   : > { %7125 = vst [vmem:[#allocation35_spill] sm:$0xff] %v6026_v54  ;;  %7126 = vst [vmem:[#allocation36_spill] sm:$0xff] %v6032_v27  ;;  %vm2436_vm3 = vcmp.ge.f32.partialorder %v2300_v62, 0.0  ;;  %v2492_v57 = vmul.f32 0.01, %v2300_v62  ;;  %vm1735_vm4 = vcmp.ge.f32.partialorder %v1615_v48, 0.0  ;;  %v1607_v4 = vadd.f32 %v5754_v31, %v1606_v43 }
 0x16f   : > { %v4859_v20 = vpop.f32.mrf.mxu0  ;;  %v4925_v35 = vpop.f32.mrf.mxu1  ;;  %v6036_v9 = vsel %vm1730_vm1, %v1594_v10, %v1786_v55  ;;  %v1791_v56 = vmul.f32 0.01, %v1615_v48  ;;  %vm2441_vm5 = vcmp.ge.f32.partialorder %v2321_v44, 0.0  ;;  %v2497_v30 = vmul.f32 0.01, %v2321_v44 }
 0x170   : > { %7127 = vst [vmem:[#allocation37_spill] sm:$0xff] %v6036_v9  ;;  %v6038_v51 = vsel %vm2436_vm3, %v2300_v62, %v2492_v57  ;;  %v2313_v49 = vadd.f32 %v5754_v31, %v2312_v29  ;;  %v1618_v3 = vadd.f32 %v4859_v20, %v5754_v31  ;;  %v2324_v55 = vadd.f32 %v4925_v35, %v5754_v31 }
 0x171   : > { %v1609_v53 = vpop.f32.mrf.mxu0  ;;  %v2315_v38 = vpop.f32.mrf.mxu1  ;;  %7128 = vst [vmem:[#allocation38_spill] sm:$0xff] %v6038_v51  ;;  %v6045_v54 = vsel %vm1735_vm4, %v1615_v48, %v1791_v56  ;;  %v6047_v10 = vsel %vm2441_vm5, %v2321_v44, %v2497_v30  ;;  %vm1733_vm6 = vcmp.ge.f32.partialorder %v1607_v4, 0.0  ;;  %v1789_v43 = vmul.f32 0.01, %v1607_v4 }
 0x172   : > { %7129 = vst [vmem:[#allocation39_spill] sm:$0xff] %v6045_v54  ;;  %7130 = vst [vmem:[#allocation40_spill] sm:$0xff] %v6047_v10  ;;  %vm2439_vm7 = vcmp.ge.f32.partialorder %v2313_v49, 0.0  ;;  %v2495_v20 = vmul.f32 0.01, %v2313_v49  ;;  %vm1736_vm8 = vcmp.ge.f32.partialorder %v1618_v3, 0.0  ;;  %v1610_v44 = vadd.f32 %v5754_v31, %v1609_v53 }
 0x173   : > { %v4862_v23 = vpop.f32.mrf.mxu0  ;;  %v4928_v8 = vpop.f32.mrf.mxu1  ;;  %v1792_v17 = vmul.f32 0.01, %v1618_v3  ;;  %vm2442_vm9 = vcmp.ge.f32.partialorder %v2324_v55, 0.0  ;;  %v6052_v15 = vsel %vm1733_vm6, %v1607_v4, %v1789_v43  ;;  %v2498_v48 = vmul.f32 0.01, %v2324_v55 }
 0x174   : > { %7131 = vst [vmem:[#allocation41_spill] sm:$0xff] %v6052_v15  ;;  %v2316_v56 = vadd.f32 %v5754_v31, %v2315_v38  ;;  %v6056_v27 = vsel %vm2439_vm7, %v2313_v49, %v2495_v20  ;;  %v1631_v10 = vadd.f32 %v4862_v23, %v5754_v31  ;;  %v2337_v54 = vadd.f32 %v4928_v8, %v5754_v31 }
 0x175   : > { %v1622_v19 = vpop.f32.mrf.mxu0  ;;  %v2328_v16 = vpop.f32.mrf.mxu1  ;;  %7132 = vst [vmem:[#allocation42_spill] sm:$0xff] %v6056_v27  ;;  %v6058_v62 = vsel %vm1736_vm8, %v1618_v3, %v1792_v17  ;;  %v6064_v4 = vsel %vm2442_vm9, %v2324_v55, %v2498_v48  ;;  %vm1734_vm2 = vcmp.ge.f32.partialorder %v1610_v44, 0.0  ;;  %v1790_v43 = vmul.f32 0.01, %v1610_v44 }
 0x176   : > { %7133 = vst [vmem:[#allocation43_spill] sm:$0xff] %v6058_v62  ;;  %7134 = vst [vmem:[#allocation44_spill] sm:$0xff] %v6064_v4  ;;  %vm2440_vm10 = vcmp.ge.f32.partialorder %v2316_v56, 0.0  ;;  %v2496_v49 = vmul.f32 0.01, %v2316_v56  ;;  %vm1739_vm11 = vcmp.ge.f32.partialorder %v1631_v10, 0.0  ;;  %v1623_v55 = vadd.f32 %v5754_v31, %v1622_v19 }
 0x177   : > { %v4863_v24 = vpop.f32.mrf.mxu0  ;;  %v4929_v2 = vpop.f32.mrf.mxu1  ;;  %v6068_v3 = vsel %vm1734_vm2, %v1610_v44, %v1790_v43  ;;  %v1795_v23 = vmul.f32 0.01, %v1631_v10  ;;  %vm2445_vm12 = vcmp.ge.f32.partialorder %v2337_v54, 0.0  ;;  %v2501_v8 = vmul.f32 0.01, %v2337_v54 }
 0x178   : > { %7135 = vst [vmem:[#allocation45_spill] sm:$0xff] %v6068_v3  ;;  %v6070_v51 = vsel %vm2440_vm10, %v2316_v56, %v2496_v49  ;;  %v2329_v48 = vadd.f32 %v5754_v31, %v2328_v16  ;;  %v1634_v27 = vadd.f32 %v4863_v24, %v5754_v31  ;;  %v2340_v43 = vadd.f32 %v4929_v2, %v5754_v31 }
 0x179   : > { %v1625_v29 = vpop.f32.mrf.mxu0  ;;  %v2331_v57 = vpop.f32.mrf.mxu1  ;;  %7136 = vst [vmem:[#allocation46_spill] sm:$0xff] %v6070_v51  ;;  %v6077_v4 = vsel %vm1739_vm11, %v1631_v10, %v1795_v23  ;;  %v6079_v44 = vsel %vm2445_vm12, %v2337_v54, %v2501_v8  ;;  %vm1737_vm13 = vcmp.ge.f32.partialorder %v1623_v55, 0.0  ;;  %v1793_v19 = vmul.f32 0.01, %v1623_v55 }
 0x17a   : > { %7137 = vst [vmem:[#allocation47_spill] sm:$0xff] %v6077_v4  ;;  %7138 = vst [vmem:[#allocation48_spill] sm:$0xff] %v6079_v44  ;;  %vm2443_vm14 = vcmp.ge.f32.partialorder %v2329_v48, 0.0  ;;  %v2499_v16 = vmul.f32 0.01, %v2329_v48  ;;  %vm1740_vm15 = vcmp.ge.f32.partialorder %v1634_v27, 0.0  ;;  %v1626_v23 = vadd.f32 %v5754_v31, %v1625_v29 }
 0x17b   : > { %v4866_v35 = vpop.f32.mrf.mxu0  ;;  %v4932_v30 = vpop.f32.mrf.mxu1  ;;  %v1796_v24 = vmul.f32 0.01, %v1634_v27  ;;  %vm2446_vm0 = vcmp.ge.f32.partialorder %v2340_v43, 0.0  ;;  %v6084_v10 = vsel %vm1737_vm13, %v1623_v55, %v1793_v19  ;;  %v2502_v54 = vmul.f32 0.01, %v2340_v43 }
 0x17c   : > { %7139 = vst [vmem:[#allocation49_spill] sm:$0xff] %v6084_v10  ;;  %v2332_v2 = vadd.f32 %v5754_v31, %v2331_v57  ;;  %v6088_v8 = vsel %vm2443_vm14, %v2329_v48, %v2499_v16  ;;  %v1647_v56 = vadd.f32 %v4866_v35, %v5754_v31  ;;  %v2353_v44 = vadd.f32 %v4932_v30, %v5754_v31 }
 0x17d   : > { %v1638_v53 = vpop.f32.mrf.mxu0  ;;  %v2344_v9 = vpop.f32.mrf.mxu1  ;;  %7140 = vst [vmem:[#allocation50_spill] sm:$0xff] %v6088_v8  ;;  %v6090_v51 = vsel %vm1740_vm15, %v1634_v27, %v1796_v24  ;;  %v6100_v19 = vsel %vm2446_vm0, %v2340_v43, %v2502_v54  ;;  %vm1738_vm1 = vcmp.ge.f32.partialorder %v1626_v23, 0.0  ;;  %v1794_v29 = vmul.f32 0.01, %v1626_v23 }
 0x17e   : > { %7141 = vst [vmem:[#allocation51_spill] sm:$0xff] %v6090_v51  ;;  %7142 = vst [vmem:[#allocation52_spill] sm:$0xff] %v6100_v19  ;;  %vm2444_vm3 = vcmp.ge.f32.partialorder %v2332_v2, 0.0  ;;  %v2500_v27 = vmul.f32 0.01, %v2332_v2  ;;  %vm1743_vm4 = vcmp.ge.f32.partialorder %v1647_v56, 0.0  ;;  %v1639_v43 = vadd.f32 %v5754_v31, %v1638_v53 }
 0x17f   : > { %v4867_v17 = vpop.f32.mrf.mxu0  ;;  %v4933_v20 = vpop.f32.mrf.mxu1  ;;  %v6104_v30 = vsel %vm1738_vm1, %v1626_v23, %v1794_v29  ;;  %v1799_v16 = vmul.f32 0.01, %v1647_v56  ;;  %vm2449_vm5 = vcmp.ge.f32.partialorder %v2353_v44, 0.0  ;;  %v2505_v24 = vmul.f32 0.01, %v2353_v44 }
 0x180   : > { %7143 = vst [vmem:[#allocation53_spill] sm:$0xff] %v6104_v30  ;;  %v6106_v32 = vsel %vm2444_vm3, %v2332_v2, %v2500_v27  ;;  %v2345_v54 = vadd.f32 %v5754_v31, %v2344_v9  ;;  %v1650_v55 = vadd.f32 %v4867_v17, %v5754_v31  ;;  %v2356_v2 = vadd.f32 %v4933_v20, %v5754_v31 }
 0x181   : > { %v1641_v62 = vpop.f32.mrf.mxu0  ;;  %v2347_v15 = vpop.f32.mrf.mxu1  ;;  %7144 = vst [vmem:[#allocation54_spill] sm:$0xff] %v6106_v32  ;;  %v6117_v23 = vsel %vm1743_vm4, %v1647_v56, %v1799_v16  ;;  %v6119_v29 = vsel %vm2449_vm5, %v2353_v44, %v2505_v24  ;;  %vm1741_vm6 = vcmp.ge.f32.partialorder %v1639_v43, 0.0  ;;  %v1797_v9 = vmul.f32 0.01, %v1639_v43 }
 0x182   : > { %7145 = vst [vmem:[#allocation55_spill] sm:$0xff] %v6117_v23  ;;  %7146 = vst [vmem:[#allocation56_spill] sm:$0xff] %v6119_v29  ;;  %vm2447_vm7 = vcmp.ge.f32.partialorder %v2345_v54, 0.0  ;;  %v2503_v51 = vmul.f32 0.01, %v2345_v54  ;;  %vm1744_vm8 = vcmp.ge.f32.partialorder %v1650_v55, 0.0  ;;  %v1642_v44 = vadd.f32 %v5754_v31, %v1641_v62 }
 0x183   : > { %v4870_v49 = vpop.f32.mrf.mxu0  ;;  %v4936_v38 = vpop.f32.mrf.mxu1  ;;  %v1800_v10 = vmul.f32 0.01, %v1650_v55  ;;  %vm2450_vm9 = vcmp.ge.f32.partialorder %v2356_v2, 0.0  ;;  %v6124_v45 = vsel %vm1741_vm6, %v1639_v43, %v1797_v9  ;;  %v2506_v56 = vmul.f32 0.01, %v2356_v2 }
 0x184   : > { %7147 = vst [vmem:[#allocation57_spill] sm:$0xff] %v6124_v45  ;;  %v2348_v16 = vadd.f32 %v5754_v31, %v2347_v15  ;;  %v6132_v53 = vsel %vm2447_vm7, %v2345_v54, %v2503_v51  ;;  %v1663_v29 = vadd.f32 %v4870_v49, %v5754_v31  ;;  %v6140_v43 = vld [vmem:[%s7007_s2] ss:$0 sm:$0xff]  ;;  %vm1742_vm2 = vcmp.ge.f32.partialorder %v1642_v44, 0.0 }
 0x185   : > { %v6094_v4 = vpop.f32.mrf.mxu0  ;;  %v6096_v3 = vpop.f32.mrf.mxu1  ;;  %7148 = vst [vmem:[#allocation58_spill] sm:$0xff] %v6132_v53  ;;  %v6134_v19 = vsel %vm1744_vm8, %v1650_v55, %v1800_v10  ;;  %v2369_v9 = vadd.f32 %v6140_v43, %v4936_v38  ;;  %v6145_v62 = vsel %vm2450_vm9, %v2356_v2, %v2506_v56  ;;  %v1798_v23 = vmul.f32 0.01, %v1642_v44 }
 0x186   : > { %7149 = vst [vmem:[#allocation59_spill] sm:$0xff] %v6134_v19  ;;  %7150 = vst [vmem:[#allocation60_spill] sm:$0xff] %v6145_v62  ;;  %vm2448_vm10 = vcmp.ge.f32.partialorder %v2348_v16, 0.0  ;;  %v2504_v49 = vmul.f32 0.01, %v2348_v16  ;;  %vm1747_vm11 = vcmp.ge.f32.partialorder %v1663_v29, 0.0  ;;  %v1655_v15 = vadd.f32 %v6140_v43, %v6094_v4 }
 0x187   : > { %v4871_v35 = vpop.f32.mrf.mxu0  ;;  %v4937_v48 = vpop.f32.mrf.mxu1  ;;  %v6151_v10 = vsel %vm1742_vm2, %v1642_v44, %v1798_v23  ;;  %v1803_v55 = vmul.f32 0.01, %v1663_v29  ;;  %vm2453_vm12 = vcmp.ge.f32.partialorder %v2369_v9, 0.0  ;;  %v2509_v38 = vmul.f32 0.01, %v2369_v9 }
 0x188   : > { %7151 = vst [vmem:[#allocation61_spill] sm:$0xff] %v6151_v10  ;;  %v6157_v56 = vsel %vm2448_vm10, %v2348_v16, %v2504_v49  ;;  %v2361_v31 = vadd.f32 %v6140_v43, %v6096_v3  ;;  %v1666_v62 = vadd.f32 %v6140_v43, %v4871_v35  ;;  %v2372_v53 = vadd.f32 %v6140_v43, %v4937_v48 }
 0x189   : > { %v6111_v8 = vpop.f32.mrf.mxu0  ;;  %v6113_v57 = vpop.f32.mrf.mxu1  ;;  %7152 = vst [vmem:[#allocation62_spill] sm:$0xff] %v6157_v56  ;;  %v6166_v44 = vsel %vm1747_vm11, %v1663_v29, %v1803_v55  ;;  %v6168_v19 = vsel %vm2453_vm12, %v2369_v9, %v2509_v38  ;;  %vm1745_vm13 = vcmp.ge.f32.partialorder %v1655_v15, 0.0  ;;  %v1801_v3 = vmul.f32 0.01, %v1655_v15 }
 0x18a   : > { %7153 = vst [vmem:[#allocation63_spill] sm:$0xff] %v6166_v44  ;;  %7154 = vst [vmem:[#allocation64_spill] sm:$0xff] %v6168_v19  ;;  %vm2451_vm14 = vcmp.ge.f32.partialorder %v2361_v31, 0.0  ;;  %v2507_v35 = vmul.f32 0.01, %v2361_v31  ;;  %vm1748_vm15 = vcmp.ge.f32.partialorder %v1666_v62, 0.0  ;;  %v1658_v38 = vadd.f32 %v6140_v43, %v6111_v8 }
 0x18b   : > { %v4874_v17 = vpop.f32.mrf.mxu0  ;;  %v4940_v27 = vpop.f32.mrf.mxu1  ;;  %v1804_v49 = vmul.f32 0.01, %v1666_v62  ;;  %vm2454_vm0 = vcmp.ge.f32.partialorder %v2372_v53, 0.0  ;;  %v6181_v55 = vsel %vm1745_vm13, %v1655_v15, %v1801_v3  ;;  %v2510_v48 = vmul.f32 0.01, %v2372_v53 }
 0x18c   : > { %7155 = vst [vmem:[#allocation65_spill] sm:$0xff] %v6181_v55  ;;  %v2364_v4 = vadd.f32 %v6140_v43, %v6113_v57  ;;  %v6187_v23 = vsel %vm2451_vm14, %v2361_v31, %v2507_v35  ;;  %v1679_v44 = vadd.f32 %v6140_v43, %v4874_v17  ;;  %v2385_v56 = vadd.f32 %v6140_v43, %v4940_v27 }
 0x18d   : > { %v6128_v20 = vpop.f32.mrf.mxu0  ;;  %v6130_v24 = vpop.f32.mrf.mxu1  ;;  %7156 = vst [vmem:[#allocation66_spill] sm:$0xff] %v6187_v23  ;;  %v6189_v19 = vsel %vm1748_vm15, %v1666_v62, %v1804_v49  ;;  %v6199_v3 = vsel %vm2454_vm0, %v2372_v53, %v2510_v48  ;;  %vm1746_vm1 = vcmp.ge.f32.partialorder %v1658_v38, 0.0  ;;  %v1802_v8 = vmul.f32 0.01, %v1658_v38 }
 0x18e   : > { %7157 = vst [vmem:[#allocation67_spill] sm:$0xff] %v6189_v19  ;;  %7158 = vst [vmem:[#allocation68_spill] sm:$0xff] %v6199_v3  ;;  %vm2452_vm3 = vcmp.ge.f32.partialorder %v2364_v4, 0.0  ;;  %v2508_v62 = vmul.f32 0.01, %v2364_v4  ;;  %vm1751_vm4 = vcmp.ge.f32.partialorder %v1679_v44, 0.0  ;;  %v1671_v53 = vadd.f32 %v6140_v43, %v6128_v20 }
 0x18f   : > { %v4875_v51 = vpop.f32.mrf.mxu0  ;;  %v6147_v54 = vpop.f32.mrf.mxu1  ;;  %v6207_v31 = vsel %vm1746_vm1, %v1658_v38, %v1802_v8  ;;  %v1807_v35 = vmul.f32 0.01, %v1679_v44  ;;  %vm2457_vm5 = vcmp.ge.f32.partialorder %v2385_v56, 0.0  ;;  %v2513_v49 = vmul.f32 0.01, %v2385_v56 }
 0x190   : > { %7159 = vst [vmem:[#allocation69_spill] sm:$0xff] %v6207_v31  ;;  %v6209_v15 = vsel %vm2452_vm3, %v2364_v4, %v2508_v62  ;;  %v2377_v48 = vadd.f32 %v6140_v43, %v6130_v24  ;;  %v1682_v57 = vadd.f32 %v6140_v43, %v4875_v51  ;;  %v2388_v4 = vadd.f32 %v6140_v43, %v6147_v54 }
 0x191   : > { %v6153_v32 = vpop.f32.mrf.mxu0  ;;  %v6155_v2 = vpop.f32.mrf.mxu1  ;;  %7160 = vst [vmem:[#allocation70_spill] sm:$0xff] %v6209_v15  ;;  %v6222_v8 = vsel %vm1751_vm4, %v1679_v44, %v1807_v35  ;;  %v6224_v23 = vsel %vm2457_vm5, %v2385_v56, %v2513_v49  ;;  %vm1749_vm6 = vcmp.ge.f32.partialorder %v1671_v53, 0.0  ;;  %v1805_v24 = vmul.f32 0.01, %v1671_v53 }
 0x192   : > { %7161 = vst [vmem:[#allocation71_spill] sm:$0xff] %v6222_v8  ;;  %7162 = vst [vmem:[#allocation72_spill] sm:$0xff] %v6224_v23  ;;  %vm2455_vm7 = vcmp.ge.f32.partialorder %v2377_v48, 0.0  ;;  %v2511_v55 = vmul.f32 0.01, %v2377_v48  ;;  %vm1752_vm8 = vcmp.ge.f32.partialorder %v1682_v57, 0.0  ;;  %v1674_v54 = vadd.f32 %v6140_v43, %v6153_v32 }
 0x193   : > { %v6171_v45 = vpop.f32.mrf.mxu0  ;;  %v6173_v16 = vpop.f32.mrf.mxu1  ;;  %v1808_v38 = vmul.f32 0.01, %v1682_v57  ;;  %vm2458_vm9 = vcmp.ge.f32.partialorder %v2388_v4, 0.0  ;;  %v6234_v56 = vsel %vm1749_vm6, %v1671_v53, %v1805_v24  ;;  %v2514_v44 = vmul.f32 0.01, %v2388_v4 }
 0x194   : > { %7163 = vst [vmem:[#allocation73_spill] sm:$0xff] %v6234_v56  ;;  %v2380_v35 = vadd.f32 %v6140_v43, %v6155_v2  ;;  %v6244_v23 = vsel %vm2455_vm7, %v2377_v48, %v2511_v55  ;;  %v1695_v15 = vadd.f32 %v6140_v43, %v6171_v45  ;;  %v2401_v53 = vadd.f32 %v6140_v43, %v6173_v16 }
 0x195   : > { %v6177_v29 = vpop.f32.mrf.mxu0  ;;  %v6179_v9 = vpop.f32.mrf.mxu1  ;;  %7164 = vst [vmem:[#allocation74_spill] sm:$0xff] %v6244_v23  ;;  %v6246_v8 = vsel %vm1752_vm8, %v1682_v57, %v1808_v38  ;;  %v6254_v24 = vsel %vm2458_vm9, %v2388_v4, %v2514_v44  ;;  %vm1750_vm2 = vcmp.ge.f32.partialorder %v1674_v54, 0.0  ;;  %v1806_v2 = vmul.f32 0.01, %v1674_v54 }
 0x196   : > { %7165 = vst [vmem:[#allocation75_spill] sm:$0xff] %v6246_v8  ;;  %7166 = vst [vmem:[#allocation76_spill] sm:$0xff] %v6254_v24  ;;  %vm2456_vm10 = vcmp.ge.f32.partialorder %v2380_v35, 0.0  ;;  %v2512_v48 = vmul.f32 0.01, %v2380_v35  ;;  %vm1755_vm11 = vcmp.ge.f32.partialorder %v1695_v15, 0.0  ;;  %v1687_v56 = vadd.f32 %v6140_v43, %v6177_v29 }
 0x197   : > { %v6193_v10 = vpop.f32.mrf.mxu0  ;;  %v6195_v30 = vpop.f32.mrf.mxu1  ;;  %v6266_v16 = vsel %vm1750_vm2, %v1674_v54, %v1806_v2  ;;  %v1811_v38 = vmul.f32 0.01, %v1695_v15  ;;  %vm2461_vm12 = vcmp.ge.f32.partialorder %v2401_v53, 0.0  ;;  %v2517_v4 = vmul.f32 0.01, %v2401_v53 }
 0x198   : > { %7167 = vst [vmem:[#allocation77_spill] sm:$0xff] %v6266_v16  ;;  %v6272_v23 = vsel %vm2456_vm10, %v2380_v35, %v2512_v48  ;;  %v2393_v45 = vadd.f32 %v6140_v43, %v6179_v9  ;;  %v1698_v24 = vadd.f32 %v6140_v43, %v6193_v10  ;;  %v2404_v35 = vadd.f32 %v6140_v43, %v6195_v30 }
 0x199   : > { %v6203_v17 = vpop.f32.mrf.mxu0  ;;  %v6205_v27 = vpop.f32.mrf.mxu1  ;;  %7168 = vst [vmem:[#allocation78_spill] sm:$0xff] %v6272_v23  ;;  %v6282_v2 = vsel %vm1755_vm11, %v1695_v15, %v1811_v38  ;;  %v6284_v8 = vsel %vm2461_vm12, %v2401_v53, %v2517_v4  ;;  %vm1753_vm13 = vcmp.ge.f32.partialorder %v1687_v56, 0.0  ;;  %v1809_v10 = vmul.f32 0.01, %v1687_v56 }
 0x19a   : > { %7169 = vst [vmem:[#allocation79_spill] sm:$0xff] %v6282_v2  ;;  %7170 = vst [vmem:[#allocation80_spill] sm:$0xff] %v6284_v8  ;;  %vm2459_vm14 = vcmp.ge.f32.partialorder %v2393_v45, 0.0  ;;  %v2515_v15 = vmul.f32 0.01, %v2393_v45  ;;  %vm1756_vm15 = vcmp.ge.f32.partialorder %v1698_v24, 0.0  ;;  %v1690_v23 = vadd.f32 %v6140_v43, %v6203_v17 }
 0x19b   : > { %v6216_v3 = vpop.f32.mrf.mxu0  ;;  %v6218_v19 = vpop.f32.mrf.mxu1  ;;  %v1812_v53 = vmul.f32 0.01, %v1698_v24  ;;  %vm2462_vm0 = vcmp.ge.f32.partialorder %v2404_v35, 0.0  ;;  %v6299_v4 = vsel %vm1753_vm13, %v1687_v56, %v1809_v10  ;;  %v2518_v54 = vmul.f32 0.01, %v2404_v35 }
 0x19c   : > { %7171 = vst [vmem:[#allocation81_spill] sm:$0xff] %v6299_v4  ;;  %v2396_v9 = vadd.f32 %v6140_v43, %v6205_v27  ;;  %v6305_v8 = vsel %vm2459_vm14, %v2393_v45, %v2515_v15  ;;  %v2955_v16 = vadd.f32 %v6140_v43, %v6216_v3  ;;  %v3661_v56 = vadd.f32 %v6140_v43, %v6218_v19 }
 0x19d   : > { %v6230_v51 = vpop.f32.mrf.mxu0  ;;  %v6232_v62 = vpop.f32.mrf.mxu1  ;;  %7172 = vst [vmem:[#allocation82_spill] sm:$0xff] %v6305_v8  ;;  %v6307_v2 = vsel %vm1756_vm15, %v1698_v24, %v1812_v53  ;;  %v6324_v27 = vsel %vm2462_vm0, %v2404_v35, %v2518_v54  ;;  %vm1754_vm1 = vcmp.ge.f32.partialorder %v1690_v23, 0.0  ;;  %v1810_v24 = vmul.f32 0.01, %v1690_v23 }
 0x19e   : > { %7173 = vst [vmem:[#allocation83_spill] sm:$0xff] %v6307_v2  ;;  %7174 = vst [vmem:[#allocation84_spill] sm:$0xff] %v6324_v27  ;;  %vm2460_vm3 = vcmp.ge.f32.partialorder %v2396_v9, 0.0  ;;  %v2516_v45 = vmul.f32 0.01, %v2396_v9  ;;  %vm3171_vm4 = vcmp.ge.f32.partialorder %v2955_v16, 0.0  ;;  %v2947_v54 = vadd.f32 %v6140_v43, %v6230_v51 }
 0x19f   : > { %v6240_v49 = vpop.f32.mrf.mxu0  ;;  %v6242_v20 = vpop.f32.mrf.mxu1  ;;  %v6332_v53 = vsel %vm1754_vm1, %v1690_v23, %v1810_v24  ;;  %v3227_v21 = vmul.f32 0.01, %v2955_v16  ;;  %vm3877_vm5 = vcmp.ge.f32.partialorder %v3661_v56, 0.0  ;;  %v3933_v14 = vmul.f32 0.01, %v3661_v56 }
 0x1a0   : > { %7175 = vst [vmem:[#allocation85_spill] sm:$0xff] %v6332_v53  ;;  %v6334_v17 = vsel %vm2460_vm3, %v2396_v9, %v2516_v45  ;;  %vm4155_vm6 = vcmask 523264   ;;  %v3653_v35 = vadd.f32 %v6140_v43, %v6232_v62  ;;  %v2958_v9 = vadd.f32 %v6140_v43, %v6240_v49 }
 0x1a1   : > { %v6260_v55 = vpop.f32.mrf.mxu0  ;;  %v6262_v57 = vpop.f32.mrf.mxu1  ;;  %7176 = vst [vmem:[#allocation86_spill] sm:$0xff] %v6334_v17  ;;  %v3283_v24 = vsel %vm3171_vm4, %v2955_v16, %v3227_v21  ;;  %v3989_v2 = vsel %vm3877_vm5, %v3661_v56, %v3933_v14  ;;  %vm3169_vm7 = vcmp.ge.f32.partialorder %v2947_v54, 0.0  ;;  %v3225_v8 = vmul.f32 0.01, %v2947_v54 }
 0x1a2   : > { %v4045_v45 = vmax.f32 %v3283_v24, %v3989_v2  ;;  %vm3875_vm8 = vcmp.ge.f32.partialorder %v3653_v35, 0.0  ;;  %v3931_v62 = vmul.f32 0.01, %v3653_v35  ;;  %vm3172_vm9 = vcmp.ge.f32.partialorder %v2958_v9, 0.0 }
 0x1a3   : > { %v6268_v44 = vpop.f32.mrf.mxu0  ;;  %v6270_v32 = vpop.f32.mrf.mxu1  ;;  %v3228_v14 = vmul.f32 0.01, %v2958_v9  ;;  %v3664_v21 = vadd.f32 %v6140_v43, %v6242_v20  ;;  %v7177_v49 = vmax.f32 %v5766_v46, %v5768_v47  ;;  %v3281_v2 = vsel %vm3169_vm7, %v2947_v54, %v3225_v8 }
 0x1a4   : > { %v2950_v56 = vadd.f32 %v6140_v43, %v6260_v55  ;;  %v3656_v24 = vadd.f32 %v6140_v43, %v6262_v57  ;;  %v3987_v53 = vsel %vm3875_vm8, %v3653_v35, %v3931_v62  ;;  %v2971_v54 = vadd.f32 %v6140_v43, %v6268_v44 }
 0x1a5   : > { %v6289_v48 = vpop.f32.mrf.mxu0  ;;  %v6291_v29 = vpop.f32.mrf.mxu1  ;;  %v4101_v16 = vmax.f32 %v7177_v49, %v4045_v45  ;;  %v3284_v61 = vsel %vm3172_vm9, %v2958_v9, %v3228_v14  ;;  %vm3878_vm2 = vcmp.ge.f32.partialorder %v3664_v21, 0.0  ;;  %v3934_v40 = vmul.f32 0.01, %v3664_v21 }
 0x1a6   : > { %v4043_v20 = vmax.f32 %v3281_v2, %v3987_v53  ;;  %vm3170_vm10 = vcmp.ge.f32.partialorder %v2950_v56, 0.0  ;;  %v3226_v46 = vmul.f32 0.01, %v2950_v56  ;;  %vm3876_vm11 = vcmp.ge.f32.partialorder %v3656_v24, 0.0 }
 0x1a7   : > { %v6295_v38 = vpop.f32.mrf.mxu0  ;;  %v6297_v30 = vpop.f32.mrf.mxu1  ;;  %4158 = vst.msk [vmem:[%s6356_s24 + $0x10] sm:$0xff] %vm4155_vm6, %v4101_v16  ;;  %v3990_v55 = vsel %vm3878_vm2, %v3664_v21, %v3934_v40  ;;  %v3932_v57 = vmul.f32 0.01, %v3656_v24  ;;  %v3677_v35 = vadd.f32 %v6140_v43, %v6270_v32  ;;  %v7178_v9 = vmax.f32 %v5776_v58, %v5783_v0 }
 0x1a8   : > { %v4046_v45 = vmax.f32 %v3284_v61, %v3990_v55  ;;  %v3282_v62 = vsel %vm3170_vm10, %v2950_v56, %v3226_v46  ;;  %v2963_v14 = vadd.f32 %v6140_v43, %v6289_v48  ;;  %vm3175_vm12 = vcmp.ge.f32.partialorder %v2971_v54, 0.0 }
 0x1a9   : > { %v6318_v10 = vpop.f32.mrf.mxu0  ;;  %v6320_v31 = vpop.f32.mrf.mxu1  ;;  %v4099_v53 = vmax.f32 %v7178_v9, %v4043_v20  ;;  %v3988_v40 = vsel %vm3876_vm11, %v3656_v24, %v3932_v57  ;;  %v3231_v44 = vmul.f32 0.01, %v2971_v54  ;;  %vm3881_vm13 = vcmp.ge.f32.partialorder %v3677_v35, 0.0 }
 0x1aa   : > { %v7179_v58 = vmax.f32 %v5785_v1, %v5792_v5  ;;  %v4044_v61 = vmax.f32 %v3282_v62, %v3988_v40  ;;  %v3937_v32 = vmul.f32 0.01, %v3677_v35  ;;  %vm3173_vm14 = vcmp.ge.f32.partialorder %v2963_v14, 0.0 }
 0x1ab   : > { %v6328_v15 = vpop.f32.mrf.mxu0  ;;  %v6330_v19 = vpop.f32.mrf.mxu1  ;;  %4156 = vst.msk [vmem:[%s6356_s24] sm:$0xff] %vm4155_vm6, %v4099_v53  ;;  %v3287_v2 = vsel %vm3175_vm12, %v2971_v54, %v3231_v44  ;;  %v3229_v56 = vmul.f32 0.01, %v2963_v14  ;;  %v3669_v24 = vadd.f32 %v6140_v43, %v6291_v29  ;;  %v2974_v20 = vadd.f32 %v6140_v43, %v6295_v38 }
 0x1ac   : > { %v4102_v0 = vmax.f32 %v7179_v58, %v4046_v45  ;;  %v7180_v1 = vmax.f32 %v5798_v12, %v5801_v18  ;;  %v3993_v46 = vsel %vm3881_vm13, %v3677_v35, %v3937_v32  ;;  %v3680_v55 = vadd.f32 %v6140_v43, %v6297_v30 }
 0x1ad   : > { %v6341_v3 = vpop.f32.mrf.mxu0  ;;  %v6343_v27 = vpop.f32.mrf.mxu1  ;;  %v2966_v57 = vadd.f32 %v6140_v43, %v6318_v10  ;;  %v4049_v29 = vmax.f32 %v3287_v2, %v3993_v46  ;;  %v3285_v53 = vsel %vm3173_vm14, %v2963_v14, %v3229_v56  ;;  %vm3879_vm15 = vcmp.ge.f32.partialorder %v3669_v24, 0.0 }
 0x1ae   : > { %4159 = vst.msk [vmem:[%s6356_s24 + $0x18] sm:$0xff] %vm4155_vm6, %v4102_v0  ;;  %v4100_v5 = vmax.f32 %v7180_v1, %v4044_v61  ;;  %v3935_v38 = vmul.f32 0.01, %v3669_v24  ;;  %vm3176_vm0 = vcmp.ge.f32.partialorder %v2974_v20, 0.0  ;;  %v3232_v12 = vmul.f32 0.01, %v2974_v20 }
 0x1af   : > { %v6349_v51 = vpop.f32.mrf.mxu0  ;;  %v6351_v4 = vpop.f32.mrf.mxu1  ;;  %vm3882_vm1 = vcmp.ge.f32.partialorder %v3680_v55, 0.0  ;;  %v3938_v18 = vmul.f32 0.01, %v3680_v55  ;;  %v7181_v10 = vmax.f32 %v5811_v25, %v5813_v26  ;;  %vm3174_vm3 = vcmp.ge.f32.partialorder %v2966_v57, 0.0 }
 0x1b0   : > { %4157 = vst.msk [vmem:[%s6356_s24 + $0x8] sm:$0xff] %vm4155_vm6, %v4100_v5  ;;  %v3991_v62 = vsel %vm3879_vm15, %v3669_v24, %v3935_v38  ;;  %v3230_v14 = vmul.f32 0.01, %v2966_v57  ;;  %v3288_v44 = vsel %vm3176_vm0, %v2974_v20, %v3232_v12  ;;  %v3672_v0 = vadd.f32 %v6140_v43, %v6320_v31 }
 0x1b1   : > { %v6367_v23 = vpop.f32.mrf.mxu0  ;;  %v6369_v17 = vpop.f32.mrf.mxu1  ;;  %v4105_v45 = vmax.f32 %v7181_v10, %v4049_v29  ;;  %v4047_v40 = vmax.f32 %v3285_v53, %v3991_v62  ;;  %v3994_v58 = vsel %vm3882_vm1, %v3680_v55, %v3938_v18  ;;  %v2987_v25 = vadd.f32 %v6140_v43, %v6328_v15 }
 0x1b2   : > { %v4050_v2 = vmax.f32 %v3288_v44, %v3994_v58  ;;  %v3286_v56 = vsel %vm3174_vm3, %v2966_v57, %v3230_v14  ;;  %v3693_v26 = vadd.f32 %v6140_v43, %v6330_v19  ;;  %v7182_v24 = vmax.f32 %v5820_v37, %v5826_v41 }
 0x1b3   : > { %v6373_v47 = vpop.f32.mrf.mxu0  ;;  %v6375_v8 = vpop.f32.mrf.mxu1  ;;  %4162 = vst.msk [vmem:[%s6356_s24 + $0x30] sm:$0xff] %vm4155_vm6, %v4105_v45  ;;  %vm3880_vm4 = vcmp.ge.f32.partialorder %v3672_v0, 0.0  ;;  %v3936_v31 = vmul.f32 0.01, %v3672_v0  ;;  %v2979_v1 = vadd.f32 %v6140_v43, %v6341_v3  ;;  %v7183_v15 = vmax.f32 %v5828_v42, %v5835_v50 }
 0x1b4   : > { %v4103_v20 = vmax.f32 %v7182_v24, %v4047_v40  ;;  %vm3179_vm5 = vcmp.ge.f32.partialorder %v2987_v25, 0.0  ;;  %v3235_v19 = vmul.f32 0.01, %v2987_v25  ;;  %vm3885_vm7 = vcmp.ge.f32.partialorder %v3693_v26, 0.0 }
 0x1b5   : > { %v6386_v49 = vpop.f32.mrf.mxu0  ;;  %v6388_v16 = vpop.f32.mrf.mxu1  ;;  %v4106_v55 = vmax.f32 %v7183_v15, %v4050_v2  ;;  %v3992_v37 = vsel %vm3880_vm4, %v3672_v0, %v3936_v31  ;;  %v3941_v41 = vmul.f32 0.01, %v3693_v26  ;;  %vm3177_vm8 = vcmp.ge.f32.partialorder %v2979_v1, 0.0 }
 0x1b6   : > { %4160 = vst.msk [vmem:[%s6356_s24 + $0x20] sm:$0xff] %vm4155_vm6, %v4103_v20  ;;  %v3233_v57 = vmul.f32 0.01, %v2979_v1  ;;  %v4048_v53 = vmax.f32 %v3286_v56, %v3992_v37  ;;  %v3291_v38 = vsel %vm3179_vm5, %v2987_v25, %v3235_v19  ;;  %v3685_v42 = vadd.f32 %v6140_v43, %v6343_v27 }
 0x1b7   : > { %v6395_v21 = vpop.f32.mrf.mxu0  ;;  %v6397_v48 = vpop.f32.mrf.mxu1  ;;  %4163 = vst.msk [vmem:[%s6356_s24 + $0x38] sm:$0xff] %vm4155_vm6, %v4106_v55  ;;  %v2990_v50 = vadd.f32 %v6140_v43, %v6349_v51  ;;  %v3997_v12 = vsel %vm3885_vm7, %v3693_v26, %v3941_v41  ;;  %v3696_v10 = vadd.f32 %v6140_v43, %v6351_v4  ;;  %v2982_v45 = vadd.f32 %v6140_v43, %v6367_v23 }
 0x1b8   : > { %v3289_v18 = vsel %vm3177_vm8, %v2979_v1, %v3233_v57  ;;  %v7184_v40 = vmax.f32 %v5841_v60, %v5843_v63  ;;  %v4053_v44 = vmax.f32 %v3291_v38, %v3997_v12  ;;  %vm3883_vm9 = vcmp.ge.f32.partialorder %v3685_v42, 0.0 }
 0x1b9   : > { %v6412_v54 = vpop.f32.mrf.mxu0  ;;  %v6414_v9 = vpop.f32.mrf.mxu1  ;;  %v3939_v51 = vmul.f32 0.01, %v3685_v42  ;;  %vm3180_vm2 = vcmp.ge.f32.partialorder %v2990_v50, 0.0  ;;  %v3236_v58 = vmul.f32 0.01, %v2990_v50  ;;  %vm3886_vm10 = vcmp.ge.f32.partialorder %v3696_v10, 0.0 }
 0x1ba   : > { %v4104_v27 = vmax.f32 %v7184_v40, %v4048_v53  ;;  %v3942_v0 = vmul.f32 0.01, %v3696_v10  ;;  %v7185_v23 = vmax.f32 %v5851_v11, %v5853_v13  ;;  %vm3178_vm11 = vcmp.ge.f32.partialorder %v2982_v45, 0.0 }
 0x1bb   : > { %v6418_v35 = vpop.f32.mrf.mxu0  ;;  %v6420_v30 = vpop.f32.mrf.mxu1  ;;  %v3995_v60 = vsel %vm3883_vm9, %v3685_v42, %v3939_v51  ;;  %v3234_v63 = vmul.f32 0.01, %v2982_v45  ;;  %v3292_v26 = vsel %vm3180_vm2, %v2990_v50, %v3236_v58  ;;  %v3688_v20 = vadd.f32 %v6140_v43, %v6369_v17 }
 0x1bc   : > { %4161 = vst.msk [vmem:[%s6356_s24 + $0x28] sm:$0xff] %vm4155_vm6, %v4104_v27  ;;  %v4109_v56 = vmax.f32 %v7185_v23, %v4053_v44  ;;  %v4051_v25 = vmax.f32 %v3289_v18, %v3995_v60  ;;  %v3998_v24 = vsel %vm3886_vm10, %v3696_v10, %v3942_v0  ;;  %v3003_v11 = vadd.f32 %v6140_v43, %v6373_v47 }
 0x1bd   : > { %v6427_v61 = vpop.f32.mrf.mxu0  ;;  %v6429_v32 = vpop.f32.mrf.mxu1  ;;  %v4054_v15 = vmax.f32 %v3292_v26, %v3998_v24  ;;  %v3290_v55 = vsel %vm3178_vm11, %v2982_v45, %v3234_v63  ;;  %v3709_v13 = vadd.f32 %v6140_v43, %v6375_v8  ;;  %v7186_v19 = vmax.f32 %v5860_v22, %v5864_v33 }
 0x1be   : > { %4166 = vst.msk [vmem:[%s6356_s24 + $0x50] sm:$0xff] %vm4155_vm6, %v4109_v56  ;;  %vm3884_vm12 = vcmp.ge.f32.partialorder %v3688_v20, 0.0  ;;  %v3940_v17 = vmul.f32 0.01, %v3688_v20  ;;  %v2995_v41 = vadd.f32 %v6140_v43, %v6386_v49  ;;  %v7187_v47 = vmax.f32 %v5866_v34, %v5872_v39 }
 0x1bf   : > { %v6442_v5 = vpop.f32.mrf.mxu0  ;;  %v6444_v46 = vpop.f32.mrf.mxu1  ;;  %v4107_v37 = vmax.f32 %v7186_v19, %v4051_v25  ;;  %vm3183_vm13 = vcmp.ge.f32.partialorder %v3003_v11, 0.0  ;;  %v3239_v8 = vmul.f32 0.01, %v3003_v11  ;;  %vm3889_vm14 = vcmp.ge.f32.partialorder %v3709_v13, 0.0 }
 0x1c0   : > { %v4110_v38 = vmax.f32 %v7187_v47, %v4054_v15  ;;  %v3996_v22 = vsel %vm3884_vm12, %v3688_v20, %v3940_v17  ;;  %v3945_v33 = vmul.f32 0.01, %v3709_v13  ;;  %vm3181_vm15 = vcmp.ge.f32.partialorder %v2995_v41, 0.0 }
 0x1c1   : > { %v6451_v29 = vpop.f32.mrf.mxu0  ;;  %v6453_v3 = vpop.f32.mrf.mxu1  ;;  %4164 = vst.msk [vmem:[%s6356_s24 + $0x40] sm:$0xff] %vm4155_vm6, %v4107_v37  ;;  %v3237_v42 = vmul.f32 0.01, %v2995_v41  ;;  %v4052_v12 = vmax.f32 %v3290_v55, %v3996_v22  ;;  %v3295_v18 = vsel %vm3183_vm13, %v3003_v11, %v3239_v8  ;;  %v3701_v34 = vadd.f32 %v6140_v43, %v6388_v16  ;;  %v7192_v8 = vld [vmem:[#allocation4_spill] sm:$0xff] }
 0x1c2   : > { %4167 = vst.msk [vmem:[%s6356_s24 + $0x58] sm:$0xff] %vm4155_vm6, %v4110_v38  ;;  %v3006_v39 = vadd.f32 %v6140_v43, %v6395_v21  ;;  %v4001_v10 = vsel %vm3889_vm14, %v3709_v13, %v3945_v33  ;;  %v3712_v40 = vadd.f32 %v6140_v43, %v6397_v48  ;;  %v2998_v27 = vadd.f32 %v6140_v43, %v6412_v54  ;;  %v7191_v38 = vld [vmem:[#allocation3_spill] sm:$0xff] }
 0x1c3   : > { %v6465_v62 = vpop.f32.mrf.mxu0  ;;  %v6467_v14 = vpop.f32.mrf.mxu1  ;;  %v3293_v45 = vsel %vm3181_vm15, %v2995_v41, %v3237_v42  ;;  %v7188_v58 = vmax.f32 %v5876_v52, %v5878_v59  ;;  %v4057_v0 = vmax.f32 %v3295_v18, %v4001_v10  ;;  %vm3887_vm0 = vcmp.ge.f32.partialorder %v3701_v34, 0.0 }
 0x1c4   : > { %v3943_v21 = vmul.f32 0.01, %v3701_v34  ;;  %vm3184_vm1 = vcmp.ge.f32.partialorder %v3006_v39, 0.0  ;;  %v3240_v23 = vmul.f32 0.01, %v3006_v39  ;;  %vm3890_vm3 = vcmp.ge.f32.partialorder %v3712_v40, 0.0 }
 0x1c5   : > { %v6472_v4 = vpop.f32.mrf.mxu0  ;;  %v6474_v2 = vpop.f32.mrf.mxu1  ;;  %v4108_v16 = vmax.f32 %v7188_v58, %v4052_v12  ;;  %v3946_v56 = vmul.f32 0.01, %v3712_v40  ;;  %v7189_v54 = vmax.f32 %v5885_v6, %v5887_v7  ;;  %vm3182_vm4 = vcmp.ge.f32.partialorder %v2998_v27, 0.0 }
 0x1c6   : > { %v3999_v52 = vsel %vm3887_vm0, %v3701_v34, %v3943_v21  ;;  %v3238_v59 = vmul.f32 0.01, %v2998_v27  ;;  %v3296_v26 = vsel %vm3184_vm1, %v3006_v39, %v3240_v23  ;;  %v3704_v20 = vadd.f32 %v6140_v43, %v6414_v9  ;;  %v7195_v21 = vld [vmem:[#allocation6_spill] sm:$0xff] }
 0x1c7   : > { %v6483_v31 = vpop.f32.mrf.mxu0  ;;  %v6485_v1 = vpop.f32.mrf.mxu1  ;;  %4165 = vst.msk [vmem:[%s6356_s24 + $0x48] sm:$0xff] %vm4155_vm6, %v4108_v16  ;;  %v4113_v63 = vmax.f32 %v7189_v54, %v4057_v0  ;;  %v4055_v25 = vmax.f32 %v3293_v45, %v3999_v52  ;;  %v4002_v24 = vsel %vm3890_vm3, %v3712_v40, %v3946_v56  ;;  %v3019_v6 = vadd.f32 %v6140_v43, %v6418_v35  ;;  %v7194_v0 = vld [vmem:[#allocation5_spill] sm:$0xff] }
 0x1c8   : > { %v4058_v11 = vmax.f32 %v3296_v26, %v4002_v24  ;;  %v3294_v13 = vsel %vm3182_vm4, %v2998_v27, %v3238_v59  ;;  %v3725_v7 = vadd.f32 %v6140_v43, %v6420_v30  ;;  %v7190_v19 = vmax.f32 %v5892_v28, %v5896_v36  ;;  %v7198_v59 = vld [vmem:[#allocation8_spill] sm:$0xff] }
 0x1c9   : > { %v6498_v57 = vpop.f32.mrf.mxu0  ;;  %v6500_v53 = vpop.f32.mrf.mxu1  ;;  %4170 = vst.msk [vmem:[%s6356_s24 + $0x70] sm:$0xff] %vm4155_vm6, %v4113_v63  ;;  %vm3888_vm5 = vcmp.ge.f32.partialorder %v3704_v20, 0.0  ;;  %v3944_v9 = vmul.f32 0.01, %v3704_v20  ;;  %v3011_v17 = vadd.f32 %v6140_v43, %v6427_v61  ;;  %v7193_v35 = vmax.f32 %v7191_v38, %v7192_v8 }
 0x1ca   : > { %v4111_v37 = vmax.f32 %v7190_v19, %v4055_v25  ;;  %vm3187_vm7 = vcmp.ge.f32.partialorder %v3019_v6, 0.0  ;;  %v3243_v30 = vmul.f32 0.01, %v3019_v6  ;;  %vm3893_vm8 = vcmp.ge.f32.partialorder %v3725_v7, 0.0 }
 0x1cb   : > { %v6507_v50 = vpop.f32.mrf.mxu0  ;;  %v6509_v49 = vpop.f32.mrf.mxu1  ;;  %v4114_v22 = vmax.f32 %v7193_v35, %v4058_v11  ;;  %v4000_v28 = vsel %vm3888_vm5, %v3704_v20, %v3944_v9  ;;  %v3949_v36 = vmul.f32 0.01, %v3725_v7  ;;  %vm3185_vm9 = vcmp.ge.f32.partialorder %v3011_v17, 0.0  ;;  %v7200_v35 = vld [vmem:[#allocation9_spill] sm:$0xff] }
 0x1cc   : > { %4168 = vst.msk [vmem:[%s6356_s24 + $0x60] sm:$0xff] %vm4155_vm6, %v4111_v37  ;;  %v3241_v33 = vmul.f32 0.01, %v3011_v17  ;;  %v4056_v12 = vmax.f32 %v3294_v13, %v4000_v28  ;;  %v3299_v18 = vsel %vm3187_vm7, %v3019_v6, %v3243_v30  ;;  %v3717_v34 = vadd.f32 %v6140_v43, %v6429_v32 }
 0x1cd   : > { %v6521_v44 = vpop.f32.mrf.mxu0  ;;  %v6523_v51 = vpop.f32.mrf.mxu1  ;;  %4171 = vst.msk [vmem:[%s6356_s24 + $0x78] sm:$0xff] %vm4155_vm6, %v4114_v22  ;;  %v3022_v39 = vadd.f32 %v6140_v43, %v6442_v5  ;;  %v4005_v10 = vsel %vm3893_vm8, %v3725_v7, %v3949_v36  ;;  %v3728_v40 = vadd.f32 %v6140_v43, %v6444_v46  ;;  %v3014_v27 = vadd.f32 %v6140_v43, %v6451_v29  ;;  %v7197_v29 = vld [vmem:[#allocation7_spill] sm:$0xff]  ;;  %v7201_v22 = vld [vmem:[#allocation10_spill] sm:$0xff] }
 0x1ce   : > { %v3297_v45 = vsel %vm3185_vm9, %v3011_v17, %v3241_v33  ;;  %v7196_v23 = vmax.f32 %v7194_v0, %v7195_v21  ;;  %v4061_v56 = vmax.f32 %v3299_v18, %v4005_v10  ;;  %vm3891_vm2 = vcmp.ge.f32.partialorder %v3717_v34, 0.0  ;;  %v7203_v18 = vld [vmem:[#allocation11_spill] sm:$0xff] }
 0x1cf   : > { %v6528_v48 = vpop.f32.mrf.mxu0  ;;  %v6530_v60 = vpop.f32.mrf.mxu1  ;;  %v3947_v5 = vmul.f32 0.01, %v3717_v34  ;;  %vm3188_vm10 = vcmp.ge.f32.partialorder %v3022_v39, 0.0  ;;  %v3244_v54 = vmul.f32 0.01, %v3022_v39  ;;  %vm3894_vm11 = vcmp.ge.f32.partialorder %v3728_v40, 0.0 }
 0x1d0   : > { %v4112_v32 = vmax.f32 %v7196_v23, %v4056_v12  ;;  %v3950_v63 = vmul.f32 0.01, %v3728_v40  ;;  %v7199_v25 = vmax.f32 %v7197_v29, %v7198_v59  ;;  %vm3186_vm12 = vcmp.ge.f32.partialorder %v3014_v27, 0.0  ;;  %v7206_v59 = vld [vmem:[#allocation13_spill] sm:$0xff] }
 0x1d1   : > { %v6539_v15 = vpop.f32.mrf.mxu0  ;;  %v6541_v55 = vpop.f32.mrf.mxu1  ;;  %v4003_v24 = vsel %vm3891_vm2, %v3717_v34, %v3947_v5  ;;  %v3242_v20 = vmul.f32 0.01, %v3014_v27  ;;  %v3300_v13 = vsel %vm3188_vm10, %v3022_v39, %v3244_v54  ;;  %v3720_v7 = vadd.f32 %v6140_v43, %v6453_v3  ;;  %v7204_v34 = vld [vmem:[#allocation12_spill] sm:$0xff] }
 0x1d2   : > { %4169 = vst.msk [vmem:[%s6356_s24 + $0x68] sm:$0xff] %vm4155_vm6, %v4112_v32  ;;  %v4117_v26 = vmax.f32 %v7199_v25, %v4061_v56  ;;  %v4059_v11 = vmax.f32 %v3297_v45, %v4003_v24  ;;  %v4006_v6 = vsel %vm3894_vm11, %v3728_v40, %v3950_v63  ;;  %v3035_v38 = vadd.f32 %v6140_v43, %v6465_v62  ;;  %v7207_v25 = vld [vmem:[#allocation14_spill] sm:$0xff] }
 0x1d3   : > { %v6554_v41 = vpop.f32.mrf.mxu0  ;;  %v6556_v47 = vpop.f32.mrf.mxu1  ;;  %v4062_v9 = vmax.f32 %v3300_v13, %v4006_v6  ;;  %v3298_v17 = vsel %vm3186_vm12, %v3014_v27, %v3242_v20  ;;  %v3741_v8 = vadd.f32 %v6140_v43, %v6467_v14  ;;  %v7202_v30 = vmax.f32 %v7200_v35, %v7201_v22  ;;  %v7210_v6 = vld [vmem:[#allocation16_spill] sm:$0xff] }
 0x1d4   : > { %4174 = vst.msk [vmem:[%s6356_s24 + $0x90] sm:$0xff] %vm4155_vm6, %v4117_v26  ;;  %vm3892_vm13 = vcmp.ge.f32.partialorder %v3720_v7, 0.0  ;;  %v3948_v3 = vmul.f32 0.01, %v3720_v7  ;;  %v3027_v36 = vadd.f32 %v6140_v43, %v6472_v4  ;;  %v7205_v62 = vmax.f32 %v7203_v18, %v7204_v34 }
 0x1d5   : > { %v6563_v42 = vpop.f32.mrf.mxu0  ;;  %v6565_v61 = vpop.f32.mrf.mxu1  ;;  %v4115_v28 = vmax.f32 %v7202_v30, %v4059_v11  ;;  %vm3191_vm14 = vcmp.ge.f32.partialorder %v3035_v38, 0.0  ;;  %v3247_v14 = vmul.f32 0.01, %v3035_v38  ;;  %vm3897_vm15 = vcmp.ge.f32.partialorder %v3741_v8, 0.0 }
 0x1d6   : > { %v4118_v39 = vmax.f32 %v7205_v62, %v4062_v9  ;;  %v4004_v10 = vsel %vm3892_vm13, %v3720_v7, %v3948_v3  ;;  %v3953_v45 = vmul.f32 0.01, %v3741_v8  ;;  %vm3189_vm0 = vcmp.ge.f32.partialorder %v3027_v36, 0.0 }
 0x1d7   : > { %v6577_v58 = vpop.f32.mrf.mxu0  ;;  %v6579_v16 = vpop.f32.mrf.mxu1  ;;  %4172 = vst.msk [vmem:[%s6356_s24 + $0x80] sm:$0xff] %vm4155_vm6, %v4115_v28  ;;  %v3245_v40 = vmul.f32 0.01, %v3027_v36  ;;  %v4060_v0 = vmax.f32 %v3298_v17, %v4004_v10  ;;  %v3303_v21 = vsel %vm3191_vm14, %v3035_v38, %v3247_v14  ;;  %v3733_v23 = vadd.f32 %v6140_v43, %v6474_v2  ;;  %v7213_v14 = vld [vmem:[#allocation18_spill] sm:$0xff] }
 0x1d8   : > { %4175 = vst.msk [vmem:[%s6356_s24 + $0x98] sm:$0xff] %vm4155_vm6, %v4118_v39  ;;  %v3038_v32 = vadd.f32 %v6140_v43, %v6483_v31  ;;  %v4009_v56 = vsel %vm3897_vm15, %v3741_v8, %v3953_v45  ;;  %v3744_v54 = vadd.f32 %v6140_v43, %v6485_v1  ;;  %v3030_v63 = vadd.f32 %v6140_v43, %v6498_v57  ;;  %v7209_v57 = vld [vmem:[#allocation15_spill] sm:$0xff]  ;;  %v7212_v39 = vld [vmem:[#allocation17_spill] sm:$0xff] }
 0x1d9   : > { %v6584_v46 = vpop.f32.mrf.mxu0  ;;  %v6586_v52 = vpop.f32.mrf.mxu1  ;;  %v3301_v5 = vsel %vm3189_vm0, %v3027_v36, %v3245_v40  ;;  %v7208_v26 = vmax.f32 %v7206_v59, %v7207_v25  ;;  %v4065_v20 = vmax.f32 %v3303_v21, %v4009_v56  ;;  %vm3895_vm1 = vcmp.ge.f32.partialorder %v3733_v23, 0.0  ;;  %v7216_v21 = vld [vmem:[#allocation20_spill] sm:$0xff] }
 0x1da   : > { %v3951_v2 = vmul.f32 0.01, %v3733_v23  ;;  %vm3192_vm3 = vcmp.ge.f32.partialorder %v3038_v32, 0.0  ;;  %v3248_v11 = vmul.f32 0.01, %v3038_v32  ;;  %vm3898_vm4 = vcmp.ge.f32.partialorder %v3744_v54, 0.0 }
 0x1db   : > { %v6595_v19 = vpop.f32.mrf.mxu0  ;;  %v6597_v37 = vpop.f32.mrf.mxu1  ;;  %v4116_v24 = vmax.f32 %v7208_v26, %v4060_v0  ;;  %v3954_v13 = vmul.f32 0.01, %v3744_v54  ;;  %v7211_v7 = vmax.f32 %v7209_v57, %v7210_v6  ;;  %vm3190_vm5 = vcmp.ge.f32.partialorder %v3030_v63, 0.0  ;;  %v7215_v0 = vld [vmem:[#allocation19_spill] sm:$0xff]  ;;  %v7219_v57 = vld [vmem:[#allocation22_spill] sm:$0xff] }
 0x1dc   : > { %v4007_v17 = vsel %vm3895_vm1, %v3733_v23, %v3951_v2  ;;  %v3246_v38 = vmul.f32 0.01, %v3030_v63  ;;  %v3304_v35 = vsel %vm3192_vm3, %v3038_v32, %v3248_v11  ;;  %v3736_v30 = vadd.f32 %v6140_v43, %v6500_v53 }
 0x1dd   : > { %v6610_v33 = vpop.f32.mrf.mxu0  ;;  %v6612_v12 = vpop.f32.mrf.mxu1  ;;  %4173 = vst.msk [vmem:[%s6356_s24 + $0x88] sm:$0xff] %vm4155_vm6, %v4116_v24  ;;  %v4121_v9 = vmax.f32 %v7211_v7, %v4065_v20  ;;  %v4063_v8 = vmax.f32 %v3301_v5, %v4007_v17  ;;  %v4010_v22 = vsel %vm3898_vm4, %v3744_v54, %v3954_v13  ;;  %v3051_v36 = vadd.f32 %v6140_v43, %v6507_v50  ;;  %v7218_v13 = vld [vmem:[#allocation21_spill] sm:$0xff] }
 0x1de   : > { %v4066_v28 = vmax.f32 %v3304_v35, %v4010_v22  ;;  %v3302_v3 = vsel %vm3190_vm5, %v3030_v63, %v3246_v38  ;;  %v3757_v18 = vadd.f32 %v6140_v43, %v6509_v49  ;;  %v7214_v10 = vmax.f32 %v7212_v39, %v7213_v14  ;;  %v7221_v38 = vld [vmem:[#allocation23_spill] sm:$0xff] }
 0x1df   : > { %v6619_v27 = vpop.f32.mrf.mxu0  ;;  %v6621_v4 = vpop.f32.mrf.mxu1  ;;  %4178 = vst.msk [vmem:[%s6356_s24 + $0xb0] sm:$0xff] %vm4155_vm6, %v4121_v9  ;;  %vm3896_vm7 = vcmp.ge.f32.partialorder %v3736_v30, 0.0  ;;  %v3952_v45 = vmul.f32 0.01, %v3736_v30  ;;  %v3043_v40 = vadd.f32 %v6140_v43, %v6521_v44  ;;  %v7217_v50 = vmax.f32 %v7215_v0, %v7216_v21  ;;  %v7224_v0 = vld [vmem:[#allocation25_spill] sm:$0xff]  ;;  %v7225_v21 = vld [vmem:[#allocation26_spill] sm:$0xff] }
 0x1e0   : > { %v4119_v53 = vmax.f32 %v7214_v10, %v4063_v8  ;;  %vm3195_vm8 = vcmp.ge.f32.partialorder %v3051_v36, 0.0  ;;  %v3251_v49 = vmul.f32 0.01, %v3051_v36  ;;  %vm3901_vm9 = vcmp.ge.f32.partialorder %v3757_v18, 0.0  ;;  %v7222_v8 = vld [vmem:[#allocation24_spill] sm:$0xff] }
 0x1e1   : > { %v6633_v29 = vpop.f32.mrf.mxu0  ;;  %v6638_v31 = vpop.f32.mrf.mxu1  ;;  %v4122_v23 = vmax.f32 %v7217_v50, %v4066_v28  ;;  %v4008_v32 = vsel %vm3896_vm7, %v3736_v30, %v3952_v45  ;;  %v3957_v56 = vmul.f32 0.01, %v3757_v18  ;;  %vm3193_vm2 = vcmp.ge.f32.partialorder %v3043_v40, 0.0 }
 0x1e2   : > { %4176 = vst.msk [vmem:[%s6356_s24 + $0xa0] sm:$0xff] %vm4155_vm6, %v4119_v53  ;;  %v3249_v5 = vmul.f32 0.01, %v3043_v40  ;;  %v4064_v54 = vmax.f32 %v3302_v3, %v4008_v32  ;;  %v3307_v63 = vsel %vm3195_vm8, %v3051_v36, %v3251_v49  ;;  %v3749_v44 = vadd.f32 %v6140_v43, %v6523_v51  ;;  %v6702_v53 = vld [vmem:[%s7007_s2] ss:$0 sm:$0xff]  ;;  %v7228_v32 = vld [vmem:[#allocation28_spill] sm:$0xff] }
 0x1e3   : > { %v6640_v1 = vpop.f32.mrf.mxu0  ;;  %v6655_v34 = vpop.f32.mrf.mxu1  ;;  %4179 = vst.msk [vmem:[%s6356_s24 + $0xb8] sm:$0xff] %vm4155_vm6, %v4122_v23  ;;  %v3054_v59 = vadd.f32 %v6140_v43, %v6528_v48  ;;  %v4013_v24 = vsel %vm3901_vm9, %v3757_v18, %v3957_v56  ;;  %v3760_v2 = vadd.f32 %v6140_v43, %v6530_v60  ;;  %v3046_v11 = vadd.f32 %v6140_v43, %v6539_v15  ;;  %v7227_v49 = vld [vmem:[#allocation27_spill] sm:$0xff] }
 0x1e4   : > { %v3305_v20 = vsel %vm3193_vm2, %v3043_v40, %v3249_v5  ;;  %v7220_v6 = vmax.f32 %v7218_v13, %v7219_v57  ;;  %v4069_v7 = vmax.f32 %v3307_v63, %v4013_v24  ;;  %vm3899_vm10 = vcmp.ge.f32.partialorder %v3749_v44, 0.0 }
 0x1e5   : > { %v6657_v62 = vpop.f32.mrf.mxu0  ;;  %v6675_v25 = vpop.f32.mrf.mxu1  ;;  %v3955_v9 = vmul.f32 0.01, %v3749_v44  ;;  %vm3196_vm11 = vcmp.ge.f32.partialorder %v3054_v59, 0.0  ;;  %v3252_v48 = vmul.f32 0.01, %v3054_v59  ;;  %vm3902_vm12 = vcmp.ge.f32.partialorder %v3760_v2, 0.0 }
 0x1e6   : > { %v4120_v51 = vmax.f32 %v7220_v6, %v4064_v54  ;;  %v3958_v17 = vmul.f32 0.01, %v3760_v2  ;;  %v7223_v60 = vmax.f32 %v7221_v38, %v7222_v8  ;;  %vm3194_vm13 = vcmp.ge.f32.partialorder %v3046_v11, 0.0 }
 0x1e7   : > { %v6677_v26 = vpop.f32.mrf.mxu0  ;;  %v4011_v22 = vsel %vm3899_vm10, %v3749_v44, %v3955_v9  ;;  %v3250_v15 = vmul.f32 0.01, %v3046_v11  ;;  %v6691_v30 = vpop.f32.mrf.mxu1  ;;  %v3308_v36 = vsel %vm3196_vm11, %v3054_v59, %v3252_v48  ;;  %v3752_v39 = vadd.f32 %v6140_v43, %v6541_v55 }
 0x1e8   : > { %4177 = vst.msk [vmem:[%s6356_s24 + $0xa8] sm:$0xff] %vm4155_vm6, %v4120_v51  ;;  %v4125_v35 = vmax.f32 %v7223_v60, %v4069_v7  ;;  %v4067_v3 = vmax.f32 %v3305_v20, %v4011_v22  ;;  %v4014_v18 = vsel %vm3902_vm12, %v3760_v2, %v3958_v17  ;;  %v3067_v45 = vadd.f32 %v6702_v53, %v6554_v41  ;;  %v7230_v51 = vld [vmem:[#allocation29_spill] sm:$0xff]  ;;  %v7231_v7 = vld [vmem:[#allocation30_spill] sm:$0xff] }
 0x1e9   : > { %v6693_v28 = vpop.f32.mrf.mxu0  ;;  %v4070_v14 = vmax.f32 %v3308_v36, %v4014_v18  ;;  %v3306_v10 = vsel %vm3194_vm13, %v3046_v11, %v3250_v15  ;;  %v3773_v40 = vadd.f32 %v6702_v53, %v6556_v47  ;;  %v7226_v50 = vmax.f32 %v7224_v0, %v7225_v21  ;;  %v6716_v41 = vpop.f32.mrf.mxu1 }
 0x1ea   : > { %4182 = vst.msk [vmem:[%s6356_s24 + $0xd0] sm:$0xff] %vm4155_vm6, %v4125_v35  ;;  %vm3900_vm14 = vcmp.ge.f32.partialorder %v3752_v39, 0.0  ;;  %v3956_v55 = vmul.f32 0.01, %v3752_v39  ;;  %v3059_v23 = vadd.f32 %v6702_v53, %v6563_v42  ;;  %v7229_v56 = vmax.f32 %v7227_v49, %v7228_v32 }
 0x1eb   : > { %v4123_v43 = vmax.f32 %v7226_v50, %v4067_v3  ;;  %vm3199_vm15 = vcmp.ge.f32.partialorder %v3067_v45, 0.0  ;;  %v3255_v54 = vmul.f32 0.01, %v3067_v45  ;;  %vm3905_vm0 = vcmp.ge.f32.partialorder %v3773_v40, 0.0  ;;  %v6718_v47 = vpop.f32.mrf.mxu0 }
 0x1ec   : > { %v4126_v5 = vmax.f32 %v7229_v56, %v4070_v14  ;;  %v4012_v63 = vsel %vm3900_vm14, %v3752_v39, %v3956_v55  ;;  %v3961_v44 = vmul.f32 0.01, %v3773_v40  ;;  %vm3197_vm1 = vcmp.ge.f32.partialorder %v3059_v23, 0.0  ;;  %v7237_v55 = vld [vmem:[#allocation34_spill] sm:$0xff]  ;;  %v7239_v56 = vld [vmem:[#allocation35_spill] sm:$0xff] }
 0x1ed   : > { %4180 = vst.msk [vmem:[%s6356_s24 + $0xc0] sm:$0xff] %vm4155_vm6, %v4123_v43  ;;  %v3253_v59 = vmul.f32 0.01, %v3059_v23  ;;  %v4068_v42 = vmax.f32 %v3306_v10, %v4012_v63  ;;  %v3311_v24 = vsel %vm3199_vm15, %v3067_v45, %v3255_v54  ;;  %v3765_v20 = vadd.f32 %v6702_v53, %v6565_v61  ;;  %v6735_v61 = vpop.f32.mrf.mxu1  ;;  %v6737_v8 = vpop.f32.mrf.mxu0  ;;  %v7236_v43 = vld [vmem:[#allocation33_spill] sm:$0xff] }
 0x1ee   : > { %4183 = vst.msk [vmem:[%s6356_s24 + $0xd8] sm:$0xff] %vm4155_vm6, %v4126_v5  ;;  %v3070_v2 = vadd.f32 %v6702_v53, %v6577_v58  ;;  %v4017_v11 = vsel %vm3905_vm0, %v3773_v40, %v3961_v44  ;;  %v3776_v57 = vadd.f32 %v6702_v53, %v6579_v16  ;;  %v3062_v6 = vadd.f32 %v6702_v53, %v6584_v46  ;;  %v7233_v16 = vld [vmem:[#allocation31_spill] sm:$0xff]  ;;  %v7234_v46 = vld [vmem:[#allocation32_spill] sm:$0xff] }
 0x1ef   : > { %v3309_v13 = vsel %vm3197_vm1, %v3059_v23, %v3253_v59  ;;  %v7232_v9 = vmax.f32 %v7230_v51, %v7231_v7  ;;  %v4073_v17 = vmax.f32 %v3311_v24, %v4017_v11  ;;  %vm3903_vm3 = vcmp.ge.f32.partialorder %v3765_v20, 0.0  ;;  %v6752_v21 = vpop.f32.mrf.mxu1  ;;  %v6754_v50 = vpop.f32.mrf.mxu0  ;;  %v7240_v5 = vld [vmem:[#allocation36_spill] sm:$0xff]  ;;  %v7242_v7 = vld [vmem:[#allocation37_spill] sm:$0xff] }
 0x1f0   : > { %v3959_v38 = vmul.f32 0.01, %v3765_v20  ;;  %vm3200_vm4 = vcmp.ge.f32.partialorder %v3070_v2, 0.0  ;;  %v3256_v58 = vmul.f32 0.01, %v3070_v2  ;;  %vm3906_vm5 = vcmp.ge.f32.partialorder %v3776_v57, 0.0 }
 0x1f1   : > { %v4124_v48 = vmax.f32 %v7232_v9, %v4068_v42  ;;  %v3962_v60 = vmul.f32 0.01, %v3776_v57  ;;  %v7235_v35 = vmax.f32 %v7233_v16, %v7234_v46  ;;  %vm3198_vm7 = vcmp.ge.f32.partialorder %v3062_v6, 0.0  ;;  %v6774_v11 = vpop.f32.mrf.mxu0  ;;  %v7243_v9 = vld [vmem:[#allocation38_spill] sm:$0xff]  ;;  %v7246_v16 = vld [vmem:[#allocation40_spill] sm:$0xff] }
 0x1f2   : > { %v4015_v15 = vsel %vm3903_vm3, %v3765_v20, %v3959_v38  ;;  %v3254_v3 = vmul.f32 0.01, %v3062_v6  ;;  %v3312_v18 = vsel %vm3200_vm4, %v3070_v2, %v3256_v58  ;;  %v3768_v14 = vadd.f32 %v6702_v53, %v6586_v52  ;;  %v6772_v2 = vpop.f32.mrf.mxu1 }
 0x1f3   : > { %4181 = vst.msk [vmem:[%s6356_s24 + $0xc8] sm:$0xff] %vm4155_vm6, %v4124_v48  ;;  %v4129_v22 = vmax.f32 %v7235_v35, %v4073_v17  ;;  %v4071_v36 = vmax.f32 %v3309_v13, %v4015_v15  ;;  %v4018_v39 = vsel %vm3906_vm5, %v3776_v57, %v3962_v60  ;;  %v3083_v40 = vadd.f32 %v6702_v53, %v6595_v19  ;;  %v7245_v60 = vld [vmem:[#allocation39_spill] sm:$0xff]  ;;  %v6790_v15 = vpop.f32.mrf.mxu0 }
 0x1f4   : > { %v4074_v10 = vmax.f32 %v3312_v18, %v4018_v39  ;;  %v3310_v45 = vsel %vm3198_vm7, %v3062_v6, %v3254_v3  ;;  %v3789_v0 = vadd.f32 %v6702_v53, %v6597_v37  ;;  %v7238_v23 = vmax.f32 %v7236_v43, %v7237_v55  ;;  %v7249_v43 = vld [vmem:[#allocation42_spill] sm:$0xff] }
 0x1f5   : > { %4186 = vst.msk [vmem:[%s6356_s24 + $0xf0] sm:$0xff] %vm4155_vm6, %v4129_v22  ;;  %vm3904_vm8 = vcmp.ge.f32.partialorder %v3768_v14, 0.0  ;;  %v3960_v49 = vmul.f32 0.01, %v3768_v14  ;;  %v3075_v32 = vadd.f32 %v6702_v53, %v6610_v33  ;;  %v7241_v19 = vmax.f32 %v7239_v56, %v7240_v5  ;;  %v6788_v22 = vpop.f32.mrf.mxu1 }
 0x1f6   : > { %v4127_v52 = vmax.f32 %v7238_v23, %v4071_v36  ;;  %vm3203_vm9 = vcmp.ge.f32.partialorder %v3083_v40, 0.0  ;;  %v3259_v37 = vmul.f32 0.01, %v3083_v40  ;;  %vm3909_vm2 = vcmp.ge.f32.partialorder %v3789_v0, 0.0 }
 0x1f7   : > { %v4130_v54 = vmax.f32 %v7241_v19, %v4074_v10  ;;  %v4016_v63 = vsel %vm3904_vm8, %v3768_v14, %v3960_v49  ;;  %v3965_v44 = vmul.f32 0.01, %v3789_v0  ;;  %vm3201_vm10 = vcmp.ge.f32.partialorder %v3075_v32, 0.0  ;;  %v7251_v49 = vld [vmem:[#allocation43_spill] sm:$0xff] }
 0x1f8   : > { %4184 = vst.msk [vmem:[%s6356_s24 + $0xe0] sm:$0xff] %vm4155_vm6, %v4127_v52  ;;  %v3257_v59 = vmul.f32 0.01, %v3075_v32  ;;  %v4072_v42 = vmax.f32 %v3310_v45, %v4016_v63  ;;  %v3315_v24 = vsel %vm3203_vm9, %v3083_v40, %v3259_v37  ;;  %v3781_v33 = vadd.f32 %v6702_v53, %v6612_v12 }
 0x1f9   : > { %4187 = vst.msk [vmem:[%s6356_s24 + $0xf8] sm:$0xff] %vm4155_vm6, %v4130_v54  ;;  %v3086_v20 = vadd.f32 %v6702_v53, %v6619_v27  ;;  %v4021_v13 = vsel %vm3909_vm2, %v3789_v0, %v3965_v44  ;;  %v3792_v6 = vadd.f32 %v6702_v53, %v6621_v4  ;;  %v3078_v51 = vadd.f32 %v6702_v53, %v6633_v29  ;;  %v7248_v0 = vld [vmem:[#allocation41_spill] sm:$0xff] }
 0x1fa   : > { %v3313_v57 = vsel %vm3201_vm10, %v3075_v32, %v3257_v59  ;;  %v7244_v48 = vmax.f32 %v7242_v7, %v7243_v9  ;;  %v4077_v17 = vmax.f32 %v3315_v24, %v4021_v13  ;;  %vm3907_vm11 = vcmp.ge.f32.partialorder %v3781_v33, 0.0  ;;  %v7252_v32 = vld [vmem:[#allocation44_spill] sm:$0xff] }
 0x1fb   : > { %v3963_v38 = vmul.f32 0.01, %v3781_v33  ;;  %vm3204_vm12 = vcmp.ge.f32.partialorder %v3086_v20, 0.0  ;;  %v3260_v27 = vmul.f32 0.01, %v3086_v20  ;;  %vm3910_vm13 = vcmp.ge.f32.partialorder %v3792_v6, 0.0 }
 0x1fc   : > { %v4128_v12 = vmax.f32 %v7244_v48, %v4072_v42  ;;  %v3966_v58 = vmul.f32 0.01, %v3792_v6  ;;  %v7247_v4 = vmax.f32 %v7245_v60, %v7246_v16  ;;  %vm3202_vm14 = vcmp.ge.f32.partialorder %v3078_v51, 0.0 }
 0x1fd   : > { %v4019_v35 = vsel %vm3907_vm11, %v3781_v33, %v3963_v38  ;;  %v3258_v29 = vmul.f32 0.01, %v3078_v51  ;;  %v3316_v36 = vsel %vm3204_vm12, %v3086_v20, %v3260_v27  ;;  %v3784_v39 = vadd.f32 %v6702_v53, %v6638_v31 }
 0x1fe   : > { %4185 = vst.msk [vmem:[%s6356_s24 + $0xe8] sm:$0xff] %vm4155_vm6, %v4128_v12  ;;  %v4133_v46 = vmax.f32 %v7247_v4, %v4077_v17  ;;  %v4075_v3 = vmax.f32 %v3313_v57, %v4019_v35  ;;  %v4022_v18 = vsel %vm3910_vm13, %v3792_v6, %v3966_v58  ;;  %v3099_v45 = vadd.f32 %v6702_v53, %v6640_v1  ;;  %v6808_v1 = vpop.f32.mrf.mxu1  ;;  %v7254_v57 = vld [vmem:[#allocation45_spill] sm:$0xff]  ;;  %v7255_v6 = vld [vmem:[#allocation46_spill] sm:$0xff] }
 0x1ff   : > { %v4078_v14 = vmax.f32 %v3316_v36, %v4022_v18  ;;  %v3314_v10 = vsel %vm3202_vm14, %v3078_v51, %v3258_v29  ;;  %v3805_v40 = vadd.f32 %v6702_v53, %v6655_v34  ;;  %v7250_v55 = vmax.f32 %v7248_v0, %v7249_v43  ;;  %v6810_v34 = vpop.f32.mrf.mxu0 }
 0x200   : > { %4190 = vst.msk [vmem:[%s6356_s24 + $0x110] sm:$0xff] %vm4155_vm6, %v4133_v46  ;;  %vm3908_vm15 = vcmp.ge.f32.partialorder %v3784_v39, 0.0  ;;  %v3964_v52 = vmul.f32 0.01, %v3784_v39  ;;  %v3091_v31 = vadd.f32 %v6702_v53, %v6657_v62  ;;  %v7253_v56 = vmax.f32 %v7251_v49, %v7252_v32 }
 0x201   : > { %v4131_v23 = vmax.f32 %v7250_v55, %v4075_v3  ;;  %vm3207_vm0 = vcmp.ge.f32.partialorder %v3099_v45, 0.0  ;;  %v3263_v19 = vmul.f32 0.01, %v3099_v45  ;;  %vm3913_vm1 = vcmp.ge.f32.partialorder %v3805_v40, 0.0  ;;  %v6829_v12 = vpop.f32.mrf.mxu0  ;;  %v7263_v55 = vld [vmem:[#allocation51_spill] sm:$0xff] }
 0x202   : > { %v4134_v5 = vmax.f32 %v7253_v56, %v4078_v14  ;;  %v4020_v54 = vsel %vm3908_vm15, %v3784_v39, %v3964_v52  ;;  %v3969_v37 = vmul.f32 0.01, %v3805_v40  ;;  %vm3205_vm3 = vcmp.ge.f32.partialorder %v3091_v31, 0.0 }
 0x203   : > { %4188 = vst.msk [vmem:[%s6356_s24 + $0x100] sm:$0xff] %vm4155_vm6, %v4131_v23  ;;  %v3261_v63 = vmul.f32 0.01, %v3091_v31  ;;  %v4076_v62 = vmax.f32 %v3314_v10, %v4020_v54  ;;  %v3319_v44 = vsel %vm3207_vm0, %v3099_v45, %v3263_v19  ;;  %v3797_v59 = vadd.f32 %v6702_v53, %v6675_v25  ;;  %v6827_v25 = vpop.f32.mrf.mxu1  ;;  %v6846_v14 = vpop.f32.mrf.mxu0  ;;  %v7260_v10 = vld [vmem:[#allocation49_spill] sm:$0xff]  ;;  %v7261_v45 = vld [vmem:[#allocation50_spill] sm:$0xff]  ;;  %v7264_v23 = vld [vmem:[#allocation52_spill] sm:$0xff] }
 0x204   : > { %4191 = vst.msk [vmem:[%s6356_s24 + $0x118] sm:$0xff] %vm4155_vm6, %v4134_v5  ;;  %v3102_v42 = vadd.f32 %v6702_v53, %v6677_v26  ;;  %v4025_v24 = vsel %vm3913_vm1, %v3805_v40, %v3969_v37  ;;  %v3808_v20 = vadd.f32 %v6702_v53, %v6691_v30  ;;  %v3094_v13 = vadd.f32 %v6702_v53, %v6693_v28  ;;  %v7257_v30 = vld [vmem:[#allocation47_spill] sm:$0xff]  ;;  %v7258_v28 = vld [vmem:[#allocation48_spill] sm:$0xff] }
 0x205   : > { %v3317_v33 = vsel %vm3205_vm3, %v3091_v31, %v3261_v63  ;;  %v7256_v51 = vmax.f32 %v7254_v57, %v7255_v6  ;;  %v4081_v9 = vmax.f32 %v3319_v44, %v4025_v24  ;;  %vm3911_vm4 = vcmp.ge.f32.partialorder %v3797_v59, 0.0  ;;  %v6844_v39 = vpop.f32.mrf.mxu1  ;;  %v6866_v37 = vpop.f32.mrf.mxu0  ;;  %v7267_v24 = vld [vmem:[#allocation54_spill] sm:$0xff]  ;;  %v7269_v6 = vld [vmem:[#allocation55_spill] sm:$0xff] }
 0x206   : > { %v3967_v48 = vmul.f32 0.01, %v3797_v59  ;;  %vm3208_vm5 = vcmp.ge.f32.partialorder %v3102_v42, 0.0  ;;  %v3264_v26 = vmul.f32 0.01, %v3102_v42  ;;  %vm3914_vm7 = vcmp.ge.f32.partialorder %v3808_v20, 0.0 }
 0x207   : > { %v4132_v7 = vmax.f32 %v7256_v51, %v4076_v62  ;;  %v3970_v17 = vmul.f32 0.01, %v3808_v20  ;;  %v7259_v38 = vmax.f32 %v7257_v30, %v7258_v28  ;;  %vm3206_vm8 = vcmp.ge.f32.partialorder %v3094_v13, 0.0  ;;  %v6864_v54 = vpop.f32.mrf.mxu1  ;;  %v7270_v51 = vld [vmem:[#allocation56_spill] sm:$0xff] }
 0x208   : > { %v4023_v58 = vsel %vm3911_vm4, %v3797_v59, %v3967_v48  ;;  %v3262_v60 = vmul.f32 0.01, %v3094_v13  ;;  %v3320_v4 = vsel %vm3208_vm5, %v3102_v42, %v3264_v26  ;;  %v3800_v35 = vadd.f32 %v6702_v53, %v6716_v41  ;;  %v7266_v42 = vld [vmem:[#allocation53_spill] sm:$0xff]  ;;  %v6880_v26 = vpop.f32.mrf.mxu0 }
 0x209   : > { %4189 = vst.msk [vmem:[%s6356_s24 + $0x108] sm:$0xff] %vm4155_vm6, %v4132_v7  ;;  %v4137_v27 = vmax.f32 %v7259_v38, %v4081_v9  ;;  %v4079_v16 = vmax.f32 %v3317_v33, %v4023_v58  ;;  %v4026_v46 = vsel %vm3914_vm7, %v3808_v20, %v3970_v17  ;;  %v3115_v36 = vadd.f32 %v6702_v53, %v6718_v47  ;;  %v5072_v48 = vpop.f32.mrf.mxu1 }
 0x20a   : > { %v4082_v29 = vmax.f32 %v3320_v4, %v4026_v46  ;;  %v3318_v3 = vsel %vm3206_vm8, %v3094_v13, %v3262_v60  ;;  %v3821_v18 = vadd.f32 %v6702_v53, %v6735_v61  ;;  %v7262_v40 = vmax.f32 %v7260_v10, %v7261_v45  ;;  %v7272_v4 = vld [vmem:[#allocation57_spill] sm:$0xff]  ;;  %v7273_v46 = vld [vmem:[#allocation58_spill] sm:$0xff] }
 0x20b   : > { %4194 = vst.msk [vmem:[%s6356_s24 + $0x130] sm:$0xff] %vm4155_vm6, %v4137_v27  ;;  %vm3912_vm9 = vcmp.ge.f32.partialorder %v3800_v35, 0.0  ;;  %v3968_v0 = vmul.f32 0.01, %v3800_v35  ;;  %v3107_v43 = vadd.f32 %v6702_v53, %v6737_v8  ;;  %v7265_v47 = vmax.f32 %v7263_v55, %v7264_v23 }
 0x20c   : > { %v4135_v41 = vmax.f32 %v7262_v40, %v4079_v16  ;;  %vm3211_vm2 = vcmp.ge.f32.partialorder %v3115_v36, 0.0  ;;  %v3267_v61 = vmul.f32 0.01, %v3115_v36  ;;  %vm3917_vm10 = vcmp.ge.f32.partialorder %v3821_v18, 0.0 }
 0x20d   : > { %v4138_v52 = vmax.f32 %v7265_v47, %v4082_v29  ;;  %v4024_v31 = vsel %vm3912_vm9, %v3800_v35, %v3968_v0  ;;  %v3973_v49 = vmul.f32 0.01, %v3821_v18  ;;  %vm3209_vm11 = vcmp.ge.f32.partialorder %v3107_v43, 0.0 }
 0x20e   : > { %4192 = vst.msk [vmem:[%s6356_s24 + $0x120] sm:$0xff] %vm4155_vm6, %v4135_v41  ;;  %v3265_v32 = vmul.f32 0.01, %v3107_v43  ;;  %v4080_v56 = vmax.f32 %v3318_v3, %v4024_v31  ;;  %v3323_v5 = vsel %vm3211_vm2, %v3115_v36, %v3267_v61  ;;  %v3813_v8 = vadd.f32 %v6702_v53, %v6752_v21  ;;  %v7275_v36 = vld [vmem:[#allocation59_spill] sm:$0xff]  ;;  %v5007_v41 = vpop.f32.mrf.mxu0 }
 0x20f   : > { %4195 = vst.msk [vmem:[%s6356_s24 + $0x138] sm:$0xff] %vm4155_vm6, %v4138_v52  ;;  %v3118_v19 = vadd.f32 %v6702_v53, %v6754_v50  ;;  %v4029_v63 = vsel %vm3917_vm10, %v3821_v18, %v3973_v49  ;;  %v3824_v44 = vadd.f32 %v6702_v53, %v6772_v2  ;;  %v3110_v59 = vadd.f32 %v6702_v53, %v6774_v11  ;;  %v7276_v18 = vld [vmem:[#allocation60_spill] sm:$0xff] }
 0x210   : > { %v3321_v62 = vsel %vm3209_vm11, %v3107_v43, %v3265_v32  ;;  %v7268_v33 = vmax.f32 %v7266_v42, %v7267_v24  ;;  %v4085_v20 = vmax.f32 %v3323_v5, %v4029_v63  ;;  %vm3915_vm12 = vcmp.ge.f32.partialorder %v3813_v8, 0.0  ;;  %v7278_v32 = vld [vmem:[#allocation61_spill] sm:$0xff] }
 0x211   : > { %v3971_v13 = vmul.f32 0.01, %v3813_v8  ;;  %vm3212_vm13 = vcmp.ge.f32.partialorder %v3118_v19, 0.0  ;;  %v3268_v50 = vmul.f32 0.01, %v3118_v19  ;;  %vm3918_vm14 = vcmp.ge.f32.partialorder %v3824_v44, 0.0 }
 0x212   : > { %v4136_v21 = vmax.f32 %v7268_v33, %v4080_v56  ;;  %v3974_v57 = vmul.f32 0.01, %v3824_v44  ;;  %v7271_v2 = vmax.f32 %v7269_v6, %v7270_v51  ;;  %vm3210_vm15 = vcmp.ge.f32.partialorder %v3110_v59, 0.0  ;;  %v7279_v56 = vld [vmem:[#allocation62_spill] sm:$0xff] }
 0x213   : > { %v4027_v9 = vsel %vm3915_vm12, %v3813_v8, %v3971_v13  ;;  %v3266_v11 = vmul.f32 0.01, %v3110_v59  ;;  %v3324_v30 = vsel %vm3212_vm13, %v3118_v19, %v3268_v50  ;;  %v3816_v38 = vadd.f32 %v6702_v53, %v6788_v22 }
 0x214   : > { %4193 = vst.msk [vmem:[%s6356_s24 + $0x128] sm:$0xff] %vm4155_vm6, %v4136_v21  ;;  %v4141_v7 = vmax.f32 %v7271_v2, %v4085_v20  ;;  %v4083_v17 = vmax.f32 %v3321_v62, %v4027_v9  ;;  %v4030_v28 = vsel %vm3918_vm14, %v3824_v44, %v3974_v57  ;;  %v3131_v60 = vadd.f32 %v6702_v53, %v6790_v15  ;;  %v3844_v15 = vpop.f32.mrf.mxu1  ;;  %v3141_v62 = vpop.f32.mrf.mxu0 }
 0x215   : > { %v4086_v27 = vmax.f32 %v3324_v30, %v4030_v28  ;;  %v3322_v58 = vsel %vm3210_vm15, %v3110_v59, %v3266_v11  ;;  %v3837_v16 = vadd.f32 %v6702_v53, %v6808_v1  ;;  %v7274_v35 = vmax.f32 %v7272_v4, %v7273_v46  ;;  %v7282_v59 = vld [vmem:[#allocation64_spill] sm:$0xff]  ;;  %v7284_v11 = vld [vmem:[#allocation65_spill] sm:$0xff] }
 0x216   : > { %4198 = vst.msk [vmem:[%s6356_s24 + $0x150] sm:$0xff] %vm4155_vm6, %v4141_v7  ;;  %vm3916_vm0 = vcmp.ge.f32.partialorder %v3816_v38, 0.0  ;;  %v3972_v3 = vmul.f32 0.01, %v3816_v38  ;;  %v3123_v22 = vadd.f32 %v6702_v53, %v6810_v34  ;;  %v7277_v10 = vmax.f32 %v7275_v36, %v7276_v18  ;;  %v5010_v9 = vpop.f32.mrf.mxu0 }
 0x217   : > { %v4139_v29 = vmax.f32 %v7274_v35, %v4083_v17  ;;  %vm3215_vm1 = vcmp.ge.f32.partialorder %v3131_v60, 0.0  ;;  %v3271_v40 = vmul.f32 0.01, %v3131_v60  ;;  %vm3921_vm3 = vcmp.ge.f32.partialorder %v3837_v16, 0.0  ;;  %v7285_v17 = vld [vmem:[#allocation66_spill] sm:$0xff] }
 0x218   : > { %v4142_v45 = vmax.f32 %v7277_v10, %v4086_v27  ;;  %v4028_v1 = vsel %vm3916_vm0, %v3816_v38, %v3972_v3  ;;  %v3977_v0 = vmul.f32 0.01, %v3837_v16  ;;  %vm3213_vm4 = vcmp.ge.f32.partialorder %v3123_v22, 0.0  ;;  %v7287_v27 = vld [vmem:[#allocation67_spill] sm:$0xff]  ;;  %v3154_v36 = vpop.f32.mrf.mxu0 }
 0x219   : > { %4196 = vst.msk [vmem:[%s6356_s24 + $0x140] sm:$0xff] %vm4155_vm6, %v4139_v29  ;;  %v3269_v43 = vmul.f32 0.01, %v3123_v22  ;;  %v4084_v55 = vmax.f32 %v3322_v58, %v4028_v1  ;;  %v3327_v23 = vsel %vm3215_vm1, %v3131_v60, %v3271_v40  ;;  %v3829_v34 = vadd.f32 %v6702_v53, %v6827_v25  ;;  %v5073_v25 = vpop.f32.mrf.mxu1  ;;  %v7288_v58 = vld [vmem:[#allocation68_spill] sm:$0xff]  ;;  %v7290_v1 = vld [vmem:[#allocation69_spill] sm:$0xff] }
 0x21a   : > { %4199 = vst.msk [vmem:[%s6356_s24 + $0x158] sm:$0xff] %vm4155_vm6, %v4142_v45  ;;  %v3134_v47 = vadd.f32 %v6702_v53, %v6829_v12  ;;  %v4033_v52 = vsel %vm3921_vm3, %v3837_v16, %v3977_v0  ;;  %v3840_v31 = vadd.f32 %v6702_v53, %v6844_v39  ;;  %v3126_v49 = vadd.f32 %v6702_v53, %v6846_v14  ;;  %v7281_v39 = vld [vmem:[#allocation63_spill] sm:$0xff]  ;;  %v7291_v0 = vld [vmem:[#allocation70_spill] sm:$0xff] }
 0x21b   : > { %v3325_v61 = vsel %vm3213_vm4, %v3123_v22, %v3269_v43  ;;  %v7280_v5 = vmax.f32 %v7278_v32, %v7279_v56  ;;  %v4089_v19 = vmax.f32 %v3327_v23, %v4033_v52  ;;  %vm3919_vm5 = vcmp.ge.f32.partialorder %v3829_v34, 0.0  ;;  %v3847_v7 = vpop.f32.mrf.mxu1  ;;  %v7294_v52 = vld [vmem:[#allocation72_spill] sm:$0xff] }
 0x21c   : > { %v3975_v63 = vmul.f32 0.01, %v3829_v34  ;;  %vm3216_vm7 = vcmp.ge.f32.partialorder %v3134_v47, 0.0  ;;  %v3272_v12 = vmul.f32 0.01, %v3134_v47  ;;  %vm3922_vm8 = vcmp.ge.f32.partialorder %v3840_v31, 0.0 }
 0x21d   : > { %v4140_v8 = vmax.f32 %v7280_v5, %v4084_v55  ;;  %v3978_v44 = vmul.f32 0.01, %v3840_v31  ;;  %v7283_v42 = vmax.f32 %v7281_v39, %v7282_v59  ;;  %vm3214_vm9 = vcmp.ge.f32.partialorder %v3126_v49, 0.0  ;;  %v5076_v22 = vpop.f32.mrf.mxu1  ;;  %v5011_v5 = vpop.f32.mrf.mxu0  ;;  %v7296_v59 = vld [vmem:[#allocation73_spill] sm:$0xff] }
 0x21e   : > { %v4031_v24 = vsel %vm3919_vm5, %v3829_v34, %v3975_v63  ;;  %v3270_v33 = vmul.f32 0.01, %v3126_v49  ;;  %v3328_v20 = vsel %vm3216_vm7, %v3134_v47, %v3272_v12  ;;  %v3832_v50 = vadd.f32 %v6702_v53, %v6864_v54  ;;  %v7293_v47 = vld [vmem:[#allocation71_spill] sm:$0xff] }
 0x21f   : > { %4197 = vst.msk [vmem:[%s6356_s24 + $0x148] sm:$0xff] %vm4155_vm6, %v4140_v8  ;;  %v4145_v14 = vmax.f32 %v7283_v42, %v4089_v19  ;;  %v4087_v21 = vmax.f32 %v3325_v61, %v4031_v24  ;;  %v4034_v13 = vsel %vm3922_vm8, %v3840_v31, %v3978_v44  ;;  %v3147_v51 = vadd.f32 %v6702_v53, %v6866_v37  ;;  %v3860_v56 = vpop.f32.mrf.mxu1  ;;  %v7297_v42 = vld [vmem:[#allocation74_spill] sm:$0xff] }
 0x220   : > { %v4090_v57 = vmax.f32 %v3328_v20, %v4034_v13  ;;  %v3326_v6 = vsel %vm3214_vm9, %v3126_v49, %v3270_v33  ;;  %v3853_v2 = vadd.f32 %v6702_v53, %v5072_v48  ;;  %v7286_v30 = vmax.f32 %v7284_v11, %v7285_v17  ;;  %v7299_v20 = vld [vmem:[#allocation75_spill] sm:$0xff]  ;;  %v7300_v13 = vld [vmem:[#allocation76_spill] sm:$0xff] }
 0x221   : > { %4202 = vst.msk [vmem:[%s6356_s24 + $0x170] sm:$0xff] %vm4155_vm6, %v4145_v14  ;;  %vm3920_vm2 = vcmp.ge.f32.partialorder %v3832_v50, 0.0  ;;  %v3976_v38 = vmul.f32 0.01, %v3832_v50  ;;  %v3139_v54 = vadd.f32 %v6702_v53, %v6880_v26  ;;  %v7289_v60 = vmax.f32 %v7287_v27, %v7288_v58 }
 0x222   : > { %v4143_v28 = vmax.f32 %v7286_v30, %v4087_v21  ;;  %vm3219_vm10 = vcmp.ge.f32.partialorder %v3147_v51, 0.0  ;;  %v3275_v37 = vmul.f32 0.01, %v3147_v51  ;;  %vm3925_vm11 = vcmp.ge.f32.partialorder %v3853_v2, 0.0 }
 0x223   : > { %v4146_v16 = vmax.f32 %v7289_v60, %v4090_v57  ;;  %v4032_v48 = vsel %vm3920_vm2, %v3832_v50, %v3976_v38  ;;  %v3981_v4 = vmul.f32 0.01, %v3853_v2  ;;  %vm3217_vm12 = vcmp.ge.f32.partialorder %v3139_v54, 0.0 }
 0x224   : > { %4200 = vst.msk [vmem:[%s6356_s24 + $0x160] sm:$0xff] %vm4155_vm6, %v4143_v28  ;;  %v3273_v46 = vmul.f32 0.01, %v3139_v54  ;;  %v4088_v35 = vmax.f32 %v3326_v6, %v4032_v48  ;;  %v3331_v29 = vsel %vm3219_vm10, %v3147_v51, %v3275_v37  ;;  %v3845_v3 = vadd.f32 %v6702_v53, %v3844_v15  ;;  %v5077_v51 = vpop.f32.mrf.mxu1  ;;  %v7303_v37 = vld [vmem:[#allocation78_spill] sm:$0xff] }
 0x225   : > { %4203 = vst.msk [vmem:[%s6356_s24 + $0x178] sm:$0xff] %vm4155_vm6, %v4146_v16  ;;  %v3150_v26 = vadd.f32 %v6702_v53, %v5007_v41  ;;  %v4037_v18 = vsel %vm3925_vm11, %v3853_v2, %v3981_v4  ;;  %v3856_v45 = vadd.f32 %v6702_v53, %v5073_v25  ;;  %v3142_v40 = vadd.f32 %v6702_v53, %v3141_v62  ;;  %v3157_v2 = vpop.f32.mrf.mxu0  ;;  %v7302_v16 = vld [vmem:[#allocation77_spill] sm:$0xff] }
 0x226   : > { %v3329_v10 = vsel %vm3217_vm12, %v3139_v54, %v3273_v46  ;;  %v7292_v43 = vmax.f32 %v7290_v1, %v7291_v0  ;;  %v4093_v23 = vmax.f32 %v3331_v29, %v4037_v18  ;;  %vm3923_vm13 = vcmp.ge.f32.partialorder %v3845_v3, 0.0  ;;  %v3863_v29 = vpop.f32.mrf.mxu1 }
 0x227   : > { %v3979_v34 = vmul.f32 0.01, %v3845_v3  ;;  %vm3220_vm14 = vcmp.ge.f32.partialorder %v3150_v26, 0.0  ;;  %v3276_v15 = vmul.f32 0.01, %v3150_v26  ;;  %vm3926_vm15 = vcmp.ge.f32.partialorder %v3856_v45, 0.0 }
 0x228   : > { %v4144_v55 = vmax.f32 %v7292_v43, %v4088_v35  ;;  %v3982_v41 = vmul.f32 0.01, %v3856_v45  ;;  %v7295_v61 = vmax.f32 %v7293_v47, %v7294_v52  ;;  %vm3218_vm0 = vcmp.ge.f32.partialorder %v3142_v40, 0.0 }
 0x229   : > { %v4035_v49 = vsel %vm3923_vm13, %v3845_v3, %v3979_v34  ;;  %v3274_v32 = vmul.f32 0.01, %v3142_v40  ;;  %v3332_v19 = vsel %vm3220_vm14, %v3150_v26, %v3276_v15  ;;  %v3848_v25 = vadd.f32 %v6702_v53, %v3847_v7  ;;  %v7308_v34 = vld [vmem:[#allocation81_spill] sm:$0xff]  ;;  %v7309_v15 = vld [vmem:[#allocation82_spill] sm:$0xff] }
 0x22a   : > { %4201 = vst.msk [vmem:[%s6356_s24 + $0x168] sm:$0xff] %vm4155_vm6, %v4144_v55  ;;  %v4149_v31 = vmax.f32 %v7295_v61, %v4093_v23  ;;  %v4091_v8 = vmax.f32 %v3329_v10, %v4035_v49  ;;  %v4038_v63 = vsel %vm3926_vm15, %v3856_v45, %v3982_v41  ;;  %v3163_v44 = vadd.f32 %v6702_v53, %v5010_v9  ;;  %v7312_v49 = vld [vmem:[#allocation84_spill] sm:$0xff] }
 0x22b   : > { %v4094_v62 = vmax.f32 %v3332_v19, %v4038_v63  ;;  %v3330_v12 = vsel %vm3218_vm0, %v3142_v40, %v3274_v32  ;;  %v3869_v39 = vadd.f32 %v6702_v53, %v5076_v22  ;;  %v7298_v14 = vmax.f32 %v7296_v59, %v7297_v42  ;;  %v7305_v22 = vld [vmem:[#allocation79_spill] sm:$0xff]  ;;  %v7315_v19 = vld [vmem:[#allocation86_spill] sm:$0xff] }
 0x22c   : > { %4206 = vst.msk [vmem:[%s6356_s24 + $0x190] sm:$0xff] %vm4155_vm6, %v4149_v31  ;;  %vm3924_vm1 = vcmp.ge.f32.partialorder %v3848_v25, 0.0  ;;  %v3980_v33 = vmul.f32 0.01, %v3848_v25  ;;  %v3155_v21 = vadd.f32 %v6702_v53, %v3154_v36  ;;  %v7301_v50 = vmax.f32 %v7299_v20, %v7300_v13  ;;  %v7306_v36 = vld [vmem:[#allocation80_spill] sm:$0xff]  ;;  %v7311_v31 = vld [vmem:[#allocation83_spill] sm:$0xff] }
 0x22d   : > { %v4147_v24 = vmax.f32 %v7298_v14, %v4091_v8  ;;  %vm3223_vm3 = vcmp.ge.f32.partialorder %v3163_v44, 0.0  ;;  %v3279_v6 = vmul.f32 0.01, %v3163_v44  ;;  %vm3929_vm4 = vcmp.ge.f32.partialorder %v3869_v39, 0.0  ;;  %v7314_v8 = vld [vmem:[#allocation85_spill] sm:$0xff] }
 0x22e   : > { %v4150_v57 = vmax.f32 %v7301_v50, %v4094_v62  ;;  %v4036_v7 = vsel %vm3924_vm1, %v3848_v25, %v3980_v33  ;;  %v3985_v9 = vmul.f32 0.01, %v3869_v39  ;;  %vm3221_vm5 = vcmp.ge.f32.partialorder %v3155_v21, 0.0 }
 0x22f   : > { %4204 = vst.msk [vmem:[%s6356_s24 + $0x180] sm:$0xff] %vm4155_vm6, %v4147_v24  ;;  %v3277_v11 = vmul.f32 0.01, %v3155_v21  ;;  %v4092_v17 = vmax.f32 %v3330_v12, %v4036_v7  ;;  %v3335_v30 = vsel %vm3223_vm3, %v3163_v44, %v3279_v6  ;;  %v3861_v28 = vadd.f32 %v6702_v53, %v3860_v56 }
 0x230   : > { %4207 = vst.msk [vmem:[%s6356_s24 + $0x198] sm:$0xff] %vm4155_vm6, %v4150_v57  ;;  %v3166_v38 = vadd.f32 %v6702_v53, %v5011_v5  ;;  %v4041_v54 = vsel %vm3929_vm4, %v3869_v39, %v3985_v9  ;;  %v3872_v58 = vadd.f32 %v6702_v53, %v5077_v51  ;;  %v3158_v60 = vadd.f32 %v6702_v53, %v3157_v2 }
 0x231   : > { %v3333_v27 = vsel %vm3221_vm5, %v3155_v21, %v3277_v11  ;;  %v7304_v48 = vmax.f32 %v7302_v16, %v7303_v37  ;;  %v4097_v46 = vmax.f32 %v3335_v30, %v4041_v54  ;;  %vm3927_vm7 = vcmp.ge.f32.partialorder %v3861_v28, 0.0 }
 0x232   : > { %v3983_v35 = vmul.f32 0.01, %v3861_v28  ;;  %vm3224_vm8 = vcmp.ge.f32.partialorder %v3166_v38, 0.0  ;;  %v3280_v3 = vmul.f32 0.01, %v3166_v38  ;;  %vm3930_vm9 = vcmp.ge.f32.partialorder %v3872_v58, 0.0 }
 0x233   : > { %v4148_v4 = vmax.f32 %v7304_v48, %v4092_v17  ;;  %v3986_v26 = vmul.f32 0.01, %v3872_v58  ;;  %v7307_v18 = vmax.f32 %v7305_v22, %v7306_v36  ;;  %vm3222_vm2 = vcmp.ge.f32.partialorder %v3158_v60, 0.0 }
 0x234   : > { %v4039_v45 = vsel %vm3927_vm7, %v3861_v28, %v3983_v35  ;;  %v3278_v40 = vmul.f32 0.01, %v3158_v60  ;;  %v3336_v0 = vsel %vm3224_vm8, %v3166_v38, %v3280_v3  ;;  %v3864_v55 = vadd.f32 %v6702_v53, %v3863_v29 }
 0x235   : > { %4205 = vst.msk [vmem:[%s6356_s24 + $0x188] sm:$0xff] %vm4155_vm6, %v4148_v4  ;;  %v4153_v10 = vmax.f32 %v7307_v18, %v4097_v46  ;;  %v4095_v1 = vmax.f32 %v3333_v27, %v4039_v45  ;;  %v4042_v43 = vsel %vm3930_vm9, %v3872_v58, %v3986_v26  ;;  %v7310_v41 = vmax.f32 %v7308_v34, %v7309_v15 }
 0x236   : > { %v4098_v23 = vmax.f32 %v3336_v0, %v4042_v43  ;;  %v3334_v52 = vsel %vm3222_vm2, %v3158_v60, %v3278_v40  ;;  %vm3928_vm10 = vcmp.ge.f32.partialorder %v3864_v55, 0.0  ;;  %v3984_v61 = vmul.f32 0.01, %v3864_v55 }
 0x237   : > { %4210 = vst.msk [vmem:[%s6356_s24 + $0x1b0] sm:$0xff] %vm4155_vm6, %v4153_v10  ;;  %v4151_v47 = vmax.f32 %v7310_v41, %v4095_v1  ;;  %v7313_v32 = vmax.f32 %v7311_v31, %v7312_v49  ;;  %v7316_v63 = vmax.f32 %v7314_v8, %v7315_v19 }
 0x238   : > { %v4040_v5 = vsel %vm3928_vm10, %v3864_v55, %v3984_v61 }
 0x239   : > { %v4154_v56 = vmax.f32 %v7313_v32, %v4098_v23  ;;  %4208 = vst.msk [vmem:[%s6356_s24 + $0x1a0] sm:$0xff] %vm4155_vm6, %v4151_v47  ;;  %v4096_v53 = vmax.f32 %v3334_v52, %v4040_v5 }
 0x23b   : > { %4211 = vst.msk [vmem:[%s6356_s24 + $0x1b8] sm:$0xff] %vm4155_vm6, %v4154_v56  ;;  %v4152_v25 = vmax.f32 %v7316_v63, %v4096_v53 }
 0x23d   : > { %4209 = vst.msk [vmem:[%s6356_s24 + $0x1a8] sm:$0xff] %vm4155_vm6, %v4152_v25 }
 0x23e PF: > { %p10_p9 = scmp.ge.s32.totalorder %s5286_s16, 4   ;;  %s7317_s12 = smov %s5242_s13 }
 0x23f   : > { %s7318_s13 = smov %s5295_s19  ;;  %s7319_s14 = smov %s5286_s16 }
 0x240   :  { %12 = sbr.rel (!%p10_p9) target bundleno = 2 (0x2), region = 111 }

// kernel: mixstyle_encoder_forward.5
= control target key start
LH: loop header
LB: loop body
LE: loop exit
PB: predicated region body
PF: predicated region fallthrough
CT: control target
= control target key end

     0   :  { %vm953_vm0 = vcmask 523264   ;;  %s5839_s1 = inlined_call_operand.vmem [shape: bf16[1600,128], index: 1, kind: input, shape index: {}]   ;;  %s5840_s0 = inlined_call_operand.vmem [shape: bf16[4,24,1600], index: 0, kind: input, shape index: {}]   ;;  %s5841_s2 = inlined_call_operand.vmem [shape: f32[1,128], index: 2, kind: input, shape index: {}]   ;;  %s5842_s3 = inlined_call_operand.vmem [shape: f32[24,128], index: 3, kind: output, shape index: {}]  }
   0x1   :  { %v4142_v0 = vld [vmem:[%s5839_s1 + $0x78] sm:$0xff]   ;;  %v4165_v4 = vld [vmem:[%s5839_s1 + $0x70] sm:$0xff]   ;;  %v4189_v8 = vld [vmem:[%s5839_s1 + $0x68] sm:$0xff]  }
   0x2   :  { %v4147_v1 = vld [vmem:[%s5839_s1 + $0xf8] sm:$0xff]   ;;  %3046 = vmatprep.subr.bf16.mxu0 %v4142_v0  ;;  %v4171_v5 = vld [vmem:[%s5839_s1 + $0xf0] sm:$0xff]   ;;  %v4195_v9 = vld [vmem:[%s5839_s1 + $0xe8] sm:$0xff]  }
   0x3   :  { %v4153_v2 = vld [vmem:[%s5839_s1 + $0x38] sm:$0xff]   ;;  %3074 = vmatprep.subr.bf16.mxu1 %v4147_v1  ;;  %v4177_v6 = vld [vmem:[%s5839_s1 + $0x30] sm:$0xff]   ;;  %v4201_v10 = vld [vmem:[%s5839_s1 + $0x28] sm:$0xff]  }
   0x4   :  { %v4159_v3 = vld [vmem:[%s5839_s1 + $0xb8] sm:$0xff]   ;;  %3047 = vmatpush3.bf16.msra.mxu0 %v4153_v2  ;;  %v4183_v7 = vld [vmem:[%s5839_s1 + $0xb0] sm:$0xff]   ;;  %v4207_v11 = vld [vmem:[%s5839_s1 + $0xa8] sm:$0xff]  }
   0x5   :  { %3075 = vmatpush3.bf16.msra.mxu1 %v4159_v3  ;;  %3048 = vmatprep.subr.bf16.mxu0 %v4165_v4  ;;  %v4213_v12 = vld [vmem:[%s5839_s1 + $0x60] sm:$0xff]   ;;  %v4237_v16 = vld [vmem:[%s5839_s1 + $0x58] sm:$0xff]   ;;  %v4261_v20 = vld [vmem:[%s5839_s1 + $0x50] sm:$0xff]  }
   0x6   :  { %3076 = vmatprep.subr.bf16.mxu1 %v4171_v5  ;;  %v4219_v13 = vld [vmem:[%s5839_s1 + $0xe0] sm:$0xff]   ;;  %v4243_v17 = vld [vmem:[%s5839_s1 + $0xd8] sm:$0xff]   ;;  %v4267_v21 = vld [vmem:[%s5839_s1 + $0xd0] sm:$0xff]  }
   0x7   :  { %v4225_v14 = vld [vmem:[%s5839_s1 + $0x20] sm:$0xff]   ;;  %v4249_v18 = vld [vmem:[%s5839_s1 + $0x18] sm:$0xff]   ;;  %v4273_v22 = vld [vmem:[%s5839_s1 + $0x10] sm:$0xff]  }
   0x8   :  { %3049 = vmatpush3.bf16.msra.mxu0 %v4177_v6  ;;  %v4231_v15 = vld [vmem:[%s5839_s1 + $0xa0] sm:$0xff]   ;;  %v4255_v19 = vld [vmem:[%s5839_s1 + $0x98] sm:$0xff]   ;;  %v4279_v23 = vld [vmem:[%s5839_s1 + $0x90] sm:$0xff]  }
   0x9   :  { %3077 = vmatpush3.bf16.msra.mxu1 %v4183_v7  ;;  %3050 = vmatprep.subr.bf16.mxu0 %v4189_v8  ;;  %v4285_v24 = vld [vmem:[%s5839_s1 + $0x48] sm:$0xff]   ;;  %v4309_v28 = vld [vmem:[%s5839_s1 + $0x40] sm:$0xff]   ;;  %v4346_v36 = vld [vmem:[%s5839_s1 + $0x178] sm:$0xff]  }
   0xa   :  { %3078 = vmatprep.subr.bf16.mxu1 %v4195_v9  ;;  %v4291_v25 = vld [vmem:[%s5839_s1 + $0xc8] sm:$0xff]   ;;  %v4315_v29 = vld [vmem:[%s5839_s1 + $0xc0] sm:$0xff]   ;;  %v4351_v37 = vld [vmem:[%s5839_s1 + $0x1f8] sm:$0xff]  }
   0xb   :  { %v4297_v26 = vld [vmem:[%s5839_s1 + $0x8] sm:$0xff]   ;;  %v4321_v30 = vld [vmem:[%s5839_s1] sm:$0xff]   ;;  %v4357_v38 = vld [vmem:[%s5839_s1 + $0x138] sm:$0xff]  }
   0xc   :  { %3051 = vmatpush3.bf16.msra.mxu0 %v4201_v10  ;;  %v4303_v27 = vld [vmem:[%s5839_s1 + $0x88] sm:$0xff]   ;;  %v4327_v31 = vld [vmem:[%s5839_s1 + $0x80] sm:$0xff]   ;;  %v4363_v39 = vld [vmem:[%s5839_s1 + $0x1b8] sm:$0xff]  }
   0xd   :  { %3079 = vmatpush3.bf16.msra.mxu1 %v4207_v11  ;;  %3052 = vmatprep.subr.bf16.mxu0 %v4213_v12  ;;  %v3822_v32 = vld [vmem:[%s5840_s0] ss:$52 sps:$4 sm:$0xff]   ;;  %v3824_v33 = vld [vmem:[%s5840_s0 + $0x4] ss:$52 sps:$4 sm:$0xff]   ;;  %v3825_v34 = vld [vmem:[%s5840_s0 + $0x8] ss:$52 sps:$4 sm:$0xff]  }
   0xe   :  { %3080 = vmatprep.subr.bf16.mxu1 %v4219_v13  ;;  %v3827_v35 = vld [vmem:[%s5840_s0 + $0xc] ss:$52 sps:$4 sm:$0xff]   ;;  %992 = vmatprep.mubr.bf16.mxu0 %v3824_v33  ;;  %v4369_v40 = vld [vmem:[%s5839_s1 + $0x170] sm:$0xff]   ;;  %v4441_v52 = vld [vmem:[%s5839_s1 + $0x158] sm:$0xff]  }
   0xf   :  { %1040 = vmatprep.mubr.bf16.mxu1 %v3827_v35  ;;  %v4375_v41 = vld [vmem:[%s5839_s1 + $0x1f0] sm:$0xff]   ;;  %v4393_v44 = vld [vmem:[%s5839_s1 + $0x168] sm:$0xff]   ;;  %v4417_v48 = vld [vmem:[%s5839_s1 + $0x160] sm:$0xff]  }
  0x10   :  { %3053 = vmatpush3.bf16.msra.mxu0 %v4225_v14  ;;  %v4381_v42 = vld [vmem:[%s5839_s1 + $0x130] sm:$0xff]   ;;  %v4399_v45 = vld [vmem:[%s5839_s1 + $0x1e8] sm:$0xff]   ;;  %v4423_v49 = vld [vmem:[%s5839_s1 + $0x1e0] sm:$0xff]  }
  0x11   :  { %3081 = vmatpush3.bf16.msra.mxu1 %v4231_v15  ;;  %3054 = vmatprep.subr.bf16.mxu0 %v4237_v16  ;;  %v4387_v43 = vld [vmem:[%s5839_s1 + $0x1b0] sm:$0xff]   ;;  %v4405_v46 = vld [vmem:[%s5839_s1 + $0x128] sm:$0xff]   ;;  %v4429_v50 = vld [vmem:[%s5839_s1 + $0x120] sm:$0xff]  }
  0x12   :  { %3082 = vmatprep.subr.bf16.mxu1 %v4243_v17  ;;  %v4411_v47 = vld [vmem:[%s5839_s1 + $0x1a8] sm:$0xff]   ;;  %v4435_v51 = vld [vmem:[%s5839_s1 + $0x1a0] sm:$0xff]   ;;  %v4447_v53 = vld [vmem:[%s5839_s1 + $0x1d8] sm:$0xff]  }
  0x13   :  { %5951 = vst [vmem:[#allocation2_spill] sm:$0xff] %v4435_v51  ;;  %5952 = vst [vmem:[#allocation3_spill] sm:$0xff] %v4447_v53  ;;  %v4453_v54 = vld [vmem:[%s5839_s1 + $0x118] sm:$0xff]   ;;  %v230_v56 = vld [vmem:[%s5840_s0 + $0x68] sm:$0xff] }
  0x14   :  { %3055 = vmatpush3.bf16.msra.mxu0 %v4249_v18  ;;  %v4459_v55 = vld [vmem:[%s5839_s1 + $0x198] sm:$0xff]   ;;  %v2785_v57 = vcombine.high %v230_v56, %v230_v56  ;;  %v2784_v58 = vcombine.low %v230_v56, %v230_v56  ;;  %v4468_v59 = vld [vmem:[%s5839_s1 + $0x150] sm:$0xff]   ;;  %v4496_v33 = vld [vmem:[%s5839_s1 + $0x148] sm:$0xff]  }
  0x15   :  { %3083 = vmatpush3.bf16.msra.mxu1 %v4255_v19  ;;  %3056 = vmatprep.subr.bf16.mxu0 %v4261_v20  ;;  %5953 = vst [vmem:[#allocation4_spill] sm:$0xff] %v4459_v55  ;;  %v4474_v60 = vld [vmem:[%s5839_s1 + $0x1d0] sm:$0xff]   ;;  %v4501_v35 = vld [vmem:[%s5839_s1 + $0x1c8] sm:$0xff]  }
  0x16   :  { %3084 = vmatprep.subr.bf16.mxu1 %v4267_v21  ;;  %5954 = vst [vmem:[#allocation5_spill] sm:$0xff] %v4474_v60  ;;  %v4480_v61 = vld [vmem:[%s5839_s1 + $0x110] sm:$0xff]   ;;  %5956 = vst [vmem:[#allocation7_spill] sm:$0xff] %v4501_v35  ;;  %v4507_v56 = vld [vmem:[%s5839_s1 + $0x108] sm:$0xff]  }
  0x17   :  { %v4486_v62 = vld [vmem:[%s5839_s1 + $0x190] sm:$0xff]  }
  0x18   :  { %3057 = vmatpush3.bf16.msra.mxu0 %v4273_v22  ;;  %5955 = vst [vmem:[#allocation6_spill] sm:$0xff] %v4486_v62  ;;  %v231_v63 = vld [vmem:[%s5840_s0 + $0x70] sm:$0xff] }
  0x19   :  { %3085 = vmatpush3.bf16.msra.mxu1 %v4279_v23  ;;  %3058 = vmatprep.subr.bf16.mxu0 %v4285_v24 }
  0x1a   :  { %3086 = vmatprep.subr.bf16.mxu1 %v4291_v25 }
  0x1c   :  { %3059 = vmatpush3.bf16.msra.mxu0 %v4297_v26 }
  0x1d   :  { %3087 = vmatpush3.bf16.msra.mxu1 %v4303_v27  ;;  %3060 = vmatprep.subr.bf16.mxu0 %v4309_v28 }
  0x1e   :  { %3088 = vmatprep.subr.bf16.mxu1 %v4315_v29 }
  0x20   :  { %3061 = vmatpush3.bf16.msra.mxu0 %v4321_v30 }
  0x21   :  { %3089 = vmatpush3.bf16.msra.mxu1 %v4327_v31  ;;  %3102 = vmatprep.subr.bf16.mxu0 %v4346_v36 }
  0x22   :  { %3130 = vmatprep.subr.bf16.mxu1 %v4351_v37 }
  0x23   :  { %993 = vmatmul.mubr.bf16.vlgmr.msra.gmra.mxu0 %v3822_v32  ;;  %v2787_v32 = vcombine.high %v231_v63, %v231_v63 }
  0x24   :  { %1041 = vmatmul.mubr.bf16.vlgmr.msra.gmra.mxu1 %v3825_v34  ;;  %3103 = vmatpush3.bf16.msra.mxu0 %v4357_v38  ;;  %v2786_v34 = vcombine.low %v231_v63, %v231_v63  ;;  %v4525_v63 = vld [vmem:[%s5839_s1 + $0x1c0] sm:$0xff]  }
  0x25   :  { %3131 = vmatpush3.bf16.msra.mxu1 %v4363_v39  ;;  %3104 = vmatprep.subr.bf16.mxu0 %v4369_v40  ;;  %5958 = vst [vmem:[#allocation9_spill] sm:$0xff] %v4525_v63 }
  0x26   :  { %3132 = vmatprep.subr.bf16.mxu1 %v4375_v41  ;;  %1000 = vmatprep.mubr.bf16.mxu0 %v2785_v57  ;;  %v4513_v57 = vld [vmem:[%s5839_s1 + $0x188] sm:$0xff]  }
  0x27   :  { %1048 = vmatprep.mubr.bf16.mxu1 %v2787_v32  ;;  %5957 = vst [vmem:[#allocation8_spill] sm:$0xff] %v4513_v57  ;;  %v4531_v32 = vld [vmem:[%s5839_s1 + $0x100] sm:$0xff]  }
  0x28   :  { %3105 = vmatpush3.bf16.msra.mxu0 %v4381_v42 }
  0x29   :  { %3133 = vmatpush3.bf16.msra.mxu1 %v4387_v43  ;;  %3106 = vmatprep.subr.bf16.mxu0 %v4393_v44 }
  0x2a   :  { %3134 = vmatprep.subr.bf16.mxu1 %v4399_v45 }
  0x2b   :  { %1001 = vmatmul.mubr.bf16.gmra.mxu0 %v2784_v58  ;;  %v4519_v58 = vld [vmem:[%s5839_s1 + $0x140] sm:$0xff]  }
  0x2c   :  { %3107 = vmatpush3.bf16.msra.mxu0 %v4405_v46  ;;  %1049 = vmatmul.mubr.bf16.gmra.mxu1 %v2786_v34  ;;  %v4537_v34 = vld [vmem:[%s5839_s1 + $0x180] sm:$0xff]  }
  0x2d   :  { %3135 = vmatpush3.bf16.msra.mxu1 %v4411_v47  ;;  %3108 = vmatprep.subr.bf16.mxu0 %v4417_v48  ;;  %5959 = vst [vmem:[#allocation10_spill] sm:$0xff] %v4537_v34 }
  0x2e   :  { %3136 = vmatprep.subr.bf16.mxu1 %v4423_v49 }
  0x30   :  { %3109 = vmatpush3.bf16.msra.mxu0 %v4429_v50 }
  0x31   :  { %3137 = vmatpush3.bf16.msra.mxu1 %v4435_v51  ;;  %3110 = vmatprep.subr.bf16.mxu0 %v4441_v52  ;;  %v4627_v51 = vld [vmem:[%s5839_s1 + $0x2a8] sm:$0xff]  }
  0x32   :  { %3138 = vmatprep.subr.bf16.mxu1 %v4447_v53  ;;  %5970 = vst [vmem:[#allocation21_spill] sm:$0xff] %v4627_v51 }
  0x34   :  { %3111 = vmatpush3.bf16.msra.mxu0 %v4453_v54 }
  0x35   :  { %3139 = vmatpush3.bf16.msra.mxu1 %v4459_v55  ;;  %3112 = vmatprep.subr.bf16.mxu0 %v4468_v59  ;;  %v4567_v55 = vld [vmem:[%s5839_s1 + $0x238] sm:$0xff]  }
  0x36   :  { %3140 = vmatprep.subr.bf16.mxu1 %v4474_v60  ;;  %v4556_v60 = vld [vmem:[%s5839_s1 + $0x278] sm:$0xff]   ;;  %5962 = vst [vmem:[#allocation13_spill] sm:$0xff] %v4567_v55 }
  0x37   :  { %5960 = vst [vmem:[#allocation11_spill] sm:$0xff] %v4556_v60 }
  0x38   :  { %3113 = vmatpush3.bf16.msra.mxu0 %v4480_v61 }
  0x39   :  { %3141 = vmatpush3.bf16.msra.mxu1 %v4486_v62  ;;  %3114 = vmatprep.subr.bf16.mxu0 %v4496_v33  ;;  %v3869_v62 = vld [vmem:[%s5840_s0 + $0x1c] ss:$52 sps:$4 sm:$0xff]  }
  0x3a   :  { %3142 = vmatprep.subr.bf16.mxu1 %v4501_v35  ;;  %v3866_v35 = vld [vmem:[%s5840_s0 + $0x14] ss:$52 sps:$4 sm:$0xff]   ;;  %1136 = vmatprep.mubr.bf16.mxu1 %v3869_v62 }
  0x3b   :  { %1088 = vmatprep.mubr.bf16.mxu0 %v3866_v35  ;;  %v4573_v35 = vld [vmem:[%s5839_s1 + $0x2b8] sm:$0xff]   ;;  %v4579_v62 = vld [vmem:[%s5839_s1 + $0x270] sm:$0xff]  }
  0x3c   :  { %3115 = vmatpush3.bf16.msra.mxu0 %v4507_v56  ;;  %5963 = vst [vmem:[#allocation14_spill] sm:$0xff] %v4573_v35  ;;  %5964 = vst [vmem:[#allocation15_spill] sm:$0xff] %v4579_v62 }
  0x3d   :  { %3143 = vmatpush3.bf16.msra.mxu1 %v4513_v57  ;;  %3116 = vmatprep.subr.bf16.mxu0 %v4519_v58  ;;  %v3864_v57 = vld [vmem:[%s5840_s0 + $0x10] ss:$52 sps:$4 sm:$0xff]  }
  0x3e   :  { %3144 = vmatprep.subr.bf16.mxu1 %v4525_v63  ;;  %v3867_v63 = vld [vmem:[%s5840_s0 + $0x18] ss:$52 sps:$4 sm:$0xff]  }
  0x40   :  { %3117 = vmatpush3.bf16.msra.mxu0 %v4531_v32 }
  0x41   :  { %3145 = vmatpush3.bf16.msra.mxu1 %v4537_v34  ;;  %v4561_v34 = vld [vmem:[%s5839_s1 + $0x2f8] sm:$0xff]   ;;  %3158 = vmatprep.subr.bf16.mxu0 %v4556_v60  ;;  %v4607_v60 = vld [vmem:[%s5839_s1 + $0x268] sm:$0xff]  }
  0x42   :  { %5961 = vst [vmem:[#allocation12_spill] sm:$0xff] %v4561_v34  ;;  %3186 = vmatprep.subr.bf16.mxu1 %v4561_v34  ;;  %v4597_v34 = vld [vmem:[%s5839_s1 + $0x2b0] sm:$0xff]  }
  0x43   :  { %1089 = vmatmul.mubr.bf16.vlgmr.msra.gmra.mxu0 %v3864_v57  ;;  %v4585_v57 = vld [vmem:[%s5839_s1 + $0x2f0] sm:$0xff]   ;;  %5967 = vst [vmem:[#allocation18_spill] sm:$0xff] %v4597_v34 }
  0x44   :  { %1137 = vmatmul.mubr.bf16.vlgmr.msra.gmra.mxu1 %v3867_v63  ;;  %3159 = vmatpush3.bf16.msra.mxu0 %v4567_v55  ;;  %5965 = vst [vmem:[#allocation16_spill] sm:$0xff] %v4585_v57  ;;  %v4591_v63 = vld [vmem:[%s5839_s1 + $0x230] sm:$0xff]  }
  0x45   :  { %3187 = vmatpush3.bf16.msra.mxu1 %v4573_v35  ;;  %3160 = vmatprep.subr.bf16.mxu0 %v4579_v62  ;;  %5966 = vst [vmem:[#allocation17_spill] sm:$0xff] %v4591_v63  ;;  %v232_v35 = vld [vmem:[%s5840_s0 + $0x78] sm:$0xff] }
  0x46   :  { %3188 = vmatprep.subr.bf16.mxu1 %v4585_v57  ;;  %v2789_v62 = vcombine.high %v232_v35, %v232_v35  ;;  %v2788_v55 = vcombine.low %v232_v35, %v232_v35  ;;  %v4612_v57 = vld [vmem:[%s5839_s1 + $0x2e8] sm:$0xff]  }
  0x47   :  { %5968 = vst [vmem:[#allocation19_spill] sm:$0xff] %v4612_v57  ;;  %v4621_v35 = vld [vmem:[%s5839_s1 + $0x228] sm:$0xff]  }
  0x48   :  { %3161 = vmatpush3.bf16.msra.mxu0 %v4591_v63  ;;  %v233_v63 = vld [vmem:[%s5840_s0 + $0x80] sm:$0xff]  ;;  %1096 = vmatprep.mubr.bf16.mxu0 %v2789_v62  ;;  %5969 = vst [vmem:[#allocation20_spill] sm:$0xff] %v4621_v35 }
  0x49   :  { %3189 = vmatpush3.bf16.msra.mxu1 %v4597_v34  ;;  %3162 = vmatprep.subr.bf16.mxu0 %v4607_v60  ;;  %v2791_v34 = vcombine.high %v233_v63, %v233_v63  ;;  %v2790_v53 = vcombine.low %v233_v63, %v233_v63  ;;  %v4633_v62 = vld [vmem:[%s5839_s1 + $0x260] sm:$0xff]  }
  0x4a   :  { %3190 = vmatprep.subr.bf16.mxu1 %v4612_v57  ;;  %5971 = vst [vmem:[#allocation22_spill] sm:$0xff] %v4633_v62  ;;  %v4651_v63 = vld [vmem:[%s5839_s1 + $0x2a0] sm:$0xff]   ;;  %v4675_v57 = vld [vmem:[%s5839_s1 + $0x298] sm:$0xff]  }
  0x4b   :  { %1097 = vmatmul.mubr.bf16.gmra.mxu0 %v2788_v55  ;;  %1144 = vmatprep.mubr.bf16.mxu1 %v2791_v34  ;;  %v4639_v55 = vld [vmem:[%s5839_s1 + $0x2e0] sm:$0xff]   ;;  %5974 = vst [vmem:[#allocation25_spill] sm:$0xff] %v4651_v63  ;;  %5978 = vst [vmem:[#allocation29_spill] sm:$0xff] %v4675_v57 }
  0x4c   :  { %3163 = vmatpush3.bf16.msra.mxu0 %v4621_v35  ;;  %5972 = vst [vmem:[#allocation23_spill] sm:$0xff] %v4639_v55  ;;  %1145 = vmatmul.mubr.bf16.gmra.mxu1 %v2790_v53  ;;  %v4645_v34 = vld [vmem:[%s5839_s1 + $0x220] sm:$0xff]   ;;  %v4657_v53 = vld [vmem:[%s5839_s1 + $0x258] sm:$0xff]   ;;  %v4788_v35 = vld [vmem:[%s5839_s1 + $0x308] sm:$0xff]  }
  0x4d   :  { %3191 = vmatpush3.bf16.msra.mxu1 %v4627_v51  ;;  %3164 = vmatprep.subr.bf16.mxu0 %v4633_v62  ;;  %5973 = vst [vmem:[#allocation24_spill] sm:$0xff] %v4645_v34  ;;  %5975 = vst [vmem:[#allocation26_spill] sm:$0xff] %v4657_v53  ;;  %v4663_v51 = vld [vmem:[%s5839_s1 + $0x2d8] sm:$0xff]  }
  0x4e   :  { %3192 = vmatprep.subr.bf16.mxu1 %v4639_v55  ;;  %5976 = vst [vmem:[#allocation27_spill] sm:$0xff] %v4663_v51  ;;  %v4669_v55 = vld [vmem:[%s5839_s1 + $0x218] sm:$0xff]  }
  0x4f   :  { %5977 = vst [vmem:[#allocation28_spill] sm:$0xff] %v4669_v55 }
  0x50   :  { %3165 = vmatpush3.bf16.msra.mxu0 %v4645_v34  ;;  %v3911_v34 = vld [vmem:[%s5840_s0 + $0x2c] ss:$52 sps:$4 sm:$0xff]  }
  0x51   :  { %3193 = vmatpush3.bf16.msra.mxu1 %v4651_v63  ;;  %3166 = vmatprep.subr.bf16.mxu0 %v4657_v53  ;;  %v4681_v63 = vld [vmem:[%s5839_s1 + $0x250] sm:$0xff]  }
  0x52   :  { %3194 = vmatprep.subr.bf16.mxu1 %v4663_v51  ;;  %5979 = vst [vmem:[#allocation30_spill] sm:$0xff] %v4681_v63  ;;  %v4687_v53 = vld [vmem:[%s5839_s1 + $0x2d0] sm:$0xff]   ;;  %1232 = vmatprep.mubr.bf16.mxu1 %v3911_v34 }
  0x53   :  { %5980 = vst [vmem:[#allocation31_spill] sm:$0xff] %v4687_v53  ;;  %v4693_v51 = vld [vmem:[%s5839_s1 + $0x210] sm:$0xff]  }
  0x54   :  { %3167 = vmatpush3.bf16.msra.mxu0 %v4669_v55  ;;  %5981 = vst [vmem:[#allocation32_spill] sm:$0xff] %v4693_v51  ;;  %v4699_v55 = vld [vmem:[%s5839_s1 + $0x290] sm:$0xff]  }
  0x55   :  { %3195 = vmatpush3.bf16.msra.mxu1 %v4675_v57  ;;  %3168 = vmatprep.subr.bf16.mxu0 %v4681_v63  ;;  %5982 = vst [vmem:[#allocation33_spill] sm:$0xff] %v4699_v55  ;;  %v4705_v57 = vld [vmem:[%s5839_s1 + $0x248] sm:$0xff]  }
  0x56   :  { %3196 = vmatprep.subr.bf16.mxu1 %v4687_v53  ;;  %5983 = vst [vmem:[#allocation34_spill] sm:$0xff] %v4705_v57  ;;  %v4711_v63 = vld [vmem:[%s5839_s1 + $0x2c8] sm:$0xff]  }
  0x57   :  { %5984 = vst [vmem:[#allocation35_spill] sm:$0xff] %v4711_v63  ;;  %v4717_v53 = vld [vmem:[%s5839_s1 + $0x208] sm:$0xff]  }
  0x58   :  { %3169 = vmatpush3.bf16.msra.mxu0 %v4693_v51  ;;  %5985 = vst [vmem:[#allocation36_spill] sm:$0xff] %v4717_v53  ;;  %v4723_v51 = vld [vmem:[%s5839_s1 + $0x288] sm:$0xff]  }
  0x59   :  { %3197 = vmatpush3.bf16.msra.mxu1 %v4699_v55  ;;  %3170 = vmatprep.subr.bf16.mxu0 %v4705_v57  ;;  %5986 = vst [vmem:[#allocation37_spill] sm:$0xff] %v4723_v51  ;;  %v4729_v55 = vld [vmem:[%s5839_s1 + $0x240] sm:$0xff]  }
  0x5a   :  { %3198 = vmatprep.subr.bf16.mxu1 %v4711_v63  ;;  %5987 = vst [vmem:[#allocation38_spill] sm:$0xff] %v4729_v55  ;;  %v4735_v57 = vld [vmem:[%s5839_s1 + $0x2c0] sm:$0xff]  }
  0x5b   :  { %5988 = vst [vmem:[#allocation39_spill] sm:$0xff] %v4735_v57  ;;  %v4741_v63 = vld [vmem:[%s5839_s1 + $0x200] sm:$0xff]  }
  0x5c   :  { %3171 = vmatpush3.bf16.msra.mxu0 %v4717_v53  ;;  %5989 = vst [vmem:[#allocation40_spill] sm:$0xff] %v4741_v63  ;;  %v4747_v53 = vld [vmem:[%s5839_s1 + $0x280] sm:$0xff]  }
  0x5d   :  { %3199 = vmatpush3.bf16.msra.mxu1 %v4723_v51  ;;  %3172 = vmatprep.subr.bf16.mxu0 %v4729_v55  ;;  %5990 = vst [vmem:[#allocation41_spill] sm:$0xff] %v4747_v53  ;;  %v3906_v51 = vld [vmem:[%s5840_s0 + $0x20] ss:$52 sps:$4 sm:$0xff]   ;;  %v3908_v55 = vld [vmem:[%s5840_s0 + $0x24] ss:$52 sps:$4 sm:$0xff]  }
  0x5e   :  { %3200 = vmatprep.subr.bf16.mxu1 %v4735_v57  ;;  %v3909_v57 = vld [vmem:[%s5840_s0 + $0x28] ss:$52 sps:$4 sm:$0xff]   ;;  %1184 = vmatprep.mubr.bf16.mxu0 %v3908_v55 }
  0x5f   :  { %v234_v55 = vld [vmem:[%s5840_s0 + $0x88] sm:$0xff] }
  0x60   :  { %3173 = vmatpush3.bf16.msra.mxu0 %v4741_v63  ;;  %v4767_v63 = vld [vmem:[%s5839_s1 + $0x318] sm:$0xff]   ;;  %v2792_v62 = vcombine.low %v234_v55, %v234_v55 }
  0x61   :  { %3201 = vmatpush3.bf16.msra.mxu1 %v4747_v53  ;;  %5991 = vst [vmem:[#allocation42_spill] sm:$0xff] %v4767_v63  ;;  %v4772_v53 = vld [vmem:[%s5839_s1 + $0x310] sm:$0xff]   ;;  %3742 = vmatprep.subr.bf16.mxu0 %v4767_v63 }
  0x62   :  { %3220 = vmatprep.subr.bf16.mxu1 %v4142_v0  ;;  %v2793_v0 = vcombine.high %v234_v55, %v234_v55  ;;  %v6023_v55 = vld [vmem:[#allocation25_spill] sm:$0xff] }
  0x63   :  { %1185 = vmatmul.mubr.bf16.vlgmr.msra.gmra.mxu0 %v3906_v51  ;;  %v235_v51 = vld [vmem:[%s5840_s0 + $0x90] sm:$0xff] }
  0x64   :  { %1233 = vmatmul.mubr.bf16.vlgmr.msra.gmra.mxu1 %v3909_v57  ;;  %3743 = vmatpush3.bf16.msra.mxu0 %v4767_v63  ;;  %v2795_v34 = vcombine.high %v235_v51, %v235_v51  ;;  %v3920_v57 = vld [vmem:[%s5840_s0 + $0x30] ss:$52 sps:$4 sm:$0xff]   ;;  %v2794_v63 = vcombine.low %v235_v51, %v235_v51 }
  0x65   :  { %3221 = vmatpush3.bf16.msra.mxu1 %v4153_v2  ;;  %3744 = vmatprep.subr.bf16.mxu0 %v4772_v53  ;;  %v4799_v2 = vld [vmem:[%s5839_s1 + $0x300] sm:$0xff]  }
  0x66   :  { %3222 = vmatprep.subr.bf16.mxu1 %v4165_v4  ;;  %1192 = vmatprep.mubr.bf16.mxu0 %v2793_v0  ;;  %v3924_v4 = vld [vmem:[%s5840_s0 + $0xa0] ss:$52 sps:$4 sm:$0xff]   ;;  %v6024_v0 = vld [vmem:[#allocation27_spill] sm:$0xff] }
  0x67   :  { %1240 = vmatprep.mubr.bf16.mxu1 %v2795_v34 }
  0x68   :  { %3745 = vmatpush3.bf16.msra.mxu0 %v4772_v53  ;;  %v6025_v51 = vld [vmem:[#allocation42_spill] sm:$0xff] }
  0x69   :  { %3223 = vmatpush3.bf16.msra.mxu1 %v4177_v6  ;;  %3746 = vmatprep.subr.bf16.mxu0 %v4788_v35  ;;  %v3921_v6 = vld [vmem:[%s5840_s0 + $0x98] ss:$0 sps:$4 sm:$0xff]  }
  0x6a   :  { %3224 = vmatprep.subr.bf16.mxu1 %v4189_v8  ;;  %v3927_v8 = vld [vmem:[%s5840_s0 + $0xa8] ss:$52 sps:$4 sm:$0xff]  }
  0x6b   :  { %1193 = vmatmul.mubr.bf16.gmra.mxu0 %v2792_v62  ;;  %v2917_v62 = vld [vmem:[%s5840_s0 + $0x124] sm:$0xff] }
  0x6c   :  { %3750 = vmatprep.mubr.msk.bf16.mxu0 %vm953_vm0, %v3920_v57  ;;  %1241 = vmatmul.mubr.bf16.gmra.mxu1 %v2794_v63  ;;  %v6022_v63 = vld [vmem:[#allocation40_spill] sm:$0xff]  ;;  %v2942_v34 = vcombine.high %v2917_v62, %v2917_v62  ;;  %v6026_v57 = vld [vmem:[#allocation29_spill] sm:$0xff] }
  0x6d   :  { %3747 = vmatpush3.bf16.msra.mxu0 %v4788_v35  ;;  %3225 = vmatpush3.bf16.msra.mxu1 %v4201_v10  ;;  %v3925_v10 = vld [vmem:[%s5840_s0 + $0xa4] ss:$52 sps:$4 sm:$0xff]  }
  0x6e   :  { %3748 = vmatprep.subr.bf16.mxu0 %v4799_v2  ;;  %3226 = vmatprep.subr.bf16.mxu1 %v4213_v12 }
  0x6f   :  { %1475 = vmatprep.mubr.bf16.mxu1 %v3924_v4  ;;  %v6027_v4 = vld [vmem:[#allocation31_spill] sm:$0xff] }
  0x71   :  { %3749 = vmatpush3.bf16.msra.mxu0 %v4799_v2  ;;  %3227 = vmatpush3.bf16.msra.mxu1 %v4225_v14  ;;  %v3939_v14 = vld [vmem:[%s5840_s0 + $0xb8] ss:$52 sps:$4 sm:$0xff]  }
  0x72   :  { %3228 = vmatprep.subr.bf16.mxu1 %v4237_v16  ;;  %3248 = vmatprep.subr.bf16.mxu0 %v4147_v1  ;;  %v3922_v1 = vld [vmem:[%s5840_s0 + $0x9c] ss:$52 sps:$4 sm:$0xff]   ;;  %v2915_v16 = vld [vmem:[%s5840_s0 + $0x114] sm:$0xff] }
  0x74   :  { %3751 = vmatmul.mubr.msk.bf16.vlgmr.msra.gmra.mxu0 %vm953_vm0, %v3921_v6  ;;  %v2941_v6 = vcombine.low %v2917_v62, %v2917_v62 }
  0x75   :  { %3229 = vmatpush3.bf16.msra.mxu1 %v4249_v18  ;;  %3249 = vmatpush3.bf16.msra.mxu0 %v4159_v3  ;;  %v2913_v3 = vld [vmem:[%s5840_s0 + $0x104] sm:$0xff] }
  0x76   :  { %3230 = vmatprep.subr.bf16.mxu1 %v4261_v20  ;;  %3250 = vmatprep.subr.bf16.mxu0 %v4171_v5  ;;  %v2934_v5 = vcombine.high %v2913_v3, %v2913_v3  ;;  %v5993_v18 = vld [vmem:[#allocation3_spill] sm:$0xff]  ;;  %v2938_v20 = vcombine.high %v2915_v16, %v2915_v16 }
  0x77   :  { %1523 = vmatprep.mubr.bf16.mxu0 %v3927_v8  ;;  %v6028_v8 = vld [vmem:[#allocation33_spill] sm:$0xff] }
  0x79   :  { %3231 = vmatpush3.bf16.msra.mxu1 %v4273_v22  ;;  %3251 = vmatpush3.bf16.msra.mxu0 %v4183_v7  ;;  %v2933_v7 = vcombine.low %v2913_v3, %v2913_v3  ;;  %v5996_v22 = vld [vmem:[#allocation13_spill] sm:$0xff]  ;;  %v3950_v3 = vld [vmem:[%s5840_s0 + $0xcc] ss:$52 sps:$4 sm:$0xff]  }
  0x7a   :  { %3232 = vmatprep.subr.bf16.mxu1 %v4285_v24  ;;  %3252 = vmatprep.subr.bf16.mxu0 %v4195_v9  ;;  %v3933_v9 = vld [vmem:[%s5840_s0 + $0xb0] ss:$52 sps:$4 sm:$0xff]   ;;  %v5998_v24 = vld [vmem:[#allocation15_spill] sm:$0xff] }
  0x7d   :  { %3233 = vmatpush3.bf16.msra.mxu1 %v4297_v26  ;;  %3253 = vmatpush3.bf16.msra.mxu0 %v4207_v11  ;;  %v2914_v11 = vld [vmem:[%s5840_s0 + $0x10c] sm:$0xff]  ;;  %v5999_v26 = vld [vmem:[#allocation6_spill] sm:$0xff] }
  0x7e   :  { %3234 = vmatprep.subr.bf16.mxu1 %v4309_v28  ;;  %3254 = vmatprep.subr.bf16.mxu0 %v4219_v13  ;;  %v2936_v12 = vcombine.high %v2914_v11, %v2914_v11  ;;  %v2935_v13 = vcombine.low %v2914_v11, %v2914_v11  ;;  %v6001_v28 = vld [vmem:[#allocation7_spill] sm:$0xff] }
  0x7f   :  { %v2918_v11 = vld [vmem:[%s5840_s0 + $0x12c] sm:$0xff] }
  0x81   :  { %3235 = vmatpush3.bf16.msra.mxu1 %v4321_v30  ;;  %3255 = vmatpush3.bf16.msra.mxu0 %v4231_v15  ;;  %v3931_v15 = vld [vmem:[%s5840_s0 + $0xac] ss:$52 sps:$4 sm:$0xff]   ;;  %v6002_v30 = vld [vmem:[#allocation8_spill] sm:$0xff] }
  0x82   :  { %3256 = vmatprep.subr.bf16.mxu0 %v4243_v17  ;;  %3276 = vmatprep.subr.bf16.mxu1 %v4346_v36  ;;  %v5992_v17 = vld [vmem:[#allocation2_spill] sm:$0xff]  ;;  %v6004_v36 = vld [vmem:[#allocation9_spill] sm:$0xff] }
  0x84   :  { %1476 = vmatmul.mubr.bf16.vlgmr.msra.gmra.mxu1 %v3922_v1  ;;  %v6029_v1 = vld [vmem:[#allocation35_spill] sm:$0xff] }
  0x85   :  { %3257 = vmatpush3.bf16.msra.mxu0 %v4255_v19  ;;  %3277 = vmatpush3.bf16.msra.mxu1 %v4357_v38  ;;  %v5994_v19 = vld [vmem:[#allocation11_spill] sm:$0xff] }
  0x86   :  { %3258 = vmatprep.subr.bf16.mxu0 %v4267_v21  ;;  %3278 = vmatprep.subr.bf16.mxu1 %v4369_v40  ;;  %v5995_v21 = vld [vmem:[#allocation4_spill] sm:$0xff]  ;;  %v6006_v40 = vld [vmem:[#allocation10_spill] sm:$0xff] }
  0x87   :  { %1483 = vmatprep.mubr.bf16.mxu1 %v2934_v5  ;;  %v3937_v38 = vld [vmem:[%s5840_s0 + $0xb4] ss:$52 sps:$4 sm:$0xff]   ;;  %v6030_v5 = vld [vmem:[#allocation37_spill] sm:$0xff] }
  0x89   :  { %3259 = vmatpush3.bf16.msra.mxu0 %v4279_v23  ;;  %3279 = vmatpush3.bf16.msra.mxu1 %v4381_v42  ;;  %v5997_v23 = vld [vmem:[#allocation5_spill] sm:$0xff]  ;;  %v6008_v42 = vld [vmem:[#allocation26_spill] sm:$0xff] }
  0x8a   :  { %3260 = vmatprep.subr.bf16.mxu0 %v4291_v25  ;;  %3280 = vmatprep.subr.bf16.mxu1 %v4393_v44  ;;  %v2937_v25 = vcombine.low %v2915_v16, %v2915_v16  ;;  %v3959_v16 = vld [vmem:[%s5840_s0 + $0x144] ss:$52 sps:$4 sm:$0xff]  }
  0x8c   :  { %1484 = vmatmul.mubr.bf16.gmra.mxu1 %v2933_v7  ;;  %v6031_v7 = vld [vmem:[#allocation39_spill] sm:$0xff] }
  0x8d   :  { %3261 = vmatpush3.bf16.msra.mxu0 %v4303_v27  ;;  %3281 = vmatpush3.bf16.msra.mxu1 %v4405_v46  ;;  %v6000_v27 = vld [vmem:[#allocation17_spill] sm:$0xff]  ;;  %v6011_v46 = vld [vmem:[#allocation14_spill] sm:$0xff] }
  0x8e   :  { %3262 = vmatprep.subr.bf16.mxu0 %v4315_v29  ;;  %3282 = vmatprep.subr.bf16.mxu1 %v4417_v48  ;;  %v3944_v29 = vld [vmem:[%s5840_s0 + $0xc0] ss:$52 sps:$4 sm:$0xff]  }
  0x8f   :  { %1571 = vmatprep.mubr.bf16.mxu1 %v3933_v9  ;;  %v6013_v48 = vld [vmem:[#allocation16_spill] sm:$0xff]  ;;  %v3947_v9 = vld [vmem:[%s5840_s0 + $0xc4] ss:$52 sps:$4 sm:$0xff]  }
  0x91   :  { %3263 = vmatpush3.bf16.msra.mxu0 %v4327_v31  ;;  %3283 = vmatpush3.bf16.msra.mxu1 %v4429_v50  ;;  %v6003_v31 = vld [vmem:[#allocation20_spill] sm:$0xff] }
  0x92   :  { %3284 = vmatprep.subr.bf16.mxu1 %v4441_v52  ;;  %3304 = vmatprep.subr.bf16.mxu0 %v4351_v37  ;;  %v6005_v37 = vld [vmem:[#allocation22_spill] sm:$0xff]  ;;  %v6014_v50 = vld [vmem:[#allocation32_spill] sm:$0xff] }
  0x93   :  { %v6015_v52 = vld [vmem:[#allocation18_spill] sm:$0xff] }
  0x94   :  { %1524 = vmatmul.mubr.bf16.vlgmr.msra.gmra.mxu0 %v3925_v10  ;;  %v3951_v10 = vld [vmem:[%s5840_s0 + $0x134] ss:$0 sps:$4 sm:$0xff]  }
  0x95   :  { %3285 = vmatpush3.bf16.msra.mxu1 %v4453_v54  ;;  %3305 = vmatpush3.bf16.msra.mxu0 %v4363_v39  ;;  %v2916_v39 = vld [vmem:[%s5840_s0 + $0x11c] sm:$0xff] }
  0x96   :  { %3286 = vmatprep.subr.bf16.mxu1 %v4468_v59  ;;  %3306 = vmatprep.subr.bf16.mxu0 %v4375_v41  ;;  %v6007_v41 = vld [vmem:[#allocation24_spill] sm:$0xff]  ;;  %v2940_v44 = vcombine.high %v2916_v39, %v2916_v39  ;;  %v6016_v54 = vld [vmem:[#allocation34_spill] sm:$0xff]  ;;  %v6017_v59 = vld [vmem:[#allocation19_spill] sm:$0xff] }
  0x97   :  { %1531 = vmatprep.mubr.bf16.mxu0 %v2936_v12  ;;  %v6032_v12 = vld [vmem:[#allocation41_spill] sm:$0xff] }
  0x99   :  { %3287 = vmatpush3.bf16.msra.mxu1 %v4480_v61  ;;  %3307 = vmatpush3.bf16.msra.mxu0 %v4387_v43  ;;  %v6009_v43 = vld [vmem:[#allocation12_spill] sm:$0xff] }
  0x9a   :  { %3288 = vmatprep.subr.bf16.mxu1 %v4496_v33  ;;  %3308 = vmatprep.subr.bf16.mxu0 %v4399_v45  ;;  %v6010_v45 = vld [vmem:[#allocation28_spill] sm:$0xff]  ;;  %v6019_v33 = vld [vmem:[#allocation21_spill] sm:$0xff] }
  0x9b   :  { %v6018_v61 = vld [vmem:[#allocation36_spill] sm:$0xff] }
  0x9c   :  { %1532 = vmatmul.mubr.bf16.gmra.mxu0 %v2935_v13  ;;  %v4973_v13 = vld [vmem:[%s5839_s1 + $0x78] sm:$0xff]  }
  0x9d   :  { %3289 = vmatpush3.bf16.msra.mxu1 %v4507_v56  ;;  %3309 = vmatpush3.bf16.msra.mxu0 %v4411_v47  ;;  %v6012_v47 = vld [vmem:[#allocation30_spill] sm:$0xff] }
  0x9e   :  { %3290 = vmatprep.subr.bf16.mxu1 %v4519_v58  ;;  %3310 = vmatprep.subr.bf16.mxu0 %v4423_v49  ;;  %v2939_v49 = vcombine.low %v2916_v39, %v2916_v39  ;;  %v6020_v56 = vld [vmem:[#allocation38_spill] sm:$0xff]  ;;  %v6021_v58 = vld [vmem:[#allocation23_spill] sm:$0xff] }
  0x9f   :  { %1619 = vmatprep.mubr.bf16.mxu0 %v3939_v14  ;;  %v4979_v14 = vld [vmem:[%s5839_s1 + $0xf8] sm:$0xff]  }
  0xa1   :  { %3291 = vmatpush3.bf16.msra.mxu1 %v4531_v32  ;;  %3311 = vmatpush3.bf16.msra.mxu0 %v5992_v17  ;;  %v3942_v32 = vld [vmem:[%s5840_s0 + $0xbc] ss:$52 sps:$4 sm:$0xff]  }
  0xa2   :  { %3312 = vmatprep.subr.bf16.mxu0 %v5993_v18  ;;  %3332 = vmatprep.subr.bf16.mxu1 %v5994_v19  ;;  %v4989_v17 = vld [vmem:[%s5839_s1 + $0x38] sm:$0xff]   ;;  %v5001_v19 = vld [vmem:[%s5839_s1 + $0x70] sm:$0xff]  }
  0xa3   :  { %v4995_v18 = vld [vmem:[%s5839_s1 + $0xb8] sm:$0xff]  }
  0xa4   :  { %1572 = vmatmul.mubr.bf16.vlgmr.msra.gmra.mxu1 %v3931_v15  ;;  %v2944_v15 = vcombine.high %v2918_v11, %v2918_v11 }
  0xa5   :  { %3313 = vmatpush3.bf16.msra.mxu0 %v5995_v21  ;;  %3333 = vmatpush3.bf16.msra.mxu1 %v5996_v22  ;;  %v2943_v21 = vcombine.low %v2918_v11, %v2918_v11  ;;  %v5013_v22 = vld [vmem:[%s5839_s1 + $0x30] sm:$0xff]  }
  0xa6   :  { %3314 = vmatprep.subr.bf16.mxu0 %v5997_v23  ;;  %3334 = vmatprep.subr.bf16.mxu1 %v5998_v24  ;;  %v5019_v23 = vld [vmem:[%s5839_s1 + $0xb0] sm:$0xff]   ;;  %v5025_v24 = vld [vmem:[%s5839_s1 + $0x68] sm:$0xff]  }
  0xa7   :  { %1579 = vmatprep.mubr.bf16.mxu1 %v2938_v20  ;;  %v5007_v20 = vld [vmem:[%s5839_s1 + $0xf0] sm:$0xff]  }
  0xa9   :  { %3315 = vmatpush3.bf16.msra.mxu0 %v5999_v26  ;;  %3335 = vmatpush3.bf16.msra.mxu1 %v6000_v27  ;;  %v3956_v26 = vld [vmem:[%s5840_s0 + $0x13c] ss:$52 sps:$4 sm:$0xff]  }
  0xaa   :  { %3316 = vmatprep.subr.bf16.mxu0 %v6001_v28  ;;  %3336 = vmatprep.subr.bf16.mxu1 %v4607_v60  ;;  %v3949_v60 = vld [vmem:[%s5840_s0 + $0xc8] ss:$52 sps:$4 sm:$0xff]  }
  0xab   :  { %v5040_v28 = vld [vmem:[%s5839_s1 + $0x28] sm:$0xff]  }
  0xac   :  { %1580 = vmatmul.mubr.bf16.gmra.mxu1 %v2937_v25  ;;  %v5031_v25 = vld [vmem:[%s5839_s1 + $0xe8] sm:$0xff]  }
  0xad   :  { %3317 = vmatpush3.bf16.msra.mxu0 %v6002_v30  ;;  %3337 = vmatpush3.bf16.msra.mxu1 %v6003_v31  ;;  %v5052_v31 = vld [vmem:[%s5839_s1 + $0x60] sm:$0xff]  }
  0xae   :  { %3318 = vmatprep.subr.bf16.mxu0 %v6004_v36  ;;  %3338 = vmatprep.subr.bf16.mxu1 %v6005_v37  ;;  %v5058_v36 = vld [vmem:[%s5839_s1 + $0xe0] sm:$0xff]  }
  0xaf   :  { %1667 = vmatprep.mubr.bf16.mxu1 %v3944_v29  ;;  %v5046_v29 = vld [vmem:[%s5839_s1 + $0xa8] sm:$0xff]  }
  0xb1   :  { %3319 = vmatpush3.bf16.msra.mxu0 %v6006_v40  ;;  %3339 = vmatpush3.bf16.msra.mxu1 %v6007_v41 }
  0xb2   :  { %3340 = vmatprep.subr.bf16.mxu1 %v6008_v42  ;;  %3360 = vmatprep.subr.bf16.mxu0 %v6009_v43 }
  0xb4   :  { %1620 = vmatmul.mubr.bf16.vlgmr.msra.gmra.mxu0 %v3937_v38  ;;  %v5064_v38 = vld [vmem:[%s5841_s2] ss:$0 sm:$0xff] }
  0xb5   :  { %3341 = vmatpush3.bf16.msra.mxu1 %v6010_v45  ;;  %3361 = vmatpush3.bf16.msra.mxu0 %v6011_v46 }
  0xb6   :  { %3342 = vmatprep.subr.bf16.mxu1 %v6012_v47  ;;  %3362 = vmatprep.subr.bf16.mxu0 %v6013_v48  ;;  %v5069_v48 = vld [vmem:[%s5839_s1 + $0x20] sm:$0xff]  }
  0xb7   :  { %1627 = vmatprep.mubr.bf16.mxu0 %v2940_v44 }
  0xb9   :  { %3343 = vmatpush3.bf16.msra.mxu1 %v6014_v50  ;;  %3363 = vmatpush3.bf16.msra.mxu0 %v6015_v52 }
  0xba   :  { %3344 = vmatprep.subr.bf16.mxu1 %v6016_v54  ;;  %3364 = vmatprep.subr.bf16.mxu0 %v6017_v59 }
  0xbc   :  { %1628 = vmatmul.mubr.bf16.gmra.mxu0 %v2939_v49  ;;  %v5075_v49 = vld [vmem:[%s5839_s1 + $0xa0] sm:$0xff]  }
  0xbd   :  { %3345 = vmatpush3.bf16.msra.mxu1 %v6018_v61  ;;  %3365 = vmatpush3.bf16.msra.mxu0 %v6019_v33  ;;  %v5088_v33 = vld [vmem:[%s5839_s1 + $0xd8] sm:$0xff]  }
  0xbe   :  { %3346 = vmatprep.subr.bf16.mxu1 %v6020_v56  ;;  %3366 = vmatprep.subr.bf16.mxu0 %v6021_v58  ;;  %6033 = vst [vmem:[#allocation2_spill] sm:$0xff] %v5088_v33 }
  0xbf   :  { %1715 = vmatprep.mubr.bf16.mxu0 %v3949_v60  ;;  %v5082_v60 = vld [vmem:[%s5839_s1 + $0x58] sm:$0xff]  }
  0xc1   :  { %3347 = vmatpush3.bf16.msra.mxu1 %v6022_v63  ;;  %3367 = vmatpush3.bf16.msra.mxu0 %v6023_v55 }
  0xc2   :  { %3368 = vmatprep.subr.bf16.mxu0 %v6024_v0  ;;  %3754 = vmatprep.subr.bf16.mxu1 %v6025_v51 }
  0xc4   :  { %1668 = vmatmul.mubr.bf16.vlgmr.msra.gmra.mxu1 %v3942_v32 }
  0xc5   :  { %3369 = vmatpush3.bf16.msra.mxu0 %v6026_v57  ;;  %3755 = vmatpush3.bf16.msra.mxu1 %v6025_v51 }
  0xc6   :  { %3370 = vmatprep.subr.bf16.mxu0 %v6027_v4  ;;  %3756 = vmatprep.subr.bf16.mxu1 %v4772_v53 }
  0xc7   :  { %1675 = vmatprep.mubr.bf16.mxu1 %v2942_v34 }
  0xc9   :  { %3371 = vmatpush3.bf16.msra.mxu0 %v6028_v8  ;;  %3757 = vmatpush3.bf16.msra.mxu1 %v4772_v53 }
  0xca   :  { %3372 = vmatprep.subr.bf16.mxu0 %v6029_v1  ;;  %3758 = vmatprep.subr.bf16.mxu1 %v4788_v35 }
  0xcc   :  { %1676 = vmatmul.mubr.bf16.gmra.mxu1 %v2941_v6 }
  0xcd   :  { %3373 = vmatpush3.bf16.msra.mxu0 %v6030_v5  ;;  %3759 = vmatpush3.bf16.msra.mxu1 %v4788_v35 }
  0xce   :  { %3374 = vmatprep.subr.bf16.mxu0 %v6031_v7  ;;  %3760 = vmatprep.subr.bf16.mxu1 %v4799_v2 }
  0xcf   :  { %3762 = vmatprep.mubr.msk.bf16.mxu1 %vm953_vm0, %v3950_v3 }
  0xd1   :  { %3375 = vmatpush3.bf16.msra.mxu0 %v6032_v12  ;;  %3761 = vmatpush3.bf16.msra.mxu1 %v4799_v2 }
  0xd2   :  { %3394 = vmatprep.subr.bf16.mxu0 %v4973_v13  ;;  %3422 = vmatprep.subr.bf16.mxu1 %v4979_v14 }
  0xd4   :  { %1716 = vmatmul.mubr.bf16.vlgmr.msra.gmra.mxu0 %v3947_v9  ;;  %3763 = vmatmul.mubr.msk.bf16.vlgmr.msra.gmra.mxu1 %vm953_vm0, %v3951_v10  ;;  %v5096_v9 = vld [vmem:[%s5839_s1 + $0x18] sm:$0xff]  }
  0xd5   :  { %3395 = vmatpush3.bf16.msra.mxu0 %v4989_v17  ;;  %3423 = vmatpush3.bf16.msra.mxu1 %v4995_v18  ;;  %v5102_v10 = vld [vmem:[%s5839_s1 + $0x98] sm:$0xff]  }
  0xd6   :  { %3396 = vmatprep.subr.bf16.mxu0 %v5001_v19  ;;  %3424 = vmatprep.subr.bf16.mxu1 %v5007_v20  ;;  %6034 = vst [vmem:[#allocation3_spill] sm:$0xff] %v5102_v10 }
  0xd7   :  { %1723 = vmatprep.mubr.bf16.mxu0 %v2944_v15  ;;  %2009 = vmatprep.mubr.bf16.mxu1 %v3959_v16  ;;  %v5109_v15 = vld [vmem:[%s5839_s1 + $0x50] sm:$0xff]  }
  0xd8   :  { %v5115_v16 = vld [vmem:[%s5839_s1 + $0xd0] sm:$0xff]  }
  0xd9   :  { %3397 = vmatpush3.bf16.msra.mxu0 %v5013_v22  ;;  %3425 = vmatpush3.bf16.msra.mxu1 %v5019_v23  ;;  %6035 = vst [vmem:[#allocation11_spill] sm:$0xff] %v5115_v16 }
  0xda   :  { %3398 = vmatprep.subr.bf16.mxu0 %v5025_v24  ;;  %3426 = vmatprep.subr.bf16.mxu1 %v5031_v25 }
  0xdc   :  { %1724 = vmatmul.mubr.bf16.gmra.mxu0 %v2943_v21 }
  0xdd   :  { %3399 = vmatpush3.bf16.msra.mxu0 %v5040_v28  ;;  %3427 = vmatpush3.bf16.msra.mxu1 %v5046_v29 }
  0xde   :  { %3400 = vmatprep.subr.bf16.mxu0 %v5052_v31  ;;  %3428 = vmatprep.subr.bf16.mxu1 %v5058_v36 }
  0xdf   :  { %1961 = vmatprep.mubr.bf16.mxu0 %v3956_v26  ;;  %v5123_v26 = vld [vmem:[%s5839_s1 + $0x10] sm:$0xff]  }
  0xe1   :  { %3401 = vmatpush3.bf16.msra.mxu0 %v5069_v48  ;;  %3429 = vmatpush3.bf16.msra.mxu1 %v5075_v49 }
  0xe2   :  { %3402 = vmatprep.subr.bf16.mxu0 %v5082_v60  ;;  %3430 = vmatprep.subr.bf16.mxu1 %v5088_v33 }
  0xe3   :  { %v3062_v27 = vpop.f32.mrf.mxu0 }
  0xe4   :  { %v3090_v30 = vpop.f32.mrf.mxu1 }
  0xe5   :  { %v3063_v39 = vpop.f32.mrf.mxu0  ;;  %3403 = vmatpush3.bf16.msra.mxu0 %v5096_v9  ;;  %3431 = vmatpush3.bf16.msra.mxu1 %v5102_v10  ;;  %v5213_v10 = vld [vmem:[%s5839_s1 + $0x1b8] sm:$0xff]  }
  0xe6   :  { %v3064_v40 = vadd.f32 %v3063_v39, %v3062_v27  ;;  %v3091_v43 = vpop.f32.mrf.mxu1  ;;  %3404 = vmatprep.subr.bf16.mxu0 %v5109_v15  ;;  %3432 = vmatprep.subr.bf16.mxu1 %v5115_v16  ;;  %v5129_v27 = vld [vmem:[%s5839_s1 + $0x90] sm:$0xff]   ;;  %v5141_v39 = vld [vmem:[%s5839_s1 + $0xc8] sm:$0xff]   ;;  %v5207_v16 = vld [vmem:[%s5839_s1 + $0x138] sm:$0xff]   ;;  %6044 = vst [vmem:[#allocation20_spill] sm:$0xff] %v5213_v10 }
  0xe7   :  { %v3065_v44 = vpop.f32.mrf.mxu0  ;;  %v3092_v46 = vadd.f32 %v3091_v43, %v3090_v30  ;;  %6036 = vst [vmem:[#allocation4_spill] sm:$0xff] %v5129_v27  ;;  %v5135_v30 = vld [vmem:[%s5839_s1 + $0x48] sm:$0xff]   ;;  %6037 = vst [vmem:[#allocation13_spill] sm:$0xff] %v5141_v39 }
  0xe8   :  { %v995_v52 = vadd.f32 %v3064_v40, %v5064_v38  ;;  %v3093_v59 = vpop.f32.mrf.mxu1  ;;  %v5147_v40 = vld [vmem:[%s5839_s1 + $0x8] sm:$0xff]   ;;  %6043 = vst [vmem:[#allocation8_spill] sm:$0xff] %v5207_v16 }
  0xe9   :  { %v3066_v32 = vpop.f32.mrf.mxu0  ;;  %3405 = vmatpush3.bf16.msra.mxu0 %v5123_v26  ;;  %3433 = vmatpush3.bf16.msra.mxu1 %v5129_v27  ;;  %v5153_v43 = vld [vmem:[%s5839_s1 + $0x88] sm:$0xff]  }
  0xea   :  { %v5091_v62 = vadd.f32 %v3092_v46, %v995_v52  ;;  %v3067_v34 = vadd.f32 %v3066_v32, %v3065_v44  ;;  %v3094_v6 = vpop.f32.mrf.mxu1  ;;  %3406 = vmatprep.subr.bf16.mxu0 %v5135_v30  ;;  %3434 = vmatprep.subr.bf16.mxu1 %v5141_v39  ;;  %6038 = vst [vmem:[#allocation5_spill] sm:$0xff] %v5153_v43  ;;  %v5159_v44 = vld [vmem:[%s5839_s1 + $0x40] sm:$0xff]   ;;  %v3954_v52 = vld [vmem:[%s5840_s0 + $0x138] ss:$52 sps:$4 sm:$0xff]  }
  0xeb   :  { %v3095_v3 = vadd.f32 %v3094_v6, %v3093_v59  ;;  %v5165_v46 = vld [vmem:[%s5839_s1 + $0xc0] sm:$0xff]  }
  0xec   :  { %v998_v11 = vadd.f32 %v3067_v34, %v5064_v38  ;;  %6039 = vst [vmem:[#allocation15_spill] sm:$0xff] %v5165_v46  ;;  %v3957_v59 = vld [vmem:[%s5840_s0 + $0x140] ss:$52 sps:$4 sm:$0xff]   ;;  %v2963_v34 = vld [vmem:[%s5840_s0 + $0x1a8] sm:$0xff] }
  0xed   :  { %3407 = vmatpush3.bf16.msra.mxu0 %v5147_v40  ;;  %3435 = vmatpush3.bf16.msra.mxu1 %v5153_v43  ;;  %v2962_v32 = vld [vmem:[%s5840_s0 + $0x1a0] sm:$0xff]  ;;  %v3068_v43 = vpop.f32.mrf.mxu0  ;;  %v2985_v27 = vcombine.high %v2963_v34, %v2963_v34  ;;  %v2984_v33 = vcombine.low %v2963_v34, %v2963_v34 }
  0xee   :  { %v5118_v21 = vadd.f32 %v3095_v3, %v998_v11  ;;  %3408 = vmatprep.subr.bf16.mxu0 %v5159_v44  ;;  %3436 = vmatprep.subr.bf16.mxu1 %v5165_v46  ;;  %v5183_v6 = vld [vmem:[%s5839_s1] sm:$0xff]   ;;  %v5195_v11 = vld [vmem:[%s5839_s1 + $0x178] sm:$0xff]   ;;  %v2983_v39 = vcombine.high %v2962_v32, %v2962_v32 }
  0xef   :  { %v5189_v3 = vld [vmem:[%s5839_s1 + $0x80] sm:$0xff]   ;;  %6041 = vst [vmem:[#allocation17_spill] sm:$0xff] %v5195_v11  ;;  %v5201_v46 = vld [vmem:[%s5839_s1 + $0x1f8] sm:$0xff]  }
  0xf0   :  { %6040 = vst [vmem:[#allocation6_spill] sm:$0xff] %v5189_v3  ;;  %6042 = vst [vmem:[#allocation7_spill] sm:$0xff] %v5201_v46  ;;  %v3966_v34 = vld [vmem:[%s5840_s0 + $0x14c] ss:$52 sps:$4 sm:$0xff]  }
  0xf1   :  { %3409 = vmatpush3.bf16.msra.mxu0 %v5183_v6  ;;  %3437 = vmatpush3.bf16.msra.mxu1 %v5189_v3  ;;  %v3069_v3 = vpop.f32.mrf.mxu0 }
  0xf2   :  { %3450 = vmatprep.subr.bf16.mxu0 %v5195_v11  ;;  %3478 = vmatprep.subr.bf16.mxu1 %v5201_v46  ;;  %v3070_v46 = vadd.f32 %v3069_v3, %v3068_v43  ;;  %v3096_v11 = vpop.f32.mrf.mxu1 }
  0xf4   :  { %1962 = vmatmul.mubr.bf16.vlgmr.msra.gmra.mxu0 %v3954_v52  ;;  %2010 = vmatmul.mubr.bf16.vlgmr.msra.gmra.mxu1 %v3957_v59  ;;  %v5219_v52 = vld [vmem:[%s5839_s1 + $0x170] sm:$0xff]   ;;  %v1003_v43 = vadd.f32 %v3070_v46, %v5064_v38 }
  0xf5   :  { %3451 = vmatpush3.bf16.msra.mxu0 %v5207_v16  ;;  %3479 = vmatpush3.bf16.msra.mxu1 %v5213_v10  ;;  %6045 = vst [vmem:[#allocation9_spill] sm:$0xff] %v5219_v52  ;;  %v5225_v59 = vld [vmem:[%s5839_s1 + $0x1f0] sm:$0xff]   ;;  %v3071_v16 = vpop.f32.mrf.mxu0  ;;  %v2982_v10 = vcombine.low %v2962_v32, %v2962_v32 }
  0xf6   :  { %3452 = vmatprep.subr.bf16.mxu0 %v5219_v52  ;;  %6046 = vst [vmem:[#allocation22_spill] sm:$0xff] %v5225_v59  ;;  %3480 = vmatprep.subr.bf16.mxu1 %v5225_v59  ;;  %v5232_v52 = vld [vmem:[%s5839_s1 + $0x130] sm:$0xff]   ;;  %v3097_v16 = vpop.f32.mrf.mxu1 }
  0xf7   :  { %1969 = vmatprep.mubr.bf16.mxu0 %v2983_v39  ;;  %2017 = vmatprep.mubr.bf16.mxu1 %v2985_v27  ;;  %v3072_v3 = vpop.f32.mrf.mxu0  ;;  %6047 = vst [vmem:[#allocation10_spill] sm:$0xff] %v5232_v52  ;;  %v5238_v59 = vld [vmem:[%s5839_s1 + $0x1b0] sm:$0xff]   ;;  %v5244_v27 = vld [vmem:[%s5839_s1 + $0x168] sm:$0xff]   ;;  %v3098_v46 = vadd.f32 %v3097_v16, %v3096_v11 }
  0xf8   :  { %6048 = vst [vmem:[#allocation24_spill] sm:$0xff] %v5238_v59  ;;  %6049 = vst [vmem:[#allocation26_spill] sm:$0xff] %v5244_v27  ;;  %v5250_v39 = vld [vmem:[%s5839_s1 + $0x1e8] sm:$0xff]   ;;  %v3099_v32 = vpop.f32.mrf.mxu1 }
  0xf9   :  { %3453 = vmatpush3.bf16.msra.mxu0 %v5232_v52  ;;  %3481 = vmatpush3.bf16.msra.mxu1 %v5238_v59  ;;  %6050 = vst [vmem:[#allocation12_spill] sm:$0xff] %v5250_v39  ;;  %v3969_v3 = vld [vmem:[%s5840_s0 + $0x154] ss:$52 sps:$4 sm:$0xff]   ;;  %v5259_v59 = vadd.f32 %v3098_v46, %v1003_v43  ;;  %v5288_v32 = vld [vmem:[%s5839_s1 + $0x120] sm:$0xff]   ;;  %v5313_v52 = vld [vmem:[%s5839_s1 + $0x118] sm:$0xff]  }
  0xfa   :  { %3454 = vmatprep.subr.bf16.mxu0 %v5244_v27  ;;  %3482 = vmatprep.subr.bf16.mxu1 %v5250_v39  ;;  %v5264_v27 = vld [vmem:[%s5839_s1 + $0x128] sm:$0xff]   ;;  %v3100_v16 = vpop.f32.mrf.mxu1  ;;  %6055 = vst [vmem:[#allocation32_spill] sm:$0xff] %v5288_v32  ;;  %6059 = vst [vmem:[#allocation36_spill] sm:$0xff] %v5313_v52 }
  0xfb   :  { %6051 = vst [vmem:[#allocation28_spill] sm:$0xff] %v5264_v27  ;;  %v5270_v11 = vld [vmem:[%s5839_s1 + $0x1a8] sm:$0xff]   ;;  %v5294_v16 = vld [vmem:[%s5839_s1 + $0x1a0] sm:$0xff]  }
  0xfc   :  { %1970 = vmatmul.mubr.bf16.gmra.mxu0 %v2982_v10  ;;  %2018 = vmatmul.mubr.bf16.gmra.mxu1 %v2984_v33  ;;  %6052 = vst [vmem:[#allocation14_spill] sm:$0xff] %v5270_v11  ;;  %v5276_v10 = vld [vmem:[%s5839_s1 + $0x160] sm:$0xff]   ;;  %6056 = vst [vmem:[#allocation18_spill] sm:$0xff] %v5294_v16 }
  0xfd   :  { %3455 = vmatpush3.bf16.msra.mxu0 %v5264_v27  ;;  %3483 = vmatpush3.bf16.msra.mxu1 %v5270_v11  ;;  %6053 = vst [vmem:[#allocation30_spill] sm:$0xff] %v5276_v10  ;;  %v5282_v33 = vld [vmem:[%s5839_s1 + $0x1e0] sm:$0xff]  }
  0xfe   :  { %3456 = vmatprep.subr.bf16.mxu0 %v5276_v10  ;;  %6054 = vst [vmem:[#allocation16_spill] sm:$0xff] %v5282_v33  ;;  %3484 = vmatprep.subr.bf16.mxu1 %v5282_v33 }
  0xff   :  { %2057 = vmatprep.mubr.bf16.mxu0 %v3966_v34  ;;  %2105 = vmatprep.mubr.bf16.mxu1 %v3969_v3  ;;  %v5300_v34 = vld [vmem:[%s5839_s1 + $0x158] sm:$0xff]  }
 0x100   :  { %6057 = vst [vmem:[#allocation34_spill] sm:$0xff] %v5300_v34  ;;  %v5306_v3 = vld [vmem:[%s5839_s1 + $0x1d8] sm:$0xff]  }
 0x101   :  { %3457 = vmatpush3.bf16.msra.mxu0 %v5288_v32  ;;  %3485 = vmatpush3.bf16.msra.mxu1 %v5294_v16  ;;  %6058 = vst [vmem:[#allocation19_spill] sm:$0xff] %v5306_v3 }
 0x102   :  { %3458 = vmatprep.subr.bf16.mxu0 %v5300_v34  ;;  %3486 = vmatprep.subr.bf16.mxu1 %v5306_v3  ;;  %v5319_v34 = vld [vmem:[%s5839_s1 + $0x198] sm:$0xff]   ;;  %v5346_v3 = vld [vmem:[%s5839_s1 + $0x190] sm:$0xff]  }
 0x103   :  { %v3118_v43 = vpop.f32.mrf.mxu0  ;;  %6060 = vst [vmem:[#allocation21_spill] sm:$0xff] %v5319_v34  ;;  %6064 = vst [vmem:[#allocation25_spill] sm:$0xff] %v5346_v3 }
 0x104   :  { %v3146_v46 = vpop.f32.mrf.mxu1 }
 0x105   :  { %v3119_v11 = vpop.f32.mrf.mxu0  ;;  %3459 = vmatpush3.bf16.msra.mxu0 %v5313_v52  ;;  %3487 = vmatpush3.bf16.msra.mxu1 %v5319_v34 }
 0x106   :  { %v3120_v33 = vadd.f32 %v3119_v11, %v3118_v43  ;;  %v3147_v39 = vpop.f32.mrf.mxu1 }
 0x107   :  { %v3121_v32 = vpop.f32.mrf.mxu0  ;;  %v3148_v10 = vadd.f32 %v3147_v39, %v3146_v46  ;;  %v5333_v39 = vld [vmem:[%s5839_s1 + $0x1d0] sm:$0xff]  }
 0x108   :  { %v1091_v16 = vadd.f32 %v3120_v33, %v5091_v62  ;;  %v3149_v27 = vpop.f32.mrf.mxu1  ;;  %v5327_v62 = vld [vmem:[%s5839_s1 + $0x150] sm:$0xff]   ;;  %6062 = vst [vmem:[#allocation23_spill] sm:$0xff] %v5333_v39  ;;  %3488 = vmatprep.subr.bf16.mxu1 %v5333_v39 }
 0x109   :  { %v3122_v11 = vpop.f32.mrf.mxu0  ;;  %6061 = vst [vmem:[#allocation38_spill] sm:$0xff] %v5327_v62  ;;  %3460 = vmatprep.subr.bf16.mxu0 %v5327_v62  ;;  %3489 = vmatpush3.bf16.msra.mxu1 %v5346_v3  ;;  %v5384_v3 = vld [vmem:[%s5839_s1 + $0x1c0] sm:$0xff]  }
 0x10a   :  { %v5322_v43 = vadd.f32 %v3148_v10, %v1091_v16  ;;  %v3123_v33 = vadd.f32 %v3122_v11, %v3121_v32  ;;  %v3150_v46 = vpop.f32.mrf.mxu1  ;;  %v5340_v16 = vld [vmem:[%s5839_s1 + $0x110] sm:$0xff]   ;;  %6070 = vst [vmem:[#allocation35_spill] sm:$0xff] %v5384_v3 }
 0x10b   :  { %v3151_v34 = vadd.f32 %v3150_v46, %v3149_v27  ;;  %6063 = vst [vmem:[#allocation40_spill] sm:$0xff] %v5340_v16  ;;  %3461 = vmatpush3.bf16.msra.mxu0 %v5340_v16  ;;  %v3124_v39 = vpop.f32.mrf.mxu0  ;;  %v5360_v27 = vld [vmem:[%s5839_s1 + $0x1c8] sm:$0xff]   ;;  %v2964_v16 = vld [vmem:[%s5840_s0 + $0x1b0] sm:$0xff] }
 0x10c   :  { %v1094_v10 = vadd.f32 %v3123_v33, %v5118_v21  ;;  %v5354_v21 = vld [vmem:[%s5839_s1 + $0x148] sm:$0xff]   ;;  %6066 = vst [vmem:[#allocation42_spill] sm:$0xff] %v5360_v27  ;;  %3490 = vmatprep.subr.bf16.mxu1 %v5360_v27  ;;  %v5378_v27 = vld [vmem:[%s5839_s1 + $0x140] sm:$0xff]  }
 0x10d   :  { %6065 = vst [vmem:[#allocation27_spill] sm:$0xff] %v5354_v21  ;;  %3462 = vmatprep.subr.bf16.mxu0 %v5354_v21  ;;  %v3125_v11 = vpop.f32.mrf.mxu0  ;;  %v5372_v33 = vld [vmem:[%s5839_s1 + $0x188] sm:$0xff]   ;;  %6069 = vst [vmem:[#allocation33_spill] sm:$0xff] %v5378_v27 }
 0x10e   :  { %v5349_v32 = vadd.f32 %v3151_v34, %v1094_v10  ;;  %v5366_v34 = vld [vmem:[%s5839_s1 + $0x108] sm:$0xff]   ;;  %6068 = vst [vmem:[#allocation31_spill] sm:$0xff] %v5372_v33  ;;  %3491 = vmatpush3.bf16.msra.mxu1 %v5372_v33  ;;  %v3126_v46 = vadd.f32 %v3125_v11, %v3124_v39  ;;  %v3152_v10 = vpop.f32.mrf.mxu1 }
 0x10f   :  { %6067 = vst [vmem:[#allocation29_spill] sm:$0xff] %v5366_v34  ;;  %3463 = vmatpush3.bf16.msra.mxu0 %v5366_v34  ;;  %3492 = vmatprep.subr.bf16.mxu1 %v5384_v3  ;;  %v3127_v34 = vpop.f32.mrf.mxu0  ;;  %v3964_v39 = vld [vmem:[%s5840_s0 + $0x148] ss:$52 sps:$4 sm:$0xff]  }
 0x110   :  { %3464 = vmatprep.subr.bf16.mxu0 %v5378_v27  ;;  %v1099_v21 = vadd.f32 %v3126_v46, %v5259_v59  ;;  %v3153_v33 = vpop.f32.mrf.mxu1  ;;  %v3967_v27 = vld [vmem:[%s5840_s0 + $0x150] ss:$52 sps:$4 sm:$0xff]   ;;  %v2965_v34 = vld [vmem:[%s5840_s0 + $0x1b8] sm:$0xff] }
 0x111   :  { %v3154_v11 = vadd.f32 %v3153_v33, %v3152_v10  ;;  %v3128_v62 = vpop.f32.mrf.mxu0  ;;  %v5403_v59 = vld [vmem:[%s5839_s1 + $0x100] sm:$0xff]   ;;  %v5417_v10 = vld [vmem:[%s5839_s1 + $0x278] sm:$0xff]   ;;  %v2989_v52 = vcombine.high %v2965_v34, %v2965_v34 }
 0x112   :  { %6071 = vst [vmem:[#allocation37_spill] sm:$0xff] %v5403_v59  ;;  %v5409_v33 = vld [vmem:[%s5839_s1 + $0x180] sm:$0xff]   ;;  %v3155_v46 = vpop.f32.mrf.mxu1  ;;  %v5423_v3 = vld [vmem:[%s5839_s1 + $0x2f8] sm:$0xff]  }
 0x113   :  { %3465 = vmatpush3.bf16.msra.mxu0 %v5403_v59  ;;  %6072 = vst [vmem:[#allocation39_spill] sm:$0xff] %v5409_v33  ;;  %3493 = vmatpush3.bf16.msra.mxu1 %v5409_v33  ;;  %v5412_v62 = vadd.f32 %v3154_v11, %v1099_v21  ;;  %6073 = vst [vmem:[#allocation41_spill] sm:$0xff] %v5423_v3  ;;  %v2987_v59 = vcombine.high %v2964_v16, %v2964_v16  ;;  %v5429_v21 = vld [vmem:[%s5839_s1 + $0x238] sm:$0xff]  }
 0x114   :  { %3506 = vmatprep.subr.bf16.mxu0 %v5417_v10  ;;  %3534 = vmatprep.subr.bf16.mxu1 %v5423_v3  ;;  %v3156_v33 = vpop.f32.mrf.mxu1  ;;  %v5435_v11 = vld [vmem:[%s5839_s1 + $0x2b8] sm:$0xff]   ;;  %v2988_v46 = vcombine.low %v2965_v34, %v2965_v34  ;;  %v5459_v3 = vld [vmem:[%s5839_s1 + $0x2b0] sm:$0xff]  }
 0x115   :  { %6074 = vst [vmem:[#allocation43_spill] sm:$0xff] %v5435_v11  ;;  %v5441_v33 = vld [vmem:[%s5839_s1 + $0x270] sm:$0xff]   ;;  %6076 = vst [vmem:[#allocation45_spill] sm:$0xff] %v5459_v3 }
 0x116   :  { %2058 = vmatmul.mubr.bf16.vlgmr.msra.gmra.mxu0 %v3964_v39  ;;  %2106 = vmatmul.mubr.bf16.vlgmr.msra.gmra.mxu1 %v3967_v27  ;;  %v5447_v27 = vld [vmem:[%s5839_s1 + $0x2f0] sm:$0xff]   ;;  %v2986_v39 = vcombine.low %v2964_v16, %v2964_v16  ;;  %v5471_v16 = vld [vmem:[%s5839_s1 + $0x2e8] sm:$0xff]  }
 0x117   :  { %3507 = vmatpush3.bf16.msra.mxu0 %v5429_v21  ;;  %3535 = vmatpush3.bf16.msra.mxu1 %v5435_v11  ;;  %6075 = vst [vmem:[#allocation44_spill] sm:$0xff] %v5447_v27  ;;  %v5453_v11 = vld [vmem:[%s5839_s1 + $0x230] sm:$0xff]   ;;  %6077 = vst [vmem:[#allocation46_spill] sm:$0xff] %v5471_v16 }
 0x118   :  { %3508 = vmatprep.subr.bf16.mxu0 %v5441_v33  ;;  %3536 = vmatprep.subr.bf16.mxu1 %v5447_v27  ;;  %v3976_v34 = vld [vmem:[%s5840_s0 + $0x15c] ss:$52 sps:$4 sm:$0xff]  }
 0x119   :  { %2065 = vmatprep.mubr.bf16.mxu0 %v2987_v59  ;;  %2113 = vmatprep.mubr.bf16.mxu1 %v2989_v52  ;;  %v5465_v52 = vld [vmem:[%s5839_s1 + $0x268] sm:$0xff]   ;;  %v3979_v59 = vld [vmem:[%s5840_s0 + $0x164] ss:$52 sps:$4 sm:$0xff]  }
 0x11b   :  { %3509 = vmatpush3.bf16.msra.mxu0 %v5453_v11  ;;  %3537 = vmatpush3.bf16.msra.mxu1 %v5459_v3  ;;  %v5483_v3 = vld [vmem:[%s5839_s1 + $0x228] sm:$0xff]  }
 0x11c   :  { %3510 = vmatprep.subr.bf16.mxu0 %v5465_v52  ;;  %3538 = vmatprep.subr.bf16.mxu1 %v5471_v16  ;;  %v5489_v16 = vld [vmem:[%s5839_s1 + $0x2a8] sm:$0xff]  }
 0x11d   :  { %6078 = vst [vmem:[#allocation47_spill] sm:$0xff] %v5489_v16 }
 0x11e   :  { %2066 = vmatmul.mubr.bf16.gmra.mxu0 %v2986_v39  ;;  %2114 = vmatmul.mubr.bf16.gmra.mxu1 %v2988_v46 }
 0x11f   :  { %3511 = vmatpush3.bf16.msra.mxu0 %v5483_v3  ;;  %3539 = vmatpush3.bf16.msra.mxu1 %v5489_v16 }
 0x120   :  { %3512 = vmatprep.subr.bf16.mxu0 %v6005_v37  ;;  %3540 = vmatprep.subr.bf16.mxu1 %v6021_v58 }
 0x121   :  { %2153 = vmatprep.mubr.bf16.mxu0 %v3976_v34  ;;  %2201 = vmatprep.mubr.bf16.mxu1 %v3979_v59 }
 0x123   :  { %3513 = vmatpush3.bf16.msra.mxu0 %v6007_v41  ;;  %3541 = vmatpush3.bf16.msra.mxu1 %v6023_v55  ;;  %v3174_v39 = vpop.f32.mrf.mxu0 }
 0x124   :  { %3514 = vmatprep.subr.bf16.mxu0 %v6008_v42  ;;  %3542 = vmatprep.subr.bf16.mxu1 %v6024_v0  ;;  %v3202_v27 = vpop.f32.mrf.mxu1 }
 0x125   :  { %v3175_v46 = vpop.f32.mrf.mxu0 }
 0x126   :  { %v3176_v37 = vadd.f32 %v3175_v46, %v3174_v39  ;;  %v3203_v58 = vpop.f32.mrf.mxu1 }
 0x127   :  { %3515 = vmatpush3.bf16.msra.mxu0 %v6010_v45  ;;  %3543 = vmatpush3.bf16.msra.mxu1 %v6026_v57  ;;  %v3177_v16 = vpop.f32.mrf.mxu0  ;;  %v3204_v55 = vadd.f32 %v3203_v58, %v3202_v27 }
 0x128   :  { %3516 = vmatprep.subr.bf16.mxu0 %v6012_v47  ;;  %3544 = vmatprep.subr.bf16.mxu1 %v6027_v4  ;;  %v1187_v41 = vadd.f32 %v3176_v37, %v5322_v43  ;;  %v3205_v42 = vpop.f32.mrf.mxu1 }
 0x129   :  { %v3178_v34 = vpop.f32.mrf.mxu0 }
 0x12a   :  { %v3179_v0 = vadd.f32 %v3178_v34, %v3177_v16  ;;  %v1235_v45 = vadd.f32 %v3204_v55, %v1187_v41  ;;  %v3206_v57 = vpop.f32.mrf.mxu1 }
 0x12b   :  { %3517 = vmatpush3.bf16.msra.mxu0 %v6014_v50  ;;  %3545 = vmatpush3.bf16.msra.mxu1 %v6028_v8  ;;  %v3180_v59 = vpop.f32.mrf.mxu0  ;;  %v3207_v4 = vadd.f32 %v3206_v57, %v3205_v42  ;;  %v6084_v57 = vld [vmem:[#allocation9_spill] sm:$0xff] }
 0x12c   :  { %3518 = vmatprep.subr.bf16.mxu0 %v6016_v54  ;;  %3546 = vmatprep.subr.bf16.mxu1 %v6029_v1  ;;  %v1190_v47 = vadd.f32 %v3179_v0, %v5349_v32  ;;  %v3208_v43 = vpop.f32.mrf.mxu1  ;;  %v3974_v32 = vld [vmem:[%s5840_s0 + $0x158] ss:$52 sps:$4 sm:$0xff]  }
 0x12d   :  { %v3181_v39 = vpop.f32.mrf.mxu0 }
 0x12e   :  { %v3182_v50 = vadd.f32 %v3181_v39, %v3180_v59  ;;  %v1238_v27 = vadd.f32 %v3207_v4, %v1190_v47  ;;  %v3209_v16 = vpop.f32.mrf.mxu1 }
 0x12f   :  { %3519 = vmatpush3.bf16.msra.mxu0 %v6018_v61  ;;  %3547 = vmatpush3.bf16.msra.mxu1 %v6030_v5  ;;  %v3183_v8 = vpop.f32.mrf.mxu0  ;;  %v3210_v1 = vadd.f32 %v3209_v16, %v3208_v43  ;;  %v3977_v61 = vld [vmem:[%s5840_s0 + $0x160] ss:$52 sps:$4 sm:$0xff]  }
 0x130   :  { %3520 = vmatprep.subr.bf16.mxu0 %v6020_v56  ;;  %3548 = vmatprep.subr.bf16.mxu1 %v6031_v7  ;;  %v1195_v54 = vadd.f32 %v3182_v50, %v5412_v62  ;;  %v2966_v5 = vld [vmem:[%s5840_s0 + $0x1c0] sm:$0xff]  ;;  %v2967_v56 = vld [vmem:[%s5840_s0 + $0x1c8] sm:$0xff]  ;;  %v3211_v7 = vpop.f32.mrf.mxu1  ;;  %v6085_v43 = vld [vmem:[#allocation4_spill] sm:$0xff] }
 0x131   :  { %v3184_v46 = vpop.f32.mrf.mxu0  ;;  %v2991_v58 = vcombine.high %v2966_v5, %v2966_v5  ;;  %v2993_v41 = vcombine.high %v2967_v56, %v2967_v56  ;;  %v2990_v42 = vcombine.low %v2966_v5, %v2966_v5  ;;  %v2992_v0 = vcombine.low %v2967_v56, %v2967_v56  ;;  %v6086_v50 = vld [vmem:[#allocation10_spill] sm:$0xff]  ;;  %v6087_v8 = vld [vmem:[#allocation13_spill] sm:$0xff]  ;;  %v6090_v56 = vld [vmem:[#allocation28_spill] sm:$0xff] }
 0x132   :  { %v1243_v62 = vadd.f32 %v3210_v1, %v1195_v54  ;;  %v3212_v37 = vpop.f32.mrf.mxu1  ;;  %v6088_v16 = vld [vmem:[#allocation26_spill] sm:$0xff]  ;;  %v6089_v5 = vld [vmem:[#allocation5_spill] sm:$0xff] }
 0x133   :  { %3521 = vmatpush3.bf16.msra.mxu0 %v6022_v63  ;;  %3549 = vmatpush3.bf16.msra.mxu1 %v6032_v12  ;;  %v6092_v37 = vld [vmem:[#allocation30_spill] sm:$0xff] }
 0x134   :  { %3766 = vmatprep.subr.bf16.mxu0 %v6025_v51  ;;  %3568 = vmatprep.subr.bf16.mxu1 %v4973_v13  ;;  %v3752_v55 = vpop.f32.mrf.mxu0 }
 0x135   :  { %v5529_v34 = vadd.f32 %v3752_v55, %v1243_v62  ;;  %v6091_v62 = vld [vmem:[#allocation15_spill] sm:$0xff]  ;;  %v3989_v55 = vld [vmem:[%s5840_s0 + $0x1dc] ss:$52 sps:$4 sm:$0xff]  }
 0x136   :  { %2154 = vmatmul.mubr.bf16.vlgmr.msra.gmra.mxu0 %v3974_v32  ;;  %2202 = vmatmul.mubr.bf16.vlgmr.msra.gmra.mxu1 %v3977_v61  ;;  %v1282_v63 = vpop.f32.mrf.mxu0  ;;  %v3997_v32 = vld [vmem:[%s5840_s0 + $0x1e8] ss:$52 sps:$4 sm:$0xff]  }
 0x137   :  { %3767 = vmatpush3.bf16.msra.mxu0 %v6025_v51  ;;  %3569 = vmatpush3.bf16.msra.mxu1 %v4989_v17  ;;  %v5535_v12 = vadd.f32 %v1282_v63, %v1235_v45  ;;  %v3984_v17 = vld [vmem:[%s5840_s0 + $0x168] ss:$52 sps:$4 sm:$0xff]   ;;  %vm1298_vm5 = vcmp.ge.f32.partialorder %v5529_v34, 0.0 }
 0x138   :  { %3768 = vmatprep.subr.bf16.mxu0 %v4772_v53  ;;  %3570 = vmatprep.subr.bf16.mxu1 %v5001_v19  ;;  %v3753_v13 = vpop.f32.mrf.mxu0  ;;  %v3988_v19 = vld [vmem:[%s5840_s0 + $0x1d8] ss:$52 sps:$4 sm:$0xff]  }
 0x139   :  { %2161 = vmatprep.mubr.bf16.mxu0 %v2991_v58  ;;  %2209 = vmatprep.mubr.bf16.mxu1 %v2993_v41  ;;  %v6083_v45 = vld [vmem:[#allocation11_spill] sm:$0xff]  ;;  %vm1296_vm1 = vcmp.ge.f32.partialorder %v5535_v12, 0.0 }
 0x13a   :  { %v1285_v59 = vpop.f32.mrf.mxu0  ;;  %v3012_v13 = vld [vmem:[%s5840_s0 + $0x244] sm:$0xff] }
 0x13b   :  { %3769 = vmatpush3.bf16.msra.mxu0 %v4772_v53  ;;  %3571 = vmatpush3.bf16.msra.mxu1 %v5013_v22  ;;  %v5541_v51 = vadd.f32 %v1285_v59, %v1238_v27  ;;  %v3985_v53 = vld [vmem:[%s5840_s0 + $0x1d0] ss:$0 sps:$4 sm:$0xff]   ;;  %v6095_v59 = vld [vmem:[#allocation34_spill] sm:$0xff] }
 0x13c   :  { %3770 = vmatprep.subr.bf16.mxu0 %v4788_v35  ;;  %3572 = vmatprep.subr.bf16.mxu1 %v5025_v24 }
 0x13d   :  { %vm1297_vm3 = vcmp.ge.f32.partialorder %v5541_v51, 0.0 }
 0x13e   :  { %2162 = vmatmul.mubr.bf16.gmra.mxu0 %v2990_v42  ;;  %2210 = vmatmul.mubr.bf16.gmra.mxu1 %v2992_v0  ;;  %v6093_v42 = vld [vmem:[#allocation6_spill] sm:$0xff]  ;;  %v6094_v0 = vld [vmem:[#allocation32_spill] sm:$0xff] }
 0x13f   :  { %3771 = vmatpush3.bf16.msra.mxu0 %v4788_v35  ;;  %3573 = vmatpush3.bf16.msra.mxu1 %v5040_v28  ;;  %v3991_v35 = vld [vmem:[%s5840_s0 + $0x1e0] ss:$52 sps:$4 sm:$0xff]  }
 0x140   :  { %3772 = vmatprep.subr.bf16.mxu0 %v4799_v2  ;;  %3574 = vmatprep.subr.bf16.mxu1 %v5052_v31 }
 0x141   :  { %3774 = vmatprep.mubr.msk.bf16.mxu0 %vm953_vm0, %v3984_v17  ;;  %2444 = vmatprep.mubr.bf16.mxu1 %v3988_v19  ;;  %v6096_v17 = vld [vmem:[#allocation7_spill] sm:$0xff] }
 0x143   :  { %3773 = vmatpush3.bf16.msra.mxu0 %v4799_v2  ;;  %3575 = vmatpush3.bf16.msra.mxu1 %v5069_v48 }
 0x144   :  { %3576 = vmatprep.subr.bf16.mxu1 %v5082_v60  ;;  %3596 = vmatprep.subr.bf16.mxu0 %v4979_v14  ;;  %v3236_v22 = vpop.f32.mrf.mxu1 }
 0x146   :  { %3775 = vmatmul.mubr.msk.bf16.vlgmr.msra.gmra.mxu0 %vm953_vm0, %v3985_v53  ;;  %v3237_v24 = vpop.f32.mrf.mxu1  ;;  %v3034_v53 = vcombine.high %v3012_v13, %v3012_v13 }
 0x147   :  { %3577 = vmatpush3.bf16.msra.mxu1 %v5096_v9  ;;  %3597 = vmatpush3.bf16.msra.mxu0 %v4995_v18  ;;  %v3238_v2 = vadd.f32 %v3237_v24, %v3236_v22  ;;  %v6080_v9 = vld [vmem:[#allocation17_spill] sm:$0xff]  ;;  %v6097_v22 = vld [vmem:[#allocation36_spill] sm:$0xff] }
 0x148   :  { %3578 = vmatprep.subr.bf16.mxu1 %v5109_v15  ;;  %3598 = vmatprep.subr.bf16.mxu0 %v5007_v20  ;;  %v3239_v28 = vpop.f32.mrf.mxu1  ;;  %v6098_v24 = vld [vmem:[#allocation20_spill] sm:$0xff] }
 0x149   :  { %2492 = vmatprep.mubr.bf16.mxu0 %v3991_v35 }
 0x14a   :  { %v3240_v14 = vpop.f32.mrf.mxu1 }
 0x14b   :  { %3579 = vmatpush3.bf16.msra.mxu1 %v5123_v26  ;;  %3599 = vmatpush3.bf16.msra.mxu0 %v5019_v23  ;;  %v3241_v31 = vadd.f32 %v3240_v14, %v3239_v28  ;;  %v3986_v23 = vld [vmem:[%s5840_s0 + $0x1d4] ss:$52 sps:$4 sm:$0xff]   ;;  %v6099_v28 = vld [vmem:[#allocation38_spill] sm:$0xff] }
 0x14c   :  { %3580 = vmatprep.subr.bf16.mxu1 %v5135_v30  ;;  %3600 = vmatprep.subr.bf16.mxu0 %v5031_v25  ;;  %v3242_v48 = vpop.f32.mrf.mxu1  ;;  %v3011_v25 = vld [vmem:[%s5840_s0 + $0x23c] sm:$0xff]  ;;  %v6081_v30 = vld [vmem:[#allocation3_spill] sm:$0xff] }
 0x14d   :  { %v3032_v15 = vcombine.high %v3011_v25, %v3011_v25  ;;  %v3031_v4 = vcombine.low %v3011_v25, %v3011_v25  ;;  %v1481_v54 = vadd.f32 %v3241_v31, %v5064_v38  ;;  %v6100_v14 = vld [vmem:[#allocation22_spill] sm:$0xff] }
 0x14e   :  { %v3243_v18 = vpop.f32.mrf.mxu1 }
 0x14f   :  { %3581 = vmatpush3.bf16.msra.mxu1 %v5147_v40  ;;  %3601 = vmatpush3.bf16.msra.mxu0 %v5046_v29  ;;  %v3244_v20 = vadd.f32 %v3243_v18, %v3242_v48  ;;  %v6079_v29 = vld [vmem:[#allocation2_spill] sm:$0xff]  ;;  %v6082_v40 = vld [vmem:[#allocation8_spill] sm:$0xff]  ;;  %v3033_v18 = vcombine.low %v3012_v13, %v3012_v13 }
 0x150   :  { %3582 = vmatprep.subr.bf16.mxu1 %v5159_v44  ;;  %3602 = vmatprep.subr.bf16.mxu0 %v5058_v36  ;;  %v3245_v60 = vpop.f32.mrf.mxu1 }
 0x151   :  { %v1486_v7 = vadd.f32 %v3244_v20, %v5064_v38  ;;  %v6102_v60 = vld [vmem:[#allocation24_spill] sm:$0xff] }
 0x152   :  { %v3246_v36 = vpop.f32.mrf.mxu1 }
 0x153   :  { %3583 = vmatpush3.bf16.msra.mxu1 %v5183_v6  ;;  %3603 = vmatpush3.bf16.msra.mxu0 %v5075_v49  ;;  %v1478_v6 = vadd.f32 %v3238_v2, %v5064_v38 }
 0x154   :  { %3604 = vmatprep.subr.bf16.mxu0 %v6079_v29  ;;  %3624 = vmatprep.subr.bf16.mxu1 %v6080_v9  ;;  %v3264_v26 = vpop.f32.mrf.mxu0  ;;  %v6103_v29 = vld [vmem:[#allocation27_spill] sm:$0xff]  ;;  %v6104_v9 = vld [vmem:[#allocation12_spill] sm:$0xff] }
 0x156   :  { %2445 = vmatmul.mubr.bf16.vlgmr.msra.gmra.mxu1 %v3986_v23  ;;  %v3265_v44 = vpop.f32.mrf.mxu0  ;;  %v6101_v23 = vld [vmem:[#allocation40_spill] sm:$0xff] }
 0x157   :  { %3605 = vmatpush3.bf16.msra.mxu0 %v6081_v30  ;;  %3625 = vmatpush3.bf16.msra.mxu1 %v6082_v40  ;;  %v3266_v49 = vadd.f32 %v3265_v44, %v3264_v26  ;;  %v6105_v40 = vld [vmem:[#allocation29_spill] sm:$0xff]  ;;  %v6106_v44 = vld [vmem:[#allocation14_spill] sm:$0xff] }
 0x158   :  { %3606 = vmatprep.subr.bf16.mxu0 %v6083_v45  ;;  %3626 = vmatprep.subr.bf16.mxu1 %v6084_v57  ;;  %v3267_v47 = vpop.f32.mrf.mxu0  ;;  %v6107_v57 = vld [vmem:[#allocation33_spill] sm:$0xff] }
 0x159   :  { %2452 = vmatprep.mubr.bf16.mxu1 %v3032_v15  ;;  %v1526_v39 = vadd.f32 %v3266_v49, %v1478_v6  ;;  %v4003_v15 = vld [vmem:[%s5840_s0 + $0x1f0] ss:$52 sps:$4 sm:$0xff]  }
 0x15a   :  { %v3268_v27 = vpop.f32.mrf.mxu0  ;;  %v6108_v6 = vld [vmem:[#allocation16_spill] sm:$0xff] }
 0x15b   :  { %3607 = vmatpush3.bf16.msra.mxu0 %v6085_v43  ;;  %3627 = vmatpush3.bf16.msra.mxu1 %v6086_v50  ;;  %v3269_v1 = vadd.f32 %v3268_v27, %v3267_v47  ;;  %v3995_v47 = vld [vmem:[%s5840_s0 + $0x1e4] ss:$52 sps:$4 sm:$0xff]  }
 0x15c   :  { %3608 = vmatprep.subr.bf16.mxu0 %v6087_v8  ;;  %3628 = vmatprep.subr.bf16.mxu1 %v6088_v16  ;;  %v3270_v46 = vpop.f32.mrf.mxu0  ;;  %v6109_v50 = vld [vmem:[#allocation37_spill] sm:$0xff]  ;;  %v6110_v27 = vld [vmem:[#allocation18_spill] sm:$0xff]  ;;  %v6111_v8 = vld [vmem:[#allocation19_spill] sm:$0xff] }
 0x15d   :  { %v1529_v61 = vadd.f32 %v3269_v1, %v1481_v54 }
 0x15e   :  { %2453 = vmatmul.mubr.bf16.gmra.mxu1 %v3031_v4  ;;  %v3271_v58 = vpop.f32.mrf.mxu0  ;;  %v3013_v4 = vld [vmem:[%s5840_s0 + $0x24c] sm:$0xff] }
 0x15f   :  { %3609 = vmatpush3.bf16.msra.mxu0 %v6089_v5  ;;  %3629 = vmatpush3.bf16.msra.mxu1 %v6090_v56  ;;  %v3272_v41 = vadd.f32 %v3271_v58, %v3270_v46  ;;  %v3036_v54 = vcombine.high %v3013_v4, %v3013_v4  ;;  %v6115_v58 = vld [vmem:[#allocation42_spill] sm:$0xff] }
 0x160   :  { %3610 = vmatprep.subr.bf16.mxu0 %v6091_v62  ;;  %3630 = vmatprep.subr.bf16.mxu1 %v6092_v37  ;;  %v3273_v63 = vpop.f32.mrf.mxu0  ;;  %v6114_v37 = vld [vmem:[#allocation25_spill] sm:$0xff] }
 0x161   :  { %2540 = vmatprep.mubr.bf16.mxu1 %v3997_v32  ;;  %v1534_v38 = vadd.f32 %v3272_v41, %v1486_v7  ;;  %v6112_v32 = vld [vmem:[#allocation21_spill] sm:$0xff]  ;;  %v3035_v7 = vcombine.low %v3013_v4, %v3013_v4  ;;  %v6116_v63 = vld [vmem:[#allocation31_spill] sm:$0xff]  ;;  %v4103_v4 = vld [vmem:[%s5839_s1 + $0x2e0] sm:$0xff]  }
 0x162   :  { %v3274_v19 = vpop.f32.mrf.mxu0  ;;  %v4008_v41 = vld [vmem:[%s5840_s0 + $0x1f8] ss:$52 sps:$4 sm:$0xff]  }
 0x163   :  { %3611 = vmatpush3.bf16.msra.mxu0 %v6093_v42  ;;  %3631 = vmatpush3.bf16.msra.mxu1 %v6094_v0  ;;  %v6117_v42 = vld [vmem:[#allocation35_spill] sm:$0xff]  ;;  %v4095_v19 = vld [vmem:[%s5839_s1 + $0x220] sm:$0xff]  }
 0x164   :  { %3632 = vmatprep.subr.bf16.mxu1 %v6095_v59  ;;  %3652 = vmatprep.subr.bf16.mxu0 %v6096_v17  ;;  %v3292_v35 = vpop.f32.mrf.mxu1  ;;  %v4001_v0 = vld [vmem:[%s5840_s0 + $0x1ec] ss:$52 sps:$4 sm:$0xff]   ;;  %v3014_v59 = vld [vmem:[%s5840_s0 + $0x254] sm:$0xff] }
 0x165   :  { %v6118_v17 = vld [vmem:[#allocation39_spill] sm:$0xff] }
 0x166   :  { %2493 = vmatmul.mubr.bf16.vlgmr.msra.gmra.mxu0 %v3989_v55  ;;  %v3293_v2 = vpop.f32.mrf.mxu1 }
 0x167   :  { %3633 = vmatpush3.bf16.msra.mxu1 %v6097_v22  ;;  %3653 = vmatpush3.bf16.msra.mxu0 %v6098_v24  ;;  %v3294_v31 = vadd.f32 %v3293_v2, %v3292_v35  ;;  %v6119_v35 = vld [vmem:[#allocation41_spill] sm:$0xff]  ;;  %v3038_v24 = vcombine.high %v3014_v59, %v3014_v59 }
 0x168   :  { %3634 = vmatprep.subr.bf16.mxu1 %v6099_v28  ;;  %3654 = vmatprep.subr.bf16.mxu0 %v6100_v14  ;;  %v3295_v48 = vpop.f32.mrf.mxu1  ;;  %v4097_v28 = vld [vmem:[%s5839_s1 + $0x218] sm:$0xff]   ;;  %v6120_v14 = vld [vmem:[#allocation43_spill] sm:$0xff] }
 0x169   :  { %2500 = vmatprep.mubr.bf16.mxu0 %v3034_v53  ;;  %v1574_v20 = vadd.f32 %v3294_v31, %v1526_v39  ;;  %v4096_v53 = vld [vmem:[%s5839_s1 + $0x258] sm:$0xff]  }
 0x16a   :  { %v3296_v25 = vpop.f32.mrf.mxu1 }
 0x16b   :  { %3635 = vmatpush3.bf16.msra.mxu1 %v6101_v23  ;;  %3655 = vmatpush3.bf16.msra.mxu0 %v6102_v60  ;;  %v3297_v36 = vadd.f32 %v3296_v25, %v3295_v48  ;;  %v4098_v48 = vld [vmem:[%s5839_s1 + $0x250] sm:$0xff]   ;;  %v3037_v60 = vcombine.low %v3014_v59, %v3014_v59 }
 0x16c   :  { %3636 = vmatprep.subr.bf16.mxu1 %v6103_v29  ;;  %3656 = vmatprep.subr.bf16.mxu0 %v6104_v9  ;;  %v3298_v26 = vpop.f32.mrf.mxu1  ;;  %v4099_v29 = vld [vmem:[%s5839_s1 + $0x210] sm:$0xff]   ;;  %v6122_v9 = vld [vmem:[#allocation45_spill] sm:$0xff] }
 0x16d   :  { %v1577_v30 = vadd.f32 %v3297_v36, %v1529_v61  ;;  %v6113_v61 = vld [vmem:[#allocation23_spill] sm:$0xff] }
 0x16e   :  { %2501 = vmatmul.mubr.bf16.gmra.mxu0 %v3033_v18  ;;  %v3299_v45 = vpop.f32.mrf.mxu1  ;;  %v6121_v18 = vld [vmem:[#allocation44_spill] sm:$0xff] }
 0x16f   :  { %3637 = vmatpush3.bf16.msra.mxu1 %v6105_v40  ;;  %3657 = vmatpush3.bf16.msra.mxu0 %v6106_v44  ;;  %v3300_v49 = vadd.f32 %v3299_v45, %v3298_v26  ;;  %v6123_v26 = vld [vmem:[#allocation46_spill] sm:$0xff] }
 0x170   :  { %3638 = vmatprep.subr.bf16.mxu1 %v6107_v57  ;;  %3658 = vmatprep.subr.bf16.mxu0 %v6108_v6  ;;  %v3301_v39 = vpop.f32.mrf.mxu1  ;;  %v4013_v40 = vld [vmem:[%s5840_s0 + $0x200] ss:$52 sps:$4 sm:$0xff]   ;;  %v4101_v57 = vld [vmem:[%s5839_s1 + $0x208] sm:$0xff]  }
 0x171   :  { %2588 = vmatprep.mubr.bf16.mxu0 %v4003_v15  ;;  %v1582_v43 = vadd.f32 %v3300_v49, %v1534_v38  ;;  %v4100_v15 = vld [vmem:[%s5839_s1 + $0x248] sm:$0xff]  }
 0x172   :  { %v3302_v16 = vpop.f32.mrf.mxu1  ;;  %v6124_v6 = vld [vmem:[#allocation47_spill] sm:$0xff] }
 0x173   :  { %3639 = vmatpush3.bf16.msra.mxu1 %v6109_v50  ;;  %3659 = vmatpush3.bf16.msra.mxu0 %v6110_v27  ;;  %v4006_v50 = vld [vmem:[%s5840_s0 + $0x1f4] ss:$52 sps:$4 sm:$0xff]   ;;  %v3015_v27 = vld [vmem:[%s5840_s0 + $0x25c] sm:$0xff] }
 0x174   :  { %3660 = vmatprep.subr.bf16.mxu0 %v6111_v8  ;;  %3680 = vmatprep.subr.bf16.mxu1 %v5417_v10  ;;  %v3320_v1 = vpop.f32.mrf.mxu0  ;;  %v4104_v16 = vld [vmem:[%s5839_s1 + $0x200] sm:$0xff]  }
 0x176   :  { %2541 = vmatmul.mubr.bf16.vlgmr.msra.gmra.mxu1 %v3995_v47  ;;  %v3321_v46 = vpop.f32.mrf.mxu0  ;;  %v4102_v47 = vld [vmem:[%s5839_s1 + $0x240] sm:$0xff]  }
 0x177   :  { %3661 = vmatpush3.bf16.msra.mxu0 %v6112_v32  ;;  %3681 = vmatpush3.bf16.msra.mxu1 %v5429_v21  ;;  %v3322_v5 = vadd.f32 %v3321_v46, %v3320_v1  ;;  %v4106_v32 = vld [vmem:[%s5839_s1 + $0x2d8] sm:$0xff]  }
 0x178   :  { %3662 = vmatprep.subr.bf16.mxu0 %v6113_v61  ;;  %3682 = vmatprep.subr.bf16.mxu1 %v5441_v33  ;;  %v3323_v56 = vpop.f32.mrf.mxu0  ;;  %v4107_v46 = vld [vmem:[%s5839_s1 + $0x318] sm:$0xff]   ;;  %v3040_v61 = vcombine.high %v3015_v27, %v3015_v27 }
 0x179   :  { %2548 = vmatprep.mubr.bf16.mxu1 %v3036_v54  ;;  %v1622_v62 = vadd.f32 %v3322_v5, %v1574_v20  ;;  %v4105_v54 = vld [vmem:[%s5839_s1 + $0x2a0] sm:$0xff]  }
 0x17a   :  { %v3324_v10 = vpop.f32.mrf.mxu0 }
 0x17b   :  { %3663 = vmatpush3.bf16.msra.mxu0 %v6114_v37  ;;  %3683 = vmatpush3.bf16.msra.mxu1 %v5453_v11  ;;  %v3325_v21 = vadd.f32 %v3324_v10, %v3323_v56  ;;  %v4094_v11 = vld [vmem:[%s5839_s1 + $0x260] sm:$0xff]   ;;  %v4109_v10 = vld [vmem:[%s5839_s1 + $0x2d0] sm:$0xff]  }
 0x17c   :  { %3664 = vmatprep.subr.bf16.mxu0 %v6115_v58  ;;  %3684 = vmatprep.subr.bf16.mxu1 %v5465_v52  ;;  %v3326_v33 = vpop.f32.mrf.mxu0  ;;  %v4110_v58 = vld [vmem:[%s5839_s1 + $0x310] sm:$0xff]  }
 0x17d   :  { %v1625_v55 = vadd.f32 %v3325_v21, %v1577_v30 }
 0x17e   :  { %2549 = vmatmul.mubr.bf16.gmra.mxu1 %v3035_v7  ;;  %v3327_v13 = vpop.f32.mrf.mxu0  ;;  %v4108_v7 = vld [vmem:[%s5839_s1 + $0x298] sm:$0xff]  }
 0x17f   :  { %3665 = vmatpush3.bf16.msra.mxu0 %v6116_v63  ;;  %3685 = vmatpush3.bf16.msra.mxu1 %v5483_v3  ;;  %v3328_v52 = vadd.f32 %v3327_v13, %v3326_v33  ;;  %v4111_v13 = vld [vmem:[%s5839_s1 + $0x290] sm:$0xff]  }
 0x180   :  { %3666 = vmatprep.subr.bf16.mxu0 %v6117_v42  ;;  %3686 = vmatprep.subr.bf16.mxu1 %v4094_v11  ;;  %v3329_v38 = vpop.f32.mrf.mxu0  ;;  %v1299_v42 = vmul.f32 0.01, %v5535_v12 }
 0x181   :  { %2636 = vmatprep.mubr.bf16.mxu1 %v4008_v41  ;;  %v1630_v3 = vadd.f32 %v3328_v52, %v1582_v43  ;;  %v4112_v52 = vld [vmem:[%s5839_s1 + $0x2c8] sm:$0xff]  }
 0x182   :  { %v3330_v22 = vpop.f32.mrf.mxu0 }
 0x183   :  { %3667 = vmatpush3.bf16.msra.mxu0 %v6118_v17  ;;  %3687 = vmatpush3.bf16.msra.mxu1 %v4095_v19  ;;  %v4114_v22 = vld [vmem:[%s5839_s1 + $0x288] sm:$0xff]  }
 0x184   :  { %3688 = vmatprep.subr.bf16.mxu1 %v4096_v53  ;;  %3708 = vmatprep.subr.bf16.mxu0 %v6119_v35  ;;  %v3348_v2 = vpop.f32.mrf.mxu1 }
 0x186   :  { %2589 = vmatmul.mubr.bf16.vlgmr.msra.gmra.mxu0 %v4001_v0  ;;  %v3349_v31 = vpop.f32.mrf.mxu1  ;;  %v4113_v0 = vld [vmem:[%s5839_s1 + $0x308] sm:$0xff]  }
 0x187   :  { %3689 = vmatpush3.bf16.msra.mxu1 %v4097_v28  ;;  %3709 = vmatpush3.bf16.msra.mxu0 %v6120_v14  ;;  %v3350_v20 = vadd.f32 %v3349_v31, %v3348_v2  ;;  %v4115_v28 = vld [vmem:[%s5839_s1 + $0x2c0] sm:$0xff]  }
 0x188   :  { %3690 = vmatprep.subr.bf16.mxu1 %v4098_v48  ;;  %3710 = vmatprep.subr.bf16.mxu0 %v6121_v18  ;;  %v3351_v23 = vpop.f32.mrf.mxu1  ;;  %v4116_v14 = vld [vmem:[%s5839_s1 + $0x300] sm:$0xff]   ;;  %v1300_v48 = vmul.f32 0.01, %v5541_v51 }
 0x189   :  { %2596 = vmatprep.mubr.bf16.mxu0 %v3038_v24  ;;  %v1670_v25 = vadd.f32 %v3350_v20, %v1622_v62  ;;  %v5749_v24 = vsel %vm1296_vm1, %v5535_v12, %v1299_v42  ;;  %v3016_v31 = vld [vmem:[%s5840_s0 + $0x264] sm:$0xff] }
 0x18a   :  { %v3352_v36 = vpop.f32.mrf.mxu1 }
 0x18b   :  { %3691 = vmatpush3.bf16.msra.mxu1 %v4099_v29  ;;  %3711 = vmatpush3.bf16.msra.mxu0 %v6122_v9  ;;  %v3353_v30 = vadd.f32 %v3352_v36, %v3351_v23 }
 0x18c   :  { %3692 = vmatprep.subr.bf16.mxu1 %v4100_v15  ;;  %3712 = vmatprep.subr.bf16.mxu0 %v6123_v26  ;;  %v3354_v44 = vpop.f32.mrf.mxu1  ;;  %v4117_v15 = vld [vmem:[%s5839_s1 + $0x280] sm:$0xff]   ;;  %v3042_v26 = vcombine.high %v3016_v31, %v3016_v31 }
 0x18d   :  { %v1673_v45 = vadd.f32 %v3353_v30, %v1625_v55  ;;  %v3039_v55 = vcombine.low %v3015_v27, %v3015_v27 }
 0x18e   :  { %2597 = vmatmul.mubr.bf16.gmra.mxu0 %v3037_v60  ;;  %v3355_v49 = vpop.f32.mrf.mxu1  ;;  %v4011_v60 = vld [vmem:[%s5840_s0 + $0x1fc] ss:$52 sps:$4 sm:$0xff]  }
 0x18f   :  { %3693 = vmatpush3.bf16.msra.mxu1 %v4101_v57  ;;  %3713 = vmatpush3.bf16.msra.mxu0 %v6124_v6  ;;  %v3356_v39 = vadd.f32 %v3355_v49, %v3354_v44  ;;  %v5779_v44 = vsel %vm1297_vm3, %v5541_v51, %v1300_v48 }
 0x190   :  { %3694 = vmatprep.subr.bf16.mxu1 %v4102_v47  ;;  %3714 = vmatprep.subr.bf16.mxu0 %v4103_v4  ;;  %v3357_v43 = vpop.f32.mrf.mxu1 }
 0x191   :  { %2684 = vmatprep.mubr.bf16.mxu0 %v4013_v40  ;;  %v5706_v8 = vadd.f32 %v3356_v39, %v1630_v3  ;;  %v4014_v3 = vld [vmem:[%s5840_s0 + $0x204] ss:$52 sps:$4 sm:$0xff]   ;;  %v1301_v40 = vmul.f32 0.01, %v5529_v34  ;;  %v3041_v39 = vcombine.low %v3016_v31, %v3016_v31 }
 0x192   :  { %v3358_v1 = vpop.f32.mrf.mxu1 }
 0x193   :  { %3695 = vmatpush3.bf16.msra.mxu1 %v4104_v16  ;;  %3715 = vmatpush3.bf16.msra.mxu0 %v4105_v54  ;;  %v5789_v47 = vsel %vm1298_vm5, %v5529_v34, %v1301_v40  ;;  %v5798_v34 = vld [vmem:[%s5841_s2] ss:$0 sm:$0xff] }
 0x194   :  { %3716 = vmatprep.subr.bf16.mxu0 %v4106_v32  ;;  %3778 = vmatprep.subr.bf16.mxu1 %v4107_v46  ;;  %v3376_v5 = vpop.f32.mrf.mxu0  ;;  %v5720_v56 = vpop.f32.mrf.mxu1 }
 0x196   :  { %2637 = vmatmul.mubr.bf16.vlgmr.msra.gmra.mxu1 %v4006_v50  ;;  %v3377_v62 = vpop.f32.mrf.mxu0  ;;  %v1765_v37 = vpop.f32.mrf.mxu1 }
 0x197   :  { %3717 = vmatpush3.bf16.msra.mxu0 %v4108_v7  ;;  %3779 = vmatpush3.bf16.msra.mxu1 %v4107_v46  ;;  %v3378_v21 = vadd.f32 %v3377_v62, %v3376_v5 }
 0x198   :  { %3718 = vmatprep.subr.bf16.mxu0 %v4109_v10  ;;  %3780 = vmatprep.subr.bf16.mxu1 %v4110_v58  ;;  %v3379_v41 = vpop.f32.mrf.mxu0  ;;  %v3765_v33 = vpop.f32.mrf.mxu1 }
 0x199   :  { %2644 = vmatprep.mubr.bf16.mxu1 %v3040_v61  ;;  %v1718_v63 = vadd.f32 %v3378_v21, %v1670_v25  ;;  %v4015_v25 = vld [vmem:[%s5840_s0 + $0x26c] ss:$0 sps:$4 sm:$0xff]  }
 0x19a   :  { %v3380_v11 = vpop.f32.mrf.mxu0  ;;  %v1768_v19 = vpop.f32.mrf.mxu1 }
 0x19b   :  { %3719 = vmatpush3.bf16.msra.mxu0 %v4111_v13  ;;  %3781 = vmatpush3.bf16.msra.mxu1 %v4110_v58  ;;  %v1766_v38 = vadd.f32 %v1765_v37, %v1718_v63  ;;  %v3381_v59 = vadd.f32 %v3380_v11, %v3379_v41 }
 0x19c   :  { %3720 = vmatprep.subr.bf16.mxu0 %v4112_v52  ;;  %3782 = vmatprep.subr.bf16.mxu1 %v4113_v0  ;;  %v3382_v17 = vpop.f32.mrf.mxu0 }
 0x19d   :  { %vm1779_vm2 = vcmp.ge.f32.partialorder %v1766_v38, 0.0  ;;  %v1782_v53 = vmul.f32 0.01, %v1766_v38  ;;  %v1721_v35 = vadd.f32 %v3381_v59, %v1673_v45 }
 0x19e   :  { %2645 = vmatmul.mubr.bf16.gmra.mxu1 %v3039_v55  ;;  %v3383_v2 = vpop.f32.mrf.mxu0 }
 0x19f   :  { %3721 = vmatpush3.bf16.msra.mxu0 %v4114_v22  ;;  %3783 = vmatpush3.bf16.msra.mxu1 %v4113_v0  ;;  %v5761_v18 = vsel %vm1779_vm2, %v1766_v38, %v1782_v53  ;;  %v1769_v12 = vadd.f32 %v1768_v19, %v1721_v35  ;;  %v3384_v20 = vadd.f32 %v3383_v2, %v3382_v17 }
 0x1a0   :  { %3722 = vmatprep.subr.bf16.mxu0 %v4115_v28  ;;  %3784 = vmatprep.subr.bf16.mxu1 %v4116_v14  ;;  %v1788_v23 = vmax.f32 %v5749_v24, %v5761_v18  ;;  %v3385_v29 = vpop.f32.mrf.mxu0 }
 0x1a1   :  { %3786 = vmatprep.mubr.msk.bf16.mxu1 %vm953_vm0, %v4014_v3  ;;  %vm1780_vm4 = vcmp.ge.f32.partialorder %v1769_v12, 0.0  ;;  %v1783_v9 = vmul.f32 0.01, %v1769_v12  ;;  %v1726_v36 = vadd.f32 %v3384_v20, %v5706_v8 }
 0x1a2   :  { %v3386_v30 = vpop.f32.mrf.mxu0 }
 0x1a3   :  { %3723 = vmatpush3.bf16.msra.mxu0 %v4117_v15  ;;  %3785 = vmatpush3.bf16.msra.mxu1 %v4116_v14  ;;  %v5781_v45 = vsel %vm1780_vm4, %v1769_v12, %v1783_v9  ;;  %v1774_v57 = vadd.f32 %v5720_v56, %v1726_v36 }
 0x1a4   :  { %v1789_v6 = vmax.f32 %v5779_v44, %v5781_v45 }
 0x1a5   :  { %vm1781_vm6 = vcmp.ge.f32.partialorder %v1774_v57, 0.0  ;;  %v1784_v49 = vmul.f32 0.01, %v1774_v57 }
 0x1a6   :  { %2685 = vmatmul.mubr.bf16.vlgmr.msra.gmra.mxu0 %v4011_v60  ;;  %3787 = vmatmul.mubr.msk.bf16.vlgmr.msra.gmra.mxu1 %vm953_vm0, %v4015_v25 }
 0x1a7   :  { %2692 = vmatprep.mubr.bf16.mxu0 %v3042_v26  ;;  %v5791_v51 = vsel %vm1781_vm6, %v1774_v57, %v1784_v49 }
 0x1a8   :  { %v1790_v4 = vmax.f32 %v5789_v47, %v5791_v51 }
 0x1ae   :  { %2693 = vmatmul.mubr.bf16.gmra.mxu0 %v3041_v39 }
 0x1b4   :  { %v3410_v43 = vpop.f32.mrf.mxu0  ;;  %v3438_v50 = vpop.f32.mrf.mxu1 }
 0x1b6   :  { %v3411_v27 = vpop.f32.mrf.mxu0  ;;  %v3439_v8 = vpop.f32.mrf.mxu1 }
 0x1b7   :  { %v3412_v16 = vadd.f32 %v3411_v27, %v3410_v43  ;;  %v3440_v54 = vadd.f32 %v3439_v8, %v3438_v50 }
 0x1b8   :  { %v3413_v1 = vpop.f32.mrf.mxu0  ;;  %v3441_v32 = vpop.f32.mrf.mxu1 }
 0x1b9   :  { %v1964_v46 = vadd.f32 %v5798_v34, %v3412_v16 }
 0x1ba   :  { %v3414_v61 = vpop.f32.mrf.mxu0  ;;  %v3442_v5 = vpop.f32.mrf.mxu1 }
 0x1bb   :  { %v2012_v56 = vadd.f32 %v3440_v54, %v1964_v46  ;;  %v3415_v7 = vadd.f32 %v3414_v61, %v3413_v1  ;;  %v3443_v62 = vadd.f32 %v3442_v5, %v3441_v32 }
 0x1bc   :  { %v3416_v37 = vpop.f32.mrf.mxu0  ;;  %v3444_v10 = vpop.f32.mrf.mxu1 }
 0x1bd   :  { %v1967_v58 = vadd.f32 %v5798_v34, %v3415_v7 }
 0x1be   :  { %v3417_v21 = vpop.f32.mrf.mxu0  ;;  %v3445_v41 = vpop.f32.mrf.mxu1 }
 0x1bf   :  { %v2015_v33 = vadd.f32 %v3443_v62, %v1967_v58  ;;  %v3418_v55 = vadd.f32 %v3417_v21, %v3416_v37  ;;  %v3446_v63 = vadd.f32 %v3445_v41, %v3444_v10 }
 0x1c0   :  { %v3419_v13 = vpop.f32.mrf.mxu0  ;;  %v3447_v42 = vpop.f32.mrf.mxu1 }
 0x1c1   :  { %v1972_v11 = vadd.f32 %v5798_v34, %v3418_v55 }
 0x1c2   :  { %v3420_v52 = vpop.f32.mrf.mxu0  ;;  %v3448_v0 = vpop.f32.mrf.mxu1 }
 0x1c3   :  { %v2020_v38 = vadd.f32 %v3446_v63, %v1972_v11 }
 0x1d6   :  { %v3466_v59 = vpop.f32.mrf.mxu0  ;;  %v3494_v3 = vpop.f32.mrf.mxu1 }
 0x1d8   :  { %v3467_v17 = vpop.f32.mrf.mxu0  ;;  %v3495_v19 = vpop.f32.mrf.mxu1 }
 0x1d9   :  { %v3468_v53 = vadd.f32 %v3467_v17, %v3466_v59  ;;  %v3496_v35 = vadd.f32 %v3495_v19, %v3494_v3 }
 0x1da   :  { %v3469_v22 = vpop.f32.mrf.mxu0  ;;  %v3497_v2 = vpop.f32.mrf.mxu1 }
 0x1db   :  { %v2060_v28 = vadd.f32 %v3468_v53, %v2012_v56 }
 0x1dc   :  { %v3470_v14 = vpop.f32.mrf.mxu0  ;;  %v3498_v31 = vpop.f32.mrf.mxu1 }
 0x1dd   :  { %v2108_v48 = vadd.f32 %v3496_v35, %v2060_v28  ;;  %v3471_v12 = vadd.f32 %v3470_v14, %v3469_v22  ;;  %v3499_v20 = vadd.f32 %v3498_v31, %v3497_v2 }
 0x1de   :  { %v3472_v60 = vpop.f32.mrf.mxu0  ;;  %v3500_v25 = vpop.f32.mrf.mxu1 }
 0x1df   :  { %v2063_v29 = vadd.f32 %v3471_v12, %v2015_v33 }
 0x1e0   :  { %v3473_v9 = vpop.f32.mrf.mxu0  ;;  %v3501_v36 = vpop.f32.mrf.mxu1 }
 0x1e1   :  { %v2111_v15 = vadd.f32 %v3499_v20, %v2063_v29  ;;  %v3474_v26 = vadd.f32 %v3473_v9, %v3472_v60  ;;  %v3502_v30 = vadd.f32 %v3501_v36, %v3500_v25 }
 0x1e2   :  { %v3475_v40 = vpop.f32.mrf.mxu0  ;;  %v3503_v57 = vpop.f32.mrf.mxu1 }
 0x1e3   :  { %v2068_v49 = vadd.f32 %v3474_v26, %v2020_v38 }
 0x1e4   :  { %v3476_v39 = vpop.f32.mrf.mxu0  ;;  %v3504_v43 = vpop.f32.mrf.mxu1 }
 0x1e5   :  { %v2116_v50 = vadd.f32 %v3502_v30, %v2068_v49 }
 0x1f6   :  { %v3522_v27 = vpop.f32.mrf.mxu0  ;;  %v3550_v8 = vpop.f32.mrf.mxu1 }
 0x1f8   :  { %v3523_v16 = vpop.f32.mrf.mxu0  ;;  %v3551_v54 = vpop.f32.mrf.mxu1 }
 0x1f9   :  { %v3524_v1 = vadd.f32 %v3523_v16, %v3522_v27  ;;  %v3552_v32 = vadd.f32 %v3551_v54, %v3550_v8 }
 0x1fa   :  { %v3525_v46 = vpop.f32.mrf.mxu0  ;;  %v3553_v61 = vpop.f32.mrf.mxu1 }
 0x1fb   :  { %v2156_v5 = vadd.f32 %v3524_v1, %v2108_v48 }
 0x1fc   :  { %v3526_v56 = vpop.f32.mrf.mxu0  ;;  %v3554_v7 = vpop.f32.mrf.mxu1 }
 0x1fd   :  { %v3527_v62 = vadd.f32 %v3526_v56, %v3525_v46  ;;  %v3555_v37 = vadd.f32 %v3554_v7, %v3553_v61  ;;  %v2204_v10 = vadd.f32 %v3552_v32, %v2156_v5 }
 0x1fe   :  { %v3528_v58 = vpop.f32.mrf.mxu0  ;;  %v3556_v21 = vpop.f32.mrf.mxu1 }
 0x1ff   :  { %v2159_v41 = vadd.f32 %v3527_v62, %v2111_v15 }
 0x200   :  { %v3529_v33 = vpop.f32.mrf.mxu0  ;;  %v3557_v55 = vpop.f32.mrf.mxu1 }
 0x201   :  { %v3530_v63 = vadd.f32 %v3529_v33, %v3528_v58  ;;  %v3558_v13 = vadd.f32 %v3557_v55, %v3556_v21  ;;  %v2207_v42 = vadd.f32 %v3555_v37, %v2159_v41 }
 0x202   :  { %v3531_v11 = vpop.f32.mrf.mxu0  ;;  %v3559_v52 = vpop.f32.mrf.mxu1 }
 0x203   :  { %v2164_v0 = vadd.f32 %v3530_v63, %v2116_v50 }
 0x204   :  { %v3532_v38 = vpop.f32.mrf.mxu0  ;;  %v3560_v59 = vpop.f32.mrf.mxu1 }
 0x205   :  { %v2212_v3 = vadd.f32 %v3558_v13, %v2164_v0 }
 0x206   :  { %v3776_v17 = vpop.f32.mrf.mxu0 }
 0x207   :  { %v5803_v19 = vadd.f32 %v3776_v17, %v2212_v3 }
 0x208   :  { %v2251_v53 = vpop.f32.mrf.mxu0 }
 0x209   :  { %v5805_v35 = vadd.f32 %v2251_v53, %v2204_v10  ;;  %vm2267_vm11 = vcmp.ge.f32.partialorder %v5803_v19, 0.0 }
 0x20a   :  { %v3777_v22 = vpop.f32.mrf.mxu0 }
 0x20b   :  { %vm2265_vm7 = vcmp.ge.f32.partialorder %v5805_v35, 0.0 }
 0x20c   :  { %v2254_v2 = vpop.f32.mrf.mxu0 }
 0x20d   :  { %v5807_v28 = vadd.f32 %v2254_v2, %v2207_v42 }
 0x20f   :  { %vm2266_vm9 = vcmp.ge.f32.partialorder %v5807_v28, 0.0 }
 0x216   :  { %v3584_v14 = vpop.f32.mrf.mxu1 }
 0x218   :  { %v3585_v31 = vpop.f32.mrf.mxu1 }
 0x219   :  { %v3586_v48 = vadd.f32 %v3585_v31, %v3584_v14 }
 0x21a   :  { %v3587_v12 = vpop.f32.mrf.mxu1 }
 0x21b   :  { %v2447_v52 = vadd.f32 %v5798_v34, %v3586_v48 }
 0x21c   :  { %v3588_v20 = vpop.f32.mrf.mxu1 }
 0x21d   :  { %v3589_v60 = vadd.f32 %v3588_v20, %v3587_v12 }
 0x21e   :  { %v3590_v25 = vpop.f32.mrf.mxu1 }
 0x21f   :  { %v2450_v22 = vadd.f32 %v5798_v34, %v3589_v60 }
 0x220   :  { %v3591_v29 = vpop.f32.mrf.mxu1 }
 0x221   :  { %v3592_v9 = vadd.f32 %v3591_v29, %v3590_v25 }
 0x222   :  { %v3593_v36 = vpop.f32.mrf.mxu1 }
 0x223   :  { %v2455_v12 = vadd.f32 %v5798_v34, %v3592_v9  ;;  %v2268_v34 = vmul.f32 0.01, %v5805_v35 }
 0x224   :  { %v3594_v15 = vpop.f32.mrf.mxu1 }
 0x226   :  { %v3612_v26 = vpop.f32.mrf.mxu0 }
 0x228   :  { %v3613_v30 = vpop.f32.mrf.mxu0 }
 0x229   :  { %v3614_v42 = vadd.f32 %v3613_v30, %v3612_v26 }
 0x22a   :  { %v3615_v40 = vpop.f32.mrf.mxu0 }
 0x22b   :  { %v2495_v59 = vadd.f32 %v3614_v42, %v2447_v52 }
 0x22c   :  { %v3616_v57 = vpop.f32.mrf.mxu0 }
 0x22d   :  { %v3617_v3 = vadd.f32 %v3616_v57, %v3615_v40 }
 0x22e   :  { %v3618_v49 = vpop.f32.mrf.mxu0 }
 0x22f   :  { %v2498_v36 = vadd.f32 %v3617_v3, %v2450_v22 }
 0x230   :  { %v3619_v39 = vpop.f32.mrf.mxu0 }
 0x231   :  { %v3620_v20 = vadd.f32 %v3619_v39, %v3618_v49 }
 0x232   :  { %v3621_v43 = vpop.f32.mrf.mxu0 }
 0x234   :  { %v3622_v50 = vpop.f32.mrf.mxu0 }
 0x236   :  { %v3640_v27 = vpop.f32.mrf.mxu1 }
 0x238   :  { %v3641_v8 = vpop.f32.mrf.mxu1 }
 0x239   :  { %v3642_v0 = vadd.f32 %v3641_v8, %v3640_v27  ;;  %v2503_v8 = vadd.f32 %v3620_v20, %v2455_v12 }
 0x23a   :  { %v3643_v16 = vpop.f32.mrf.mxu1 }
 0x23b   :  { %v2543_v2 = vadd.f32 %v3642_v0, %v2495_v59  ;;  %v2270_v59 = vmul.f32 0.01, %v5803_v19 }
 0x23c   :  { %v3644_v54 = vpop.f32.mrf.mxu1 }
 0x23d   :  { %v3645_v14 = vadd.f32 %v3644_v54, %v3643_v16  ;;  %v2273_v18 = vsel %vm2267_vm11, %v5803_v19, %v2270_v59 }
 0x23e   :  { %v3646_v1 = vpop.f32.mrf.mxu1 }
 0x23f   :  { %v2546_v50 = vadd.f32 %v3645_v14, %v2498_v36 }
 0x240   :  { %v3647_v32 = vpop.f32.mrf.mxu1 }
 0x241   :  { %v3648_v48 = vadd.f32 %v3647_v32, %v3646_v1 }
 0x242   :  { %v3649_v46 = vpop.f32.mrf.mxu1 }
 0x243   :  { %v2551_v9 = vadd.f32 %v3648_v48, %v2503_v8 }
 0x244   :  { %v3650_v61 = vpop.f32.mrf.mxu1 }
 0x246   :  { %v3668_v5 = vpop.f32.mrf.mxu0 }
 0x248   :  { %v3669_v56 = vpop.f32.mrf.mxu0 }
 0x249   :  { %v3670_v17 = vadd.f32 %v3669_v56, %v3668_v5 }
 0x24a   :  { %v3671_v7 = vpop.f32.mrf.mxu0 }
 0x24b   :  { %v2591_v15 = vadd.f32 %v3670_v17, %v2543_v2 }
 0x24c   :  { %v3672_v62 = vpop.f32.mrf.mxu0 }
 0x24d   :  { %v3673_v26 = vadd.f32 %v3672_v62, %v3671_v7 }
 0x24e   :  { %v3674_v37 = vpop.f32.mrf.mxu0 }
 0x24f   :  { %v2594_v16 = vadd.f32 %v3673_v26, %v2546_v50 }
 0x250   :  { %v3675_v10 = vpop.f32.mrf.mxu0 }
 0x251   :  { %v3676_v54 = vadd.f32 %v3675_v10, %v3674_v37  ;;  %v2269_v37 = vmul.f32 0.01, %v5807_v28 }
 0x252   :  { %v3677_v58 = vpop.f32.mrf.mxu0 }
 0x253   :  { %v2599_v7 = vadd.f32 %v3676_v54, %v2551_v9  ;;  %v2272_v3 = vsel %vm2266_vm9, %v5807_v28, %v2269_v37 }
 0x254   :  { %v3678_v21 = vpop.f32.mrf.mxu0 }
 0x255   :  { %v2271_v21 = vsel %vm2265_vm7, %v5805_v35, %v2268_v34 }
 0x256   :  { %v3696_v41 = vpop.f32.mrf.mxu1 }
 0x258   :  { %v3697_v33 = vpop.f32.mrf.mxu1 }
 0x259   :  { %v3698_v31 = vadd.f32 %v3697_v33, %v3696_v41 }
 0x25a   :  { %v3699_v55 = vpop.f32.mrf.mxu1 }
 0x25b   :  { %v2639_v40 = vadd.f32 %v3698_v31, %v2591_v15 }
 0x25c   :  { %v3700_v63 = vpop.f32.mrf.mxu1 }
 0x25d   :  { %v3701_v57 = vadd.f32 %v3700_v63, %v3699_v55 }
 0x25e   :  { %v3702_v13 = vpop.f32.mrf.mxu1 }
 0x25f   :  { %v2642_v39 = vadd.f32 %v3701_v57, %v2594_v16 }
 0x260   :  { %v3703_v11 = vpop.f32.mrf.mxu1 }
 0x261   :  { %v3704_v1 = vadd.f32 %v3703_v11, %v3702_v13 }
 0x262   :  { %v3705_v38 = vpop.f32.mrf.mxu1 }
 0x263   :  { %v2647_v33 = vadd.f32 %v3704_v1, %v2599_v7 }
 0x264   :  { %v3706_v53 = vpop.f32.mrf.mxu1 }
 0x266   :  { %v3724_v25 = vpop.f32.mrf.mxu0  ;;  %v3788_v29 = vpop.f32.mrf.mxu1 }
 0x268   :  { %v3725_v30 = vpop.f32.mrf.mxu0  ;;  %v2734_v43 = vpop.f32.mrf.mxu1 }
 0x269   :  { %v3726_v27 = vadd.f32 %v3725_v30, %v3724_v25 }
 0x26a   :  { %v3727_v60 = vpop.f32.mrf.mxu0  ;;  %v3789_v46 = vpop.f32.mrf.mxu1 }
 0x26b   :  { %v2687_v61 = vadd.f32 %v3726_v27, %v2639_v40 }
 0x26c   :  { %v3728_v49 = vpop.f32.mrf.mxu0  ;;  %v2737_v10 = vpop.f32.mrf.mxu1 }
 0x26d   :  { %v2735_v32 = vadd.f32 %v2734_v43, %v2687_v61  ;;  %v3729_v5 = vadd.f32 %v3728_v49, %v3727_v60 }
 0x26e   :  { %v3730_v56 = vpop.f32.mrf.mxu0 }
 0x26f   :  { %vm2748_vm8 = vcmp.ge.f32.partialorder %v2735_v32, 0.0  ;;  %v2751_v62 = vmul.f32 0.01, %v2735_v32  ;;  %v2690_v58 = vadd.f32 %v3729_v5, %v2642_v39 }
 0x270   :  { %v3731_v41 = vpop.f32.mrf.mxu0 }
 0x271   :  { %v2754_v55 = vsel %vm2748_vm8, %v2735_v32, %v2751_v62  ;;  %v2738_v63 = vadd.f32 %v2737_v10, %v2690_v58  ;;  %v3732_v42 = vadd.f32 %v3731_v41, %v3730_v56 }
 0x272   :  { %v2757_v13 = vmax.f32 %v2271_v21, %v2754_v55  ;;  %v3733_v11 = vpop.f32.mrf.mxu0 }
 0x273   :  { %vm2749_vm10 = vcmp.ge.f32.partialorder %v2738_v63, 0.0  ;;  %v2752_v52 = vmul.f32 0.01, %v2738_v63  ;;  %v2695_v0 = vadd.f32 %v3732_v42, %v2647_v33 }
 0x274   :  { %v2760_v38 = vmax.f32 %v1788_v23, %v2757_v13  ;;  %v3734_v35 = vpop.f32.mrf.mxu0 }
 0x275   :  { %v2755_v17 = vsel %vm2749_vm10, %v2738_v63, %v2752_v52  ;;  %v2743_v53 = vadd.f32 %v3788_v29, %v2695_v0 }
 0x276   :  { %2763 = vst [vmem:[%s5842_s3] sm:$0xff] %v2760_v38  ;;  %v2758_v22 = vmax.f32 %v2272_v3, %v2755_v17 }
 0x277   :  { %vm2750_vm12 = vcmp.ge.f32.partialorder %v2743_v53, 0.0  ;;  %v2753_v2 = vmul.f32 0.01, %v2743_v53 }
 0x278   :  { %v2761_v24 = vmax.f32 %v1789_v6, %v2758_v22 }
 0x279   :  { %v2756_v23 = vsel %vm2750_vm12, %v2743_v53, %v2753_v2 }
 0x27a   :  { %2764 = vst [vmem:[%s5842_s3 + $0x8] sm:$0xff] %v2761_v24  ;;  %v2759_v28 = vmax.f32 %v2273_v18, %v2756_v23 }
 0x27c   :  { %v2762_v14 = vmax.f32 %v1790_v4, %v2759_v28 }
 0x27e   :  { %2765 = vst [vmem:[%s5842_s3 + $0x10] sm:$0xff] %v2762_v14 }

// kernel: mixstyle_encoder_forward.6
= control target key start
LH: loop header
LB: loop body
LE: loop exit
PB: predicated region body
PF: predicated region fallthrough
CT: control target
= control target key end

     0   :  { %s4504_s1 = inlined_call_operand.vmem [shape: bf16[1152,256], index: 1, kind: input, shape index: {}]   ;;  %s4505_s0 = inlined_call_operand.vmem [shape: bf16[4,8,1152], index: 0, kind: input, shape index: {}]   ;;  %s4506_s2 = inlined_call_operand.vmem [shape: f32[1,256], index: 2, kind: input, shape index: {}]   ;;  %s4507_s3 = inlined_call_operand.vmem [shape: f32[8,256], index: 3, kind: output, shape index: {}]  }
   0x1   :  { %v2514_v0 = vld [vmem:[%s4504_s1 + $0x74] ss:$8 sps:$4 sm:$0xff]   ;;  %v2525_v2 = vld [vmem:[%s4504_s1 + $0x70] ss:$8 sps:$4 sm:$0xff]   ;;  %v2536_v4 = vld [vmem:[%s4504_s1 + $0x64] ss:$8 sps:$4 sm:$0xff]  }
   0x2   :  { %v2519_v1 = vld [vmem:[%s4504_s1 + $0x174] ss:$8 sps:$4 sm:$0xff]   ;;  %928 = vmatprep.subr.bf16.mxu0 %v2514_v0  ;;  %v2530_v3 = vld [vmem:[%s4504_s1 + $0x170] ss:$8 sps:$4 sm:$0xff]   ;;  %v2543_v5 = vld [vmem:[%s4504_s1 + $0x164] ss:$8 sps:$4 sm:$0xff]  }
   0x3   :  { %969 = vmatprep.subr.bf16.mxu1 %v2519_v1  ;;  %929 = vmatpush1.bf16.msra.mxu0 %v2525_v2  ;;  %v2548_v6 = vld [vmem:[%s4504_s1 + $0x60] ss:$8 sps:$4 sm:$0xff]   ;;  %v2560_v8 = vld [vmem:[%s4504_s1 + $0x54] ss:$8 sps:$4 sm:$0xff]   ;;  %v2570_v10 = vld [vmem:[%s4504_s1 + $0x50] ss:$8 sps:$4 sm:$0xff]  }
   0x4   :  { %970 = vmatpush1.bf16.msra.mxu1 %v2530_v3  ;;  %930 = vmatprep.subr.bf16.mxu0 %v2536_v4  ;;  %v2554_v7 = vld [vmem:[%s4504_s1 + $0x160] ss:$8 sps:$4 sm:$0xff]   ;;  %v2565_v9 = vld [vmem:[%s4504_s1 + $0x154] ss:$8 sps:$4 sm:$0xff]   ;;  %v2575_v11 = vld [vmem:[%s4504_s1 + $0x150] ss:$8 sps:$4 sm:$0xff]  }
   0x5   :  { %971 = vmatprep.subr.bf16.mxu1 %v2543_v5  ;;  %v2582_v12 = vld [vmem:[%s4504_s1 + $0x44] ss:$8 sps:$4 sm:$0xff]   ;;  %v2594_v14 = vld [vmem:[%s4504_s1 + $0x40] ss:$8 sps:$4 sm:$0xff]   ;;  %v2606_v16 = vld [vmem:[%s4504_s1 + $0x34] ss:$8 sps:$4 sm:$0xff]  }
   0x6   :  { %v2589_v13 = vld [vmem:[%s4504_s1 + $0x144] ss:$8 sps:$4 sm:$0xff]   ;;  %v2601_v15 = vld [vmem:[%s4504_s1 + $0x140] ss:$8 sps:$4 sm:$0xff]   ;;  %v2613_v17 = vld [vmem:[%s4504_s1 + $0x134] ss:$8 sps:$4 sm:$0xff]  }
   0x7   :  { %931 = vmatpush1.bf16.msra.mxu0 %v2548_v6  ;;  %v2618_v18 = vld [vmem:[%s4504_s1 + $0x30] ss:$8 sps:$4 sm:$0xff]   ;;  %v2630_v20 = vld [vmem:[%s4504_s1 + $0x24] ss:$8 sps:$4 sm:$0xff]   ;;  %v2642_v22 = vld [vmem:[%s4504_s1 + $0x20] ss:$8 sps:$4 sm:$0xff]  }
   0x8   :  { %972 = vmatpush1.bf16.msra.mxu1 %v2554_v7  ;;  %932 = vmatprep.subr.bf16.mxu0 %v2560_v8  ;;  %v2623_v19 = vld [vmem:[%s4504_s1 + $0x130] ss:$8 sps:$4 sm:$0xff]   ;;  %v2637_v21 = vld [vmem:[%s4504_s1 + $0x124] ss:$8 sps:$4 sm:$0xff]   ;;  %v2649_v23 = vld [vmem:[%s4504_s1 + $0x120] ss:$8 sps:$4 sm:$0xff]  }
   0x9   :  { %973 = vmatprep.subr.bf16.mxu1 %v2565_v9  ;;  %v2654_v24 = vld [vmem:[%s4504_s1 + $0x14] ss:$8 sps:$4 sm:$0xff]   ;;  %v2666_v26 = vld [vmem:[%s4504_s1 + $0x10] ss:$8 sps:$4 sm:$0xff]   ;;  %v2678_v28 = vld [vmem:[%s4504_s1 + $0x4] ss:$8 sps:$4 sm:$0xff]  }
   0xa   :  { %v2661_v25 = vld [vmem:[%s4504_s1 + $0x114] ss:$8 sps:$4 sm:$0xff]   ;;  %v2671_v27 = vld [vmem:[%s4504_s1 + $0x110] ss:$8 sps:$4 sm:$0xff]   ;;  %v2685_v29 = vld [vmem:[%s4504_s1 + $0x104] ss:$8 sps:$4 sm:$0xff]  }
   0xb   :  { %933 = vmatpush1.bf16.msra.mxu0 %v2570_v10  ;;  %v2690_v30 = vld [vmem:[%s4504_s1] ss:$8 sps:$4 sm:$0xff]   ;;  %v2702_v32 = vld [vmem:[%s4504_s1 + $0xf4] ss:$8 sps:$4 sm:$0xff]   ;;  %v2714_v34 = vld [vmem:[%s4504_s1 + $0xf0] ss:$8 sps:$4 sm:$0xff]  }
   0xc   :  { %974 = vmatpush1.bf16.msra.mxu1 %v2575_v11  ;;  %934 = vmatprep.subr.bf16.mxu0 %v2582_v12  ;;  %v2697_v31 = vld [vmem:[%s4504_s1 + $0x100] ss:$8 sps:$4 sm:$0xff]   ;;  %v2709_v33 = vld [vmem:[%s4504_s1 + $0x1f4] ss:$8 sps:$4 sm:$0xff]   ;;  %v2719_v35 = vld [vmem:[%s4504_s1 + $0x1f0] ss:$8 sps:$4 sm:$0xff]  }
   0xd   :  { %975 = vmatprep.subr.bf16.mxu1 %v2589_v13  ;;  %v2726_v36 = vld [vmem:[%s4504_s1 + $0xe4] ss:$8 sps:$4 sm:$0xff]   ;;  %v2738_v38 = vld [vmem:[%s4504_s1 + $0xe0] ss:$8 sps:$4 sm:$0xff]   ;;  %v2750_v40 = vld [vmem:[%s4504_s1 + $0xd4] ss:$8 sps:$4 sm:$0xff]  }
   0xe   :  { %v2733_v37 = vld [vmem:[%s4504_s1 + $0x1e4] ss:$8 sps:$4 sm:$0xff]   ;;  %v2745_v39 = vld [vmem:[%s4504_s1 + $0x1e0] ss:$8 sps:$4 sm:$0xff]   ;;  %v2757_v41 = vld [vmem:[%s4504_s1 + $0x1d4] ss:$8 sps:$4 sm:$0xff]  }
   0xf   :  { %935 = vmatpush1.bf16.msra.mxu0 %v2594_v14  ;;  %4719 = vst [vmem:[#allocation2_spill] sm:$0xff] %v2733_v37  ;;  %4720 = vst [vmem:[#allocation3_spill] sm:$0xff] %v2745_v39  ;;  %v2762_v42 = vld [vmem:[%s4504_s1 + $0xd0] ss:$8 sps:$4 sm:$0xff]   ;;  %v2774_v44 = vld [vmem:[%s4504_s1 + $0xc4] ss:$8 sps:$4 sm:$0xff]  }
  0x10   :  { %976 = vmatpush1.bf16.msra.mxu1 %v2601_v15  ;;  %936 = vmatprep.subr.bf16.mxu0 %v2606_v16  ;;  %4721 = vst [vmem:[#allocation4_spill] sm:$0xff] %v2757_v41  ;;  %v2767_v43 = vld [vmem:[%s4504_s1 + $0x1d0] ss:$8 sps:$4 sm:$0xff]   ;;  %v2781_v45 = vld [vmem:[%s4504_s1 + $0x1c4] ss:$8 sps:$4 sm:$0xff]  }
  0x11   :  { %977 = vmatprep.subr.bf16.mxu1 %v2613_v17  ;;  %4722 = vst [vmem:[#allocation5_spill] sm:$0xff] %v2767_v43  ;;  %4723 = vst [vmem:[#allocation6_spill] sm:$0xff] %v2781_v45  ;;  %v2786_v46 = vld [vmem:[%s4504_s1 + $0xc0] ss:$8 sps:$4 sm:$0xff]   ;;  %v2806_v52 = vld [vmem:[%s4504_s1 + $0xb4] ss:$8 sps:$4 sm:$0xff]  }
  0x12   :  { %v160_v47 = vld [vmem:[%s4505_s0] sm:$0xff]  ;;  %v161_v49 = vld [vmem:[%s4505_s0 + $0x8] sm:$0xff]  ;;  %v2811_v53 = vld [vmem:[%s4504_s1 + $0x1b4] ss:$8 sps:$4 sm:$0xff]  }
  0x13   :  { %937 = vmatpush1.bf16.msra.mxu0 %v2618_v18  ;;  %v1899_v48 = vcombine.high %v160_v47, %v160_v47  ;;  %v2799_v50 = vld [vmem:[%s4504_s1 + $0x1c0] ss:$8 sps:$4 sm:$0xff]   ;;  %v1901_v51 = vcombine.high %v161_v49, %v161_v49  ;;  %4725 = vst [vmem:[#allocation8_spill] sm:$0xff] %v2811_v53  ;;  %v2816_v54 = vld [vmem:[%s4504_s1 + $0xb0] ss:$8 sps:$4 sm:$0xff]  }
  0x14   :  { %978 = vmatpush1.bf16.msra.mxu1 %v2623_v19  ;;  %938 = vmatprep.subr.bf16.mxu0 %v2630_v20  ;;  %4724 = vst [vmem:[#allocation7_spill] sm:$0xff] %v2799_v50  ;;  %v2823_v55 = vld [vmem:[%s4504_s1 + $0x1b0] ss:$8 sps:$4 sm:$0xff]   ;;  %v2828_v56 = vld [vmem:[%s4504_s1 + $0xa4] ss:$8 sps:$4 sm:$0xff]  }
  0x15   :  { %979 = vmatprep.subr.bf16.mxu1 %v2637_v21  ;;  %960 = vmatprep.mubr.bf16.mxu0 %v1899_v48  ;;  %4726 = vst [vmem:[#allocation9_spill] sm:$0xff] %v2823_v55  ;;  %v2835_v57 = vld [vmem:[%s4504_s1 + $0x1a4] ss:$8 sps:$4 sm:$0xff]   ;;  %v2840_v58 = vld [vmem:[%s4504_s1 + $0xa0] ss:$8 sps:$4 sm:$0xff]  }
  0x16   :  { %1001 = vmatprep.mubr.bf16.mxu1 %v1901_v51  ;;  %4727 = vst [vmem:[#allocation10_spill] sm:$0xff] %v2835_v57  ;;  %v2847_v59 = vld [vmem:[%s4504_s1 + $0x1a0] ss:$8 sps:$4 sm:$0xff]   ;;  %v2854_v60 = vld [vmem:[%s4504_s1 + $0x94] ss:$8 sps:$4 sm:$0xff]  }
  0x17   :  { %939 = vmatpush1.bf16.msra.mxu0 %v2642_v22  ;;  %4728 = vst [vmem:[#allocation11_spill] sm:$0xff] %v2847_v59  ;;  %v2859_v61 = vld [vmem:[%s4504_s1 + $0x194] ss:$8 sps:$4 sm:$0xff]   ;;  %v2864_v62 = vld [vmem:[%s4504_s1 + $0x90] ss:$8 sps:$4 sm:$0xff]  }
  0x18   :  { %980 = vmatpush1.bf16.msra.mxu1 %v2649_v23  ;;  %940 = vmatprep.subr.bf16.mxu0 %v2654_v24  ;;  %4729 = vst [vmem:[#allocation12_spill] sm:$0xff] %v2859_v61  ;;  %v2871_v63 = vld [vmem:[%s4504_s1 + $0x190] ss:$8 sps:$4 sm:$0xff]   ;;  %v2876_v48 = vld [vmem:[%s4504_s1 + $0x84] ss:$8 sps:$4 sm:$0xff]  }
  0x19   :  { %981 = vmatprep.subr.bf16.mxu1 %v2661_v25  ;;  %4730 = vst [vmem:[#allocation13_spill] sm:$0xff] %v2871_v63  ;;  %v2883_v51 = vld [vmem:[%s4504_s1 + $0x184] ss:$8 sps:$4 sm:$0xff]  }
  0x1a   :  { %4731 = vst [vmem:[#allocation14_spill] sm:$0xff] %v2883_v51 }
  0x1b   :  { %941 = vmatpush1.bf16.msra.mxu0 %v2666_v26 }
  0x1c   :  { %982 = vmatpush1.bf16.msra.mxu1 %v2671_v27  ;;  %942 = vmatprep.subr.bf16.mxu0 %v2678_v28 }
  0x1d   :  { %983 = vmatprep.subr.bf16.mxu1 %v2685_v29 }
  0x1f   :  { %943 = vmatpush1.bf16.msra.mxu0 %v2690_v30 }
  0x20   :  { %984 = vmatpush1.bf16.msra.mxu1 %v2697_v31  ;;  %944 = vmatprep.subr.bf16.mxu0 %v2702_v32 }
  0x21   :  { %985 = vmatprep.subr.bf16.mxu1 %v2709_v33 }
  0x23   :  { %945 = vmatpush2.bf16.msra.mxu0 %v2714_v34 }
  0x24   :  { %986 = vmatpush2.bf16.msra.mxu1 %v2719_v35  ;;  %946 = vmatprep.subr.bf16.mxu0 %v2726_v36 }
  0x25   :  { %987 = vmatprep.subr.bf16.mxu1 %v2733_v37  ;;  %v3089_v37 = vld [vmem:[%s4504_s1 + $0x304] ss:$8 sps:$4 sm:$0xff]  }
  0x26   :  { %4758 = vst [vmem:[#allocation41_spill] sm:$0xff] %v3089_v37 }
  0x27   :  { %947 = vmatpush2.bf16.msra.mxu0 %v2738_v38 }
  0x28   :  { %988 = vmatpush2.bf16.msra.mxu1 %v2745_v39  ;;  %948 = vmatprep.subr.bf16.mxu0 %v2750_v40 }
  0x29   :  { %989 = vmatprep.subr.bf16.mxu1 %v2757_v41  ;;  %v3071_v41 = vld [vmem:[%s4504_s1 + $0x310] ss:$8 sps:$4 sm:$0xff]  }
  0x2a   :  { %4756 = vst [vmem:[#allocation39_spill] sm:$0xff] %v3071_v41 }
  0x2b   :  { %949 = vmatpush2.bf16.msra.mxu0 %v2762_v42 }
  0x2c   :  { %990 = vmatpush2.bf16.msra.mxu1 %v2767_v43  ;;  %950 = vmatprep.subr.bf16.mxu0 %v2774_v44  ;;  %v2979_v43 = vld [vmem:[%s4504_s1 + $0x344] ss:$8 sps:$4 sm:$0xff]  }
  0x2d   :  { %991 = vmatprep.subr.bf16.mxu1 %v2781_v45  ;;  %v2924_v45 = vld [vmem:[%s4504_s1 + $0x264] ss:$8 sps:$4 sm:$0xff]   ;;  %4744 = vst [vmem:[#allocation27_spill] sm:$0xff] %v2979_v43 }
  0x2e   :  { %4735 = vst [vmem:[#allocation18_spill] sm:$0xff] %v2924_v45 }
  0x2f   :  { %951 = vmatpush2.bf16.msra.mxu0 %v2786_v46 }
  0x30   :  { %992 = vmatpush2.bf16.msra.mxu1 %v2799_v50  ;;  %952 = vmatprep.subr.bf16.mxu0 %v2806_v52  ;;  %v2912_v50 = vld [vmem:[%s4504_s1 + $0x270] ss:$8 sps:$4 sm:$0xff]  }
  0x31   :  { %993 = vmatprep.subr.bf16.mxu1 %v2811_v53  ;;  %v1900_v53 = vcombine.low %v161_v49, %v161_v49  ;;  %v2936_v49 = vld [vmem:[%s4504_s1 + $0x260] ss:$8 sps:$4 sm:$0xff]  }
  0x32   :  { %4737 = vst [vmem:[#allocation20_spill] sm:$0xff] %v2936_v49 }
  0x33   :  { %953 = vmatpush2.bf16.msra.mxu0 %v2816_v54 }
  0x34   :  { %994 = vmatpush2.bf16.msra.mxu1 %v2823_v55  ;;  %954 = vmatprep.subr.bf16.mxu0 %v2828_v56  ;;  %v2907_v55 = vld [vmem:[%s4504_s1 + $0x374] ss:$8 sps:$4 sm:$0xff]  }
  0x35   :  { %995 = vmatprep.subr.bf16.mxu1 %v2835_v57  ;;  %v2895_v57 = vld [vmem:[%s4504_s1 + $0x180] ss:$8 sps:$4 sm:$0xff]   ;;  %4733 = vst [vmem:[#allocation16_spill] sm:$0xff] %v2907_v55 }
  0x36   :  { %4732 = vst [vmem:[#allocation15_spill] sm:$0xff] %v2895_v57 }
  0x37   :  { %955 = vmatpush2.bf16.msra.mxu0 %v2840_v58 }
  0x38   :  { %996 = vmatpush2.bf16.msra.mxu1 %v2847_v59  ;;  %956 = vmatprep.subr.bf16.mxu0 %v2854_v60  ;;  %v2888_v59 = vld [vmem:[%s4504_s1 + $0x80] ss:$8 sps:$4 sm:$0xff]  }
  0x39   :  { %997 = vmatprep.subr.bf16.mxu1 %v2859_v61  ;;  %v2902_v61 = vld [vmem:[%s4504_s1 + $0x274] ss:$8 sps:$4 sm:$0xff]  }
  0x3b   :  { %957 = vmatpush2.bf16.msra.mxu0 %v2864_v62 }
  0x3c   :  { %998 = vmatpush2.bf16.msra.mxu1 %v2871_v63  ;;  %958 = vmatprep.subr.bf16.mxu0 %v2876_v48  ;;  %v1898_v63 = vcombine.low %v160_v47, %v160_v47  ;;  %v2931_v47 = vld [vmem:[%s4504_s1 + $0x364] ss:$8 sps:$4 sm:$0xff]  }
  0x3d   :  { %999 = vmatprep.subr.bf16.mxu1 %v2883_v51  ;;  %v2919_v51 = vld [vmem:[%s4504_s1 + $0x370] ss:$8 sps:$4 sm:$0xff]   ;;  %4736 = vst [vmem:[#allocation19_spill] sm:$0xff] %v2931_v47 }
  0x3e   :  { %4734 = vst [vmem:[#allocation17_spill] sm:$0xff] %v2919_v51 }
  0x3f   :  { %959 = vmatpush2.bf16.msra.mxu0 %v2888_v59 }
  0x40   :  { %1000 = vmatpush2.bf16.msra.mxu1 %v2895_v57  ;;  %1010 = vmatprep.subr.bf16.mxu0 %v2902_v61  ;;  %v2972_v57 = vld [vmem:[%s4504_s1 + $0x244] ss:$8 sps:$4 sm:$0xff]  }
  0x41   :  { %1051 = vmatprep.subr.bf16.mxu1 %v2907_v55  ;;  %v2943_v55 = vld [vmem:[%s4504_s1 + $0x360] ss:$8 sps:$4 sm:$0xff]   ;;  %4743 = vst [vmem:[#allocation26_spill] sm:$0xff] %v2972_v57 }
  0x42   :  { %961 = vmatmul.mubr.bf16.vlgmr.msra.gmra.mxu0 %v1898_v63  ;;  %4738 = vst [vmem:[#allocation21_spill] sm:$0xff] %v2943_v55  ;;  %v2955_v63 = vld [vmem:[%s4504_s1 + $0x354] ss:$8 sps:$4 sm:$0xff]  }
  0x43   :  { %1002 = vmatmul.mubr.bf16.vlgmr.msra.gmra.mxu1 %v1900_v53  ;;  %1011 = vmatpush1.bf16.msra.mxu0 %v2912_v50  ;;  %v2950_v53 = vld [vmem:[%s4504_s1 + $0x254] ss:$8 sps:$4 sm:$0xff]   ;;  %4740 = vst [vmem:[#allocation23_spill] sm:$0xff] %v2955_v63 }
  0x44   :  { %1052 = vmatpush1.bf16.msra.mxu1 %v2919_v51  ;;  %1012 = vmatprep.subr.bf16.mxu0 %v2924_v45  ;;  %4739 = vst [vmem:[#allocation22_spill] sm:$0xff] %v2950_v53  ;;  %v2960_v51 = vld [vmem:[%s4504_s1 + $0x250] ss:$8 sps:$4 sm:$0xff]   ;;  %v3082_v45 = vld [vmem:[%s4504_s1 + $0x204] ss:$8 sps:$4 sm:$0xff]  }
  0x45   :  { %1053 = vmatprep.subr.bf16.mxu1 %v2931_v47  ;;  %4741 = vst [vmem:[#allocation24_spill] sm:$0xff] %v2960_v51  ;;  %v2967_v47 = vld [vmem:[%s4504_s1 + $0x350] ss:$8 sps:$4 sm:$0xff]   ;;  %4757 = vst [vmem:[#allocation40_spill] sm:$0xff] %v3082_v45 }
  0x46   :  { %4742 = vst [vmem:[#allocation25_spill] sm:$0xff] %v2967_v47 }
  0x47   :  { %1013 = vmatpush1.bf16.msra.mxu0 %v2936_v49 }
  0x48   :  { %1054 = vmatpush1.bf16.msra.mxu1 %v2943_v55  ;;  %1014 = vmatprep.subr.bf16.mxu0 %v2950_v53  ;;  %v2984_v55 = vld [vmem:[%s4504_s1 + $0x240] ss:$8 sps:$4 sm:$0xff]  }
  0x49   :  { %1055 = vmatprep.subr.bf16.mxu1 %v2955_v63  ;;  %4745 = vst [vmem:[#allocation28_spill] sm:$0xff] %v2984_v55  ;;  %v2991_v53 = vld [vmem:[%s4504_s1 + $0x340] ss:$8 sps:$4 sm:$0xff]   ;;  %v2998_v63 = vld [vmem:[%s4504_s1 + $0x234] ss:$8 sps:$4 sm:$0xff]  }
  0x4a   :  { %4746 = vst [vmem:[#allocation29_spill] sm:$0xff] %v2991_v53  ;;  %4747 = vst [vmem:[#allocation30_spill] sm:$0xff] %v2998_v63 }
  0x4b   :  { %1015 = vmatpush1.bf16.msra.mxu0 %v2960_v51  ;;  %v3003_v51 = vld [vmem:[%s4504_s1 + $0x334] ss:$8 sps:$4 sm:$0xff]  }
  0x4c   :  { %1056 = vmatpush1.bf16.msra.mxu1 %v2967_v47  ;;  %1016 = vmatprep.subr.bf16.mxu0 %v2972_v57  ;;  %4748 = vst [vmem:[#allocation31_spill] sm:$0xff] %v3003_v51  ;;  %v3008_v47 = vld [vmem:[%s4504_s1 + $0x230] ss:$8 sps:$4 sm:$0xff]   ;;  %v3020_v57 = vld [vmem:[%s4504_s1 + $0x224] ss:$8 sps:$4 sm:$0xff]  }
  0x4d   :  { %1057 = vmatprep.subr.bf16.mxu1 %v2979_v43  ;;  %4749 = vst [vmem:[#allocation32_spill] sm:$0xff] %v3008_v47  ;;  %v3015_v43 = vld [vmem:[%s4504_s1 + $0x330] ss:$8 sps:$4 sm:$0xff]   ;;  %4751 = vst [vmem:[#allocation34_spill] sm:$0xff] %v3020_v57 }
  0x4e   :  { %4750 = vst [vmem:[#allocation33_spill] sm:$0xff] %v3015_v43 }
  0x4f   :  { %1017 = vmatpush1.bf16.msra.mxu0 %v2984_v55  ;;  %v3027_v55 = vld [vmem:[%s4504_s1 + $0x324] ss:$8 sps:$4 sm:$0xff]  }
  0x50   :  { %1058 = vmatpush1.bf16.msra.mxu1 %v2991_v53  ;;  %1018 = vmatprep.subr.bf16.mxu0 %v2998_v63  ;;  %4752 = vst [vmem:[#allocation35_spill] sm:$0xff] %v3027_v55  ;;  %v3032_v53 = vld [vmem:[%s4504_s1 + $0x220] ss:$8 sps:$4 sm:$0xff]  }
  0x51   :  { %1059 = vmatprep.subr.bf16.mxu1 %v3003_v51  ;;  %4753 = vst [vmem:[#allocation36_spill] sm:$0xff] %v3032_v53  ;;  %v3039_v63 = vld [vmem:[%s4504_s1 + $0x320] ss:$8 sps:$4 sm:$0xff]   ;;  %v3046_v51 = vld [vmem:[%s4504_s1 + $0x214] ss:$8 sps:$4 sm:$0xff]  }
  0x52   :  { %4754 = vst [vmem:[#allocation37_spill] sm:$0xff] %v3039_v63 }
  0x53   :  { %1019 = vmatpush1.bf16.msra.mxu0 %v3008_v47  ;;  %v3051_v47 = vld [vmem:[%s4504_s1 + $0x314] ss:$8 sps:$4 sm:$0xff]  }
  0x54   :  { %1060 = vmatpush1.bf16.msra.mxu1 %v3015_v43  ;;  %1020 = vmatprep.subr.bf16.mxu0 %v3020_v57  ;;  %4755 = vst [vmem:[#allocation38_spill] sm:$0xff] %v3051_v47  ;;  %v3056_v43 = vld [vmem:[%s4505_s0 + $0x10] sm:$0xff]  ;;  %v3061_v57 = vld [vmem:[%s4505_s0 + $0x18] sm:$0xff] }
  0x55   :  { %1061 = vmatprep.subr.bf16.mxu1 %v3027_v55  ;;  %v3066_v55 = vld [vmem:[%s4504_s1 + $0x210] ss:$8 sps:$4 sm:$0xff]   ;;  %v1903_v49 = vcombine.high %v3056_v43, %v3056_v43  ;;  %v1905_v39 = vcombine.high %v3061_v57, %v3061_v57 }
  0x57   :  { %1021 = vmatpush1.bf16.msra.mxu0 %v3032_v53  ;;  %1042 = vmatprep.mubr.bf16.mxu0 %v1903_v49  ;;  %v3099_v53 = vld [vmem:[%s4504_s1 + $0x300] ss:$8 sps:$4 sm:$0xff]   ;;  %v3118_v49 = vld [vmem:[%s4504_s1 + $0x2f0] ss:$8 sps:$4 sm:$0xff]  }
  0x58   :  { %1062 = vmatpush1.bf16.msra.mxu1 %v3039_v63  ;;  %1022 = vmatprep.subr.bf16.mxu0 %v3046_v51  ;;  %v3094_v63 = vld [vmem:[%s4504_s1 + $0x200] ss:$8 sps:$4 sm:$0xff]   ;;  %4760 = vst [vmem:[#allocation43_spill] sm:$0xff] %v3099_v53  ;;  %4763 = vst [vmem:[#allocation46_spill] sm:$0xff] %v3118_v49 }
  0x59   :  { %1063 = vmatprep.subr.bf16.mxu1 %v3051_v47  ;;  %1083 = vmatprep.mubr.bf16.mxu1 %v1905_v39  ;;  %4759 = vst [vmem:[#allocation42_spill] sm:$0xff] %v3094_v63  ;;  %v3106_v47 = vld [vmem:[%s4504_s1 + $0x2f4] ss:$8 sps:$4 sm:$0xff]  }
  0x5a   :  { %4761 = vst [vmem:[#allocation44_spill] sm:$0xff] %v3106_v47  ;;  %v3113_v39 = vld [vmem:[%s4504_s1 + $0x3f4] ss:$8 sps:$4 sm:$0xff]  }
  0x5b   :  { %1023 = vmatpush1.bf16.msra.mxu0 %v3066_v55  ;;  %4762 = vst [vmem:[#allocation45_spill] sm:$0xff] %v3113_v39 }
  0x5c   :  { %1064 = vmatpush1.bf16.msra.mxu1 %v3071_v41  ;;  %1024 = vmatprep.subr.bf16.mxu0 %v3082_v45  ;;  %v3125_v41 = vld [vmem:[%s4504_s1 + $0x3f0] ss:$8 sps:$4 sm:$0xff]   ;;  %v3309_v45 = vld [vmem:[%s4505_s0 + $0x24] sm:$0xff] }
  0x5d   :  { %1065 = vmatprep.subr.bf16.mxu1 %v3089_v37  ;;  %4764 = vst [vmem:[#allocation47_spill] sm:$0xff] %v3125_v41  ;;  %v3132_v37 = vld [vmem:[%s4504_s1 + $0x2e4] ss:$8 sps:$4 sm:$0xff]  }
  0x5e   :  { %4765 = vst [vmem:[#allocation48_spill] sm:$0xff] %v3132_v37 }
  0x5f   :  { %1025 = vmatpush1.bf16.msra.mxu0 %v3094_v63  ;;  %v3137_v63 = vld [vmem:[%s4504_s1 + $0x3e4] ss:$8 sps:$4 sm:$0xff]  }
  0x60   :  { %1066 = vmatpush1.bf16.msra.mxu1 %v3099_v53  ;;  %1026 = vmatprep.subr.bf16.mxu0 %v3106_v47  ;;  %4766 = vst [vmem:[#allocation49_spill] sm:$0xff] %v3137_v63  ;;  %v3144_v53 = vld [vmem:[%s4504_s1 + $0x2e0] ss:$8 sps:$4 sm:$0xff]   ;;  %v1904_v47 = vcombine.low %v3061_v57, %v3061_v57  ;;  %v2057_v57 = vcombine.high %v3309_v45, %v3309_v45 }
  0x61   :  { %1067 = vmatprep.subr.bf16.mxu1 %v3113_v39  ;;  %4767 = vst [vmem:[#allocation50_spill] sm:$0xff] %v3144_v53  ;;  %v3149_v39 = vld [vmem:[%s4504_s1 + $0x3e0] ss:$8 sps:$4 sm:$0xff]  }
  0x62   :  { %4768 = vst [vmem:[#allocation51_spill] sm:$0xff] %v3149_v39 }
  0x63   :  { %1027 = vmatpush2.bf16.msra.mxu0 %v3118_v49  ;;  %v3156_v49 = vld [vmem:[%s4504_s1 + $0x2d4] ss:$8 sps:$4 sm:$0xff]  }
  0x64   :  { %1068 = vmatpush2.bf16.msra.mxu1 %v3125_v41  ;;  %1028 = vmatprep.subr.bf16.mxu0 %v3132_v37  ;;  %4769 = vst [vmem:[#allocation52_spill] sm:$0xff] %v3156_v49  ;;  %v3161_v41 = vld [vmem:[%s4504_s1 + $0x3d4] ss:$8 sps:$4 sm:$0xff]   ;;  %v3168_v37 = vld [vmem:[%s4504_s1 + $0x2d0] ss:$8 sps:$4 sm:$0xff]  }
  0x65   :  { %1069 = vmatprep.subr.bf16.mxu1 %v3137_v63  ;;  %4770 = vst [vmem:[#allocation53_spill] sm:$0xff] %v3161_v41  ;;  %4771 = vst [vmem:[#allocation54_spill] sm:$0xff] %v3168_v37  ;;  %v3173_v63 = vld [vmem:[%s4504_s1 + $0x3d0] ss:$8 sps:$4 sm:$0xff]  }
  0x66   :  { %4772 = vst [vmem:[#allocation55_spill] sm:$0xff] %v3173_v63 }
  0x67   :  { %1029 = vmatpush2.bf16.msra.mxu0 %v3144_v53  ;;  %v3180_v53 = vld [vmem:[%s4504_s1 + $0x2c4] ss:$8 sps:$4 sm:$0xff]  }
  0x68   :  { %1070 = vmatpush2.bf16.msra.mxu1 %v3149_v39  ;;  %1030 = vmatprep.subr.bf16.mxu0 %v3156_v49  ;;  %4773 = vst [vmem:[#allocation56_spill] sm:$0xff] %v3180_v53  ;;  %v3185_v39 = vld [vmem:[%s4504_s1 + $0x3c4] ss:$8 sps:$4 sm:$0xff]   ;;  %v3192_v49 = vld [vmem:[%s4504_s1 + $0x2c0] ss:$8 sps:$4 sm:$0xff]  }
  0x69   :  { %1071 = vmatprep.subr.bf16.mxu1 %v3161_v41  ;;  %4774 = vst [vmem:[#allocation57_spill] sm:$0xff] %v3185_v39  ;;  %4775 = vst [vmem:[#allocation58_spill] sm:$0xff] %v3192_v49  ;;  %v3197_v41 = vld [vmem:[%s4504_s1 + $0x3c0] ss:$8 sps:$4 sm:$0xff]  }
  0x6a   :  { %4776 = vst [vmem:[#allocation59_spill] sm:$0xff] %v3197_v41 }
  0x6b   :  { %1031 = vmatpush2.bf16.msra.mxu0 %v3168_v37  ;;  %v3204_v37 = vld [vmem:[%s4504_s1 + $0x2b4] ss:$8 sps:$4 sm:$0xff]  }
  0x6c   :  { %1072 = vmatpush2.bf16.msra.mxu1 %v3173_v63  ;;  %1032 = vmatprep.subr.bf16.mxu0 %v3180_v53  ;;  %4777 = vst [vmem:[#allocation60_spill] sm:$0xff] %v3204_v37  ;;  %v3209_v63 = vld [vmem:[%s4504_s1 + $0x3b4] ss:$8 sps:$4 sm:$0xff]   ;;  %v3216_v53 = vld [vmem:[%s4504_s1 + $0x2b0] ss:$8 sps:$4 sm:$0xff]  }
  0x6d   :  { %1073 = vmatprep.subr.bf16.mxu1 %v3185_v39  ;;  %4778 = vst [vmem:[#allocation61_spill] sm:$0xff] %v3209_v63  ;;  %4779 = vst [vmem:[#allocation62_spill] sm:$0xff] %v3216_v53  ;;  %v3221_v39 = vld [vmem:[%s4504_s1 + $0x3b0] ss:$8 sps:$4 sm:$0xff]  }
  0x6e   :  { %4780 = vst [vmem:[#allocation63_spill] sm:$0xff] %v3221_v39 }
  0x6f   :  { %1033 = vmatpush2.bf16.msra.mxu0 %v3192_v49  ;;  %v3228_v49 = vld [vmem:[%s4504_s1 + $0x2a4] ss:$8 sps:$4 sm:$0xff]  }
  0x70   :  { %1074 = vmatpush2.bf16.msra.mxu1 %v3197_v41  ;;  %1034 = vmatprep.subr.bf16.mxu0 %v3204_v37  ;;  %4781 = vst [vmem:[#allocation64_spill] sm:$0xff] %v3228_v49  ;;  %v3233_v41 = vld [vmem:[%s4504_s1 + $0x3a4] ss:$8 sps:$4 sm:$0xff]   ;;  %v3240_v37 = vld [vmem:[%s4504_s1 + $0x2a0] ss:$8 sps:$4 sm:$0xff]  }
  0x71   :  { %1075 = vmatprep.subr.bf16.mxu1 %v3209_v63  ;;  %4782 = vst [vmem:[#allocation65_spill] sm:$0xff] %v3233_v41  ;;  %4783 = vst [vmem:[#allocation66_spill] sm:$0xff] %v3240_v37  ;;  %v3245_v63 = vld [vmem:[%s4504_s1 + $0x3a0] ss:$8 sps:$4 sm:$0xff]  }
  0x72   :  { %4784 = vst [vmem:[#allocation67_spill] sm:$0xff] %v3245_v63 }
  0x73   :  { %1035 = vmatpush2.bf16.msra.mxu0 %v3216_v53  ;;  %v3252_v53 = vld [vmem:[%s4504_s1 + $0x294] ss:$8 sps:$4 sm:$0xff]  }
  0x74   :  { %1076 = vmatpush2.bf16.msra.mxu1 %v3221_v39  ;;  %1036 = vmatprep.subr.bf16.mxu0 %v3228_v49  ;;  %4785 = vst [vmem:[#allocation68_spill] sm:$0xff] %v3252_v53  ;;  %v3257_v39 = vld [vmem:[%s4504_s1 + $0x394] ss:$8 sps:$4 sm:$0xff]   ;;  %v3264_v49 = vld [vmem:[%s4504_s1 + $0x290] ss:$8 sps:$4 sm:$0xff]  }
  0x75   :  { %1077 = vmatprep.subr.bf16.mxu1 %v3233_v41  ;;  %4786 = vst [vmem:[#allocation69_spill] sm:$0xff] %v3257_v39  ;;  %4787 = vst [vmem:[#allocation70_spill] sm:$0xff] %v3264_v49  ;;  %v3269_v41 = vld [vmem:[%s4504_s1 + $0x390] ss:$8 sps:$4 sm:$0xff]  }
  0x76   :  { %4788 = vst [vmem:[#allocation71_spill] sm:$0xff] %v3269_v41 }
  0x77   :  { %1037 = vmatpush2.bf16.msra.mxu0 %v3240_v37  ;;  %v3276_v37 = vld [vmem:[%s4504_s1 + $0x284] ss:$8 sps:$4 sm:$0xff]  }
  0x78   :  { %1078 = vmatpush2.bf16.msra.mxu1 %v3245_v63  ;;  %1038 = vmatprep.subr.bf16.mxu0 %v3252_v53  ;;  %4789 = vst [vmem:[#allocation72_spill] sm:$0xff] %v3276_v37  ;;  %v3281_v63 = vld [vmem:[%s4504_s1 + $0x384] ss:$8 sps:$4 sm:$0xff]   ;;  %v3288_v53 = vld [vmem:[%s4504_s1 + $0x280] ss:$8 sps:$4 sm:$0xff]  }
  0x79   :  { %1079 = vmatprep.subr.bf16.mxu1 %v3257_v39  ;;  %4790 = vst [vmem:[#allocation73_spill] sm:$0xff] %v3281_v63  ;;  %4791 = vst [vmem:[#allocation74_spill] sm:$0xff] %v3288_v53  ;;  %v3293_v39 = vld [vmem:[%s4504_s1 + $0x380] ss:$8 sps:$4 sm:$0xff]  }
  0x7a   :  { %4792 = vst [vmem:[#allocation75_spill] sm:$0xff] %v3293_v39 }
  0x7b   :  { %1039 = vmatpush2.bf16.msra.mxu0 %v3264_v49  ;;  %v3300_v49 = vld [vmem:[%s4504_s1 + $0x474] ss:$8 sps:$4 sm:$0xff]  }
  0x7c   :  { %1080 = vmatpush2.bf16.msra.mxu1 %v3269_v41  ;;  %1040 = vmatprep.subr.bf16.mxu0 %v3276_v37  ;;  %4793 = vst [vmem:[#allocation76_spill] sm:$0xff] %v3300_v49  ;;  %v1902_v41 = vcombine.low %v3056_v43, %v3056_v43  ;;  %v3323_v43 = vld [vmem:[%s4504_s1 + $0x464] ss:$8 sps:$4 sm:$0xff]  }
  0x7d   :  { %1081 = vmatprep.subr.bf16.mxu1 %v3281_v63  ;;  %v3316_v63 = vld [vmem:[%s4504_s1 + $0x470] ss:$8 sps:$4 sm:$0xff]   ;;  %4795 = vst [vmem:[#allocation78_spill] sm:$0xff] %v3323_v43 }
  0x7e   :  { %4794 = vst [vmem:[#allocation77_spill] sm:$0xff] %v3316_v63 }
  0x7f   :  { %1041 = vmatpush2.bf16.msra.mxu0 %v3288_v53 }
  0x80   :  { %1082 = vmatpush2.bf16.msra.mxu1 %v3293_v39  ;;  %1092 = vmatprep.subr.bf16.mxu0 %v3300_v49  ;;  %v3332_v39 = vld [vmem:[%s4504_s1 + $0x460] ss:$8 sps:$4 sm:$0xff]  }
  0x81   :  { %1177 = vmatprep.subr.bf16.mxu1 %v2514_v0  ;;  %4796 = vst [vmem:[#allocation79_spill] sm:$0xff] %v3332_v39  ;;  %v3339_v0 = vld [vmem:[%s4504_s1 + $0x454] ss:$8 sps:$4 sm:$0xff]  }
  0x82   :  { %1043 = vmatmul.mubr.bf16.vlgmr.msra.gmra.mxu0 %v1902_v41  ;;  %4797 = vst [vmem:[#allocation80_spill] sm:$0xff] %v3339_v0  ;;  %v4638_v41 = vmov 0  }
  0x83   :  { %1084 = vmatmul.mubr.bf16.vlgmr.msra.gmra.mxu1 %v1904_v47  ;;  %1093 = vmatpush1.bf16.msra.mxu0 %v3316_v63  ;;  %v3427_v47 = vld [vmem:[%s4505_s0 + $0x2c] sm:$0xff] }
  0x84   :  { %1178 = vmatpush1.bf16.msra.mxu1 %v2525_v2  ;;  %1094 = vmatprep.subr.bf16.mxu0 %v3323_v43  ;;  %v3347_v2 = vld [vmem:[%s4504_s1 + $0x450] ss:$8 sps:$4 sm:$0xff]  }
  0x85   :  { %1179 = vmatprep.subr.bf16.mxu1 %v2536_v4  ;;  %1124 = vmatprep.mubr.bf16.mxu0 %v4638_v41  ;;  %4798 = vst [vmem:[#allocation81_spill] sm:$0xff] %v3347_v2  ;;  %v3354_v4 = vld [vmem:[%s4504_s1 + $0x444] ss:$8 sps:$4 sm:$0xff]  }
  0x86   :  { %1209 = vmatprep.mubr.bf16.mxu1 %v2057_v57  ;;  %4799 = vst [vmem:[#allocation82_spill] sm:$0xff] %v3354_v4  ;;  %v4840_v57 = vld [vmem:[#allocation19_spill] sm:$0xff]  ;;  %v4860_v41 = vld [vmem:[#allocation38_spill] sm:$0xff] }
  0x87   :  { %1095 = vmatpush1.bf16.msra.mxu0 %v3332_v39 }
  0x88   :  { %1180 = vmatpush1.bf16.msra.mxu1 %v2548_v6  ;;  %1096 = vmatprep.subr.bf16.mxu0 %v3339_v0  ;;  %v3361_v6 = vld [vmem:[%s4504_s1 + $0x440] ss:$8 sps:$4 sm:$0xff]  }
  0x89   :  { %1181 = vmatprep.subr.bf16.mxu1 %v2560_v8  ;;  %4800 = vst [vmem:[#allocation83_spill] sm:$0xff] %v3361_v6  ;;  %v3368_v8 = vld [vmem:[%s4504_s1 + $0x434] ss:$8 sps:$4 sm:$0xff]  }
  0x8a   :  { %4801 = vst [vmem:[#allocation84_spill] sm:$0xff] %v3368_v8 }
  0x8b   :  { %1097 = vmatpush1.bf16.msra.mxu0 %v3347_v2 }
  0x8c   :  { %1182 = vmatpush1.bf16.msra.mxu1 %v2570_v10  ;;  %1098 = vmatprep.subr.bf16.mxu0 %v3354_v4  ;;  %v3375_v10 = vld [vmem:[%s4504_s1 + $0x430] ss:$8 sps:$4 sm:$0xff]  }
  0x8d   :  { %1183 = vmatprep.subr.bf16.mxu1 %v2582_v12  ;;  %4802 = vst [vmem:[#allocation85_spill] sm:$0xff] %v3375_v10  ;;  %v3382_v12 = vld [vmem:[%s4504_s1 + $0x424] ss:$8 sps:$4 sm:$0xff]  }
  0x8e   :  { %4803 = vst [vmem:[#allocation86_spill] sm:$0xff] %v3382_v12 }
  0x8f   :  { %1099 = vmatpush1.bf16.msra.mxu0 %v3361_v6 }
  0x90   :  { %1184 = vmatpush1.bf16.msra.mxu1 %v2594_v14  ;;  %1100 = vmatprep.subr.bf16.mxu0 %v3368_v8  ;;  %v3389_v14 = vld [vmem:[%s4504_s1 + $0x420] ss:$8 sps:$4 sm:$0xff]  }
  0x91   :  { %1185 = vmatprep.subr.bf16.mxu1 %v2606_v16  ;;  %4804 = vst [vmem:[#allocation87_spill] sm:$0xff] %v3389_v14  ;;  %v3396_v16 = vld [vmem:[%s4504_s1 + $0x414] ss:$8 sps:$4 sm:$0xff]  }
  0x92   :  { %4805 = vst [vmem:[#allocation88_spill] sm:$0xff] %v3396_v16 }
  0x93   :  { %1101 = vmatpush1.bf16.msra.mxu0 %v3375_v10 }
  0x94   :  { %1186 = vmatpush1.bf16.msra.mxu1 %v2618_v18  ;;  %1102 = vmatprep.subr.bf16.mxu0 %v3382_v12  ;;  %v3403_v18 = vld [vmem:[%s4504_s1 + $0x410] ss:$8 sps:$4 sm:$0xff]  }
  0x95   :  { %1187 = vmatprep.subr.bf16.mxu1 %v2630_v20  ;;  %4806 = vst [vmem:[#allocation89_spill] sm:$0xff] %v3403_v18  ;;  %v3410_v20 = vld [vmem:[%s4504_s1 + $0x404] ss:$8 sps:$4 sm:$0xff]  }
  0x96   :  { %4807 = vst [vmem:[#allocation90_spill] sm:$0xff] %v3410_v20 }
  0x97   :  { %1103 = vmatpush1.bf16.msra.mxu0 %v3389_v14 }
  0x98   :  { %1188 = vmatpush1.bf16.msra.mxu1 %v2642_v22  ;;  %1104 = vmatprep.subr.bf16.mxu0 %v3396_v16  ;;  %v3417_v22 = vld [vmem:[%s4504_s1 + $0x400] ss:$8 sps:$4 sm:$0xff]  }
  0x99   :  { %1189 = vmatprep.subr.bf16.mxu1 %v2654_v24  ;;  %4808 = vst [vmem:[#allocation91_spill] sm:$0xff] %v3417_v22  ;;  %v2318_v24 = vld [vmem:[%s4505_s0 + $0x20] ss:$0 sps:$4 sm:$0xff]  }
  0x9b   :  { %1105 = vmatpush1.bf16.msra.mxu0 %v3403_v18 }
  0x9c   :  { %1190 = vmatpush1.bf16.msra.mxu1 %v2666_v26  ;;  %1106 = vmatprep.subr.bf16.mxu0 %v3410_v20  ;;  %v2059_v26 = vcombine.high %v3427_v47, %v3427_v47 }
  0x9d   :  { %1191 = vmatprep.subr.bf16.mxu1 %v2678_v28  ;;  %v4820_v28 = vld [vmem:[#allocation28_spill] sm:$0xff] }
  0x9f   :  { %1107 = vmatpush1.bf16.msra.mxu0 %v3417_v22 }
  0xa0   :  { %1192 = vmatpush1.bf16.msra.mxu1 %v2690_v30  ;;  %1218 = vmatprep.subr.bf16.mxu0 %v2519_v1  ;;  %v2056_v1 = vcombine.low %v3309_v45, %v3309_v45  ;;  %v4822_v30 = vld [vmem:[#allocation30_spill] sm:$0xff]  ;;  %v2058_v45 = vcombine.low %v3427_v47, %v3427_v47  ;;  %v4842_v47 = vld [vmem:[#allocation21_spill] sm:$0xff] }
  0xa1   :  { %1193 = vmatprep.subr.bf16.mxu1 %v2702_v32  ;;  %v4824_v32 = vld [vmem:[#allocation32_spill] sm:$0xff] }
  0xa2   :  { %1125 = vmatmul.mubr.bf16.vlgmr.msra.gmra.mxu0 %v2318_v24  ;;  %v4841_v24 = vld [vmem:[#allocation50_spill] sm:$0xff] }
  0xa3   :  { %1219 = vmatpush1.bf16.msra.mxu0 %v2530_v3  ;;  %1250 = vmatprep.mubr.bf16.mxu0 %v2059_v26  ;;  %v3468_v3 = vld [vmem:[%s4505_s0 + $0x34] sm:$0xff] }
  0xa4   :  { %1194 = vmatpush2.bf16.msra.mxu1 %v2714_v34  ;;  %1220 = vmatprep.subr.bf16.mxu0 %v2543_v5  ;;  %v2061_v5 = vcombine.high %v3468_v3, %v3468_v3  ;;  %v4826_v34 = vld [vmem:[#allocation34_spill] sm:$0xff]  ;;  %v4843_v26 = vld [vmem:[#allocation52_spill] sm:$0xff] }
  0xa5   :  { %1195 = vmatprep.subr.bf16.mxu1 %v2726_v36  ;;  %v4828_v36 = vld [vmem:[#allocation36_spill] sm:$0xff] }
  0xa7   :  { %1221 = vmatpush1.bf16.msra.mxu0 %v2554_v7  ;;  %v4809_v7 = vld [vmem:[#allocation2_spill] sm:$0xff] }
  0xa8   :  { %1196 = vmatpush2.bf16.msra.mxu1 %v2738_v38  ;;  %1222 = vmatprep.subr.bf16.mxu0 %v2565_v9  ;;  %v4810_v9 = vld [vmem:[#allocation18_spill] sm:$0xff]  ;;  %v4829_v38 = vld [vmem:[#allocation12_spill] sm:$0xff] }
  0xa9   :  { %1197 = vmatprep.subr.bf16.mxu1 %v2750_v40  ;;  %v4830_v40 = vld [vmem:[#allocation13_spill] sm:$0xff] }
  0xab   :  { %1223 = vmatpush1.bf16.msra.mxu0 %v2575_v11  ;;  %v4811_v11 = vld [vmem:[#allocation3_spill] sm:$0xff] }
  0xac   :  { %1198 = vmatpush2.bf16.msra.mxu1 %v2762_v42  ;;  %1224 = vmatprep.subr.bf16.mxu0 %v2589_v13  ;;  %v4812_v13 = vld [vmem:[#allocation20_spill] sm:$0xff]  ;;  %v4831_v42 = vld [vmem:[#allocation14_spill] sm:$0xff] }
  0xad   :  { %1199 = vmatprep.subr.bf16.mxu1 %v2774_v44  ;;  %v4832_v44 = vld [vmem:[#allocation40_spill] sm:$0xff] }
  0xaf   :  { %1225 = vmatpush1.bf16.msra.mxu0 %v2601_v15  ;;  %v4813_v15 = vld [vmem:[#allocation4_spill] sm:$0xff] }
  0xb0   :  { %1200 = vmatpush2.bf16.msra.mxu1 %v2786_v46  ;;  %1226 = vmatprep.subr.bf16.mxu0 %v2613_v17  ;;  %v4814_v17 = vld [vmem:[#allocation22_spill] sm:$0xff] }
  0xb1   :  { %1201 = vmatprep.subr.bf16.mxu1 %v2806_v52  ;;  %v3509_v46 = vld [vmem:[%s4505_s0 + $0x3c] sm:$0xff]  ;;  %v4833_v52 = vld [vmem:[#allocation15_spill] sm:$0xff] }
  0xb3   :  { %1227 = vmatpush1.bf16.msra.mxu0 %v2623_v19  ;;  %v4815_v19 = vld [vmem:[#allocation5_spill] sm:$0xff] }
  0xb4   :  { %1202 = vmatpush2.bf16.msra.mxu1 %v2816_v54  ;;  %1228 = vmatprep.subr.bf16.mxu0 %v2637_v21  ;;  %v4816_v21 = vld [vmem:[#allocation24_spill] sm:$0xff]  ;;  %v4834_v54 = vld [vmem:[#allocation42_spill] sm:$0xff] }
  0xb5   :  { %1203 = vmatprep.subr.bf16.mxu1 %v2828_v56  ;;  %v4835_v56 = vld [vmem:[#allocation44_spill] sm:$0xff] }
  0xb7   :  { %1229 = vmatpush1.bf16.msra.mxu0 %v2649_v23  ;;  %v4817_v23 = vld [vmem:[#allocation6_spill] sm:$0xff] }
  0xb8   :  { %1204 = vmatpush2.bf16.msra.mxu1 %v2840_v58  ;;  %1230 = vmatprep.subr.bf16.mxu0 %v2661_v25  ;;  %v4818_v25 = vld [vmem:[#allocation26_spill] sm:$0xff]  ;;  %v4836_v58 = vld [vmem:[#allocation16_spill] sm:$0xff] }
  0xb9   :  { %1205 = vmatprep.subr.bf16.mxu1 %v2854_v60  ;;  %v4837_v60 = vld [vmem:[#allocation46_spill] sm:$0xff] }
  0xbb   :  { %1231 = vmatpush1.bf16.msra.mxu0 %v2671_v27  ;;  %v4819_v27 = vld [vmem:[#allocation7_spill] sm:$0xff] }
  0xbc   :  { %1206 = vmatpush2.bf16.msra.mxu1 %v2864_v62  ;;  %1232 = vmatprep.subr.bf16.mxu0 %v2685_v29  ;;  %v4821_v29 = vld [vmem:[#allocation8_spill] sm:$0xff]  ;;  %v4838_v62 = vld [vmem:[#allocation17_spill] sm:$0xff] }
  0xbd   :  { %1207 = vmatprep.subr.bf16.mxu1 %v2876_v48  ;;  %v4839_v48 = vld [vmem:[#allocation48_spill] sm:$0xff] }
  0xbf   :  { %1233 = vmatpush1.bf16.msra.mxu0 %v2697_v31  ;;  %v4823_v31 = vld [vmem:[#allocation9_spill] sm:$0xff] }
  0xc0   :  { %1208 = vmatpush2.bf16.msra.mxu1 %v2888_v59  ;;  %1234 = vmatprep.subr.bf16.mxu0 %v2709_v33  ;;  %v4825_v33 = vld [vmem:[#allocation10_spill] sm:$0xff]  ;;  %v2063_v59 = vcombine.high %v3509_v46, %v3509_v46 }
  0xc1   :  { %1259 = vmatprep.subr.bf16.mxu1 %v2902_v61 }
  0xc3   :  { %1210 = vmatmul.mubr.bf16.vlgmr.msra.gmra.mxu1 %v2056_v1  ;;  %1235 = vmatpush2.bf16.msra.mxu0 %v2719_v35  ;;  %v4827_v35 = vld [vmem:[#allocation11_spill] sm:$0xff] }
  0xc4   :  { %1260 = vmatpush1.bf16.msra.mxu1 %v2912_v50  ;;  %1236 = vmatprep.subr.bf16.mxu0 %v4809_v7  ;;  %v4844_v1 = vld [vmem:[#allocation23_spill] sm:$0xff]  ;;  %v4846_v7 = vld [vmem:[#allocation25_spill] sm:$0xff] }
  0xc5   :  { %1261 = vmatprep.subr.bf16.mxu1 %v4810_v9  ;;  %1291 = vmatprep.mubr.bf16.mxu1 %v2061_v5  ;;  %v4845_v5 = vld [vmem:[#allocation54_spill] sm:$0xff] }
  0xc7   :  { %1237 = vmatpush2.bf16.msra.mxu0 %v4811_v11  ;;  %v4847_v11 = vld [vmem:[#allocation56_spill] sm:$0xff] }
  0xc8   :  { %1262 = vmatpush1.bf16.msra.mxu1 %v4812_v13  ;;  %1238 = vmatprep.subr.bf16.mxu0 %v4813_v15  ;;  %v4848_v15 = vld [vmem:[#allocation27_spill] sm:$0xff] }
  0xc9   :  { %1263 = vmatprep.subr.bf16.mxu1 %v4814_v17 }
  0xcb   :  { %1239 = vmatpush2.bf16.msra.mxu0 %v4815_v19  ;;  %v4849_v19 = vld [vmem:[#allocation58_spill] sm:$0xff] }
  0xcc   :  { %1264 = vmatpush1.bf16.msra.mxu1 %v4816_v21  ;;  %1240 = vmatprep.subr.bf16.mxu0 %v4817_v23  ;;  %v4850_v23 = vld [vmem:[#allocation29_spill] sm:$0xff] }
  0xcd   :  { %1265 = vmatprep.subr.bf16.mxu1 %v4818_v25 }
  0xcf   :  { %1241 = vmatpush2.bf16.msra.mxu0 %v4819_v27  ;;  %v4851_v27 = vld [vmem:[#allocation60_spill] sm:$0xff] }
  0xd0   :  { %1266 = vmatpush1.bf16.msra.mxu1 %v4820_v28  ;;  %1242 = vmatprep.subr.bf16.mxu0 %v4821_v29  ;;  %v4852_v29 = vld [vmem:[#allocation31_spill] sm:$0xff] }
  0xd1   :  { %1267 = vmatprep.subr.bf16.mxu1 %v4822_v30 }
  0xd3   :  { %1243 = vmatpush2.bf16.msra.mxu0 %v4823_v31  ;;  %v4853_v31 = vld [vmem:[#allocation62_spill] sm:$0xff] }
  0xd4   :  { %1268 = vmatpush1.bf16.msra.mxu1 %v4824_v32  ;;  %1244 = vmatprep.subr.bf16.mxu0 %v4825_v33  ;;  %v4854_v33 = vld [vmem:[#allocation33_spill] sm:$0xff] }
  0xd5   :  { %1269 = vmatprep.subr.bf16.mxu1 %v4826_v34 }
  0xd7   :  { %1245 = vmatpush2.bf16.msra.mxu0 %v4827_v35  ;;  %v166_v35 = vlaneseq }
  0xd8   :  { %1270 = vmatpush1.bf16.msra.mxu1 %v4828_v36  ;;  %1246 = vmatprep.subr.bf16.mxu0 %v4829_v38  ;;  %v4855_v38 = vld [vmem:[#allocation64_spill] sm:$0xff] }
  0xd9   :  { %1271 = vmatprep.subr.bf16.mxu1 %v3046_v51 }
  0xdb   :  { %1247 = vmatpush2.bf16.msra.mxu0 %v4830_v40  ;;  %v4856_v40 = vld [vmem:[#allocation35_spill] sm:$0xff] }
  0xdc   :  { %1272 = vmatpush1.bf16.msra.mxu1 %v3066_v55  ;;  %1248 = vmatprep.subr.bf16.mxu0 %v4831_v42  ;;  %v4857_v42 = vld [vmem:[#allocation66_spill] sm:$0xff] }
  0xdd   :  { %1273 = vmatprep.subr.bf16.mxu1 %v4832_v44 }
  0xdf   :  { %1249 = vmatpush2.bf16.msra.mxu0 %v4833_v52  ;;  %v167_v52 = vshrl.u32 %v166_v35, 7  ;;  %v2060_v35 = vcombine.low %v3468_v3, %v3468_v3 }
  0xe0   :  { %1274 = vmatpush1.bf16.msra.mxu1 %v4834_v54  ;;  %1300 = vmatprep.subr.bf16.mxu0 %v4836_v58 }
  0xe1   :  { %1275 = vmatprep.subr.bf16.mxu1 %v4835_v56 }
  0xe2   :  { %1251 = vmatmul.mubr.bf16.vlgmr.msra.gmra.mxu0 %v2058_v45  ;;  %v4858_v45 = vld [vmem:[#allocation37_spill] sm:$0xff] }
  0xe3   :  { %1301 = vmatpush1.bf16.msra.mxu0 %v4838_v62  ;;  %1332 = vmatprep.mubr.bf16.mxu0 %v2063_v59  ;;  %v4859_v59 = vld [vmem:[#allocation68_spill] sm:$0xff] }
  0xe4   :  { %1276 = vmatpush2.bf16.msra.mxu1 %v4837_v60  ;;  %1302 = vmatprep.subr.bf16.mxu0 %v4840_v57  ;;  %v4868_v60 = vld [vmem:[#allocation49_spill] sm:$0xff] }
  0xe5   :  { %1277 = vmatprep.subr.bf16.mxu1 %v4839_v48  ;;  %v4867_v48 = vld [vmem:[#allocation47_spill] sm:$0xff] }
  0xe7   :  { %1303 = vmatpush1.bf16.msra.mxu0 %v4842_v47 }
  0xe8   :  { %1278 = vmatpush2.bf16.msra.mxu1 %v4841_v24  ;;  %1304 = vmatprep.subr.bf16.mxu0 %v4844_v1 }
  0xe9   :  { %1279 = vmatprep.subr.bf16.mxu1 %v4843_v26 }
  0xeb   :  { %1305 = vmatpush1.bf16.msra.mxu0 %v4846_v7 }
  0xec   :  { %1280 = vmatpush2.bf16.msra.mxu1 %v4845_v5  ;;  %1306 = vmatprep.subr.bf16.mxu0 %v4848_v15  ;;  %v4866_v5 = vld [vmem:[#allocation45_spill] sm:$0xff] }
  0xed   :  { %1281 = vmatprep.subr.bf16.mxu1 %v4847_v11  ;;  %v4863_v11 = vld [vmem:[#allocation41_spill] sm:$0xff] }
  0xef   :  { %1307 = vmatpush1.bf16.msra.mxu0 %v4850_v23 }
  0xf0   :  { %1282 = vmatpush2.bf16.msra.mxu1 %v4849_v19  ;;  %1308 = vmatprep.subr.bf16.mxu0 %v4852_v29  ;;  %v4862_v19 = vld [vmem:[#allocation39_spill] sm:$0xff] }
  0xf1   :  { %1283 = vmatprep.subr.bf16.mxu1 %v4851_v27  ;;  %v4861_v27 = vld [vmem:[#allocation70_spill] sm:$0xff] }
  0xf3   :  { %1309 = vmatpush1.bf16.msra.mxu0 %v4854_v33 }
  0xf4   :  { %1284 = vmatpush2.bf16.msra.mxu1 %v4853_v31  ;;  %1310 = vmatprep.subr.bf16.mxu0 %v4856_v40  ;;  %v168_v31 = vsub.s32 0, %v167_v52 }
  0xf5   :  { %1285 = vmatprep.subr.bf16.mxu1 %v4855_v38  ;;  %v172_v38 = vsub.s32 1, %v167_v52 }
  0xf7   :  { %1311 = vmatpush1.bf16.msra.mxu0 %v4858_v45 }
  0xf8   :  { %1286 = vmatpush2.bf16.msra.mxu1 %v4857_v42  ;;  %1312 = vmatprep.subr.bf16.mxu0 %v4860_v41  ;;  %v159_v42 = vld [vmem:[%s4506_s2] sm:$0x3] }
  0xf9   :  { %1287 = vmatprep.subr.bf16.mxu1 %v4859_v59  ;;  %v4864_v59 = vld [vmem:[#allocation43_spill] sm:$0xff] }
  0xfb   :  { %1313 = vmatpush1.bf16.msra.mxu0 %v4862_v19 }
  0xfc   :  { %1288 = vmatpush2.bf16.msra.mxu1 %v4861_v27  ;;  %1314 = vmatprep.subr.bf16.mxu0 %v4863_v11  ;;  %v3552_v27 = vrot.slane %v159_v42, %v168_v31 }
  0xfd   :  { %1289 = vmatprep.subr.bf16.mxu1 %v3276_v37  ;;  %v3556_v37 = vrot.slane %v159_v42, %v172_v38  ;;  %v4869_v42 = vmov 0  }
  0xfe   :  { %4865 = vst [vmem:[#allocation2_spill] sm:$0xff] %v3552_v27 }
  0xff   :  { %1315 = vmatpush1.bf16.msra.mxu0 %v4864_v59 }
 0x100   :  { %1290 = vmatpush2.bf16.msra.mxu1 %v3288_v53  ;;  %1316 = vmatprep.subr.bf16.mxu0 %v4866_v5 }
 0x101   :  { %1341 = vmatprep.subr.bf16.mxu1 %v3300_v49 }
 0x102   :  { %v962_v26 = vpop.f32.mrf.mxu0 }
 0x103   :  { %v1003_v24 = vpop.f32.mrf.mxu1  ;;  %1292 = vmatmul.mubr.bf16.vlgmr.msra.gmra.mxu1 %v2060_v35  ;;  %v963_v52 = vadd.f32 %v962_v26, %v3552_v27  ;;  %1317 = vmatpush2.bf16.msra.mxu0 %v4867_v48  ;;  %v4870_v26 = vld [vmem:[#allocation51_spill] sm:$0xff]  ;;  %v4871_v48 = vld [vmem:[#allocation53_spill] sm:$0xff] }
 0x104   :  { %1342 = vmatpush1.bf16.msra.mxu1 %v3316_v63  ;;  %v964_v3 = vpop.f32.mrf.mxu0  ;;  %1318 = vmatprep.subr.bf16.mxu0 %v4868_v60 }
 0x105   :  { %v1005_v53 = vpop.f32.mrf.mxu1  ;;  %1343 = vmatprep.subr.bf16.mxu1 %v3323_v43  ;;  %v3563_v31 = vadd.f32 %v1003_v24, %v963_v52  ;;  %v965_v38 = vadd.f32 %v964_v3, %v3556_v37  ;;  %1373 = vmatprep.mubr.bf16.mxu1 %v4869_v42  ;;  %v4872_v24 = vld [vmem:[#allocation55_spill] sm:$0xff]  ;;  %v4873_v52 = vld [vmem:[#allocation57_spill] sm:$0xff] }
 0x106   :  { %v966_v49 = vpop.f32.mrf.mxu0  ;;  %v4878_v3 = vld [vmem:[#allocation67_spill] sm:$0xff] }
 0x107   :  { %v1007_v35 = vpop.f32.mrf.mxu1  ;;  %v3567_v5 = vadd.f32 %v1005_v53, %v965_v38  ;;  %1319 = vmatpush2.bf16.msra.mxu0 %v4870_v26  ;;  %v4874_v53 = vld [vmem:[#allocation59_spill] sm:$0xff]  ;;  %v4875_v49 = vld [vmem:[#allocation61_spill] sm:$0xff] }
 0x108   :  { %1344 = vmatpush1.bf16.msra.mxu1 %v3332_v39  ;;  %v967_v63 = vpop.f32.mrf.mxu0  ;;  %1320 = vmatprep.subr.bf16.mxu0 %v4871_v48  ;;  %v4879_v38 = vld [vmem:[#allocation69_spill] sm:$0xff]  ;;  %v4880_v35 = vld [vmem:[#allocation71_spill] sm:$0xff] }
 0x109   :  { %v1008_v27 = vpop.f32.mrf.mxu1  ;;  %1345 = vmatprep.subr.bf16.mxu1 %v3339_v0  ;;  %v4876_v63 = vld [vmem:[#allocation63_spill] sm:$0xff] }
 0x10a   :  { %v4877_v27 = vld [vmem:[#allocation65_spill] sm:$0xff] }
 0x10b   :  { %1321 = vmatpush2.bf16.msra.mxu0 %v4872_v24 }
 0x10c   :  { %1346 = vmatpush1.bf16.msra.mxu1 %v3347_v2  ;;  %1322 = vmatprep.subr.bf16.mxu0 %v4873_v52  ;;  %v3635_v2 = vld [vmem:[%s4504_s1 + $0x170] ss:$8 sps:$4 sm:$0xff]  }
 0x10d   :  { %1347 = vmatprep.subr.bf16.mxu1 %v3354_v4  ;;  %v3629_v4 = vld [vmem:[%s4504_s1 + $0x70] ss:$8 sps:$4 sm:$0xff]   ;;  %4885 = vst [vmem:[#allocation20_spill] sm:$0xff] %v3635_v2 }
 0x10e   :  { %4884 = vst [vmem:[#allocation3_spill] sm:$0xff] %v3629_v4 }
 0x10f   :  { %1323 = vmatpush2.bf16.msra.mxu0 %v4874_v53 }
 0x110   :  { %1348 = vmatpush1.bf16.msra.mxu1 %v3361_v6  ;;  %1324 = vmatprep.subr.bf16.mxu0 %v4875_v49 }
 0x111   :  { %1349 = vmatprep.subr.bf16.mxu1 %v3368_v8  ;;  %v4881_v8 = vld [vmem:[#allocation73_spill] sm:$0xff] }
 0x113   :  { %1325 = vmatpush2.bf16.msra.mxu0 %v4876_v63 }
 0x114   :  { %1350 = vmatpush1.bf16.msra.mxu1 %v3375_v10  ;;  %1326 = vmatprep.subr.bf16.mxu0 %v4877_v27  ;;  %v2062_v10 = vcombine.low %v3509_v46, %v3509_v46  ;;  %v3613_v46 = vld [vmem:[%s4504_s1 + $0x74] ss:$8 sps:$4 sm:$0xff]  }
 0x115   :  { %1351 = vmatprep.subr.bf16.mxu1 %v3382_v12  ;;  %v2327_v12 = vld [vmem:[%s4505_s0 + $0x44] ss:$0 sps:$4 sm:$0xff]  }
 0x117   :  { %1327 = vmatpush2.bf16.msra.mxu0 %v4878_v3 }
 0x118   :  { %1352 = vmatpush1.bf16.msra.mxu1 %v3389_v14  ;;  %1328 = vmatprep.subr.bf16.mxu0 %v4879_v38  ;;  %v3601_v14 = vld [vmem:[%s4505_s0 + $0x48] sm:$0xff] }
 0x119   :  { %1353 = vmatprep.subr.bf16.mxu1 %v3396_v16  ;;  %v4882_v16 = vld [vmem:[#allocation75_spill] sm:$0xff]  ;;  %v2071_v6 = vcombine.high %v3601_v14, %v3601_v14 }
 0x11b   :  { %1329 = vmatpush2.bf16.msra.mxu0 %v4880_v35 }
 0x11c   :  { %1354 = vmatpush1.bf16.msra.mxu1 %v3403_v18  ;;  %1330 = vmatprep.subr.bf16.mxu0 %v4881_v8  ;;  %v3606_v18 = vld [vmem:[%s4505_s0 + $0x50] sm:$0xff] }
 0x11d   :  { %1355 = vmatprep.subr.bf16.mxu1 %v3410_v20  ;;  %v3619_v20 = vld [vmem:[%s4504_s1 + $0x174] ss:$8 sps:$4 sm:$0xff]  }
 0x11e   :  { %4883 = vst [vmem:[#allocation18_spill] sm:$0xff] %v3619_v20 }
 0x11f   :  { %1331 = vmatpush2.bf16.msra.mxu0 %v4882_v16 }
 0x120   :  { %1356 = vmatpush1.bf16.msra.mxu1 %v3417_v22  ;;  %1428 = vmatprep.subr.bf16.mxu0 %v3613_v46  ;;  %v2073_v22 = vcombine.high %v3606_v18, %v3606_v18 }
 0x121   :  { %1469 = vmatprep.subr.bf16.mxu1 %v3619_v20  ;;  %v3641_v20 = vld [vmem:[%s4504_s1 + $0x64] ss:$8 sps:$4 sm:$0xff]  }
 0x122   :  { %1333 = vmatmul.mubr.bf16.vlgmr.msra.gmra.mxu0 %v2062_v10  ;;  %4886 = vst [vmem:[#allocation4_spill] sm:$0xff] %v3641_v20  ;;  %v3647_v10 = vld [vmem:[%s4504_s1 + $0x164] ss:$8 sps:$4 sm:$0xff]  }
 0x123   :  { %1374 = vmatmul.mubr.bf16.vlgmr.msra.gmra.mxu1 %v2327_v12  ;;  %1429 = vmatpush1.bf16.msra.mxu0 %v3629_v4  ;;  %4887 = vst [vmem:[#allocation22_spill] sm:$0xff] %v3647_v10  ;;  %v3653_v12 = vld [vmem:[%s4504_s1 + $0x60] ss:$8 sps:$4 sm:$0xff]  }
 0x124   :  { %1470 = vmatpush1.bf16.msra.mxu1 %v3635_v2  ;;  %1430 = vmatprep.subr.bf16.mxu0 %v3641_v20  ;;  %4888 = vst [vmem:[#allocation5_spill] sm:$0xff] %v3653_v12  ;;  %v3659_v2 = vld [vmem:[%s4504_s1 + $0x160] ss:$8 sps:$4 sm:$0xff]  }
 0x125   :  { %1471 = vmatprep.subr.bf16.mxu1 %v3647_v10  ;;  %1460 = vmatprep.mubr.bf16.mxu0 %v2071_v6  ;;  %4889 = vst [vmem:[#allocation24_spill] sm:$0xff] %v3659_v2  ;;  %v3665_v10 = vld [vmem:[%s4504_s1 + $0x54] ss:$8 sps:$4 sm:$0xff]   ;;  %v3851_v4 = vld [vmem:[%s4504_s1 + $0xe0] ss:$8 sps:$4 sm:$0xff]  }
 0x126   :  { %1501 = vmatprep.mubr.bf16.mxu1 %v2073_v22  ;;  %4890 = vst [vmem:[#allocation6_spill] sm:$0xff] %v3665_v10  ;;  %v3671_v6 = vld [vmem:[%s4504_s1 + $0x154] ss:$8 sps:$4 sm:$0xff]   ;;  %v3677_v22 = vld [vmem:[%s4504_s1 + $0x50] ss:$8 sps:$4 sm:$0xff]  }
 0x127   :  { %1431 = vmatpush1.bf16.msra.mxu0 %v3653_v12  ;;  %4891 = vst [vmem:[#allocation26_spill] sm:$0xff] %v3671_v6  ;;  %4892 = vst [vmem:[#allocation7_spill] sm:$0xff] %v3677_v22 }
 0x128   :  { %1472 = vmatpush1.bf16.msra.mxu1 %v3659_v2  ;;  %1432 = vmatprep.subr.bf16.mxu0 %v3665_v10  ;;  %v3683_v2 = vld [vmem:[%s4504_s1 + $0x150] ss:$8 sps:$4 sm:$0xff]   ;;  %v3689_v10 = vld [vmem:[%s4504_s1 + $0x44] ss:$8 sps:$4 sm:$0xff]  }
 0x129   :  { %1473 = vmatprep.subr.bf16.mxu1 %v3671_v6  ;;  %4893 = vst [vmem:[#allocation28_spill] sm:$0xff] %v3683_v2  ;;  %4894 = vst [vmem:[#allocation8_spill] sm:$0xff] %v3689_v10  ;;  %v3695_v6 = vld [vmem:[%s4504_s1 + $0x144] ss:$8 sps:$4 sm:$0xff]  }
 0x12a   :  { %4895 = vst [vmem:[#allocation30_spill] sm:$0xff] %v3695_v6 }
 0x12b   :  { %1433 = vmatpush1.bf16.msra.mxu0 %v3677_v22  ;;  %v3701_v22 = vld [vmem:[%s4504_s1 + $0x40] ss:$8 sps:$4 sm:$0xff]  }
 0x12c   :  { %1474 = vmatpush1.bf16.msra.mxu1 %v3683_v2  ;;  %1434 = vmatprep.subr.bf16.mxu0 %v3689_v10  ;;  %4896 = vst [vmem:[#allocation9_spill] sm:$0xff] %v3701_v22  ;;  %v3707_v2 = vld [vmem:[%s4504_s1 + $0x140] ss:$8 sps:$4 sm:$0xff]   ;;  %v3713_v10 = vld [vmem:[%s4504_s1 + $0x34] ss:$8 sps:$4 sm:$0xff]  }
 0x12d   :  { %1475 = vmatprep.subr.bf16.mxu1 %v3695_v6  ;;  %4897 = vst [vmem:[#allocation32_spill] sm:$0xff] %v3707_v2  ;;  %4898 = vst [vmem:[#allocation10_spill] sm:$0xff] %v3713_v10  ;;  %v3719_v6 = vld [vmem:[%s4504_s1 + $0x134] ss:$8 sps:$4 sm:$0xff]  }
 0x12e   :  { %4899 = vst [vmem:[#allocation34_spill] sm:$0xff] %v3719_v6 }
 0x12f   :  { %1435 = vmatpush1.bf16.msra.mxu0 %v3701_v22  ;;  %v3725_v22 = vld [vmem:[%s4504_s1 + $0x30] ss:$8 sps:$4 sm:$0xff]  }
 0x130   :  { %1476 = vmatpush1.bf16.msra.mxu1 %v3707_v2  ;;  %1436 = vmatprep.subr.bf16.mxu0 %v3713_v10  ;;  %4900 = vst [vmem:[#allocation11_spill] sm:$0xff] %v3725_v22  ;;  %v3731_v2 = vld [vmem:[%s4504_s1 + $0x130] ss:$8 sps:$4 sm:$0xff]   ;;  %v3737_v10 = vld [vmem:[%s4504_s1 + $0x24] ss:$8 sps:$4 sm:$0xff]  }
 0x131   :  { %1477 = vmatprep.subr.bf16.mxu1 %v3719_v6  ;;  %4901 = vst [vmem:[#allocation36_spill] sm:$0xff] %v3731_v2  ;;  %4902 = vst [vmem:[#allocation12_spill] sm:$0xff] %v3737_v10  ;;  %v3743_v6 = vld [vmem:[%s4504_s1 + $0x124] ss:$8 sps:$4 sm:$0xff]  }
 0x132   :  { %4903 = vst [vmem:[#allocation13_spill] sm:$0xff] %v3743_v6 }
 0x133   :  { %1437 = vmatpush1.bf16.msra.mxu0 %v3725_v22  ;;  %v3749_v22 = vld [vmem:[%s4504_s1 + $0x20] ss:$8 sps:$4 sm:$0xff]  }
 0x134   :  { %1478 = vmatpush1.bf16.msra.mxu1 %v3731_v2  ;;  %1438 = vmatprep.subr.bf16.mxu0 %v3737_v10  ;;  %4904 = vst [vmem:[#allocation14_spill] sm:$0xff] %v3749_v22  ;;  %v3755_v2 = vld [vmem:[%s4504_s1 + $0x120] ss:$8 sps:$4 sm:$0xff]   ;;  %v3761_v10 = vld [vmem:[%s4504_s1 + $0x14] ss:$8 sps:$4 sm:$0xff]  }
 0x135   :  { %1479 = vmatprep.subr.bf16.mxu1 %v3743_v6  ;;  %4905 = vst [vmem:[#allocation40_spill] sm:$0xff] %v3755_v2  ;;  %4906 = vst [vmem:[#allocation15_spill] sm:$0xff] %v3761_v10  ;;  %v3767_v6 = vld [vmem:[%s4504_s1 + $0x114] ss:$8 sps:$4 sm:$0xff]  }
 0x136   :  { %4907 = vst [vmem:[#allocation42_spill] sm:$0xff] %v3767_v6 }
 0x137   :  { %1439 = vmatpush1.bf16.msra.mxu0 %v3749_v22  ;;  %v3773_v22 = vld [vmem:[%s4504_s1 + $0x10] ss:$8 sps:$4 sm:$0xff]  }
 0x138   :  { %1480 = vmatpush1.bf16.msra.mxu1 %v3755_v2  ;;  %1440 = vmatprep.subr.bf16.mxu0 %v3761_v10  ;;  %4908 = vst [vmem:[#allocation44_spill] sm:$0xff] %v3773_v22  ;;  %v3779_v2 = vld [vmem:[%s4504_s1 + $0x110] ss:$8 sps:$4 sm:$0xff]   ;;  %v3785_v10 = vld [vmem:[%s4504_s1 + $0x4] ss:$8 sps:$4 sm:$0xff]  }
 0x139   :  { %1481 = vmatprep.subr.bf16.mxu1 %v3767_v6  ;;  %4909 = vst [vmem:[#allocation16_spill] sm:$0xff] %v3779_v2  ;;  %4910 = vst [vmem:[#allocation17_spill] sm:$0xff] %v3785_v10  ;;  %v3791_v6 = vld [vmem:[%s4504_s1 + $0x104] ss:$8 sps:$4 sm:$0xff]  }
 0x13a   :  { %4911 = vst [vmem:[#allocation19_spill] sm:$0xff] %v3791_v6 }
 0x13b   :  { %1441 = vmatpush1.bf16.msra.mxu0 %v3773_v22  ;;  %v3797_v22 = vld [vmem:[%s4504_s1] ss:$8 sps:$4 sm:$0xff]  }
 0x13c   :  { %1482 = vmatpush1.bf16.msra.mxu1 %v3779_v2  ;;  %1442 = vmatprep.subr.bf16.mxu0 %v3785_v10  ;;  %4912 = vst [vmem:[#allocation21_spill] sm:$0xff] %v3797_v22  ;;  %v3803_v2 = vld [vmem:[%s4504_s1 + $0x100] ss:$8 sps:$4 sm:$0xff]   ;;  %v3809_v10 = vld [vmem:[%s4504_s1 + $0xf4] ss:$8 sps:$4 sm:$0xff]  }
 0x13d   :  { %1483 = vmatprep.subr.bf16.mxu1 %v3791_v6  ;;  %4913 = vst [vmem:[#allocation23_spill] sm:$0xff] %v3803_v2  ;;  %4914 = vst [vmem:[#allocation25_spill] sm:$0xff] %v3809_v10  ;;  %v3815_v6 = vld [vmem:[%s4504_s1 + $0x1f4] ss:$8 sps:$4 sm:$0xff]  }
 0x13e   :  { %4915 = vst [vmem:[#allocation27_spill] sm:$0xff] %v3815_v6 }
 0x13f   :  { %1443 = vmatpush1.bf16.msra.mxu0 %v3797_v22 }
 0x140   :  { %1484 = vmatpush1.bf16.msra.mxu1 %v3803_v2  ;;  %1444 = vmatprep.subr.bf16.mxu0 %v3809_v10  ;;  %v3822_v2 = vld [vmem:[%s4504_s1 + $0xf0] ss:$8 sps:$4 sm:$0xff]  }
 0x141   :  { %1485 = vmatprep.subr.bf16.mxu1 %v3815_v6  ;;  %4916 = vst [vmem:[#allocation29_spill] sm:$0xff] %v3822_v2  ;;  %v3828_v10 = vld [vmem:[%s4504_s1 + $0x1f0] ss:$8 sps:$4 sm:$0xff]  }
 0x142   :  { %v1044_v22 = vpop.f32.mrf.mxu0  ;;  %4917 = vst [vmem:[#allocation31_spill] sm:$0xff] %v3828_v10 }
 0x143   :  { %v1085_v0 = vpop.f32.mrf.mxu1  ;;  %v1045_v12 = vadd.f32 %v1044_v22, %v3563_v31  ;;  %1445 = vmatpush2.bf16.msra.mxu0 %v3822_v2  ;;  %v3834_v31 = vld [vmem:[%s4504_s1 + $0xe4] ss:$8 sps:$4 sm:$0xff]  }
 0x144   :  { %1486 = vmatpush2.bf16.msra.mxu1 %v3828_v10  ;;  %v1046_v39 = vpop.f32.mrf.mxu0  ;;  %4918 = vst [vmem:[#allocation33_spill] sm:$0xff] %v3834_v31  ;;  %1446 = vmatprep.subr.bf16.mxu0 %v3834_v31  ;;  %v3840_v22 = vld [vmem:[%s4504_s1 + $0x1e4] ss:$8 sps:$4 sm:$0xff]   ;;  %v3857_v31 = vld [vmem:[%s4504_s1 + $0x1e0] ss:$8 sps:$4 sm:$0xff]  }
 0x145   :  { %v1087_v6 = vpop.f32.mrf.mxu1  ;;  %4919 = vst [vmem:[#allocation35_spill] sm:$0xff] %v3840_v22  ;;  %1487 = vmatprep.subr.bf16.mxu1 %v3840_v22  ;;  %v3843_v2 = vadd.f32 %v1085_v0, %v1045_v12  ;;  %v1047_v10 = vadd.f32 %v1046_v39, %v3567_v5  ;;  %4920 = vst [vmem:[#allocation37_spill] sm:$0xff] %v3857_v31  ;;  %v3869_v5 = vld [vmem:[%s4504_s1 + $0x1d4] ss:$8 sps:$4 sm:$0xff]   ;;  %v3887_v12 = vld [vmem:[%s4504_s1 + $0xc4] ss:$8 sps:$4 sm:$0xff]  }
 0x146   :  { %v1048_v42 = vpop.f32.mrf.mxu0  ;;  %4921 = vst [vmem:[#allocation38_spill] sm:$0xff] %v3869_v5  ;;  %v3947_v22 = vld [vmem:[%s4504_s1 + $0xa0] ss:$8 sps:$4 sm:$0xff]  }
 0x147   :  { %v1089_v20 = vpop.f32.mrf.mxu1  ;;  %v3846_v43 = vadd.f32 %v1087_v6, %v1047_v10  ;;  %1447 = vmatpush2.bf16.msra.mxu0 %v3851_v4  ;;  %v3875_v42 = vld [vmem:[%s4504_s1 + $0xd0] ss:$8 sps:$4 sm:$0xff]   ;;  %v3893_v6 = vld [vmem:[%s4504_s1 + $0x1c4] ss:$8 sps:$4 sm:$0xff]   ;;  %4932 = vst [vmem:[#allocation63_spill] sm:$0xff] %v3947_v22 }
 0x148   :  { %1488 = vmatpush2.bf16.msra.mxu1 %v3857_v31  ;;  %v1049_v0 = vpop.f32.mrf.mxu0  ;;  %v3863_v20 = vld [vmem:[%s4504_s1 + $0xd4] ss:$8 sps:$4 sm:$0xff]   ;;  %v3881_v10 = vld [vmem:[%s4504_s1 + $0x1d0] ss:$8 sps:$4 sm:$0xff]   ;;  %4923 = vst [vmem:[#allocation41_spill] sm:$0xff] %v3893_v6 }
 0x149   :  { %v1090_v39 = vpop.f32.mrf.mxu1  ;;  %1448 = vmatprep.subr.bf16.mxu0 %v3863_v20  ;;  %1489 = vmatprep.subr.bf16.mxu1 %v3869_v5  ;;  %4922 = vst [vmem:[#allocation39_spill] sm:$0xff] %v3881_v10  ;;  %v3899_v0 = vld [vmem:[%s4504_s1 + $0xc0] ss:$8 sps:$4 sm:$0xff]   ;;  %v3923_v5 = vld [vmem:[%s4504_s1 + $0xb0] ss:$8 sps:$4 sm:$0xff]  }
 0x14a   :  { %4924 = vst [vmem:[#allocation43_spill] sm:$0xff] %v3899_v0  ;;  %v3905_v39 = vld [vmem:[%s4504_s1 + $0x1c0] ss:$8 sps:$4 sm:$0xff]   ;;  %4928 = vst [vmem:[#allocation55_spill] sm:$0xff] %v3923_v5  ;;  %v3935_v31 = vld [vmem:[%s4504_s1 + $0xa4] ss:$8 sps:$4 sm:$0xff]  }
 0x14b   :  { %1449 = vmatpush2.bf16.msra.mxu0 %v3875_v42  ;;  %4925 = vst [vmem:[#allocation49_spill] sm:$0xff] %v3905_v39  ;;  %4930 = vst [vmem:[#allocation59_spill] sm:$0xff] %v3935_v31 }
 0x14c   :  { %1490 = vmatpush2.bf16.msra.mxu1 %v3881_v10  ;;  %1450 = vmatprep.subr.bf16.mxu0 %v3887_v12  ;;  %v3911_v10 = vld [vmem:[%s4504_s1 + $0xb4] ss:$8 sps:$4 sm:$0xff]  }
 0x14d   :  { %1491 = vmatprep.subr.bf16.mxu1 %v3893_v6  ;;  %4926 = vst [vmem:[#allocation51_spill] sm:$0xff] %v3911_v10  ;;  %v3917_v6 = vld [vmem:[%s4504_s1 + $0x1b4] ss:$8 sps:$4 sm:$0xff]  }
 0x14e   :  { %4927 = vst [vmem:[#allocation53_spill] sm:$0xff] %v3917_v6 }
 0x14f   :  { %1451 = vmatpush2.bf16.msra.mxu0 %v3899_v0 }
 0x150   :  { %1492 = vmatpush2.bf16.msra.mxu1 %v3905_v39  ;;  %1452 = vmatprep.subr.bf16.mxu0 %v3911_v10  ;;  %v3929_v39 = vld [vmem:[%s4504_s1 + $0x1b0] ss:$8 sps:$4 sm:$0xff]  }
 0x151   :  { %1493 = vmatprep.subr.bf16.mxu1 %v3917_v6  ;;  %4929 = vst [vmem:[#allocation57_spill] sm:$0xff] %v3929_v39  ;;  %v3941_v6 = vld [vmem:[%s4504_s1 + $0x1a4] ss:$8 sps:$4 sm:$0xff]  }
 0x152   :  { %4931 = vst [vmem:[#allocation61_spill] sm:$0xff] %v3941_v6 }
 0x153   :  { %1453 = vmatpush2.bf16.msra.mxu0 %v3923_v5  ;;  %v3999_v5 = vld [vmem:[%s4505_s0 + $0x58] sm:$0xff] }
 0x154   :  { %1494 = vmatpush2.bf16.msra.mxu1 %v3929_v39  ;;  %1454 = vmatprep.subr.bf16.mxu0 %v3935_v31  ;;  %v3953_v39 = vld [vmem:[%s4504_s1 + $0x1a0] ss:$8 sps:$4 sm:$0xff]   ;;  %v3959_v31 = vld [vmem:[%s4504_s1 + $0x94] ss:$8 sps:$4 sm:$0xff]  }
 0x155   :  { %1495 = vmatprep.subr.bf16.mxu1 %v3941_v6  ;;  %4933 = vst [vmem:[#allocation65_spill] sm:$0xff] %v3953_v39  ;;  %4934 = vst [vmem:[#allocation67_spill] sm:$0xff] %v3959_v31  ;;  %v3965_v6 = vld [vmem:[%s4504_s1 + $0x194] ss:$8 sps:$4 sm:$0xff]  }
 0x156   :  { %4935 = vst [vmem:[#allocation69_spill] sm:$0xff] %v3965_v6 }
 0x157   :  { %1455 = vmatpush2.bf16.msra.mxu0 %v3947_v22  ;;  %v3971_v22 = vld [vmem:[%s4504_s1 + $0x90] ss:$8 sps:$4 sm:$0xff]  }
 0x158   :  { %1496 = vmatpush2.bf16.msra.mxu1 %v3953_v39  ;;  %1456 = vmatprep.subr.bf16.mxu0 %v3959_v31  ;;  %4936 = vst [vmem:[#allocation71_spill] sm:$0xff] %v3971_v22  ;;  %v3977_v39 = vld [vmem:[%s4504_s1 + $0x190] ss:$8 sps:$4 sm:$0xff]   ;;  %v3983_v31 = vld [vmem:[%s4504_s1 + $0x84] ss:$8 sps:$4 sm:$0xff]  }
 0x159   :  { %1497 = vmatprep.subr.bf16.mxu1 %v3965_v6  ;;  %4937 = vst [vmem:[#allocation73_spill] sm:$0xff] %v3977_v39  ;;  %4938 = vst [vmem:[#allocation75_spill] sm:$0xff] %v3983_v31  ;;  %v3989_v6 = vld [vmem:[%s4504_s1 + $0x184] ss:$8 sps:$4 sm:$0xff]  }
 0x15a   :  { %4939 = vst [vmem:[#allocation92_spill] sm:$0xff] %v3989_v6 }
 0x15b   :  { %1457 = vmatpush2.bf16.msra.mxu0 %v3971_v22  ;;  %v2070_v22 = vcombine.low %v3601_v14, %v3601_v14  ;;  %v4015_v14 = vld [vmem:[%s4504_s1 + $0x180] ss:$8 sps:$4 sm:$0xff]  }
 0x15c   :  { %1498 = vmatpush2.bf16.msra.mxu1 %v3977_v39  ;;  %1458 = vmatprep.subr.bf16.mxu0 %v3983_v31  ;;  %v2072_v39 = vcombine.low %v3606_v18, %v3606_v18  ;;  %v4004_v31 = vld [vmem:[%s4505_s0 + $0x60] sm:$0xff]  ;;  %4941 = vst [vmem:[#allocation94_spill] sm:$0xff] %v4015_v14  ;;  %v2075_v18 = vcombine.high %v3999_v5, %v3999_v5 }
 0x15d   :  { %1499 = vmatprep.subr.bf16.mxu1 %v3989_v6  ;;  %v4009_v6 = vld [vmem:[%s4504_s1 + $0x80] ss:$8 sps:$4 sm:$0xff]   ;;  %v2077_v10 = vcombine.high %v4004_v31, %v4004_v31 }
 0x15e   :  { %4940 = vst [vmem:[#allocation93_spill] sm:$0xff] %v4009_v6 }
 0x15f   :  { %1459 = vmatpush2.bf16.msra.mxu0 %v4009_v6 }
 0x160   :  { %1500 = vmatpush2.bf16.msra.mxu1 %v4015_v14  ;;  %1510 = vmatprep.subr.bf16.mxu0 %v2902_v61 }
 0x161   :  { %1551 = vmatprep.subr.bf16.mxu1 %v4836_v58 }
 0x162   :  { %v1126_v0 = vpop.f32.mrf.mxu0  ;;  %1461 = vmatmul.mubr.bf16.vlgmr.msra.gmra.mxu0 %v2070_v22  ;;  %v4974_v22 = vld [vmem:[#allocation83_spill] sm:$0xff] }
 0x163   :  { %1502 = vmatmul.mubr.bf16.vlgmr.msra.gmra.mxu1 %v2072_v39  ;;  %v4025_v6 = vadd.f32 %v1126_v0, %v3843_v2  ;;  %1511 = vmatpush1.bf16.msra.mxu0 %v2912_v50  ;;  %v4942_v50 = vld [vmem:[#allocation45_spill] sm:$0xff]  ;;  %v4977_v0 = vld [vmem:[#allocation10_spill] sm:$0xff] }
 0x164   :  { %1552 = vmatpush1.bf16.msra.mxu1 %v4838_v62  ;;  %v1128_v14 = vpop.f32.mrf.mxu0  ;;  %1512 = vmatprep.subr.bf16.mxu0 %v4810_v9  ;;  %v4945_v9 = vld [vmem:[#allocation48_spill] sm:$0xff]  ;;  %v4978_v39 = vld [vmem:[#allocation85_spill] sm:$0xff] }
 0x165   :  { %1553 = vmatprep.subr.bf16.mxu1 %v4840_v57  ;;  %v4032_v61 = vadd.f32 %v1128_v14, %v3846_v43  ;;  %1542 = vmatprep.mubr.bf16.mxu0 %v2075_v18  ;;  %v4957_v62 = vld [vmem:[#allocation72_spill] sm:$0xff]  ;;  %v2076_v57 = vcombine.low %v4004_v31, %v4004_v31  ;;  %v4979_v14 = vld [vmem:[#allocation11_spill] sm:$0xff]  ;;  %v4980_v18 = vld [vmem:[#allocation86_spill] sm:$0xff]  ;;  %vm1133_vm0 = vcmp.ge.f32.partialorder %v4025_v6, 0.0 }
 0x166   :  { %1583 = vmatprep.mubr.bf16.mxu1 %v2077_v10  ;;  %v1130_v58 = vpop.f32.mrf.mxu0  ;;  %v4973_v31 = vld [vmem:[#allocation8_spill] sm:$0xff] }
 0x167   :  { %1513 = vmatpush1.bf16.msra.mxu0 %v4812_v13  ;;  %v4976_v10 = vld [vmem:[#allocation84_spill] sm:$0xff]  ;;  %vm1134_vm2 = vcmp.ge.f32.partialorder %v4032_v61, 0.0 }
 0x168   :  { %1554 = vmatpush1.bf16.msra.mxu1 %v4842_v47  ;;  %v1131_v2 = vpop.f32.mrf.mxu0  ;;  %1514 = vmatprep.subr.bf16.mxu0 %v4814_v17  ;;  %v4946_v17 = vld [vmem:[#allocation50_spill] sm:$0xff]  ;;  %v4097_v47 = vld [vmem:[%s4505_s0 + $0x6c] sm:$0xff] }
 0x169   :  { %1555 = vmatprep.subr.bf16.mxu1 %v4844_v1  ;;  %v4958_v1 = vld [vmem:[#allocation74_spill] sm:$0xff]  ;;  %v4981_v58 = vld [vmem:[#allocation12_spill] sm:$0xff]  ;;  %v4982_v2 = vld [vmem:[#allocation87_spill] sm:$0xff] }
 0x16b   :  { %1515 = vmatpush1.bf16.msra.mxu0 %v4816_v21 }
 0x16c   :  { %1556 = vmatpush1.bf16.msra.mxu1 %v4846_v7  ;;  %1516 = vmatprep.subr.bf16.mxu0 %v4818_v25  ;;  %v4947_v25 = vld [vmem:[#allocation52_spill] sm:$0xff] }
 0x16d   :  { %1557 = vmatprep.subr.bf16.mxu1 %v4848_v15  ;;  %v4959_v7 = vld [vmem:[#allocation76_spill] sm:$0xff]  ;;  %v2085_v15 = vcombine.high %v4097_v47, %v4097_v47 }
 0x16f   :  { %1517 = vmatpush1.bf16.msra.mxu0 %v4820_v28  ;;  %v4948_v28 = vld [vmem:[#allocation54_spill] sm:$0xff] }
 0x170   :  { %1558 = vmatpush1.bf16.msra.mxu1 %v4850_v23  ;;  %1518 = vmatprep.subr.bf16.mxu0 %v4822_v30  ;;  %v4949_v30 = vld [vmem:[#allocation56_spill] sm:$0xff] }
 0x171   :  { %1559 = vmatprep.subr.bf16.mxu1 %v4852_v29 }
 0x173   :  { %1519 = vmatpush1.bf16.msra.mxu0 %v4824_v32  ;;  %v4950_v32 = vld [vmem:[#allocation58_spill] sm:$0xff] }
 0x174   :  { %1560 = vmatpush1.bf16.msra.mxu1 %v4854_v33  ;;  %1520 = vmatprep.subr.bf16.mxu0 %v4826_v34  ;;  %v4951_v34 = vld [vmem:[#allocation60_spill] sm:$0xff]  ;;  %v4961_v33 = vld [vmem:[#allocation77_spill] sm:$0xff] }
 0x175   :  { %1561 = vmatprep.subr.bf16.mxu1 %v4856_v40  ;;  %v4962_v40 = vld [vmem:[#allocation3_spill] sm:$0xff] }
 0x177   :  { %1521 = vmatpush1.bf16.msra.mxu0 %v4828_v36  ;;  %v4952_v36 = vld [vmem:[#allocation62_spill] sm:$0xff] }
 0x178   :  { %1562 = vmatpush1.bf16.msra.mxu1 %v4858_v45  ;;  %1522 = vmatprep.subr.bf16.mxu0 %v3046_v51  ;;  %v4943_v51 = vld [vmem:[#allocation46_spill] sm:$0xff] }
 0x179   :  { %1563 = vmatprep.subr.bf16.mxu1 %v4860_v41  ;;  %v4944_v41 = vld [vmem:[#allocation47_spill] sm:$0xff]  ;;  %v4963_v45 = vld [vmem:[#allocation78_spill] sm:$0xff] }
 0x17b   :  { %1523 = vmatpush1.bf16.msra.mxu0 %v3066_v55 }
 0x17c   :  { %1564 = vmatpush1.bf16.msra.mxu1 %v4862_v19  ;;  %1524 = vmatprep.subr.bf16.mxu0 %v4832_v44  ;;  %v4953_v44 = vld [vmem:[#allocation64_spill] sm:$0xff] }
 0x17d   :  { %1565 = vmatprep.subr.bf16.mxu1 %v4863_v11 }
 0x17f   :  { %1525 = vmatpush1.bf16.msra.mxu0 %v4834_v54  ;;  %v4954_v54 = vld [vmem:[#allocation66_spill] sm:$0xff] }
 0x180   :  { %1566 = vmatpush1.bf16.msra.mxu1 %v4864_v59  ;;  %1526 = vmatprep.subr.bf16.mxu0 %v4835_v56  ;;  %v4955_v56 = vld [vmem:[#allocation68_spill] sm:$0xff] }
 0x181   :  { %1567 = vmatprep.subr.bf16.mxu1 %v4942_v50  ;;  %v4964_v59 = vld [vmem:[#allocation4_spill] sm:$0xff]  ;;  %v4983_v50 = vld [vmem:[#allocation14_spill] sm:$0xff] }
 0x183   :  { %v1211_v43 = vpop.f32.mrf.mxu1  ;;  %1527 = vmatpush2.bf16.msra.mxu0 %v4943_v51  ;;  %v4985_v51 = vld [vmem:[#allocation15_spill] sm:$0xff] }
 0x184   :  { %1568 = vmatpush2.bf16.msra.mxu1 %v4944_v41  ;;  %1528 = vmatprep.subr.bf16.mxu0 %v4945_v9  ;;  %v4986_v41 = vld [vmem:[#allocation89_spill] sm:$0xff]  ;;  %v4988_v9 = vld [vmem:[#allocation90_spill] sm:$0xff] }
 0x185   :  { %v1213_v55 = vpop.f32.mrf.mxu1  ;;  %1569 = vmatprep.subr.bf16.mxu1 %v4868_v60  ;;  %v4956_v60 = vld [vmem:[#allocation70_spill] sm:$0xff] }
 0x186   :  { %v1214_v23 = vadd.f32 %v1213_v55, %v3556_v37  ;;  %v4987_v55 = vld [vmem:[#allocation44_spill] sm:$0xff] }
 0x187   :  { %v1215_v13 = vpop.f32.mrf.mxu1  ;;  %1529 = vmatpush2.bf16.msra.mxu0 %v4946_v17  ;;  %v2336_v17 = vld [vmem:[%s4505_s0 + $0x68] ss:$0 sps:$4 sm:$0xff]  }
 0x188   :  { %1570 = vmatpush2.bf16.msra.mxu1 %v4870_v26  ;;  %1530 = vmatprep.subr.bf16.mxu0 %v4947_v25  ;;  %v4989_v13 = vld [vmem:[#allocation17_spill] sm:$0xff]  ;;  %v4990_v25 = vld [vmem:[#allocation91_spill] sm:$0xff] }
 0x189   :  { %v1216_v21 = vpop.f32.mrf.mxu1  ;;  %1571 = vmatprep.subr.bf16.mxu1 %v4871_v48  ;;  %v2074_v48 = vcombine.low %v3999_v5, %v3999_v5  ;;  %v4975_v5 = vld [vmem:[#allocation9_spill] sm:$0xff] }
 0x18a   :  { %v4142_v21 = vld [vmem:[%s4505_s0 + $0x74] sm:$0xff] }
 0x18b   :  { %1531 = vmatpush2.bf16.msra.mxu0 %v4948_v28  ;;  %v4991_v28 = vld [vmem:[#allocation21_spill] sm:$0xff] }
 0x18c   :  { %1572 = vmatpush2.bf16.msra.mxu1 %v4872_v24  ;;  %1532 = vmatprep.subr.bf16.mxu0 %v4949_v30  ;;  %v4965_v24 = vmov 0   ;;  %v4992_v30 = vld [vmem:[#allocation25_spill] sm:$0xff] }
 0x18d   :  { %1573 = vmatprep.subr.bf16.mxu1 %v4873_v52 }
 0x18f   :  { %1533 = vmatpush2.bf16.msra.mxu0 %v4950_v32  ;;  %v4993_v32 = vld [vmem:[#allocation18_spill] sm:$0xff] }
 0x190   :  { %1574 = vmatpush2.bf16.msra.mxu1 %v4874_v53  ;;  %1534 = vmatprep.subr.bf16.mxu0 %v4951_v34  ;;  %v4966_v53 = vld [vmem:[#allocation79_spill] sm:$0xff]  ;;  %v2087_v34 = vcombine.high %v4142_v21, %v4142_v21 }
 0x191   :  { %1575 = vmatprep.subr.bf16.mxu1 %v4875_v49  ;;  %v4967_v49 = vld [vmem:[#allocation5_spill] sm:$0xff] }
 0x193   :  { %1535 = vmatpush2.bf16.msra.mxu0 %v4952_v36 }
 0x194   :  { %1576 = vmatpush2.bf16.msra.mxu1 %v4876_v63  ;;  %1536 = vmatprep.subr.bf16.mxu0 %v4953_v44 }
 0x195   :  { %1577 = vmatprep.subr.bf16.mxu1 %v4877_v27  ;;  %v4968_v27 = vld [vmem:[#allocation80_spill] sm:$0xff] }
 0x197   :  { %1537 = vmatpush2.bf16.msra.mxu0 %v4954_v54  ;;  %v4994_v54 = vld [vmem:[#allocation29_spill] sm:$0xff] }
 0x198   :  { %1578 = vmatpush2.bf16.msra.mxu1 %v4878_v3  ;;  %1538 = vmatprep.subr.bf16.mxu0 %v4955_v56  ;;  %v4969_v3 = vld [vmem:[#allocation6_spill] sm:$0xff]  ;;  %v4995_v56 = vld [vmem:[#allocation20_spill] sm:$0xff] }
 0x199   :  { %1579 = vmatprep.subr.bf16.mxu1 %v4879_v38  ;;  %v4970_v38 = vld [vmem:[#allocation81_spill] sm:$0xff] }
 0x19b   :  { %1539 = vmatpush2.bf16.msra.mxu0 %v4956_v60 }
 0x19c   :  { %1580 = vmatpush2.bf16.msra.mxu1 %v4880_v35  ;;  %1540 = vmatprep.subr.bf16.mxu0 %v4957_v62  ;;  %v4971_v35 = vld [vmem:[#allocation7_spill] sm:$0xff]  ;;  %v4996_v62 = vld [vmem:[#allocation33_spill] sm:$0xff] }
 0x19d   :  { %1581 = vmatprep.subr.bf16.mxu1 %v4881_v8  ;;  %v4960_v8 = vld [vmem:[#allocation2_spill] sm:$0xff] }
 0x19e   :  { %v1212_v11 = vadd.f32 %v1211_v43, %v4960_v8  ;;  %v4984_v43 = vld [vmem:[#allocation88_spill] sm:$0xff] }
 0x19f   :  { %1541 = vmatpush2.bf16.msra.mxu0 %v4958_v1 }
 0x1a0   :  { %1582 = vmatpush2.bf16.msra.mxu1 %v4882_v16  ;;  %1592 = vmatprep.subr.bf16.mxu0 %v4959_v7  ;;  %v4998_v7 = vld [vmem:[#allocation24_spill] sm:$0xff] }
 0x1a1   :  { %1677 = vmatprep.subr.bf16.mxu1 %v3613_v46  ;;  %v4972_v46 = vld [vmem:[#allocation82_spill] sm:$0xff] }
 0x1a2   :  { %v1252_v19 = vpop.f32.mrf.mxu0  ;;  %1543 = vmatmul.mubr.bf16.vlgmr.msra.gmra.mxu0 %v2074_v48  ;;  %v4997_v48 = vld [vmem:[#allocation22_spill] sm:$0xff] }
 0x1a3   :  { %1584 = vmatmul.mubr.bf16.vlgmr.msra.gmra.mxu1 %v2076_v57  ;;  %v1253_v29 = vadd.f32 %v1252_v19, %v1212_v11  ;;  %1593 = vmatpush1.bf16.msra.mxu0 %v4961_v33  ;;  %v5000_v19 = vld [vmem:[#allocation28_spill] sm:$0xff] }
 0x1a4   :  { %1678 = vmatpush1.bf16.msra.mxu1 %v4962_v40  ;;  %v1254_v16 = vpop.f32.mrf.mxu0  ;;  %1594 = vmatprep.subr.bf16.mxu0 %v4963_v45  ;;  %v5003_v33 = vld [vmem:[#allocation32_spill] sm:$0xff]  ;;  %v5005_v40 = vld [vmem:[#allocation34_spill] sm:$0xff]  ;;  %v5008_v45 = vld [vmem:[#allocation59_spill] sm:$0xff] }
 0x1a5   :  { %1679 = vmatprep.subr.bf16.mxu1 %v4964_v59  ;;  %v1255_v26 = vadd.f32 %v1254_v16, %v1214_v23  ;;  %1624 = vmatprep.mubr.bf16.mxu0 %v4965_v24  ;;  %v5001_v23 = vld [vmem:[#allocation30_spill] sm:$0xff]  ;;  %v5006_v16 = vld [vmem:[#allocation55_spill] sm:$0xff] }
 0x1a6   :  { %1709 = vmatprep.mubr.bf16.mxu1 %v2085_v15  ;;  %v1256_v52 = vpop.f32.mrf.mxu0  ;;  %v4999_v15 = vld [vmem:[#allocation26_spill] sm:$0xff]  ;;  %v5010_v59 = vld [vmem:[#allocation63_spill] sm:$0xff] }
 0x1a7   :  { %1595 = vmatpush1.bf16.msra.mxu0 %v4966_v53  ;;  %v5013_v52 = vld [vmem:[#allocation42_spill] sm:$0xff]  ;;  %v5014_v53 = vld [vmem:[#allocation71_spill] sm:$0xff] }
 0x1a8   :  { %1680 = vmatpush1.bf16.msra.mxu1 %v4967_v49  ;;  %v1257_v63 = vpop.f32.mrf.mxu0  ;;  %1596 = vmatprep.subr.bf16.mxu0 %v4968_v27  ;;  %v5015_v49 = vld [vmem:[#allocation16_spill] sm:$0xff]  ;;  %v5017_v27 = vld [vmem:[#allocation19_spill] sm:$0xff] }
 0x1a9   :  { %1681 = vmatprep.subr.bf16.mxu1 %v4969_v3  ;;  %v5016_v63 = vld [vmem:[#allocation75_spill] sm:$0xff]  ;;  %v2084_v3 = vcombine.low %v4097_v47, %v4097_v47 }
 0x1ab   :  { %1597 = vmatpush1.bf16.msra.mxu0 %v4970_v38  ;;  %v4183_v38 = vld [vmem:[%s4505_s0 + $0x7c] sm:$0xff] }
 0x1ac   :  { %1682 = vmatpush1.bf16.msra.mxu1 %v4971_v35  ;;  %1598 = vmatprep.subr.bf16.mxu0 %v4972_v46  ;;  %v5018_v35 = vld [vmem:[#allocation93_spill] sm:$0xff]  ;;  %v5019_v46 = vld [vmem:[#allocation23_spill] sm:$0xff] }
 0x1ad   :  { %1683 = vmatprep.subr.bf16.mxu1 %v4973_v31  ;;  %v5020_v31 = vld [vmem:[#allocation27_spill] sm:$0xff] }
 0x1af   :  { %1599 = vmatpush1.bf16.msra.mxu0 %v4974_v22  ;;  %v2410_v22 = vld [vmem:[%s4504_s1 + $0x274] ss:$8 sps:$4 sm:$0xff]  }
 0x1b0   :  { %1684 = vmatpush1.bf16.msra.mxu1 %v4975_v5  ;;  %1600 = vmatprep.subr.bf16.mxu0 %v4976_v10  ;;  %v2089_v5 = vcombine.high %v4183_v38, %v4183_v38 }
 0x1b1   :  { %1685 = vmatprep.subr.bf16.mxu1 %v4977_v0 }
 0x1b3   :  { %1601 = vmatpush1.bf16.msra.mxu0 %v4978_v39  ;;  %v5021_v39 = vld [vmem:[#allocation31_spill] sm:$0xff] }
 0x1b4   :  { %1686 = vmatpush1.bf16.msra.mxu1 %v4979_v14  ;;  %1602 = vmatprep.subr.bf16.mxu0 %v4980_v18  ;;  %v2411_v14 = vld [vmem:[%s4504_s1 + $0x270] ss:$8 sps:$4 sm:$0xff]  }
 0x1b5   :  { %1687 = vmatprep.subr.bf16.mxu1 %v4981_v58 }
 0x1b7   :  { %1603 = vmatpush1.bf16.msra.mxu0 %v4982_v2  ;;  %v5022_v2 = vld [vmem:[#allocation35_spill] sm:$0xff] }
 0x1b8   :  { %1688 = vmatpush1.bf16.msra.mxu1 %v4983_v50  ;;  %1604 = vmatprep.subr.bf16.mxu0 %v4984_v43  ;;  %v2412_v50 = vld [vmem:[%s4504_s1 + $0x264] ss:$8 sps:$4 sm:$0xff]   ;;  %v1135_v43 = vmul.f32 0.01, %v4025_v6 }
 0x1b9   :  { %1689 = vmatprep.subr.bf16.mxu1 %v4985_v51 }
 0x1bb   :  { %1605 = vmatpush1.bf16.msra.mxu0 %v4986_v41 }
 0x1bc   :  { %1690 = vmatpush1.bf16.msra.mxu1 %v4987_v55  ;;  %1606 = vmatprep.subr.bf16.mxu0 %v4988_v9 }
 0x1bd   :  { %1691 = vmatprep.subr.bf16.mxu1 %v4989_v13  ;;  %v1136_v13 = vmul.f32 0.01, %v4032_v61 }
 0x1bf   :  { %1607 = vmatpush1.bf16.msra.mxu0 %v4990_v25 }
 0x1c0   :  { %1692 = vmatpush1.bf16.msra.mxu1 %v4991_v28  ;;  %1718 = vmatprep.subr.bf16.mxu0 %v4993_v32  ;;  %v5023_v28 = vld [vmem:[#allocation37_spill] sm:$0xff] }
 0x1c1   :  { %1693 = vmatprep.subr.bf16.mxu1 %v4992_v30  ;;  %v2413_v30 = vld [vmem:[%s4504_s1 + $0x260] ss:$8 sps:$4 sm:$0xff]  }
 0x1c2   :  { %1625 = vmatmul.mubr.bf16.vlgmr.msra.gmra.mxu0 %v2336_v17 }
 0x1c3   :  { %v1293_v36 = vpop.f32.mrf.mxu1  ;;  %1719 = vmatpush1.bf16.msra.mxu0 %v4995_v56  ;;  %1750 = vmatprep.mubr.bf16.mxu0 %v2087_v34 }
 0x1c4   :  { %v1294_v44 = vadd.f32 %v1293_v36, %v1253_v29  ;;  %1694 = vmatpush2.bf16.msra.mxu1 %v4994_v54  ;;  %1720 = vmatprep.subr.bf16.mxu0 %v4997_v48  ;;  %v5002_v29 = vld [vmem:[#allocation43_spill] sm:$0xff]  ;;  %v5024_v36 = vld [vmem:[#allocation38_spill] sm:$0xff]  ;;  %v4216_v54 = vsel %vm1133_vm0, %v4025_v6, %v1135_v43  ;;  %v4223_v48 = vsel %vm1134_vm2, %v4032_v61, %v1136_v13  ;;  %v5027_v61 = vld [vmem:[#allocation49_spill] sm:$0xff] }
 0x1c5   :  { %v1295_v60 = vpop.f32.mrf.mxu1  ;;  %1695 = vmatprep.subr.bf16.mxu1 %v4996_v62  ;;  %v2440_v43 = vld [vmem:[%s4504_s1 + $0x2c0] ss:$8 sps:$4 sm:$0xff]   ;;  %v2445_v13 = vld [vmem:[%s4504_s1 + $0x330] ss:$8 sps:$4 sm:$0xff]  }
 0x1c6   :  { %v1296_v57 = vadd.f32 %v1295_v60, %v1255_v26  ;;  %v5012_v26 = vld [vmem:[#allocation67_spill] sm:$0xff] }
 0x1c7   :  { %v1297_v1 = vpop.f32.mrf.mxu1  ;;  %1721 = vmatpush1.bf16.msra.mxu0 %v4998_v7  ;;  %v2415_v7 = vld [vmem:[%s4504_s1 + $0x250] ss:$8 sps:$4 sm:$0xff]  }
 0x1c8   :  { %1696 = vmatpush2.bf16.msra.mxu1 %v3851_v4  ;;  %1722 = vmatprep.subr.bf16.mxu0 %v4999_v15  ;;  %v5004_v4 = vld [vmem:[#allocation51_spill] sm:$0xff] }
 0x1c9   :  { %v1298_v11 = vpop.f32.mrf.mxu1  ;;  %1697 = vmatprep.subr.bf16.mxu1 %v3863_v20  ;;  %v5007_v20 = vld [vmem:[#allocation36_spill] sm:$0xff]  ;;  %v5025_v1 = vld [vmem:[#allocation39_spill] sm:$0xff] }
 0x1ca   :  { %v5026_v11 = vld [vmem:[#allocation41_spill] sm:$0xff]  ;;  %v2416_v15 = vld [vmem:[%s4504_s1 + $0x244] ss:$8 sps:$4 sm:$0xff]  }
 0x1cb   :  { %1723 = vmatpush1.bf16.msra.mxu0 %v5000_v19  ;;  %v2417_v19 = vld [vmem:[%s4504_s1 + $0x240] ss:$8 sps:$4 sm:$0xff]  }
 0x1cc   :  { %1698 = vmatpush2.bf16.msra.mxu1 %v3875_v42  ;;  %1724 = vmatprep.subr.bf16.mxu0 %v5001_v23  ;;  %v5009_v42 = vld [vmem:[#allocation13_spill] sm:$0xff] }
 0x1cd   :  { %1699 = vmatprep.subr.bf16.mxu1 %v3887_v12  ;;  %v5011_v12 = vld [vmem:[#allocation40_spill] sm:$0xff]  ;;  %v5028_v23 = vld [vmem:[#allocation53_spill] sm:$0xff] }
 0x1cf   :  { %1725 = vmatpush1.bf16.msra.mxu0 %v5003_v33  ;;  %v5029_v33 = vld [vmem:[#allocation57_spill] sm:$0xff] }
 0x1d0   :  { %1700 = vmatpush2.bf16.msra.mxu1 %v5002_v29  ;;  %1726 = vmatprep.subr.bf16.mxu0 %v5005_v40  ;;  %v2418_v29 = vld [vmem:[%s4504_s1 + $0x234] ss:$8 sps:$4 sm:$0xff]  }
 0x1d1   :  { %1701 = vmatprep.subr.bf16.mxu1 %v5004_v4  ;;  %v2419_v4 = vld [vmem:[%s4504_s1 + $0x230] ss:$8 sps:$4 sm:$0xff]  }
 0x1d2   :  { %v5030_v40 = vld [vmem:[#allocation61_spill] sm:$0xff] }
 0x1d3   :  { %1727 = vmatpush1.bf16.msra.mxu0 %v5007_v20  ;;  %v5031_v20 = vld [vmem:[#allocation65_spill] sm:$0xff] }
 0x1d4   :  { %1702 = vmatpush2.bf16.msra.mxu1 %v5006_v16  ;;  %1728 = vmatprep.subr.bf16.mxu0 %v5009_v42  ;;  %v2420_v16 = vld [vmem:[%s4504_s1 + $0x224] ss:$8 sps:$4 sm:$0xff]   ;;  %v5032_v42 = vld [vmem:[#allocation69_spill] sm:$0xff] }
 0x1d5   :  { %1703 = vmatprep.subr.bf16.mxu1 %v5008_v45  ;;  %v2421_v45 = vld [vmem:[%s4504_s1 + $0x220] ss:$8 sps:$4 sm:$0xff]  }
 0x1d7   :  { %1729 = vmatpush1.bf16.msra.mxu0 %v5011_v12  ;;  %v5033_v12 = vld [vmem:[#allocation73_spill] sm:$0xff] }
 0x1d8   :  { %1704 = vmatpush2.bf16.msra.mxu1 %v5010_v59  ;;  %1730 = vmatprep.subr.bf16.mxu0 %v5013_v52  ;;  %v2422_v59 = vld [vmem:[%s4504_s1 + $0x214] ss:$8 sps:$4 sm:$0xff]  }
 0x1d9   :  { %1705 = vmatprep.subr.bf16.mxu1 %v5012_v26  ;;  %v2423_v26 = vld [vmem:[%s4504_s1 + $0x210] ss:$8 sps:$4 sm:$0xff]  }
 0x1da   :  { %v5034_v52 = vld [vmem:[#allocation92_spill] sm:$0xff] }
 0x1db   :  { %1731 = vmatpush1.bf16.msra.mxu0 %v5015_v49  ;;  %v2086_v49 = vcombine.low %v4142_v21, %v4142_v21  ;;  %v2427_v21 = vld [vmem:[%s4504_s1 + $0x374] ss:$8 sps:$4 sm:$0xff]  }
 0x1dc   :  { %1706 = vmatpush2.bf16.msra.mxu1 %v5014_v53  ;;  %1732 = vmatprep.subr.bf16.mxu0 %v5017_v27  ;;  %v2424_v53 = vld [vmem:[%s4504_s1 + $0x204] ss:$8 sps:$4 sm:$0xff]  }
 0x1dd   :  { %1707 = vmatprep.subr.bf16.mxu1 %v5016_v63  ;;  %v4274_v63 = vld [vmem:[%s4505_s0 + $0x84] sm:$0xff] }
 0x1de   :  { %v5035_v27 = vld [vmem:[#allocation94_spill] sm:$0xff] }
 0x1df   :  { %1733 = vmatpush1.bf16.msra.mxu0 %v5019_v46  ;;  %v2091_v46 = vcombine.high %v4274_v63, %v4274_v63 }
 0x1e0   :  { %1708 = vmatpush2.bf16.msra.mxu1 %v5018_v35  ;;  %1734 = vmatprep.subr.bf16.mxu0 %v5020_v31  ;;  %v2426_v35 = vld [vmem:[%s4504_s1 + $0x2f4] ss:$8 sps:$4 sm:$0xff]   ;;  %v2428_v31 = vld [vmem:[%s4504_s1 + $0x2f0] ss:$8 sps:$4 sm:$0xff]  }
 0x1e1   :  { %1759 = vmatprep.subr.bf16.mxu1 %v2410_v22  ;;  %v2429_v22 = vld [vmem:[%s4504_s1 + $0x370] ss:$8 sps:$4 sm:$0xff]  }
 0x1e2   :  { %v1334_v47 = vpop.f32.mrf.mxu0 }
 0x1e3   :  { %v1375_v10 = vpop.f32.mrf.mxu1  ;;  %1710 = vmatmul.mubr.bf16.vlgmr.msra.gmra.mxu1 %v2084_v3  ;;  %v1335_v0 = vadd.f32 %v1334_v47, %v1294_v44  ;;  %1735 = vmatpush2.bf16.msra.mxu0 %v5021_v39  ;;  %v2414_v44 = vld [vmem:[%s4504_s1 + $0x254] ss:$8 sps:$4 sm:$0xff]   ;;  %v2425_v3 = vld [vmem:[%s4504_s1 + $0x200] ss:$8 sps:$4 sm:$0xff]   ;;  %v2431_v47 = vld [vmem:[%s4504_s1 + $0x364] ss:$8 sps:$4 sm:$0xff]  }
 0x1e4   :  { %1760 = vmatpush1.bf16.msra.mxu1 %v2411_v14  ;;  %v1336_v18 = vpop.f32.mrf.mxu0  ;;  %1736 = vmatprep.subr.bf16.mxu0 %v5022_v2  ;;  %v2434_v39 = vld [vmem:[%s4504_s1 + $0x2d4] ss:$8 sps:$4 sm:$0xff]   ;;  %v2438_v2 = vld [vmem:[%s4504_s1 + $0x2c4] ss:$8 sps:$4 sm:$0xff]  }
 0x1e5   :  { %v1377_v58 = vpop.f32.mrf.mxu1  ;;  %1761 = vmatprep.subr.bf16.mxu1 %v2412_v50  ;;  %v1376_v51 = vadd.f32 %v1375_v10, %v1335_v0  ;;  %v1337_v41 = vadd.f32 %v1336_v18, %v1296_v57  ;;  %1791 = vmatprep.mubr.bf16.mxu1 %v2089_v5  ;;  %v2430_v5 = vld [vmem:[%s4504_s1 + $0x2e4] ss:$8 sps:$4 sm:$0xff]   ;;  %v2432_v10 = vld [vmem:[%s4504_s1 + $0x2e0] ss:$8 sps:$4 sm:$0xff]   ;;  %v2435_v14 = vld [vmem:[%s4504_s1 + $0x354] ss:$8 sps:$4 sm:$0xff]  }
 0x1e6   :  { %v1338_v55 = vpop.f32.mrf.mxu0  ;;  %v2433_v0 = vld [vmem:[%s4504_s1 + $0x360] ss:$8 sps:$4 sm:$0xff]   ;;  %v2436_v18 = vld [vmem:[%s4504_s1 + $0x2d0] ss:$8 sps:$4 sm:$0xff]   ;;  %v2439_v50 = vld [vmem:[%s4504_s1 + $0x344] ss:$8 sps:$4 sm:$0xff]  }
 0x1e7   :  { %v1379_v9 = vpop.f32.mrf.mxu1  ;;  %vm1382_vm1 = vcmp.ge.f32.partialorder %v1376_v51, 0.0  ;;  %v1384_v17 = vmul.f32 0.01, %v1376_v51  ;;  %v1378_v25 = vadd.f32 %v1377_v58, %v1337_v41  ;;  %1737 = vmatpush2.bf16.msra.mxu0 %v5023_v28  ;;  %v2437_v58 = vld [vmem:[%s4504_s1 + $0x350] ss:$8 sps:$4 sm:$0xff]  }
 0x1e8   :  { %1762 = vmatpush1.bf16.msra.mxu1 %v2413_v30  ;;  %v1339_v32 = vpop.f32.mrf.mxu0  ;;  %1738 = vmatprep.subr.bf16.mxu0 %v5024_v36  ;;  %v2442_v41 = vld [vmem:[%s4504_s1 + $0x2b4] ss:$8 sps:$4 sm:$0xff]   ;;  %v2444_v9 = vld [vmem:[%s4504_s1 + $0x2b0] ss:$8 sps:$4 sm:$0xff]   ;;  %v2448_v28 = vld [vmem:[%s4504_s1 + $0x2a0] ss:$8 sps:$4 sm:$0xff]  }
 0x1e9   :  { %v1380_v34 = vpop.f32.mrf.mxu1  ;;  %1763 = vmatprep.subr.bf16.mxu1 %v2414_v44  ;;  %v4218_v56 = vsel %vm1382_vm1, %v1376_v51, %v1384_v17  ;;  %vm1383_vm3 = vcmp.ge.f32.partialorder %v1378_v25, 0.0  ;;  %v1385_v60 = vmul.f32 0.01, %v1378_v25  ;;  %v2441_v51 = vld [vmem:[%s4504_s1 + $0x340] ss:$8 sps:$4 sm:$0xff]  }
 0x1ea   :  { %v1388_v62 = vmax.f32 %v4216_v54, %v4218_v56  ;;  %v2443_v55 = vld [vmem:[%s4504_s1 + $0x334] ss:$8 sps:$4 sm:$0xff]   ;;  %v2446_v17 = vld [vmem:[%s4504_s1 + $0x2a4] ss:$8 sps:$4 sm:$0xff]   ;;  %v2449_v30 = vld [vmem:[%s4504_s1 + $0x320] ss:$8 sps:$4 sm:$0xff]  }
 0x1eb   :  { %v4225_v57 = vsel %vm1383_vm3, %v1378_v25, %v1385_v60  ;;  %1739 = vmatpush2.bf16.msra.mxu0 %v5025_v1  ;;  %v2447_v25 = vld [vmem:[%s4504_s1 + $0x324] ss:$8 sps:$4 sm:$0xff]   ;;  %v2450_v32 = vld [vmem:[%s4504_s1 + $0x294] ss:$8 sps:$4 sm:$0xff]   ;;  %v2452_v36 = vld [vmem:[%s4504_s1 + $0x290] ss:$8 sps:$4 sm:$0xff]  }
 0x1ec   :  { %1764 = vmatpush1.bf16.msra.mxu1 %v2415_v7  ;;  %v1389_v6 = vmax.f32 %v4223_v48, %v4225_v57  ;;  %1740 = vmatprep.subr.bf16.mxu0 %v5026_v11  ;;  %v2451_v34 = vld [vmem:[%s4504_s1 + $0x314] ss:$8 sps:$4 sm:$0xff]   ;;  %v2453_v44 = vld [vmem:[%s4504_s1 + $0x310] ss:$8 sps:$4 sm:$0xff]   ;;  %v2454_v60 = vld [vmem:[%s4504_s1 + $0x284] ss:$8 sps:$4 sm:$0xff]   ;;  %v2088_v7 = vcombine.low %v4183_v38, %v4183_v38 }
 0x1ed   :  { %1765 = vmatprep.subr.bf16.mxu1 %v2416_v15  ;;  %v2455_v1 = vld [vmem:[%s4504_s1 + $0x304] ss:$8 sps:$4 sm:$0xff]   ;;  %v2456_v11 = vld [vmem:[%s4504_s1 + $0x280] ss:$8 sps:$4 sm:$0xff]  }
 0x1ee   :  { %v2457_v15 = vld [vmem:[%s4504_s1 + $0x300] ss:$8 sps:$4 sm:$0xff]  }
 0x1ef   :  { %1741 = vmatpush2.bf16.msra.mxu0 %v5027_v61  ;;  %v2458_v61 = vld [vmem:[%s4504_s1 + $0x3f4] ss:$8 sps:$4 sm:$0xff]  }
 0x1f0   :  { %1766 = vmatpush1.bf16.msra.mxu1 %v2417_v19  ;;  %1742 = vmatprep.subr.bf16.mxu0 %v5028_v23  ;;  %v2459_v19 = vld [vmem:[%s4504_s1 + $0x474] ss:$8 sps:$4 sm:$0xff]  }
 0x1f1   :  { %1767 = vmatprep.subr.bf16.mxu1 %v2418_v29 }
 0x1f3   :  { %1743 = vmatpush2.bf16.msra.mxu0 %v5029_v33  ;;  %v2460_v33 = vld [vmem:[%s4504_s1 + $0x3f0] ss:$8 sps:$4 sm:$0xff]  }
 0x1f4   :  { %1768 = vmatpush1.bf16.msra.mxu1 %v2419_v4  ;;  %1744 = vmatprep.subr.bf16.mxu0 %v5030_v40  ;;  %v2461_v4 = vld [vmem:[%s4504_s1 + $0x470] ss:$8 sps:$4 sm:$0xff]  }
 0x1f5   :  { %1769 = vmatprep.subr.bf16.mxu1 %v2420_v16 }
 0x1f7   :  { %1745 = vmatpush2.bf16.msra.mxu0 %v5031_v20  ;;  %v2462_v20 = vld [vmem:[%s4504_s1 + $0x3e4] ss:$8 sps:$4 sm:$0xff]  }
 0x1f8   :  { %1770 = vmatpush1.bf16.msra.mxu1 %v2421_v45  ;;  %1746 = vmatprep.subr.bf16.mxu0 %v5032_v42  ;;  %v2463_v45 = vld [vmem:[%s4504_s1 + $0x464] ss:$8 sps:$4 sm:$0xff]  }
 0x1f9   :  { %1771 = vmatprep.subr.bf16.mxu1 %v2422_v59 }
 0x1fb   :  { %1747 = vmatpush2.bf16.msra.mxu0 %v5033_v12 }
 0x1fc   :  { %1772 = vmatpush1.bf16.msra.mxu1 %v2423_v26  ;;  %1748 = vmatprep.subr.bf16.mxu0 %v5034_v52 }
 0x1fd   :  { %1773 = vmatprep.subr.bf16.mxu1 %v2424_v53  ;;  %v2464_v53 = vld [vmem:[%s4504_s1 + $0x3e0] ss:$8 sps:$4 sm:$0xff]  }
 0x1ff   :  { %1749 = vmatpush2.bf16.msra.mxu0 %v5035_v27 }
 0x200   :  { %1774 = vmatpush1.bf16.msra.mxu1 %v2425_v3  ;;  %1800 = vmatprep.subr.bf16.mxu0 %v2427_v21  ;;  %v2468_v21 = vld [vmem:[%s4504_s1 + $0x3d0] ss:$8 sps:$4 sm:$0xff]  }
 0x201   :  { %1775 = vmatprep.subr.bf16.mxu1 %v2426_v35  ;;  %v2467_v35 = vld [vmem:[%s4504_s1 + $0x454] ss:$8 sps:$4 sm:$0xff]  }
 0x202   :  { %1751 = vmatmul.mubr.bf16.vlgmr.msra.gmra.mxu0 %v2086_v49  ;;  %v2465_v49 = vld [vmem:[%s4504_s1 + $0x460] ss:$8 sps:$4 sm:$0xff]  }
 0x203   :  { %1801 = vmatpush1.bf16.msra.mxu0 %v2429_v22  ;;  %1832 = vmatprep.mubr.bf16.mxu0 %v2091_v46  ;;  %v2469_v46 = vld [vmem:[%s4504_s1 + $0x450] ss:$8 sps:$4 sm:$0xff]   ;;  %v2471_v22 = vld [vmem:[%s4504_s1 + $0x444] ss:$8 sps:$4 sm:$0xff]  }
 0x204   :  { %1776 = vmatpush2.bf16.msra.mxu1 %v2428_v31  ;;  %1802 = vmatprep.subr.bf16.mxu0 %v2431_v47  ;;  %v2470_v31 = vld [vmem:[%s4504_s1 + $0x3c4] ss:$8 sps:$4 sm:$0xff]   ;;  %v2473_v47 = vld [vmem:[%s4504_s1 + $0x440] ss:$8 sps:$4 sm:$0xff]  }
 0x205   :  { %1777 = vmatprep.subr.bf16.mxu1 %v2430_v5  ;;  %v2472_v5 = vld [vmem:[%s4504_s1 + $0x3c0] ss:$8 sps:$4 sm:$0xff]  }
 0x207   :  { %1803 = vmatpush1.bf16.msra.mxu0 %v2433_v0  ;;  %v2475_v0 = vld [vmem:[%s4504_s1 + $0x434] ss:$8 sps:$4 sm:$0xff]  }
 0x208   :  { %1778 = vmatpush2.bf16.msra.mxu1 %v2432_v10  ;;  %1804 = vmatprep.subr.bf16.mxu0 %v2435_v14  ;;  %v2474_v10 = vld [vmem:[%s4504_s1 + $0x3b4] ss:$8 sps:$4 sm:$0xff]   ;;  %v2477_v14 = vld [vmem:[%s4504_s1 + $0x430] ss:$8 sps:$4 sm:$0xff]  }
 0x209   :  { %1779 = vmatprep.subr.bf16.mxu1 %v2434_v39  ;;  %v2476_v39 = vld [vmem:[%s4504_s1 + $0x3b0] ss:$8 sps:$4 sm:$0xff]  }
 0x20b   :  { %1805 = vmatpush1.bf16.msra.mxu0 %v2437_v58  ;;  %v2479_v58 = vld [vmem:[%s4504_s1 + $0x424] ss:$8 sps:$4 sm:$0xff]  }
 0x20c   :  { %1780 = vmatpush2.bf16.msra.mxu1 %v2436_v18  ;;  %1806 = vmatprep.subr.bf16.mxu0 %v2439_v50  ;;  %v2478_v18 = vld [vmem:[%s4504_s1 + $0x3a4] ss:$8 sps:$4 sm:$0xff]   ;;  %v2481_v50 = vld [vmem:[%s4504_s1 + $0x420] ss:$8 sps:$4 sm:$0xff]  }
 0x20d   :  { %1781 = vmatprep.subr.bf16.mxu1 %v2438_v2  ;;  %v2480_v2 = vld [vmem:[%s4504_s1 + $0x3a0] ss:$8 sps:$4 sm:$0xff]  }
 0x20f   :  { %1807 = vmatpush1.bf16.msra.mxu0 %v2441_v51  ;;  %v2483_v51 = vld [vmem:[%s4504_s1 + $0x414] ss:$8 sps:$4 sm:$0xff]  }
 0x210   :  { %1782 = vmatpush2.bf16.msra.mxu1 %v2440_v43  ;;  %1808 = vmatprep.subr.bf16.mxu0 %v2443_v55  ;;  %v2482_v43 = vld [vmem:[%s4504_s1 + $0x394] ss:$8 sps:$4 sm:$0xff]   ;;  %v2485_v55 = vld [vmem:[%s4504_s1 + $0x410] ss:$8 sps:$4 sm:$0xff]  }
 0x211   :  { %1783 = vmatprep.subr.bf16.mxu1 %v2442_v41  ;;  %v2484_v41 = vld [vmem:[%s4504_s1 + $0x390] ss:$8 sps:$4 sm:$0xff]  }
 0x213   :  { %1809 = vmatpush1.bf16.msra.mxu0 %v2445_v13  ;;  %v2487_v13 = vld [vmem:[%s4504_s1 + $0x404] ss:$8 sps:$4 sm:$0xff]  }
 0x214   :  { %1784 = vmatpush2.bf16.msra.mxu1 %v2444_v9  ;;  %1810 = vmatprep.subr.bf16.mxu0 %v2447_v25  ;;  %v2486_v9 = vld [vmem:[%s4504_s1 + $0x384] ss:$8 sps:$4 sm:$0xff]  }
 0x215   :  { %1785 = vmatprep.subr.bf16.mxu1 %v2446_v17  ;;  %v2090_v17 = vcombine.low %v4274_v63, %v4274_v63  ;;  %v2345_v25 = vld [vmem:[%s4505_s0 + $0x8c] ss:$0 sps:$4 sm:$0xff]  }
 0x217   :  { %1811 = vmatpush1.bf16.msra.mxu0 %v2449_v30  ;;  %v2489_v30 = vld [vmem:[%s4504_s1 + $0x400] ss:$8 sps:$4 sm:$0xff]  }
 0x218   :  { %1786 = vmatpush2.bf16.msra.mxu1 %v2448_v28  ;;  %1812 = vmatprep.subr.bf16.mxu0 %v2451_v34  ;;  %v2488_v28 = vld [vmem:[%s4504_s1 + $0x380] ss:$8 sps:$4 sm:$0xff]  }
 0x219   :  { %1787 = vmatprep.subr.bf16.mxu1 %v2450_v32 }
 0x21b   :  { %1813 = vmatpush1.bf16.msra.mxu0 %v2453_v44 }
 0x21c   :  { %1788 = vmatpush2.bf16.msra.mxu1 %v2452_v36  ;;  %1814 = vmatprep.subr.bf16.mxu0 %v2455_v1 }
 0x21d   :  { %1789 = vmatprep.subr.bf16.mxu1 %v2454_v60 }
 0x21f   :  { %1815 = vmatpush1.bf16.msra.mxu0 %v2457_v15 }
 0x220   :  { %1790 = vmatpush2.bf16.msra.mxu1 %v2456_v11  ;;  %1816 = vmatprep.subr.bf16.mxu0 %v2458_v61 }
 0x221   :  { %1841 = vmatprep.subr.bf16.mxu1 %v2459_v19 }
 0x222   :  { %v1462_v38 = vpop.f32.mrf.mxu0 }
 0x223   :  { %v1503_v23 = vpop.f32.mrf.mxu1  ;;  %1792 = vmatmul.mubr.bf16.vlgmr.msra.gmra.mxu1 %v2088_v7  ;;  %v1463_v29 = vadd.f32 %v1462_v38, %v4960_v8  ;;  %1817 = vmatpush2.bf16.msra.mxu0 %v2460_v33 }
 0x224   :  { %1842 = vmatpush1.bf16.msra.mxu1 %v2461_v4  ;;  %v1464_v40 = vpop.f32.mrf.mxu0  ;;  %1818 = vmatprep.subr.bf16.mxu0 %v2462_v20 }
 0x225   :  { %v1505_v16 = vpop.f32.mrf.mxu1  ;;  %1843 = vmatprep.subr.bf16.mxu1 %v2463_v45  ;;  %v4399_v42 = vadd.f32 %v1503_v23, %v1463_v29  ;;  %v1465_v59 = vadd.f32 %v1464_v40, %v3556_v37  ;;  %1873 = vmatprep.mubr.bf16.mxu1 %v4965_v24  ;;  %v2466_v24 = vld [vmem:[%s4504_s1 + $0x3d4] ss:$8 sps:$4 sm:$0xff]  }
 0x226   :  { %v1466_v12 = vpop.f32.mrf.mxu0 }
 0x227   :  { %v1507_v26 = vpop.f32.mrf.mxu1  ;;  %v4403_v52 = vadd.f32 %v1505_v16, %v1465_v59  ;;  %1819 = vmatpush2.bf16.msra.mxu0 %v2464_v53 }
 0x228   :  { %1844 = vmatpush1.bf16.msra.mxu1 %v2465_v49  ;;  %v1467_v27 = vpop.f32.mrf.mxu0  ;;  %1820 = vmatprep.subr.bf16.mxu0 %v2466_v24 }
 0x229   :  { %v1508_v3 = vpop.f32.mrf.mxu1  ;;  %1845 = vmatprep.subr.bf16.mxu1 %v2467_v35 }
 0x22b   :  { %1821 = vmatpush2.bf16.msra.mxu0 %v2468_v21 }
 0x22c   :  { %1846 = vmatpush1.bf16.msra.mxu1 %v2469_v46  ;;  %1822 = vmatprep.subr.bf16.mxu0 %v2470_v31 }
 0x22d   :  { %1847 = vmatprep.subr.bf16.mxu1 %v2471_v22 }
 0x22f   :  { %1823 = vmatpush2.bf16.msra.mxu0 %v2472_v5 }
 0x230   :  { %1848 = vmatpush1.bf16.msra.mxu1 %v2473_v47  ;;  %1824 = vmatprep.subr.bf16.mxu0 %v2474_v10 }
 0x231   :  { %1849 = vmatprep.subr.bf16.mxu1 %v2475_v0 }
 0x233   :  { %1825 = vmatpush2.bf16.msra.mxu0 %v2476_v39 }
 0x234   :  { %1850 = vmatpush1.bf16.msra.mxu1 %v2477_v14  ;;  %1826 = vmatprep.subr.bf16.mxu0 %v2478_v18 }
 0x235   :  { %1851 = vmatprep.subr.bf16.mxu1 %v2479_v58 }
 0x237   :  { %1827 = vmatpush2.bf16.msra.mxu0 %v2480_v2 }
 0x238   :  { %1852 = vmatpush1.bf16.msra.mxu1 %v2481_v50  ;;  %1828 = vmatprep.subr.bf16.mxu0 %v2482_v43 }
 0x239   :  { %1853 = vmatprep.subr.bf16.mxu1 %v2483_v51 }
 0x23b   :  { %1829 = vmatpush2.bf16.msra.mxu0 %v2484_v41 }
 0x23c   :  { %1854 = vmatpush1.bf16.msra.mxu1 %v2485_v55  ;;  %1830 = vmatprep.subr.bf16.mxu0 %v2486_v9 }
 0x23d   :  { %1855 = vmatprep.subr.bf16.mxu1 %v2487_v13 }
 0x23f   :  { %1831 = vmatpush2.bf16.msra.mxu0 %v2488_v28 }
 0x240   :  { %1856 = vmatpush1.bf16.msra.mxu1 %v2489_v30 }
 0x242   :  { %1833 = vmatmul.mubr.bf16.vlgmr.msra.gmra.mxu0 %v2090_v17 }
 0x243   :  { %1874 = vmatmul.mubr.bf16.vlgmr.msra.gmra.mxu1 %v2345_v25 }
 0x262   :  { %v1544_v32 = vpop.f32.mrf.mxu0 }
 0x263   :  { %v1585_v34 = vpop.f32.mrf.mxu1  ;;  %v1545_v63 = vadd.f32 %v1544_v32, %v4399_v42 }
 0x264   :  { %v1546_v36 = vpop.f32.mrf.mxu0 }
 0x265   :  { %v1587_v44 = vpop.f32.mrf.mxu1  ;;  %v1586_v60 = vadd.f32 %v1585_v34, %v1545_v63  ;;  %v1547_v1 = vadd.f32 %v1546_v36, %v4403_v52 }
 0x266   :  { %v1548_v7 = vpop.f32.mrf.mxu0 }
 0x267   :  { %v1589_v11 = vpop.f32.mrf.mxu1  ;;  %v1588_v15 = vadd.f32 %v1587_v44, %v1547_v1 }
 0x268   :  { %v1549_v61 = vpop.f32.mrf.mxu0 }
 0x269   :  { %v1590_v19 = vpop.f32.mrf.mxu1 }
 0x282   :  { %v1626_v38 = vpop.f32.mrf.mxu0 }
 0x283   :  { %v1627_v23 = vadd.f32 %v1626_v38, %v1586_v60 }
 0x284   :  { %v1628_v29 = vpop.f32.mrf.mxu0 }
 0x285   :  { %v1629_v33 = vadd.f32 %v1628_v29, %v1588_v15  ;;  %v1635_v14 = vmul.f32 0.01, %v1627_v23  ;;  %vm1633_vm4 = vcmp.ge.f32.partialorder %v1627_v23, 0.0 }
 0x286   :  { %v1630_v4 = vpop.f32.mrf.mxu0 }
 0x287   :  { %v1636_v43 = vmul.f32 0.01, %v1629_v33  ;;  %vm1634_vm6 = vcmp.ge.f32.partialorder %v1629_v33, 0.0  ;;  %v1637_v55 = vsel %vm1633_vm4, %v1627_v23, %v1635_v14 }
 0x288   :  { %v1631_v40 = vpop.f32.mrf.mxu0 }
 0x289   :  { %v1638_v25 = vsel %vm1634_vm6, %v1629_v33, %v1636_v43 }
 0x2a3   :  { %v1711_v16 = vpop.f32.mrf.mxu1 }
 0x2a4   :  { %v1712_v24 = vadd.f32 %v1711_v16, %v4960_v8 }
 0x2a5   :  { %v1713_v20 = vpop.f32.mrf.mxu1 }
 0x2a6   :  { %v1714_v35 = vadd.f32 %v1713_v20, %v3556_v37 }
 0x2a7   :  { %v1715_v45 = vpop.f32.mrf.mxu1 }
 0x2a9   :  { %v1716_v42 = vpop.f32.mrf.mxu1 }
 0x2c2   :  { %v1752_v59 = vpop.f32.mrf.mxu0 }
 0x2c3   :  { %v1753_v21 = vadd.f32 %v1752_v59, %v1712_v24 }
 0x2c4   :  { %v1754_v12 = vpop.f32.mrf.mxu0 }
 0x2c5   :  { %v1755_v46 = vadd.f32 %v1754_v12, %v1714_v35 }
 0x2c6   :  { %v1756_v26 = vpop.f32.mrf.mxu0 }
 0x2c8   :  { %v1757_v53 = vpop.f32.mrf.mxu0 }
 0x2e3   :  { %v1793_v52 = vpop.f32.mrf.mxu1 }
 0x2e4   :  { %v1794_v31 = vadd.f32 %v1793_v52, %v1753_v21 }
 0x2e5   :  { %v1795_v49 = vpop.f32.mrf.mxu1 }
 0x2e6   :  { %v1796_v47 = vadd.f32 %v1795_v49, %v1755_v46 }
 0x2e7   :  { %v1797_v27 = vpop.f32.mrf.mxu1 }
 0x2e9   :  { %v1798_v3 = vpop.f32.mrf.mxu1 }
 0x302   :  { %v1834_v22 = vpop.f32.mrf.mxu0 }
 0x303   :  { %v1875_v5 = vpop.f32.mrf.mxu1  ;;  %v1835_v10 = vadd.f32 %v1834_v22, %v1794_v31 }
 0x304   :  { %v1836_v0 = vpop.f32.mrf.mxu0 }
 0x305   :  { %v1877_v39 = vpop.f32.mrf.mxu1  ;;  %v1876_v18 = vadd.f32 %v1875_v5, %v1835_v10  ;;  %v1837_v58 = vadd.f32 %v1836_v0, %v1796_v47 }
 0x306   :  { %v1838_v2 = vpop.f32.mrf.mxu0 }
 0x307   :  { %v1879_v50 = vpop.f32.mrf.mxu1  ;;  %vm1882_vm5 = vcmp.ge.f32.partialorder %v1876_v18, 0.0  ;;  %v1884_v8 = vmul.f32 0.01, %v1876_v18  ;;  %v1878_v51 = vadd.f32 %v1877_v39, %v1837_v58 }
 0x308   :  { %v1839_v37 = vpop.f32.mrf.mxu0 }
 0x309   :  { %v1880_v41 = vpop.f32.mrf.mxu1  ;;  %v1886_v9 = vsel %vm1882_vm5, %v1876_v18, %v1884_v8  ;;  %vm1883_vm7 = vcmp.ge.f32.partialorder %v1878_v51, 0.0  ;;  %v1885_v13 = vmul.f32 0.01, %v1878_v51 }
 0x30a   :  { %v1888_v17 = vmax.f32 %v1637_v55, %v1886_v9 }
 0x30b   :  { %v1887_v28 = vsel %vm1883_vm7, %v1878_v51, %v1885_v13 }
 0x30c   :  { %v1890_v30 = vmax.f32 %v1388_v62, %v1888_v17  ;;  %v1889_v32 = vmax.f32 %v1638_v25, %v1887_v28 }
 0x30e   :  { %1892 = vst [vmem:[%s4507_s3] sm:$0xff] %v1890_v30  ;;  %v1891_v34 = vmax.f32 %v1389_v6, %v1889_v32 }
 0x310   :  { %1893 = vst [vmem:[%s4507_s3 + $0x8] sm:$0xff] %v1891_v34 }

// kernel: mixstyle_encoder_forward.7
= control target key start
LH: loop header
LB: loop body
LE: loop exit
PB: predicated region body
PF: predicated region fallthrough
CT: control target
= control target key end

     0   :  { %s3931_s1 = inlined_call_operand.vmem [shape: bf16[2304,256], index: 1, kind: input, shape index: {}]   ;;  %s3932_s0 = inlined_call_operand.vmem [shape: bf16[8,2304], index: 0, kind: input, shape index: {}]   ;;  %s3933_s2 = inlined_call_operand.vmem [shape: f32[1,256], index: 2, kind: input, shape index: {}]   ;;  %s3934_s3 = inlined_call_operand.vmem [shape: f32[8,256], index: 3, kind: output, shape index: {}]  }
   0x1   :  { %v2513_v0 = vld [vmem:[%s3931_s1 + $0x74] ss:$8 sps:$4 sm:$0xff]   ;;  %v2515_v1 = vld [vmem:[%s3931_s1 + $0x70] ss:$8 sps:$4 sm:$0xff]   ;;  %v2519_v4 = vld [vmem:[%s3931_s1 + $0x64] ss:$8 sps:$4 sm:$0xff]  }
   0x2   :  { %1826 = vmatprep.subr.bf16.mxu0 %v2513_v0  ;;  %v2516_v2 = vld [vmem:[%s3931_s1 + $0x174] ss:$8 sps:$4 sm:$0xff]   ;;  %v2518_v3 = vld [vmem:[%s3931_s1 + $0x170] ss:$8 sps:$4 sm:$0xff]   ;;  %v2521_v5 = vld [vmem:[%s3931_s1 + $0x60] ss:$8 sps:$4 sm:$0xff]  }
   0x3   :  { %1827 = vmatpush1.bf16.msra.mxu0 %v2515_v1  ;;  %1867 = vmatprep.subr.bf16.mxu1 %v2516_v2  ;;  %v2522_v6 = vld [vmem:[%s3931_s1 + $0x164] ss:$8 sps:$4 sm:$0xff]   ;;  %v2524_v7 = vld [vmem:[%s3931_s1 + $0x160] ss:$8 sps:$4 sm:$0xff]   ;;  %v2525_v8 = vld [vmem:[%s3931_s1 + $0x54] ss:$8 sps:$4 sm:$0xff]  }
   0x4   :  { %1868 = vmatpush1.bf16.msra.mxu1 %v2518_v3  ;;  %1828 = vmatprep.subr.bf16.mxu0 %v2519_v4  ;;  %v2527_v9 = vld [vmem:[%s3931_s1 + $0x50] ss:$8 sps:$4 sm:$0xff]   ;;  %v2528_v10 = vld [vmem:[%s3931_s1 + $0x154] ss:$8 sps:$4 sm:$0xff]   ;;  %v2531_v11 = vld [vmem:[%s3931_s1 + $0x44] ss:$8 sps:$4 sm:$0xff]  }
   0x5   :  { %1869 = vmatprep.subr.bf16.mxu1 %v2522_v6  ;;  %v2530_v12 = vld [vmem:[%s3931_s1 + $0x150] ss:$8 sps:$4 sm:$0xff]   ;;  %v2534_v13 = vld [vmem:[%s3931_s1 + $0x144] ss:$8 sps:$4 sm:$0xff]   ;;  %v2533_v14 = vld [vmem:[%s3931_s1 + $0x40] ss:$8 sps:$4 sm:$0xff]  }
   0x6   :  { %v2537_v15 = vld [vmem:[%s3931_s1 + $0x34] ss:$8 sps:$4 sm:$0xff]   ;;  %v2536_v16 = vld [vmem:[%s3931_s1 + $0x140] ss:$8 sps:$4 sm:$0xff]   ;;  %v2539_v18 = vld [vmem:[%s3931_s1 + $0x30] ss:$8 sps:$4 sm:$0xff]  }
   0x7   :  { %1829 = vmatpush1.bf16.msra.mxu0 %v2521_v5  ;;  %v2540_v17 = vld [vmem:[%s3931_s1 + $0x134] ss:$8 sps:$4 sm:$0xff]   ;;  %v2543_v19 = vld [vmem:[%s3931_s1 + $0x24] ss:$8 sps:$4 sm:$0xff]   ;;  %v2542_v20 = vld [vmem:[%s3931_s1 + $0x130] ss:$8 sps:$4 sm:$0xff]  }
   0x8   :  { %1830 = vmatprep.subr.bf16.mxu0 %v2525_v8  ;;  %1870 = vmatpush1.bf16.msra.mxu1 %v2524_v7  ;;  %v2546_v21 = vld [vmem:[%s3931_s1 + $0x124] ss:$8 sps:$4 sm:$0xff]   ;;  %v2545_v22 = vld [vmem:[%s3931_s1 + $0x20] ss:$8 sps:$4 sm:$0xff]   ;;  %v2549_v23 = vld [vmem:[%s3931_s1 + $0x14] ss:$8 sps:$4 sm:$0xff]  }
   0x9   :  { %1871 = vmatprep.subr.bf16.mxu1 %v2528_v10  ;;  %v2548_v24 = vld [vmem:[%s3931_s1 + $0x120] ss:$8 sps:$4 sm:$0xff]   ;;  %v2552_v25 = vld [vmem:[%s3931_s1 + $0x114] ss:$8 sps:$4 sm:$0xff]   ;;  %v2551_v26 = vld [vmem:[%s3931_s1 + $0x10] ss:$8 sps:$4 sm:$0xff]  }
   0xa   :  { %v2555_v27 = vld [vmem:[%s3931_s1 + $0x4] ss:$8 sps:$4 sm:$0xff]   ;;  %v2554_v28 = vld [vmem:[%s3931_s1 + $0x110] ss:$8 sps:$4 sm:$0xff]   ;;  %v2557_v30 = vld [vmem:[%s3931_s1] ss:$8 sps:$4 sm:$0xff]  }
   0xb   :  { %1831 = vmatpush1.bf16.msra.mxu0 %v2527_v9  ;;  %v2558_v29 = vld [vmem:[%s3931_s1 + $0x104] ss:$8 sps:$4 sm:$0xff]   ;;  %v2561_v31 = vld [vmem:[%s3931_s1 + $0xf4] ss:$8 sps:$4 sm:$0xff]   ;;  %v2560_v32 = vld [vmem:[%s3931_s1 + $0x100] ss:$8 sps:$4 sm:$0xff]  }
   0xc   :  { %1832 = vmatprep.subr.bf16.mxu0 %v2531_v11  ;;  %1872 = vmatpush1.bf16.msra.mxu1 %v2530_v12  ;;  %v2564_v33 = vld [vmem:[%s3931_s1 + $0x1f4] ss:$8 sps:$4 sm:$0xff]   ;;  %v2563_v34 = vld [vmem:[%s3931_s1 + $0xf0] ss:$8 sps:$4 sm:$0xff]   ;;  %v2567_v35 = vld [vmem:[%s3931_s1 + $0xe4] ss:$8 sps:$4 sm:$0xff]  }
   0xd   :  { %1873 = vmatprep.subr.bf16.mxu1 %v2534_v13  ;;  %v2566_v36 = vld [vmem:[%s3931_s1 + $0x1f0] ss:$8 sps:$4 sm:$0xff]   ;;  %v2570_v37 = vld [vmem:[%s3931_s1 + $0x1e4] ss:$8 sps:$4 sm:$0xff]   ;;  %v2569_v38 = vld [vmem:[%s3931_s1 + $0xe0] ss:$8 sps:$4 sm:$0xff]  }
   0xe   :  { %v2573_v39 = vld [vmem:[%s3931_s1 + $0xd4] ss:$8 sps:$4 sm:$0xff]   ;;  %v2572_v40 = vld [vmem:[%s3931_s1 + $0x1e0] ss:$8 sps:$4 sm:$0xff]   ;;  %v2575_v42 = vld [vmem:[%s3931_s1 + $0xd0] ss:$8 sps:$4 sm:$0xff]  }
   0xf   :  { %1833 = vmatpush1.bf16.msra.mxu0 %v2533_v14  ;;  %v2576_v41 = vld [vmem:[%s3931_s1 + $0x1d4] ss:$8 sps:$4 sm:$0xff]   ;;  %v2579_v43 = vld [vmem:[%s3931_s1 + $0xc4] ss:$8 sps:$4 sm:$0xff]   ;;  %v2578_v44 = vld [vmem:[%s3931_s1 + $0x1d0] ss:$8 sps:$4 sm:$0xff]  }
  0x10   :  { %1834 = vmatprep.subr.bf16.mxu0 %v2537_v15  ;;  %1874 = vmatpush1.bf16.msra.mxu1 %v2536_v16  ;;  %v2582_v45 = vld [vmem:[%s3931_s1 + $0x1c4] ss:$8 sps:$4 sm:$0xff]   ;;  %v2581_v47 = vld [vmem:[%s3931_s1 + $0xc0] ss:$8 sps:$4 sm:$0xff]   ;;  %v2585_v49 = vld [vmem:[%s3931_s1 + $0xb4] ss:$8 sps:$4 sm:$0xff]  }
  0x11   :  { %1875 = vmatprep.subr.bf16.mxu1 %v2540_v17  ;;  %v14_v46 = vld [vmem:[%s3932_s0] sm:$0xff]  ;;  %v15_v50 = vld [vmem:[%s3932_s0 + $0x8] sm:$0xff]  ;;  %v2588_v53 = vld [vmem:[%s3931_s1 + $0x1b4] ss:$8 sps:$4 sm:$0xff]  }
  0x12   :  { %v2208_v48 = vcombine.high %v14_v46, %v14_v46  ;;  %v2584_v51 = vld [vmem:[%s3931_s1 + $0x1c0] ss:$8 sps:$4 sm:$0xff]   ;;  %v2210_v52 = vcombine.high %v15_v50, %v15_v50  ;;  %v2587_v54 = vld [vmem:[%s3931_s1 + $0xb0] ss:$8 sps:$4 sm:$0xff]   ;;  %v2591_v55 = vld [vmem:[%s3931_s1 + $0xa4] ss:$8 sps:$4 sm:$0xff]   ;;  %v2207_v5 = vcombine.low %v14_v46, %v14_v46  ;;  %v2209_v8 = vcombine.low %v15_v50, %v15_v50 }
  0x13   :  { %1835 = vmatpush1.bf16.msra.mxu0 %v2539_v18  ;;  %v2590_v56 = vld [vmem:[%s3931_s1 + $0x1b0] ss:$8 sps:$4 sm:$0xff]   ;;  %v2594_v57 = vld [vmem:[%s3931_s1 + $0x1a4] ss:$8 sps:$4 sm:$0xff]   ;;  %v2593_v58 = vld [vmem:[%s3931_s1 + $0xa0] ss:$8 sps:$4 sm:$0xff]  }
  0x14   :  { %1836 = vmatprep.subr.bf16.mxu0 %v2543_v19  ;;  %1876 = vmatpush1.bf16.msra.mxu1 %v2542_v20  ;;  %v2597_v59 = vld [vmem:[%s3931_s1 + $0x94] ss:$8 sps:$4 sm:$0xff]   ;;  %v2596_v60 = vld [vmem:[%s3931_s1 + $0x1a0] ss:$8 sps:$4 sm:$0xff]   ;;  %v2599_v62 = vld [vmem:[%s3931_s1 + $0x90] ss:$8 sps:$4 sm:$0xff]  }
  0x15   :  { %1877 = vmatprep.subr.bf16.mxu1 %v2546_v21  ;;  %1858 = vmatprep.mubr.bf16.mxu0 %v2208_v48  ;;  %v2600_v61 = vld [vmem:[%s3931_s1 + $0x194] ss:$8 sps:$4 sm:$0xff]   ;;  %v2603_v63 = vld [vmem:[%s3931_s1 + $0x84] ss:$8 sps:$4 sm:$0xff]   ;;  %v2602_v0 = vld [vmem:[%s3931_s1 + $0x190] ss:$8 sps:$4 sm:$0xff]  }
  0x16   :  { %1899 = vmatprep.mubr.bf16.mxu1 %v2210_v52  ;;  %v2606_v1 = vld [vmem:[%s3931_s1 + $0x184] ss:$8 sps:$4 sm:$0xff]   ;;  %v2605_v2 = vld [vmem:[%s3931_s1 + $0x80] ss:$8 sps:$4 sm:$0xff]   ;;  %v2613_v3 = vld [vmem:[%s3931_s1 + $0x274] ss:$8 sps:$4 sm:$0xff]  }
  0x17   :  { %1837 = vmatpush1.bf16.msra.mxu0 %v2545_v22  ;;  %v2610_v4 = vld [vmem:[%s3931_s1 + $0x180] ss:$8 sps:$4 sm:$0xff]   ;;  %v2618_v6 = vld [vmem:[%s3931_s1 + $0x374] ss:$8 sps:$4 sm:$0xff]   ;;  %v2611_v7 = vld [vmem:[%s3931_s1 + $0x270] ss:$8 sps:$4 sm:$0xff]  }
  0x18   :  { %1838 = vmatprep.subr.bf16.mxu0 %v2549_v23  ;;  %1878 = vmatpush1.bf16.msra.mxu1 %v2548_v24  ;;  %v2621_v9 = vld [vmem:[%s3931_s1 + $0x264] ss:$8 sps:$4 sm:$0xff]   ;;  %v2616_v10 = vld [vmem:[%s3931_s1 + $0x370] ss:$8 sps:$4 sm:$0xff]   ;;  %v2619_v12 = vld [vmem:[%s3931_s1 + $0x260] ss:$8 sps:$4 sm:$0xff]  }
  0x19   :  { %1879 = vmatprep.subr.bf16.mxu1 %v2552_v25  ;;  %v2624_v11 = vld [vmem:[%s3931_s1 + $0x364] ss:$8 sps:$4 sm:$0xff]   ;;  %v2627_v13 = vld [vmem:[%s3931_s1 + $0x254] ss:$8 sps:$4 sm:$0xff]   ;;  %v2622_v14 = vld [vmem:[%s3931_s1 + $0x360] ss:$8 sps:$4 sm:$0xff]  }
  0x1a   :  { %v2630_v15 = vld [vmem:[%s3931_s1 + $0x354] ss:$8 sps:$4 sm:$0xff]   ;;  %v2625_v16 = vld [vmem:[%s3931_s1 + $0x250] ss:$8 sps:$4 sm:$0xff]   ;;  %v2633_v17 = vld [vmem:[%s3931_s1 + $0x244] ss:$8 sps:$4 sm:$0xff]  }
  0x1b   :  { %1839 = vmatpush1.bf16.msra.mxu0 %v2551_v26  ;;  %v2628_v18 = vld [vmem:[%s3931_s1 + $0x350] ss:$8 sps:$4 sm:$0xff]   ;;  %v2636_v19 = vld [vmem:[%s3931_s1 + $0x344] ss:$8 sps:$4 sm:$0xff]   ;;  %v2631_v20 = vld [vmem:[%s3931_s1 + $0x240] ss:$8 sps:$4 sm:$0xff]  }
  0x1c   :  { %1840 = vmatprep.subr.bf16.mxu0 %v2555_v27  ;;  %1880 = vmatpush1.bf16.msra.mxu1 %v2554_v28  ;;  %v2639_v21 = vld [vmem:[%s3931_s1 + $0x234] ss:$8 sps:$4 sm:$0xff]   ;;  %v2634_v22 = vld [vmem:[%s3931_s1 + $0x340] ss:$8 sps:$4 sm:$0xff]   ;;  %v2637_v24 = vld [vmem:[%s3931_s1 + $0x230] ss:$8 sps:$4 sm:$0xff]  }
  0x1d   :  { %1881 = vmatprep.subr.bf16.mxu1 %v2558_v29  ;;  %v2642_v23 = vld [vmem:[%s3931_s1 + $0x334] ss:$8 sps:$4 sm:$0xff]   ;;  %v2645_v25 = vld [vmem:[%s3931_s1 + $0x224] ss:$8 sps:$4 sm:$0xff]   ;;  %v2640_v26 = vld [vmem:[%s3931_s1 + $0x330] ss:$8 sps:$4 sm:$0xff]  }
  0x1e   :  { %v2648_v27 = vld [vmem:[%s3931_s1 + $0x324] ss:$8 sps:$4 sm:$0xff]   ;;  %v2643_v28 = vld [vmem:[%s3931_s1 + $0x220] ss:$8 sps:$4 sm:$0xff]   ;;  %v2651_v29 = vld [vmem:[%s3931_s1 + $0x214] ss:$8 sps:$4 sm:$0xff]  }
  0x1f   :  { %1841 = vmatpush1.bf16.msra.mxu0 %v2557_v30  ;;  %v2646_v30 = vld [vmem:[%s3931_s1 + $0x320] ss:$8 sps:$4 sm:$0xff]   ;;  %v2664_v46 = vld [vmem:[%s3931_s1 + $0x3f0] ss:$8 sps:$4 sm:$0xff]  }
  0x20   :  { %1842 = vmatprep.subr.bf16.mxu0 %v2561_v31  ;;  %1882 = vmatpush1.bf16.msra.mxu1 %v2560_v32  ;;  %v2654_v31 = vld [vmem:[%s3931_s1 + $0x314] ss:$8 sps:$4 sm:$0xff]   ;;  %v2667_v48 = vld [vmem:[%s3931_s1 + $0x2e0] ss:$8 sps:$4 sm:$0xff]   ;;  %v2673_v52 = vld [vmem:[%s3931_s1 + $0x2d0] ss:$8 sps:$4 sm:$0xff]  }
  0x21   :  { %1883 = vmatprep.subr.bf16.mxu1 %v2564_v33  ;;  %v3262_v32 = vld [vmem:[%s3932_s0 + $0x10] sm:$0xff]  ;;  %v2670_v50 = vld [vmem:[%s3931_s1 + $0x3e0] ss:$8 sps:$4 sm:$0xff]  }
  0x22   :  { %v2649_v33 = vld [vmem:[%s3931_s1 + $0x210] ss:$8 sps:$4 sm:$0xff]  }
  0x23   :  { %1843 = vmatpush2.bf16.msra.mxu0 %v2563_v34  ;;  %v2212_v34 = vcombine.high %v3262_v32, %v3262_v32 }
  0x24   :  { %1844 = vmatprep.subr.bf16.mxu0 %v2567_v35  ;;  %1884 = vmatpush2.bf16.msra.mxu1 %v2566_v36  ;;  %v3272_v35 = vld [vmem:[%s3932_s0 + $0x18] sm:$0xff]  ;;  %v2657_v36 = vld [vmem:[%s3931_s1 + $0x204] ss:$8 sps:$4 sm:$0xff]  }
  0x25   :  { %1885 = vmatprep.subr.bf16.mxu1 %v2570_v37  ;;  %v2214_v37 = vcombine.high %v3272_v35, %v3272_v35 }
  0x27   :  { %1845 = vmatpush2.bf16.msra.mxu0 %v2569_v38  ;;  %v2652_v38 = vld [vmem:[%s3931_s1 + $0x310] ss:$8 sps:$4 sm:$0xff]  }
  0x28   :  { %1846 = vmatprep.subr.bf16.mxu0 %v2573_v39  ;;  %1886 = vmatpush2.bf16.msra.mxu1 %v2572_v40  ;;  %v2660_v39 = vld [vmem:[%s3931_s1 + $0x304] ss:$8 sps:$4 sm:$0xff]   ;;  %v2655_v40 = vld [vmem:[%s3931_s1 + $0x200] ss:$8 sps:$4 sm:$0xff]  }
  0x29   :  { %1887 = vmatprep.subr.bf16.mxu1 %v2576_v41  ;;  %v2663_v41 = vld [vmem:[%s3931_s1 + $0x2f4] ss:$8 sps:$4 sm:$0xff]  }
  0x2b   :  { %1847 = vmatpush2.bf16.msra.mxu0 %v2575_v42  ;;  %v2658_v42 = vld [vmem:[%s3931_s1 + $0x300] ss:$8 sps:$4 sm:$0xff]  }
  0x2c   :  { %1848 = vmatprep.subr.bf16.mxu0 %v2579_v43  ;;  %1888 = vmatpush2.bf16.msra.mxu1 %v2578_v44  ;;  %v2666_v43 = vld [vmem:[%s3931_s1 + $0x3f4] ss:$8 sps:$4 sm:$0xff]   ;;  %v2661_v44 = vld [vmem:[%s3931_s1 + $0x2f0] ss:$8 sps:$4 sm:$0xff]  }
  0x2d   :  { %1889 = vmatprep.subr.bf16.mxu1 %v2582_v45  ;;  %v2669_v45 = vld [vmem:[%s3931_s1 + $0x2e4] ss:$8 sps:$4 sm:$0xff]  }
  0x2f   :  { %1849 = vmatpush2.bf16.msra.mxu0 %v2581_v47  ;;  %v2672_v47 = vld [vmem:[%s3931_s1 + $0x3e4] ss:$8 sps:$4 sm:$0xff]  }
  0x30   :  { %1850 = vmatprep.subr.bf16.mxu0 %v2585_v49  ;;  %1890 = vmatpush2.bf16.msra.mxu1 %v2584_v51  ;;  %v2675_v49 = vld [vmem:[%s3931_s1 + $0x2d4] ss:$8 sps:$4 sm:$0xff]  }
  0x31   :  { %1891 = vmatprep.subr.bf16.mxu1 %v2588_v53  ;;  %v2678_v51 = vld [vmem:[%s3931_s1 + $0x3d4] ss:$8 sps:$4 sm:$0xff]   ;;  %v2681_v53 = vld [vmem:[%s3931_s1 + $0x2c4] ss:$8 sps:$4 sm:$0xff]  }
  0x33   :  { %1851 = vmatpush2.bf16.msra.mxu0 %v2587_v54  ;;  %v2676_v54 = vld [vmem:[%s3931_s1 + $0x3d0] ss:$8 sps:$4 sm:$0xff]  }
  0x34   :  { %1852 = vmatprep.subr.bf16.mxu0 %v2591_v55  ;;  %1892 = vmatpush2.bf16.msra.mxu1 %v2590_v56  ;;  %v2684_v55 = vld [vmem:[%s3931_s1 + $0x3c4] ss:$8 sps:$4 sm:$0xff]   ;;  %v2679_v56 = vld [vmem:[%s3931_s1 + $0x2c0] ss:$8 sps:$4 sm:$0xff]  }
  0x35   :  { %1893 = vmatprep.subr.bf16.mxu1 %v2594_v57  ;;  %v2687_v57 = vld [vmem:[%s3931_s1 + $0x2b4] ss:$8 sps:$4 sm:$0xff]  }
  0x37   :  { %1853 = vmatpush2.bf16.msra.mxu0 %v2593_v58  ;;  %v2682_v58 = vld [vmem:[%s3931_s1 + $0x3c0] ss:$8 sps:$4 sm:$0xff]  }
  0x38   :  { %1854 = vmatprep.subr.bf16.mxu0 %v2597_v59  ;;  %1894 = vmatpush2.bf16.msra.mxu1 %v2596_v60  ;;  %v2690_v59 = vld [vmem:[%s3931_s1 + $0x3b4] ss:$8 sps:$4 sm:$0xff]   ;;  %v2685_v60 = vld [vmem:[%s3931_s1 + $0x2b0] ss:$8 sps:$4 sm:$0xff]  }
  0x39   :  { %1895 = vmatprep.subr.bf16.mxu1 %v2600_v61  ;;  %v2693_v61 = vld [vmem:[%s3931_s1 + $0x2a4] ss:$8 sps:$4 sm:$0xff]  }
  0x3b   :  { %1855 = vmatpush2.bf16.msra.mxu0 %v2599_v62  ;;  %v2688_v62 = vld [vmem:[%s3931_s1 + $0x3b0] ss:$8 sps:$4 sm:$0xff]  }
  0x3c   :  { %1856 = vmatprep.subr.bf16.mxu0 %v2603_v63  ;;  %1896 = vmatpush2.bf16.msra.mxu1 %v2602_v0  ;;  %v2696_v63 = vld [vmem:[%s3931_s1 + $0x3a4] ss:$8 sps:$4 sm:$0xff]   ;;  %v2691_v0 = vld [vmem:[%s3931_s1 + $0x2a0] ss:$8 sps:$4 sm:$0xff]  }
  0x3d   :  { %1897 = vmatprep.subr.bf16.mxu1 %v2606_v1  ;;  %v2699_v1 = vld [vmem:[%s3931_s1 + $0x294] ss:$8 sps:$4 sm:$0xff]  }
  0x3f   :  { %1857 = vmatpush2.bf16.msra.mxu0 %v2605_v2  ;;  %v2694_v2 = vld [vmem:[%s3931_s1 + $0x3a0] ss:$8 sps:$4 sm:$0xff]  }
  0x40   :  { %1908 = vmatprep.subr.bf16.mxu0 %v2613_v3  ;;  %1898 = vmatpush2.bf16.msra.mxu1 %v2610_v4  ;;  %v2702_v3 = vld [vmem:[%s3931_s1 + $0x394] ss:$8 sps:$4 sm:$0xff]   ;;  %v2697_v4 = vld [vmem:[%s3931_s1 + $0x290] ss:$8 sps:$4 sm:$0xff]  }
  0x41   :  { %1949 = vmatprep.subr.bf16.mxu1 %v2618_v6  ;;  %v2700_v6 = vld [vmem:[%s3931_s1 + $0x390] ss:$8 sps:$4 sm:$0xff]  }
  0x42   :  { %1859 = vmatmul.mubr.bf16.vlgmr.msra.gmra.mxu0 %v2207_v5  ;;  %v2705_v5 = vld [vmem:[%s3931_s1 + $0x284] ss:$8 sps:$4 sm:$0xff]  }
  0x43   :  { %1909 = vmatpush1.bf16.msra.mxu0 %v2611_v7  ;;  %1900 = vmatmul.mubr.bf16.vlgmr.msra.gmra.mxu1 %v2209_v8  ;;  %v2708_v7 = vld [vmem:[%s3931_s1 + $0x384] ss:$8 sps:$4 sm:$0xff]   ;;  %v2703_v8 = vld [vmem:[%s3931_s1 + $0x280] ss:$8 sps:$4 sm:$0xff]  }
  0x44   :  { %1910 = vmatprep.subr.bf16.mxu0 %v2621_v9  ;;  %1950 = vmatpush1.bf16.msra.mxu1 %v2616_v10  ;;  %v2713_v9 = vld [vmem:[%s3931_s1 + $0x474] ss:$8 sps:$4 sm:$0xff]   ;;  %v2706_v10 = vld [vmem:[%s3931_s1 + $0x380] ss:$8 sps:$4 sm:$0xff]  }
  0x45   :  { %1951 = vmatprep.subr.bf16.mxu1 %v2624_v11  ;;  %1940 = vmatprep.mubr.bf16.mxu0 %v2212_v34  ;;  %v2211_v11 = vcombine.low %v3262_v32, %v3262_v32  ;;  %v2734_v32 = vld [vmem:[%s3931_s1 + $0x540] ss:$8 sps:$4 sm:$0xff]   ;;  %v2737_v34 = vld [vmem:[%s3931_s1 + $0x430] ss:$8 sps:$4 sm:$0xff]  }
  0x46   :  { %1981 = vmatprep.mubr.bf16.mxu1 %v2214_v37  ;;  %v2748_v37 = vld [vmem:[%s3931_s1 + $0x524] ss:$8 sps:$4 sm:$0xff]  }
  0x47   :  { %1911 = vmatpush1.bf16.msra.mxu0 %v2619_v12  ;;  %v2718_v12 = vld [vmem:[%s3931_s1 + $0x574] ss:$8 sps:$4 sm:$0xff]  }
  0x48   :  { %1912 = vmatprep.subr.bf16.mxu0 %v2627_v13  ;;  %1952 = vmatpush1.bf16.msra.mxu1 %v2622_v14  ;;  %v2711_v13 = vld [vmem:[%s3931_s1 + $0x470] ss:$8 sps:$4 sm:$0xff]   ;;  %v2213_v14 = vcombine.low %v3272_v35, %v3272_v35  ;;  %v2745_v35 = vld [vmem:[%s3931_s1 + $0x424] ss:$8 sps:$4 sm:$0xff]  }
  0x49   :  { %1953 = vmatprep.subr.bf16.mxu1 %v2630_v15  ;;  %v2721_v15 = vld [vmem:[%s3931_s1 + $0x464] ss:$8 sps:$4 sm:$0xff]  }
  0x4b   :  { %1913 = vmatpush1.bf16.msra.mxu0 %v2625_v16  ;;  %v2716_v16 = vld [vmem:[%s3931_s1 + $0x570] ss:$8 sps:$4 sm:$0xff]  }
  0x4c   :  { %1914 = vmatprep.subr.bf16.mxu0 %v2633_v17  ;;  %1954 = vmatpush1.bf16.msra.mxu1 %v2628_v18  ;;  %v3409_v17 = vld [vmem:[%s3932_s0 + $0x20] sm:$0xff] }
  0x4d   :  { %1955 = vmatprep.subr.bf16.mxu1 %v2636_v19  ;;  %v2719_v18 = vld [vmem:[%s3931_s1 + $0x460] ss:$8 sps:$4 sm:$0xff]   ;;  %v2724_v19 = vld [vmem:[%s3931_s1 + $0x564] ss:$8 sps:$4 sm:$0xff]  }
  0x4f   :  { %1915 = vmatpush1.bf16.msra.mxu0 %v2631_v20  ;;  %v2216_v20 = vcombine.high %v3409_v17, %v3409_v17 }
  0x50   :  { %1916 = vmatprep.subr.bf16.mxu0 %v2639_v21  ;;  %1956 = vmatpush1.bf16.msra.mxu1 %v2634_v22  ;;  %v3422_v21 = vld [vmem:[%s3932_s0 + $0x28] sm:$0xff]  ;;  %v2727_v22 = vld [vmem:[%s3931_s1 + $0x454] ss:$8 sps:$4 sm:$0xff]  }
  0x51   :  { %1957 = vmatprep.subr.bf16.mxu1 %v2642_v23  ;;  %v2218_v23 = vcombine.high %v3422_v21, %v3422_v21 }
  0x53   :  { %1917 = vmatpush1.bf16.msra.mxu0 %v2637_v24  ;;  %v2722_v24 = vld [vmem:[%s3931_s1 + $0x560] ss:$8 sps:$4 sm:$0xff]  }
  0x54   :  { %1918 = vmatprep.subr.bf16.mxu0 %v2645_v25  ;;  %1958 = vmatpush1.bf16.msra.mxu1 %v2640_v26  ;;  %v2730_v25 = vld [vmem:[%s3931_s1 + $0x554] ss:$8 sps:$4 sm:$0xff]   ;;  %v2725_v26 = vld [vmem:[%s3931_s1 + $0x450] ss:$8 sps:$4 sm:$0xff]  }
  0x55   :  { %1959 = vmatprep.subr.bf16.mxu1 %v2648_v27  ;;  %v2733_v27 = vld [vmem:[%s3931_s1 + $0x444] ss:$8 sps:$4 sm:$0xff]  }
  0x57   :  { %1919 = vmatpush1.bf16.msra.mxu0 %v2643_v28  ;;  %v2728_v28 = vld [vmem:[%s3931_s1 + $0x550] ss:$8 sps:$4 sm:$0xff]  }
  0x58   :  { %1920 = vmatprep.subr.bf16.mxu0 %v2651_v29  ;;  %1960 = vmatpush1.bf16.msra.mxu1 %v2646_v30  ;;  %v2736_v29 = vld [vmem:[%s3931_s1 + $0x544] ss:$8 sps:$4 sm:$0xff]   ;;  %v2731_v30 = vld [vmem:[%s3931_s1 + $0x440] ss:$8 sps:$4 sm:$0xff]  }
  0x59   :  { %1961 = vmatprep.subr.bf16.mxu1 %v2654_v31  ;;  %v2739_v31 = vld [vmem:[%s3931_s1 + $0x434] ss:$8 sps:$4 sm:$0xff]  }
  0x5b   :  { %1921 = vmatpush1.bf16.msra.mxu0 %v2649_v33  ;;  %v2742_v33 = vld [vmem:[%s3931_s1 + $0x534] ss:$8 sps:$4 sm:$0xff]  }
  0x5c   :  { %1922 = vmatprep.subr.bf16.mxu0 %v2657_v36  ;;  %1962 = vmatpush1.bf16.msra.mxu1 %v2652_v38  ;;  %v2740_v36 = vld [vmem:[%s3931_s1 + $0x530] ss:$8 sps:$4 sm:$0xff]   ;;  %v2743_v38 = vld [vmem:[%s3931_s1 + $0x420] ss:$8 sps:$4 sm:$0xff]  }
  0x5d   :  { %1963 = vmatprep.subr.bf16.mxu1 %v2660_v39  ;;  %v2751_v39 = vld [vmem:[%s3931_s1 + $0x414] ss:$8 sps:$4 sm:$0xff]  }
  0x5f   :  { %1923 = vmatpush1.bf16.msra.mxu0 %v2655_v40  ;;  %v2746_v40 = vld [vmem:[%s3931_s1 + $0x520] ss:$8 sps:$4 sm:$0xff]  }
  0x60   :  { %1924 = vmatprep.subr.bf16.mxu0 %v2663_v41  ;;  %1964 = vmatpush1.bf16.msra.mxu1 %v2658_v42  ;;  %v2754_v41 = vld [vmem:[%s3931_s1 + $0x514] ss:$8 sps:$4 sm:$0xff]   ;;  %v2749_v42 = vld [vmem:[%s3931_s1 + $0x410] ss:$8 sps:$4 sm:$0xff]  }
  0x61   :  { %1965 = vmatprep.subr.bf16.mxu1 %v2666_v43  ;;  %v2757_v43 = vld [vmem:[%s3931_s1 + $0x404] ss:$8 sps:$4 sm:$0xff]  }
  0x63   :  { %1925 = vmatpush2.bf16.msra.mxu0 %v2661_v44  ;;  %v2752_v44 = vld [vmem:[%s3931_s1 + $0x510] ss:$8 sps:$4 sm:$0xff]  }
  0x64   :  { %1926 = vmatprep.subr.bf16.mxu0 %v2669_v45  ;;  %1966 = vmatpush2.bf16.msra.mxu1 %v2664_v46  ;;  %v2760_v45 = vld [vmem:[%s3931_s1 + $0x504] ss:$8 sps:$4 sm:$0xff]   ;;  %v2755_v46 = vld [vmem:[%s3931_s1 + $0x400] ss:$8 sps:$4 sm:$0xff]  }
  0x65   :  { %1967 = vmatprep.subr.bf16.mxu1 %v2672_v47  ;;  %v2763_v47 = vld [vmem:[%s3931_s1 + $0x4f4] ss:$8 sps:$4 sm:$0xff]  }
  0x67   :  { %1927 = vmatpush2.bf16.msra.mxu0 %v2667_v48  ;;  %v2758_v48 = vld [vmem:[%s3931_s1 + $0x500] ss:$8 sps:$4 sm:$0xff]  }
  0x68   :  { %1928 = vmatprep.subr.bf16.mxu0 %v2675_v49  ;;  %1968 = vmatpush2.bf16.msra.mxu1 %v2670_v50  ;;  %v2766_v49 = vld [vmem:[%s3931_s1 + $0x5f4] ss:$8 sps:$4 sm:$0xff]   ;;  %v2761_v50 = vld [vmem:[%s3931_s1 + $0x4f0] ss:$8 sps:$4 sm:$0xff]  }
  0x69   :  { %1969 = vmatprep.subr.bf16.mxu1 %v2678_v51  ;;  %v2769_v51 = vld [vmem:[%s3931_s1 + $0x4e4] ss:$8 sps:$4 sm:$0xff]  }
  0x6b   :  { %1929 = vmatpush2.bf16.msra.mxu0 %v2673_v52  ;;  %v2764_v52 = vld [vmem:[%s3931_s1 + $0x5f0] ss:$8 sps:$4 sm:$0xff]  }
  0x6c   :  { %1930 = vmatprep.subr.bf16.mxu0 %v2681_v53  ;;  %1970 = vmatpush2.bf16.msra.mxu1 %v2676_v54  ;;  %v2772_v53 = vld [vmem:[%s3931_s1 + $0x5e4] ss:$8 sps:$4 sm:$0xff]   ;;  %v2767_v54 = vld [vmem:[%s3931_s1 + $0x4e0] ss:$8 sps:$4 sm:$0xff]  }
  0x6d   :  { %1971 = vmatprep.subr.bf16.mxu1 %v2684_v55  ;;  %v2775_v55 = vld [vmem:[%s3931_s1 + $0x4d4] ss:$8 sps:$4 sm:$0xff]  }
  0x6f   :  { %1931 = vmatpush2.bf16.msra.mxu0 %v2679_v56  ;;  %v2770_v56 = vld [vmem:[%s3931_s1 + $0x5e0] ss:$8 sps:$4 sm:$0xff]  }
  0x70   :  { %1932 = vmatprep.subr.bf16.mxu0 %v2687_v57  ;;  %1972 = vmatpush2.bf16.msra.mxu1 %v2682_v58  ;;  %v2778_v57 = vld [vmem:[%s3931_s1 + $0x5d4] ss:$8 sps:$4 sm:$0xff]   ;;  %v2773_v58 = vld [vmem:[%s3931_s1 + $0x4d0] ss:$8 sps:$4 sm:$0xff]  }
  0x71   :  { %1973 = vmatprep.subr.bf16.mxu1 %v2690_v59  ;;  %v2781_v59 = vld [vmem:[%s3931_s1 + $0x4c4] ss:$8 sps:$4 sm:$0xff]  }
  0x73   :  { %1933 = vmatpush2.bf16.msra.mxu0 %v2685_v60  ;;  %v2776_v60 = vld [vmem:[%s3931_s1 + $0x5d0] ss:$8 sps:$4 sm:$0xff]  }
  0x74   :  { %1934 = vmatprep.subr.bf16.mxu0 %v2693_v61  ;;  %1974 = vmatpush2.bf16.msra.mxu1 %v2688_v62  ;;  %v2784_v61 = vld [vmem:[%s3931_s1 + $0x5c4] ss:$8 sps:$4 sm:$0xff]   ;;  %v2779_v62 = vld [vmem:[%s3931_s1 + $0x4c0] ss:$8 sps:$4 sm:$0xff]  }
  0x75   :  { %1975 = vmatprep.subr.bf16.mxu1 %v2696_v63  ;;  %v2787_v63 = vld [vmem:[%s3931_s1 + $0x4b4] ss:$8 sps:$4 sm:$0xff]  }
  0x77   :  { %1935 = vmatpush2.bf16.msra.mxu0 %v2691_v0  ;;  %v2782_v0 = vld [vmem:[%s3931_s1 + $0x5c0] ss:$8 sps:$4 sm:$0xff]  }
  0x78   :  { %1936 = vmatprep.subr.bf16.mxu0 %v2699_v1  ;;  %1976 = vmatpush2.bf16.msra.mxu1 %v2694_v2  ;;  %v2790_v1 = vld [vmem:[%s3931_s1 + $0x5b4] ss:$8 sps:$4 sm:$0xff]   ;;  %v2785_v2 = vld [vmem:[%s3931_s1 + $0x4b0] ss:$8 sps:$4 sm:$0xff]  }
  0x79   :  { %1977 = vmatprep.subr.bf16.mxu1 %v2702_v3  ;;  %v2793_v3 = vld [vmem:[%s3931_s1 + $0x4a4] ss:$8 sps:$4 sm:$0xff]  }
  0x7b   :  { %1937 = vmatpush2.bf16.msra.mxu0 %v2697_v4  ;;  %v2788_v4 = vld [vmem:[%s3931_s1 + $0x5b0] ss:$8 sps:$4 sm:$0xff]  }
  0x7c   :  { %1938 = vmatprep.subr.bf16.mxu0 %v2705_v5  ;;  %1978 = vmatpush2.bf16.msra.mxu1 %v2700_v6  ;;  %v2796_v5 = vld [vmem:[%s3931_s1 + $0x5a4] ss:$8 sps:$4 sm:$0xff]   ;;  %v2791_v6 = vld [vmem:[%s3931_s1 + $0x4a0] ss:$8 sps:$4 sm:$0xff]  }
  0x7d   :  { %1979 = vmatprep.subr.bf16.mxu1 %v2708_v7  ;;  %v2799_v7 = vld [vmem:[%s3931_s1 + $0x494] ss:$8 sps:$4 sm:$0xff]  }
  0x7f   :  { %1939 = vmatpush2.bf16.msra.mxu0 %v2703_v8  ;;  %v2794_v8 = vld [vmem:[%s3931_s1 + $0x5a0] ss:$8 sps:$4 sm:$0xff]  }
  0x80   :  { %1990 = vmatprep.subr.bf16.mxu0 %v2713_v9  ;;  %1980 = vmatpush2.bf16.msra.mxu1 %v2706_v10  ;;  %v2802_v9 = vld [vmem:[%s3931_s1 + $0x594] ss:$8 sps:$4 sm:$0xff]   ;;  %v2797_v10 = vld [vmem:[%s3931_s1 + $0x490] ss:$8 sps:$4 sm:$0xff]  }
  0x81   :  { %2031 = vmatprep.subr.bf16.mxu1 %v2718_v12  ;;  %v2800_v12 = vld [vmem:[%s3931_s1 + $0x590] ss:$8 sps:$4 sm:$0xff]  }
  0x82   :  { %1941 = vmatmul.mubr.bf16.vlgmr.msra.gmra.mxu0 %v2211_v11  ;;  %v2805_v11 = vld [vmem:[%s3931_s1 + $0x484] ss:$8 sps:$4 sm:$0xff]  }
  0x83   :  { %1991 = vmatpush1.bf16.msra.mxu0 %v2711_v13  ;;  %1982 = vmatmul.mubr.bf16.vlgmr.msra.gmra.mxu1 %v2213_v14  ;;  %v2803_v13 = vld [vmem:[%s3931_s1 + $0x480] ss:$8 sps:$4 sm:$0xff]   ;;  %v2808_v14 = vld [vmem:[%s3931_s1 + $0x584] ss:$8 sps:$4 sm:$0xff]  }
  0x84   :  { %1992 = vmatprep.subr.bf16.mxu0 %v2721_v15  ;;  %2032 = vmatpush1.bf16.msra.mxu1 %v2716_v16  ;;  %v2813_v15 = vld [vmem:[%s3931_s1 + $0x674] ss:$8 sps:$4 sm:$0xff]  }
  0x85   :  { %2022 = vmatprep.mubr.bf16.mxu0 %v2216_v20  ;;  %2033 = vmatprep.subr.bf16.mxu1 %v2724_v19  ;;  %v3600_v16 = vld [vmem:[%s3932_s0 + $0x30] sm:$0xff]  ;;  %v2215_v19 = vcombine.low %v3409_v17, %v3409_v17  ;;  %v2217_v17 = vcombine.low %v3422_v21, %v3422_v21  ;;  %v2819_v21 = vld [vmem:[%s3931_s1 + $0x660] ss:$8 sps:$4 sm:$0xff]  }
  0x86   :  { %2063 = vmatprep.mubr.bf16.mxu1 %v2218_v23  ;;  %v2818_v20 = vld [vmem:[%s3931_s1 + $0x774] ss:$8 sps:$4 sm:$0xff]   ;;  %v2811_v23 = vld [vmem:[%s3931_s1 + $0x670] ss:$8 sps:$4 sm:$0xff]  }
  0x87   :  { %1993 = vmatpush1.bf16.msra.mxu0 %v2719_v18  ;;  %v2806_v18 = vld [vmem:[%s3931_s1 + $0x580] ss:$8 sps:$4 sm:$0xff]  }
  0x88   :  { %1994 = vmatprep.subr.bf16.mxu0 %v2727_v22  ;;  %2034 = vmatpush1.bf16.msra.mxu1 %v2722_v24  ;;  %v3613_v22 = vld [vmem:[%s3932_s0 + $0x38] sm:$0xff]  ;;  %v2220_v24 = vcombine.high %v3600_v16, %v3600_v16 }
  0x89   :  { %2035 = vmatprep.subr.bf16.mxu1 %v2730_v25  ;;  %v2821_v25 = vld [vmem:[%s3931_s1 + $0x664] ss:$8 sps:$4 sm:$0xff]  }
  0x8b   :  { %1995 = vmatpush1.bf16.msra.mxu0 %v2725_v26  ;;  %v2816_v26 = vld [vmem:[%s3931_s1 + $0x770] ss:$8 sps:$4 sm:$0xff]  }
  0x8c   :  { %1996 = vmatprep.subr.bf16.mxu0 %v2733_v27  ;;  %2036 = vmatpush1.bf16.msra.mxu1 %v2728_v28  ;;  %v2222_v27 = vcombine.high %v3613_v22, %v3613_v22  ;;  %v2824_v28 = vld [vmem:[%s3931_s1 + $0x764] ss:$8 sps:$4 sm:$0xff]  }
  0x8d   :  { %2037 = vmatprep.subr.bf16.mxu1 %v2736_v29  ;;  %v2827_v29 = vld [vmem:[%s3931_s1 + $0x654] ss:$8 sps:$4 sm:$0xff]  }
  0x8f   :  { %1997 = vmatpush1.bf16.msra.mxu0 %v2731_v30  ;;  %v2822_v30 = vld [vmem:[%s3931_s1 + $0x760] ss:$8 sps:$4 sm:$0xff]  }
  0x90   :  { %1998 = vmatprep.subr.bf16.mxu0 %v2739_v31  ;;  %2038 = vmatpush1.bf16.msra.mxu1 %v2734_v32  ;;  %v2830_v31 = vld [vmem:[%s3931_s1 + $0x754] ss:$8 sps:$4 sm:$0xff]   ;;  %v2825_v32 = vld [vmem:[%s3931_s1 + $0x650] ss:$8 sps:$4 sm:$0xff]  }
  0x91   :  { %2039 = vmatprep.subr.bf16.mxu1 %v2742_v33  ;;  %v2833_v33 = vld [vmem:[%s3931_s1 + $0x644] ss:$8 sps:$4 sm:$0xff]  }
  0x93   :  { %1999 = vmatpush1.bf16.msra.mxu0 %v2737_v34  ;;  %v2828_v34 = vld [vmem:[%s3931_s1 + $0x750] ss:$8 sps:$4 sm:$0xff]  }
  0x94   :  { %2000 = vmatprep.subr.bf16.mxu0 %v2745_v35  ;;  %2040 = vmatpush1.bf16.msra.mxu1 %v2740_v36  ;;  %v2836_v35 = vld [vmem:[%s3931_s1 + $0x744] ss:$8 sps:$4 sm:$0xff]   ;;  %v2831_v36 = vld [vmem:[%s3931_s1 + $0x640] ss:$8 sps:$4 sm:$0xff]  }
  0x95   :  { %2041 = vmatprep.subr.bf16.mxu1 %v2748_v37  ;;  %v2839_v37 = vld [vmem:[%s3931_s1 + $0x634] ss:$8 sps:$4 sm:$0xff]  }
  0x97   :  { %2001 = vmatpush1.bf16.msra.mxu0 %v2743_v38  ;;  %v2834_v38 = vld [vmem:[%s3931_s1 + $0x740] ss:$8 sps:$4 sm:$0xff]  }
  0x98   :  { %2002 = vmatprep.subr.bf16.mxu0 %v2751_v39  ;;  %2042 = vmatpush1.bf16.msra.mxu1 %v2746_v40  ;;  %v2842_v39 = vld [vmem:[%s3931_s1 + $0x734] ss:$8 sps:$4 sm:$0xff]   ;;  %v2837_v40 = vld [vmem:[%s3931_s1 + $0x630] ss:$8 sps:$4 sm:$0xff]  }
  0x99   :  { %2043 = vmatprep.subr.bf16.mxu1 %v2754_v41  ;;  %v2845_v41 = vld [vmem:[%s3931_s1 + $0x624] ss:$8 sps:$4 sm:$0xff]  }
  0x9b   :  { %2003 = vmatpush1.bf16.msra.mxu0 %v2749_v42  ;;  %v2840_v42 = vld [vmem:[%s3931_s1 + $0x730] ss:$8 sps:$4 sm:$0xff]  }
  0x9c   :  { %2004 = vmatprep.subr.bf16.mxu0 %v2757_v43  ;;  %2044 = vmatpush1.bf16.msra.mxu1 %v2752_v44  ;;  %v2848_v43 = vld [vmem:[%s3931_s1 + $0x724] ss:$8 sps:$4 sm:$0xff]   ;;  %v2843_v44 = vld [vmem:[%s3931_s1 + $0x620] ss:$8 sps:$4 sm:$0xff]  }
  0x9d   :  { %2045 = vmatprep.subr.bf16.mxu1 %v2760_v45  ;;  %v2851_v45 = vld [vmem:[%s3931_s1 + $0x614] ss:$8 sps:$4 sm:$0xff]  }
  0x9f   :  { %2005 = vmatpush1.bf16.msra.mxu0 %v2755_v46  ;;  %v2846_v46 = vld [vmem:[%s3931_s1 + $0x720] ss:$8 sps:$4 sm:$0xff]  }
  0xa0   :  { %2006 = vmatprep.subr.bf16.mxu0 %v2763_v47  ;;  %2046 = vmatpush1.bf16.msra.mxu1 %v2758_v48  ;;  %v2854_v47 = vld [vmem:[%s3931_s1 + $0x714] ss:$8 sps:$4 sm:$0xff]   ;;  %v2849_v48 = vld [vmem:[%s3931_s1 + $0x610] ss:$8 sps:$4 sm:$0xff]  }
  0xa1   :  { %2047 = vmatprep.subr.bf16.mxu1 %v2766_v49  ;;  %v2857_v49 = vld [vmem:[%s3931_s1 + $0x604] ss:$8 sps:$4 sm:$0xff]  }
  0xa3   :  { %2007 = vmatpush2.bf16.msra.mxu0 %v2761_v50  ;;  %v2852_v50 = vld [vmem:[%s3931_s1 + $0x710] ss:$8 sps:$4 sm:$0xff]  }
  0xa4   :  { %2008 = vmatprep.subr.bf16.mxu0 %v2769_v51  ;;  %2048 = vmatpush2.bf16.msra.mxu1 %v2764_v52  ;;  %v2860_v51 = vld [vmem:[%s3931_s1 + $0x704] ss:$8 sps:$4 sm:$0xff]   ;;  %v2855_v52 = vld [vmem:[%s3931_s1 + $0x600] ss:$8 sps:$4 sm:$0xff]  }
  0xa5   :  { %2049 = vmatprep.subr.bf16.mxu1 %v2772_v53  ;;  %v2863_v53 = vld [vmem:[%s3931_s1 + $0x6f4] ss:$8 sps:$4 sm:$0xff]  }
  0xa7   :  { %2009 = vmatpush2.bf16.msra.mxu0 %v2767_v54  ;;  %v2858_v54 = vld [vmem:[%s3931_s1 + $0x700] ss:$8 sps:$4 sm:$0xff]  }
  0xa8   :  { %2010 = vmatprep.subr.bf16.mxu0 %v2775_v55  ;;  %2050 = vmatpush2.bf16.msra.mxu1 %v2770_v56  ;;  %v2866_v55 = vld [vmem:[%s3931_s1 + $0x7f4] ss:$8 sps:$4 sm:$0xff]   ;;  %v2861_v56 = vld [vmem:[%s3931_s1 + $0x6f0] ss:$8 sps:$4 sm:$0xff]  }
  0xa9   :  { %2051 = vmatprep.subr.bf16.mxu1 %v2778_v57  ;;  %v2869_v57 = vld [vmem:[%s3931_s1 + $0x6e4] ss:$8 sps:$4 sm:$0xff]  }
  0xab   :  { %2011 = vmatpush2.bf16.msra.mxu0 %v2773_v58  ;;  %v2864_v58 = vld [vmem:[%s3931_s1 + $0x7f0] ss:$8 sps:$4 sm:$0xff]  }
  0xac   :  { %2012 = vmatprep.subr.bf16.mxu0 %v2781_v59  ;;  %2052 = vmatpush2.bf16.msra.mxu1 %v2776_v60  ;;  %v2872_v59 = vld [vmem:[%s3931_s1 + $0x7e4] ss:$8 sps:$4 sm:$0xff]   ;;  %v2867_v60 = vld [vmem:[%s3931_s1 + $0x6e0] ss:$8 sps:$4 sm:$0xff]  }
  0xad   :  { %2053 = vmatprep.subr.bf16.mxu1 %v2784_v61  ;;  %v2875_v61 = vld [vmem:[%s3931_s1 + $0x6d4] ss:$8 sps:$4 sm:$0xff]  }
  0xaf   :  { %2013 = vmatpush2.bf16.msra.mxu0 %v2779_v62  ;;  %v2870_v62 = vld [vmem:[%s3931_s1 + $0x7e0] ss:$8 sps:$4 sm:$0xff]  }
  0xb0   :  { %2014 = vmatprep.subr.bf16.mxu0 %v2787_v63  ;;  %2054 = vmatpush2.bf16.msra.mxu1 %v2782_v0  ;;  %v2878_v63 = vld [vmem:[%s3931_s1 + $0x7d4] ss:$8 sps:$4 sm:$0xff]   ;;  %v2873_v0 = vld [vmem:[%s3931_s1 + $0x6d0] ss:$8 sps:$4 sm:$0xff]  }
  0xb1   :  { %2055 = vmatprep.subr.bf16.mxu1 %v2790_v1  ;;  %v2881_v1 = vld [vmem:[%s3931_s1 + $0x6c4] ss:$8 sps:$4 sm:$0xff]  }
  0xb3   :  { %2015 = vmatpush2.bf16.msra.mxu0 %v2785_v2  ;;  %v2876_v2 = vld [vmem:[%s3931_s1 + $0x7d0] ss:$8 sps:$4 sm:$0xff]  }
  0xb4   :  { %2016 = vmatprep.subr.bf16.mxu0 %v2793_v3  ;;  %2056 = vmatpush2.bf16.msra.mxu1 %v2788_v4  ;;  %v2884_v3 = vld [vmem:[%s3931_s1 + $0x7c4] ss:$8 sps:$4 sm:$0xff]   ;;  %v2879_v4 = vld [vmem:[%s3931_s1 + $0x6c0] ss:$8 sps:$4 sm:$0xff]  }
  0xb5   :  { %2057 = vmatprep.subr.bf16.mxu1 %v2796_v5  ;;  %v2887_v5 = vld [vmem:[%s3931_s1 + $0x6b4] ss:$8 sps:$4 sm:$0xff]  }
  0xb7   :  { %2017 = vmatpush2.bf16.msra.mxu0 %v2791_v6  ;;  %v2882_v6 = vld [vmem:[%s3931_s1 + $0x7c0] ss:$8 sps:$4 sm:$0xff]  }
  0xb8   :  { %2018 = vmatprep.subr.bf16.mxu0 %v2799_v7  ;;  %2058 = vmatpush2.bf16.msra.mxu1 %v2794_v8  ;;  %v2890_v7 = vld [vmem:[%s3931_s1 + $0x7b4] ss:$8 sps:$4 sm:$0xff]   ;;  %v2885_v8 = vld [vmem:[%s3931_s1 + $0x6b0] ss:$8 sps:$4 sm:$0xff]  }
  0xb9   :  { %2059 = vmatprep.subr.bf16.mxu1 %v2802_v9  ;;  %v2893_v9 = vld [vmem:[%s3931_s1 + $0x6a4] ss:$8 sps:$4 sm:$0xff]  }
  0xbb   :  { %2019 = vmatpush2.bf16.msra.mxu0 %v2797_v10  ;;  %v2888_v10 = vld [vmem:[%s3931_s1 + $0x7b0] ss:$8 sps:$4 sm:$0xff]  }
  0xbc   :  { %2020 = vmatprep.subr.bf16.mxu0 %v2805_v11  ;;  %2060 = vmatpush2.bf16.msra.mxu1 %v2800_v12  ;;  %v2896_v11 = vld [vmem:[%s3931_s1 + $0x7a4] ss:$8 sps:$4 sm:$0xff]   ;;  %v2891_v12 = vld [vmem:[%s3931_s1 + $0x6a0] ss:$8 sps:$4 sm:$0xff]  }
  0xbd   :  { %2061 = vmatprep.subr.bf16.mxu1 %v2808_v14  ;;  %v2899_v14 = vld [vmem:[%s3931_s1 + $0x694] ss:$8 sps:$4 sm:$0xff]  }
  0xbf   :  { %2021 = vmatpush2.bf16.msra.mxu0 %v2803_v13  ;;  %v313_v13 = vlaneseq }
  0xc0   :  { %2072 = vmatprep.subr.bf16.mxu0 %v2813_v15  ;;  %2062 = vmatpush2.bf16.msra.mxu1 %v2806_v18  ;;  %v2894_v15 = vld [vmem:[%s3931_s1 + $0x7a0] ss:$8 sps:$4 sm:$0xff]   ;;  %v2902_v18 = vld [vmem:[%s3931_s1 + $0x794] ss:$8 sps:$4 sm:$0xff]  }
  0xc1   :  { %2113 = vmatprep.subr.bf16.mxu1 %v2818_v20  ;;  %v314_v20 = vshrl.u32 %v313_v13, 7 }
  0xc2   :  { %2023 = vmatmul.mubr.bf16.vlgmr.msra.gmra.mxu0 %v2215_v19  ;;  %v2897_v19 = vld [vmem:[%s3931_s1 + $0x690] ss:$8 sps:$4 sm:$0xff]  }
  0xc3   :  { %2073 = vmatpush1.bf16.msra.mxu0 %v2811_v23  ;;  %2104 = vmatprep.mubr.bf16.mxu0 %v2220_v24  ;;  %v2905_v23 = vld [vmem:[%s3931_s1 + $0x684] ss:$8 sps:$4 sm:$0xff]   ;;  %v2900_v24 = vld [vmem:[%s3931_s1 + $0x790] ss:$8 sps:$4 sm:$0xff]  }
  0xc4   :  { %2064 = vmatmul.mubr.bf16.vlgmr.msra.gmra.mxu1 %v2217_v17  ;;  %2074 = vmatprep.subr.bf16.mxu0 %v2821_v25  ;;  %v2908_v17 = vld [vmem:[%s3931_s1 + $0x784] ss:$8 sps:$4 sm:$0xff]   ;;  %v2903_v25 = vld [vmem:[%s3931_s1 + $0x680] ss:$8 sps:$4 sm:$0xff]  }
  0xc5   :  { %2114 = vmatpush1.bf16.msra.mxu1 %v2816_v26  ;;  %2145 = vmatprep.mubr.bf16.mxu1 %v2222_v27  ;;  %v315_v26 = vsub.s32 0, %v314_v20  ;;  %v311_v27 = vld [vmem:[%s3933_s2] sm:$0x3] }
  0xc6   :  { %2115 = vmatprep.subr.bf16.mxu1 %v2824_v28  ;;  %v2913_v28 = vld [vmem:[%s3931_s1 + $0x874] ss:$8 sps:$4 sm:$0xff]  }
  0xc7   :  { %2075 = vmatpush1.bf16.msra.mxu0 %v2819_v21  ;;  %v3813_v21 = vld [vmem:[%s3932_s0 + $0x40] sm:$0xff] }
  0xc8   :  { %2076 = vmatprep.subr.bf16.mxu0 %v2827_v29  ;;  %v2906_v29 = vld [vmem:[%s3931_s1 + $0x780] ss:$8 sps:$4 sm:$0xff]   ;;  %v2223_v13 = vcombine.low %v3813_v21, %v3813_v21 }
  0xc9   :  { %2116 = vmatpush1.bf16.msra.mxu1 %v2822_v30  ;;  %v319_v30 = vsub.s32 1, %v314_v20 }
  0xca   :  { %2117 = vmatprep.subr.bf16.mxu1 %v2830_v31  ;;  %v2219_v31 = vcombine.low %v3600_v16, %v3600_v16 }
  0xcb   :  { %2077 = vmatpush1.bf16.msra.mxu0 %v2825_v32  ;;  %v316_v32 = vrot.slane %v311_v27, %v315_v26 }
  0xcc   :  { %2078 = vmatprep.subr.bf16.mxu0 %v2833_v33  ;;  %v2911_v33 = vld [vmem:[%s3931_s1 + $0x870] ss:$8 sps:$4 sm:$0xff]  }
  0xcd   :  { %2118 = vmatpush1.bf16.msra.mxu1 %v2828_v34  ;;  %v2224_v34 = vcombine.high %v3813_v21, %v3813_v21 }
  0xce   :  { %2119 = vmatprep.subr.bf16.mxu1 %v2836_v35  ;;  %v2221_v35 = vcombine.low %v3613_v22, %v3613_v22  ;;  %v2921_v22 = vld [vmem:[%s3931_s1 + $0x854] ss:$8 sps:$4 sm:$0xff]  }
  0xcf   :  { %2079 = vmatpush1.bf16.msra.mxu0 %v2831_v36  ;;  %v2918_v36 = vld [vmem:[%s3931_s1 + $0x864] ss:$8 sps:$4 sm:$0xff]  }
  0xd0   :  { %2080 = vmatprep.subr.bf16.mxu0 %v2839_v37  ;;  %v320_v37 = vrot.slane %v311_v27, %v319_v30 }
  0xd1   :  { %2120 = vmatpush1.bf16.msra.mxu1 %v2834_v38 }
  0xd2   :  { %2121 = vmatprep.subr.bf16.mxu1 %v2842_v39  ;;  %v2916_v39 = vld [vmem:[%s3931_s1 + $0x860] ss:$8 sps:$4 sm:$0xff]  }
  0xd3   :  { %2081 = vmatpush1.bf16.msra.mxu0 %v2837_v40 }
  0xd4   :  { %2082 = vmatprep.subr.bf16.mxu0 %v2845_v41 }
  0xd5   :  { %2122 = vmatpush1.bf16.msra.mxu1 %v2840_v42 }
  0xd6   :  { %2123 = vmatprep.subr.bf16.mxu1 %v2848_v43 }
  0xd7   :  { %2083 = vmatpush1.bf16.msra.mxu0 %v2843_v44 }
  0xd8   :  { %2084 = vmatprep.subr.bf16.mxu0 %v2851_v45 }
  0xd9   :  { %2124 = vmatpush1.bf16.msra.mxu1 %v2846_v46 }
  0xda   :  { %2125 = vmatprep.subr.bf16.mxu1 %v2854_v47  ;;  %v2919_v47 = vld [vmem:[%s3931_s1 + $0x850] ss:$8 sps:$4 sm:$0xff]  }
  0xdb   :  { %2085 = vmatpush1.bf16.msra.mxu0 %v2849_v48 }
  0xdc   :  { %2086 = vmatprep.subr.bf16.mxu0 %v2857_v49  ;;  %v2924_v49 = vld [vmem:[%s3931_s1 + $0x844] ss:$8 sps:$4 sm:$0xff]  }
  0xdd   :  { %2126 = vmatpush1.bf16.msra.mxu1 %v2852_v50 }
  0xde   :  { %2127 = vmatprep.subr.bf16.mxu1 %v2860_v51 }
  0xdf   :  { %2087 = vmatpush1.bf16.msra.mxu0 %v2855_v52  ;;  %v2922_v52 = vld [vmem:[%s3931_s1 + $0x840] ss:$8 sps:$4 sm:$0xff]  }
  0xe0   :  { %2088 = vmatprep.subr.bf16.mxu0 %v2863_v53  ;;  %v2927_v53 = vld [vmem:[%s3931_s1 + $0x834] ss:$8 sps:$4 sm:$0xff]  }
  0xe1   :  { %2128 = vmatpush1.bf16.msra.mxu1 %v2858_v54  ;;  %v2925_v54 = vld [vmem:[%s3931_s1 + $0x830] ss:$8 sps:$4 sm:$0xff]  }
  0xe2   :  { %2129 = vmatprep.subr.bf16.mxu1 %v2866_v55  ;;  %v2930_v55 = vld [vmem:[%s3931_s1 + $0x824] ss:$8 sps:$4 sm:$0xff]  }
  0xe3   :  { %2089 = vmatpush2.bf16.msra.mxu0 %v2861_v56  ;;  %v2928_v56 = vld [vmem:[%s3931_s1 + $0x820] ss:$8 sps:$4 sm:$0xff]  }
  0xe4   :  { %2090 = vmatprep.subr.bf16.mxu0 %v2869_v57  ;;  %v2933_v57 = vld [vmem:[%s3931_s1 + $0x814] ss:$8 sps:$4 sm:$0xff]  }
  0xe5   :  { %2130 = vmatpush2.bf16.msra.mxu1 %v2864_v58  ;;  %v2931_v58 = vld [vmem:[%s3931_s1 + $0x810] ss:$8 sps:$4 sm:$0xff]  }
  0xe6   :  { %2131 = vmatprep.subr.bf16.mxu1 %v2872_v59  ;;  %v2936_v59 = vld [vmem:[%s3931_s1 + $0x804] ss:$8 sps:$4 sm:$0xff]  }
  0xe7   :  { %2091 = vmatpush2.bf16.msra.mxu0 %v2867_v60  ;;  %v2934_v60 = vld [vmem:[%s3931_s1 + $0x800] ss:$8 sps:$4 sm:$0xff]  }
  0xe8   :  { %2092 = vmatprep.subr.bf16.mxu0 %v2875_v61  ;;  %v2939_v61 = vld [vmem:[%s3931_s1 + $0x8f4] ss:$8 sps:$4 sm:$0xff]  }
  0xe9   :  { %2132 = vmatpush2.bf16.msra.mxu1 %v2870_v62  ;;  %v2937_v62 = vld [vmem:[%s3931_s1 + $0x8f0] ss:$8 sps:$4 sm:$0xff]  }
  0xea   :  { %2133 = vmatprep.subr.bf16.mxu1 %v2878_v63  ;;  %v2942_v63 = vld [vmem:[%s3931_s1 + $0x8e4] ss:$8 sps:$4 sm:$0xff]  }
  0xeb   :  { %2093 = vmatpush2.bf16.msra.mxu0 %v2873_v0  ;;  %v2940_v0 = vld [vmem:[%s3931_s1 + $0x8e0] ss:$8 sps:$4 sm:$0xff]  }
  0xec   :  { %2094 = vmatprep.subr.bf16.mxu0 %v2881_v1  ;;  %v2945_v1 = vld [vmem:[%s3931_s1 + $0x8d4] ss:$8 sps:$4 sm:$0xff]  }
  0xed   :  { %2134 = vmatpush2.bf16.msra.mxu1 %v2876_v2  ;;  %v2943_v2 = vld [vmem:[%s3931_s1 + $0x8d0] ss:$8 sps:$4 sm:$0xff]  }
  0xee   :  { %2135 = vmatprep.subr.bf16.mxu1 %v2884_v3  ;;  %v2948_v3 = vld [vmem:[%s3931_s1 + $0x8c4] ss:$8 sps:$4 sm:$0xff]  }
  0xef   :  { %2095 = vmatpush2.bf16.msra.mxu0 %v2879_v4  ;;  %v2946_v4 = vld [vmem:[%s3931_s1 + $0x8c0] ss:$8 sps:$4 sm:$0xff]  }
  0xf0   :  { %2096 = vmatprep.subr.bf16.mxu0 %v2887_v5  ;;  %v2951_v5 = vld [vmem:[%s3931_s1 + $0x8b4] ss:$8 sps:$4 sm:$0xff]  }
  0xf1   :  { %2136 = vmatpush2.bf16.msra.mxu1 %v2882_v6  ;;  %v2949_v6 = vld [vmem:[%s3931_s1 + $0x8b0] ss:$8 sps:$4 sm:$0xff]  }
  0xf2   :  { %2137 = vmatprep.subr.bf16.mxu1 %v2890_v7  ;;  %v2954_v7 = vld [vmem:[%s3931_s1 + $0x8a4] ss:$8 sps:$4 sm:$0xff]  }
  0xf3   :  { %2097 = vmatpush2.bf16.msra.mxu0 %v2885_v8  ;;  %v2952_v8 = vld [vmem:[%s3931_s1 + $0x8a0] ss:$8 sps:$4 sm:$0xff]  }
  0xf4   :  { %2098 = vmatprep.subr.bf16.mxu0 %v2893_v9  ;;  %v2957_v9 = vld [vmem:[%s3931_s1 + $0x894] ss:$8 sps:$4 sm:$0xff]  }
  0xf5   :  { %2138 = vmatpush2.bf16.msra.mxu1 %v2888_v10  ;;  %v2955_v10 = vld [vmem:[%s3931_s1 + $0x890] ss:$8 sps:$4 sm:$0xff]  }
  0xf6   :  { %2139 = vmatprep.subr.bf16.mxu1 %v2896_v11  ;;  %v2960_v11 = vld [vmem:[%s3931_s1 + $0x884] ss:$8 sps:$4 sm:$0xff]  }
  0xf7   :  { %2099 = vmatpush2.bf16.msra.mxu0 %v2891_v12  ;;  %v2958_v12 = vld [vmem:[%s3931_s1 + $0x880] ss:$8 sps:$4 sm:$0xff]  }
  0xf8   :  { %2100 = vmatprep.subr.bf16.mxu0 %v2899_v14 }
  0xf9   :  { %2140 = vmatpush2.bf16.msra.mxu1 %v2894_v15 }
  0xfa   :  { %2141 = vmatprep.subr.bf16.mxu1 %v2902_v18 }
  0xfb   :  { %2101 = vmatpush2.bf16.msra.mxu0 %v2897_v19 }
  0xfc   :  { %2102 = vmatprep.subr.bf16.mxu0 %v2905_v23 }
  0xfd   :  { %2142 = vmatpush2.bf16.msra.mxu1 %v2900_v24 }
  0xfe   :  { %2143 = vmatprep.subr.bf16.mxu1 %v2908_v17 }
  0xff   :  { %2103 = vmatpush2.bf16.msra.mxu0 %v2903_v25 }
 0x100   :  { %2154 = vmatprep.subr.bf16.mxu0 %v2913_v28 }
 0x101   :  { %2144 = vmatpush2.bf16.msra.mxu1 %v2906_v29 }
 0x102   :  { %v1860_v16 = vpop.f32.mrf.mxu0  ;;  %2105 = vmatmul.mubr.bf16.vlgmr.msra.gmra.mxu0 %v2219_v31 }
 0x103   :  { %v1861_v38 = vadd.f32 %v1860_v16, %v316_v32  ;;  %2155 = vmatpush1.bf16.msra.mxu0 %v2911_v33  ;;  %2186 = vmatprep.mubr.bf16.mxu0 %v2224_v34  ;;  %v1901_v41 = vpop.f32.mrf.mxu1 }
 0x104   :  { %v1862_v40 = vpop.f32.mrf.mxu0  ;;  %2146 = vmatmul.mubr.bf16.vlgmr.msra.gmra.mxu1 %v2221_v35  ;;  %2156 = vmatprep.subr.bf16.mxu0 %v2918_v36 }
 0x105   :  { %v1863_v42 = vadd.f32 %v1862_v40, %v320_v37  ;;  %v3836_v43 = vadd.f32 %v1901_v41, %v1861_v38  ;;  %v1903_v45 = vpop.f32.mrf.mxu1 }
 0x106   :  { %v1864_v44 = vpop.f32.mrf.mxu0 }
 0x107   :  { %v3838_v46 = vadd.f32 %v1903_v45, %v1863_v42  ;;  %2157 = vmatpush1.bf16.msra.mxu0 %v2916_v39  ;;  %v1905_v50 = vpop.f32.mrf.mxu1 }
 0x108   :  { %v1865_v48 = vpop.f32.mrf.mxu0  ;;  %2158 = vmatprep.subr.bf16.mxu0 %v2921_v22 }
 0x109   :  { %v1906_v51 = vpop.f32.mrf.mxu1 }
 0x10b   :  { %2159 = vmatpush1.bf16.msra.mxu0 %v2919_v47 }
 0x10c   :  { %2160 = vmatprep.subr.bf16.mxu0 %v2924_v49 }
 0x10f   :  { %2161 = vmatpush1.bf16.msra.mxu0 %v2922_v52 }
 0x110   :  { %2162 = vmatprep.subr.bf16.mxu0 %v2927_v53 }
 0x113   :  { %2163 = vmatpush1.bf16.msra.mxu0 %v2925_v54 }
 0x114   :  { %2164 = vmatprep.subr.bf16.mxu0 %v2930_v55 }
 0x117   :  { %2165 = vmatpush1.bf16.msra.mxu0 %v2928_v56 }
 0x118   :  { %2166 = vmatprep.subr.bf16.mxu0 %v2933_v57 }
 0x11b   :  { %2167 = vmatpush1.bf16.msra.mxu0 %v2931_v58 }
 0x11c   :  { %2168 = vmatprep.subr.bf16.mxu0 %v2936_v59 }
 0x11f   :  { %2169 = vmatpush1.bf16.msra.mxu0 %v2934_v60 }
 0x120   :  { %2170 = vmatprep.subr.bf16.mxu0 %v2939_v61 }
 0x123   :  { %2171 = vmatpush2.bf16.msra.mxu0 %v2937_v62 }
 0x124   :  { %2172 = vmatprep.subr.bf16.mxu0 %v2942_v63 }
 0x127   :  { %2173 = vmatpush2.bf16.msra.mxu0 %v2940_v0 }
 0x128   :  { %2174 = vmatprep.subr.bf16.mxu0 %v2945_v1 }
 0x12b   :  { %2175 = vmatpush2.bf16.msra.mxu0 %v2943_v2 }
 0x12c   :  { %2176 = vmatprep.subr.bf16.mxu0 %v2948_v3 }
 0x12f   :  { %2177 = vmatpush2.bf16.msra.mxu0 %v2946_v4 }
 0x130   :  { %2178 = vmatprep.subr.bf16.mxu0 %v2951_v5 }
 0x133   :  { %2179 = vmatpush2.bf16.msra.mxu0 %v2949_v6 }
 0x134   :  { %2180 = vmatprep.subr.bf16.mxu0 %v2954_v7 }
 0x137   :  { %2181 = vmatpush2.bf16.msra.mxu0 %v2952_v8 }
 0x138   :  { %2182 = vmatprep.subr.bf16.mxu0 %v2957_v9 }
 0x13b   :  { %2183 = vmatpush2.bf16.msra.mxu0 %v2955_v10 }
 0x13c   :  { %2184 = vmatprep.subr.bf16.mxu0 %v2960_v11 }
 0x13f   :  { %2185 = vmatpush2.bf16.msra.mxu0 %v2958_v12 }
 0x142   :  { %v1942_v14 = vpop.f32.mrf.mxu0  ;;  %2187 = vmatmul.mubr.bf16.vlgmr.msra.gmra.mxu0 %v2223_v13 }
 0x143   :  { %v1943_v15 = vadd.f32 %v1942_v14, %v3836_v43  ;;  %v1983_v19 = vpop.f32.mrf.mxu1 }
 0x144   :  { %v1944_v18 = vpop.f32.mrf.mxu0 }
 0x145   :  { %v1945_v20 = vadd.f32 %v1944_v18, %v3838_v46  ;;  %v1984_v23 = vadd.f32 %v1983_v19, %v1943_v15  ;;  %v1985_v17 = vpop.f32.mrf.mxu1 }
 0x146   :  { %v1946_v24 = vpop.f32.mrf.mxu0 }
 0x147   :  { %v1986_v25 = vadd.f32 %v1985_v17, %v1945_v20  ;;  %v1987_v27 = vpop.f32.mrf.mxu1 }
 0x148   :  { %v1947_v26 = vpop.f32.mrf.mxu0 }
 0x149   :  { %v1988_v28 = vpop.f32.mrf.mxu1 }
 0x182   :  { %v2024_v29 = vpop.f32.mrf.mxu0 }
 0x183   :  { %v2025_v30 = vadd.f32 %v2024_v29, %v1984_v23 }
 0x184   :  { %v2026_v31 = vpop.f32.mrf.mxu0  ;;  %v2065_v21 = vpop.f32.mrf.mxu1 }
 0x185   :  { %v2027_v32 = vadd.f32 %v2026_v31, %v1986_v25  ;;  %v2066_v33 = vadd.f32 %v2065_v21, %v2025_v30 }
 0x186   :  { %v2028_v34 = vpop.f32.mrf.mxu0  ;;  %v2067_v35 = vpop.f32.mrf.mxu1 }
 0x187   :  { %v2068_v36 = vadd.f32 %v2067_v35, %v2027_v32 }
 0x188   :  { %v2029_v37 = vpop.f32.mrf.mxu0  ;;  %v2069_v16 = vpop.f32.mrf.mxu1 }
 0x18a   :  { %v2070_v38 = vpop.f32.mrf.mxu1 }
 0x1c2   :  { %v2106_v39 = vpop.f32.mrf.mxu0 }
 0x1c3   :  { %v2107_v46 = vadd.f32 %v2106_v39, %v2066_v33 }
 0x1c4   :  { %v2108_v40 = vpop.f32.mrf.mxu0  ;;  %v2147_v41 = vpop.f32.mrf.mxu1 }
 0x1c5   :  { %v2109_v47 = vadd.f32 %v2108_v40, %v2068_v36  ;;  %v2148_v48 = vadd.f32 %v2147_v41, %v2107_v46 }
 0x1c6   :  { %v2110_v22 = vpop.f32.mrf.mxu0  ;;  %v2149_v42 = vpop.f32.mrf.mxu1 }
 0x1c7   :  { %v2150_v50 = vadd.f32 %v2149_v42, %v2109_v47 }
 0x1c8   :  { %v2111_v43 = vpop.f32.mrf.mxu0  ;;  %v2151_v44 = vpop.f32.mrf.mxu1 }
 0x1ca   :  { %v2152_v45 = vpop.f32.mrf.mxu1 }
 0x202   :  { %v2188_v49 = vpop.f32.mrf.mxu0 }
 0x203   :  { %v2189_v51 = vadd.f32 %v2188_v49, %v2148_v48 }
 0x204   :  { %v2190_v52 = vpop.f32.mrf.mxu0 }
 0x205   :  { %vm2195_vm0 = vcmp.ge.f32.partialorder %v2189_v51, 0.0  ;;  %v2197_v53 = vmul.f32 0.01, %v2189_v51  ;;  %v2191_v54 = vadd.f32 %v2190_v52, %v2150_v50 }
 0x206   :  { %v2192_v55 = vpop.f32.mrf.mxu0 }
 0x207   :  { %v2199_v56 = vsel %vm2195_vm0, %v2189_v51, %v2197_v53  ;;  %vm2196_vm1 = vcmp.ge.f32.partialorder %v2191_v54, 0.0  ;;  %v2198_v57 = vmul.f32 0.01, %v2191_v54 }
 0x208   :  { %2201 = vst [vmem:[%s3934_s3] sm:$0xff] %v2199_v56  ;;  %v2193_v58 = vpop.f32.mrf.mxu0 }
 0x209   :  { %v2200_v59 = vsel %vm2196_vm1, %v2191_v54, %v2198_v57 }
 0x20a   :  { %2202 = vst [vmem:[%s3934_s3 + $0x8] sm:$0xff] %v2200_v59 }

</bundles_post_ra>
